<compile_context>
chip_gen: v7x
topology: tpu7x:2x2x1
jax: 0.10.0
libtpu: 0.0.40
codegen_flags: <defaults>
</compile_context>

<pallas_src>
import jax
import jax.numpy as jnp
from jax import lax
from jax.experimental import pallas as pl
from jax.experimental.pallas import tpu as pltpu


def _round_up(x, m):
    return ((x + m - 1) // m) * m


def _nbytes(shape, dtype):
    n = 1
    for d in shape:
        n *= int(d)
    return n * jnp.dtype(dtype).itemsize


# --------------------------- fused decoder kernel ----------------------------
def _make_decoder_kernel(num_layers, hidden, embed, tmax, btile, vpad, time_unroll):
    H, E, T, BT, Vp = hidden, embed, tmax, btile, vpad
    f32, bf16 = jnp.float32, jnp.bfloat16

    def kernel(*refs):
        vm_ref = refs[0]                           # (T, BT, 1)   f32 valid mask
        feat_ref = refs[1]                         # (BT, E+256)  bf16 raw features
        emb_ref = refs[2]                          # (T-1, BT, E) bf16 time-major embeddings
        w2_ref = refs[3]                           # (E+256, 256) bf16 linear2 weight (K, N)
        b2_ref = refs[4]                           # (1, 256)     f32
        w_refs = refs[5:5 + 3 * num_layers]        # per layer: wih_t(bf16), whh_t(bf16), bias(f32)
        wout_ref = refs[5 + 3 * num_layers]        # (H, Vp) bf16  final linear, lane-padded
        bout_ref = refs[6 + 3 * num_layers]        # (1, Vp) f32
        out_ref = refs[7 + 3 * num_layers]         # (T, BT, Vp) f32
        xg_sc, hs_sc, h_sc, c_sc = refs[-4:]       # scratch

        for layer in range(num_layers):
            wih_ref = w_refs[3 * layer + 0]        # (in_dim, 4H) bf16
            whh_ref = w_refs[3 * layer + 1]        # (H, 4H)      bf16
            b_ref = w_refs[3 * layer + 2]          # (1, 4H)      f32 (= b_ih + b_hh)

            # ---- hoisted input projection: all timesteps in one matmul ------
            if layer == 0:
                feats = feat_ref[...]                                     # (BT, E+256) bf16
                # t == 0: the raw feature vector is the LSTM input.
                xg0 = (jnp.dot(feats, wih_ref[...],
                               preferred_element_type=f32) + b_ref[...])
                xg_sc[0] = xg0.astype(bf16)
                # t >= 1: input is concat(features1, embedding[t-1]); split W_ih
                # by rows so the concat never has to be materialized.
                feat1 = (jnp.dot(feats, w2_ref[...],
                                 preferred_element_type=f32)
                         + b2_ref[...]).astype(bf16)                      # (BT, 256)
                fgate = (jnp.dot(feat1, wih_ref[0:256, :],
                                 preferred_element_type=f32) + b_ref[...])
                eg = jnp.dot(
                    emb_ref[...].reshape((T - 1) * BT, E),
                    wih_ref[256:256 + E, :],
                    preferred_element_type=f32,
                ).reshape(T - 1, BT, 4 * H)
                xg_sc[1:] = (fgate[None, :, :] + eg).astype(bf16)
            else:
                xg = (jnp.dot(hs_sc[...].reshape(T * BT, H), wih_ref[...],
                              preferred_element_type=f32) + b_ref[...])
                xg_sc[...] = xg.reshape(T, BT, 4 * H).astype(bf16)

            # ---- recurrence: only h @ W_hh left inside the time loop --------
            h_sc[...] = jnp.zeros_like(h_sc)
            c_sc[...] = jnp.zeros_like(c_sc)

            def step(t, carry, whh_ref=whh_ref):
                h = h_sc[...]                                             # bf16 MXU operand
                c = c_sc[...]                                             # f32
                gates = xg_sc[t].astype(f32) + jnp.dot(
                    h, whh_ref[...], preferred_element_type=f32)
                # PyTorch gate order i, f, g, o.  H multiple of 128 -> each slice
                # is a whole-vreg lane chunk.  Gate math stays f32 (v5e-safe).
                i_g = jax.nn.sigmoid(gates[:, 0 * H:1 * H])
                f_g = jax.nn.sigmoid(gates[:, 1 * H:2 * H])
                g_g = jnp.tanh(gates[:, 2 * H:3 * H])
                o_g = jax.nn.sigmoid(gates[:, 3 * H:4 * H])
                c_new = f_g * c + i_g * g_g
                h_new = o_g * jnp.tanh(c_new)
                h_sc[...] = h_new.astype(bf16)
                c_sc[...] = c_new
                hs_sc[t] = h_new.astype(bf16)
                return carry

            lax.fori_loop(0, T, step, 0, unroll=time_unroll)

        # ---- final output linear, fused, lane-dense, masked in the store ----
        out = (jnp.dot(hs_sc[...].reshape(T * BT, H), wout_ref[...],
                       preferred_element_type=f32)
               + bout_ref[...]).reshape(T, BT, Vp)
        # pad_packed_sequence zero-fills hidden states at padded (b, t >= len[b])
        # positions, so those outputs equal linear(0) = bias; fuse that mask here
        # instead of a wrapper-side full-HBM rewrite pass over the largest tensor.
        bias3 = bout_ref[...].reshape(1, 1, Vp)
        out_ref[...] = jnp.where(vm_ref[...] > 0.0, out, bias3)

    return kernel


# --------------------------- parameters & forward ----------------------------
def init_params(key, embed_size, hidden_size, feat_size, num_layers):
    vocab = feat_size * feat_size + 2
    vocab_pad = _round_up(vocab, 128)
    in0 = embed_size + 256
    ks = jax.random.split(key, 6 + 3 * num_layers)

    def rnd(k, shape, scale=0.1, dtype=jnp.float32):
        return (scale * jax.random.normal(k, shape)).astype(dtype)

    linear_w_t = rnd(ks[3], (hidden_size, vocab))     # pre-transposed (K, N)
    linear_b = rnd(ks[4], (vocab,))

    params = {
        # MXU operands stored in bf16 (f32 accumulation in-kernel); biases f32.
        "embed_w": rnd(ks[0], (vocab, embed_size), dtype=jnp.bfloat16),
        "linear2_w_t": rnd(ks[1], (in0, 256), dtype=jnp.bfloat16),
        "linear2_b": rnd(ks[2], (256,)),
        # lane-padded final linear (extra columns zero, sliced away in wrapper).
        "linear_w_t_pad": jnp.pad(
            linear_w_t, ((0, 0), (0, vocab_pad - vocab))).astype(jnp.bfloat16),
        "linear_b_pad": jnp.pad(linear_b, ((0, vocab_pad - vocab),)),
        "hidden": hidden_size,
        "embed": embed_size,
        "vocab": vocab,
        "vocab_pad": vocab_pad,
    }
    lstm = []
    kidx = 5
    for layer in range(num_layers):
        in_dim = in0 if layer == 0 else hidden_size
        wih_t = rnd(ks[kidx], (in_dim, 4 * hidden_size), dtype=jnp.bfloat16); kidx += 1
        whh_t = rnd(ks[kidx], (hidden_size, 4 * hidden_size), dtype=jnp.bfloat16); kidx += 1
        b = rnd(ks[kidx], (4 * hidden_size,)); kidx += 1   # b_ih + b_hh combined
        lstm.append((wih_t, whh_t, b))
    params["lstm"] = lstm
    return params


def decoder_forward(params, features, scanpaths, lengths, *, btile=16):
    """lengths: tuple of Python ints, sorted descending (pack_padded contract)."""
    B, Ts = scanpaths.shape
    H = params["hidden"]
    E = params["embed"]
    V = params["vocab"]
    Vp = params["vocab_pad"]
    num_layers = len(params["lstm"])
    in0 = E + 256

    lengths = tuple(int(l) for l in lengths)
    Tmax = max(lengths)                       # pack_padded: only max(lengths) steps
    assert Tmax >= 2, "decoder expects at least one scanpath step after features"
    BT = btile                                # bf16-tile-aligned (16 sublanes) batch tile
    Bp = _round_up(B, BT)
    n_btiles = Bp // BT

    # Embedding gather + layout plumbing stay in XLA; all heavy math runs inside
    # the single fused Pallas call below.
    emb = jnp.take(params["embed_w"], scanpaths[:, :Tmax - 1], axis=0)   # (B,Tmax-1,E) bf16
    emb_tm = jnp.transpose(emb, (1, 0, 2))                               # (Tmax-1,B,E)
    emb_tm = jnp.pad(emb_tm, ((0, 0), (0, Bp - B), (0, 0)))
    feat_p = jnp.pad(features, ((0, Bp - B), (0, 0))).astype(jnp.bfloat16)

    # Tiny (Tmax, Bp, 1) valid mask; the pad_packed masking itself happens inside
    # the kernel's output store (no extra HBM pass over the (B,T,V) output).
    len_arr = jnp.asarray(lengths, dtype=jnp.int32)
    len_pad = jnp.pad(len_arr, (0, Bp - B))
    vmask = (jnp.arange(Tmax, dtype=jnp.int32)[:, None]
             < len_pad[None, :]).astype(jnp.float32)[:, :, None]

    flat_w = []
    for (wih_t, whh_t, b) in params["lstm"]:
        flat_w += [wih_t, whh_t, b.reshape(1, -1)]
    w2 = params["linear2_w_t"]
    b2 = params["linear2_b"].reshape(1, -1)
    wout = params["linear_w_t_pad"]
    bout = params["linear_b_pad"].reshape(1, -1)

    # --- block specs: activations batch-tiled, weights replicated per tile ---
    in_arrays = [vmask, feat_p, emb_tm, w2, b2] + flat_w + [wout, bout]
    in_blocks = [(Tmax, BT, 1), (BT, in0), (Tmax - 1, BT, E), w2.shape, b2.shape]
    in_specs = [
        pl.BlockSpec((Tmax, BT, 1), lambda bi: (0, bi, 0)),      # valid mask
        pl.BlockSpec((BT, in0), lambda bi: (bi, 0)),             # features
        pl.BlockSpec((Tmax - 1, BT, E), lambda bi: (0, bi, 0)),  # embeddings
        pl.BlockSpec(w2.shape, lambda bi: (0, 0)),               # linear2 W^T
        pl.BlockSpec(b2.shape, lambda bi: (0, 0)),               # linear2 b
    ]
    for w in flat_w:
        in_specs.append(pl.BlockSpec(w.shape, lambda bi: (0, 0)))
        in_blocks.append(w.shape)
    in_specs += [pl.BlockSpec(wout.shape, lambda bi: (0, 0)),
                 pl.BlockSpec(bout.shape, lambda bi: (0, 0))]
    in_blocks += [wout.shape, bout.shape]
    out_spec = pl.BlockSpec((Tmax, BT, Vp), lambda bi: (0, bi, 0))

    scratch = [
        ((Tmax, BT, 4 * H), jnp.bfloat16),   # hoisted x-gate pre-activations
        ((Tmax, BT, H), jnp.bfloat16),       # per-layer hidden sequence
        ((BT, H), jnp.bfloat16),             # h state (MXU operand)
        ((BT, H), jnp.float32),              # c state (f32 accumulation)
    ]
    scratch_shapes = [pltpu.VMEM(s, d) for s, d in scratch]

    # --- VMEM budget from the actual per-tile resident set -------------------
    blk_bytes = sum(_nbytes(shp, a.dtype) for shp, a in zip(in_blocks, in_arrays))
    blk_bytes += _nbytes((Tmax, BT, Vp), jnp.float32)          # output block
    scratch_bytes = sum(_nbytes(s, d) for s, d in scratch)
    vmem_bytes = 2 * blk_bytes + scratch_bytes + (4 << 20)     # x2: double buffering
    vmem_bytes = min(vmem_bytes, 64 << 20)                     # fits v5e/v6e/v7x alike

    # Full unroll only for small T; partial unroll at production T so vreg live
    # ranges (64 vregs) don't spill onto the serial recurrence critical path.
    time_unroll = True if Tmax <= 16 else 4

    kernel = _make_decoder_kernel(num_layers, H, E, Tmax, BT, Vp, time_unroll)
    out_tm = pl.pallas_call(
        kernel,
        out_shape=jax.ShapeDtypeStruct((Tmax, Bp, Vp), jnp.float32),
        grid_spec=pltpu.PrefetchScalarGridSpec(
            num_scalar_prefetch=0,
            grid=(n_btiles,),
            in_specs=in_specs,
            out_specs=out_spec,
            scratch_shapes=scratch_shapes,
        ),
        compiler_params=pltpu.CompilerParams(
            dimension_semantics=("parallel",),   # batch tiles -> megacore on v7x
            vmem_limit_bytes=int(vmem_bytes),
        ),
    )(*in_arrays)                                # (Tmax, Bp, Vp), masking already applied

    # TODO(synk): emit batch-major (Bp, Tmax, Vp) directly from the kernel (grid
    # axis over time with a transposing out index_map) to drop this XLA transpose.
    out_bt = jnp.transpose(out_tm, (1, 0, 2))[:B, :, :V]               # (B, Tmax, V)
    unpacked_outputs = out_bt

    # outputs = linear(hiddens.data): the packed rows are exactly the valid rows
    # of unpacked_outputs in time-major packed order -> gather, no second matmul.
    pidx = [(b, t) for t in range(Tmax) for b in range(B) if lengths[b] > t]
    b_ids = jnp.asarray([p[0] for p in pidx], dtype=jnp.int32)
    t_ids = jnp.asarray([p[1] for p in pidx], dtype=jnp.int32)
    outputs = unpacked_outputs[b_ids, t_ids]                           # (sum(len), V)

    # TODO(synk): for production T on v7x, chunk xg_sc/hs_sc over time (hoisted
    # projections per T-chunk) and/or interleave layers in a wavefront when the
    # batch tile is small (MXU latency-bound regime).
    return outputs, unpacked_outputs, len_arr


# ----------------------------------- main -------------------------------------
if __name__ == "__main__":
    # hidden=128 keeps every gate slice a full 128-lane vreg chunk; batch tile 16
    # matches the bf16 sublane packing.
    embed_size, hidden_size, feat_size, num_layers = 16, 128, 4, 2
    B, Ts = 20, 8
    vocab = feat_size * feat_size + 2

    key = jax.random.PRNGKey(0)
    kf, ks, kp = jax.random.split(key, 3)
    features = (0.1 * jax.random.normal(kf, (B, embed_size + 256))).astype(jnp.float32)
    scanpaths = jax.random.randint(ks, (B, Ts), 0, vocab, dtype=jnp.int32)
    # sorted descending (pack_padded contract); max = Ts+1 because features is prepended.
    lengths = (9, 9, 9, 8, 8, 8, 7, 7, 7, 6, 6, 6, 5, 5, 5, 4, 4, 4, 3, 2)
    assert len(lengths) == B and max(lengths) == Ts + 1

    params = init_params(kp, embed_size, hidden_size, feat_size, num_layers)

    outputs, unpacked_outputs, lens = decoder_forward(params, features, scanpaths, lengths)
    jax.block_until_ready((outputs, unpacked_outputs, lens))

    assert outputs.shape == (sum(lengths), vocab)
    assert unpacked_outputs.shape == (B, Ts + 1, vocab)
    assert lens.shape == (B,)
    print("KERNEL_OK")
</pallas_src>

<mosaic_0001>
module attributes {stable_mosaic.version = 11 : i64} {
  func.func @kernel(%arg0: i32, %arg1: memref<9x16x1xf32, #tpu.memory_space<vmem>>, %arg2: memref<16x272xbf16, #tpu.memory_space<vmem>>, %arg3: memref<8x16x16xbf16, #tpu.memory_space<vmem>>, %arg4: memref<272x256xbf16, #tpu.memory_space<vmem>>, %arg5: memref<1x256xf32, #tpu.memory_space<vmem>>, %arg6: memref<272x512xbf16, #tpu.memory_space<vmem>>, %arg7: memref<128x512xbf16, #tpu.memory_space<vmem>>, %arg8: memref<1x512xf32, #tpu.memory_space<vmem>>, %arg9: memref<128x512xbf16, #tpu.memory_space<vmem>>, %arg10: memref<128x512xbf16, #tpu.memory_space<vmem>>, %arg11: memref<1x512xf32, #tpu.memory_space<vmem>>, %arg12: memref<128x128xbf16, #tpu.memory_space<vmem>>, %arg13: memref<1x128xf32, #tpu.memory_space<vmem>>, %arg14: memref<9x16x128xf32, #tpu.memory_space<vmem>>, %arg15: memref<9x16x512xbf16, #tpu.memory_space<vmem>>, %arg16: memref<9x16x128xbf16, #tpu.memory_space<vmem>>, %arg17: memref<16x128xbf16, #tpu.memory_space<vmem>>, %arg18: memref<16x128xf32, #tpu.memory_space<vmem>>) attributes {dimension_semantics = [#tpu.dimension_semantics<parallel>], iteration_bounds = array<i64: 2>, scalar_prefetch = 0 : i64, scratch_operands = 4 : i64, tpu.core_type = #tpu.core_type<tc>, window_params = [{transform_indices = @transform_0, window_bounds = array<i64: 9, 16, 1>}, {transform_indices = @transform_1, window_bounds = array<i64: 16, 272>}, {transform_indices = @transform_2, window_bounds = array<i64: 8, 16, 16>}, {pipeline_mode = #tpu.pipeline_mode<synchronous>, transform_indices = @transform_3, window_bounds = array<i64: 272, 256>}, {pipeline_mode = #tpu.pipeline_mode<synchronous>, transform_indices = @transform_4, window_bounds = array<i64: 1, 256>}, {pipeline_mode = #tpu.pipeline_mode<synchronous>, transform_indices = @transform_5, window_bounds = array<i64: 272, 512>}, {pipeline_mode = #tpu.pipeline_mode<synchronous>, transform_indices = @transform_6, window_bounds = array<i64: 128, 512>}, {pipeline_mode = #tpu.pipeline_mode<synchronous>, transform_indices = @transform_7, window_bounds = array<i64: 1, 512>}, {pipeline_mode = #tpu.pipeline_mode<synchronous>, transform_indices = @transform_8, window_bounds = array<i64: 128, 512>}, {pipeline_mode = #tpu.pipeline_mode<synchronous>, transform_indices = @transform_9, window_bounds = array<i64: 128, 512>}, {pipeline_mode = #tpu.pipeline_mode<synchronous>, transform_indices = @transform_10, window_bounds = array<i64: 1, 512>}, {pipeline_mode = #tpu.pipeline_mode<synchronous>, transform_indices = @transform_11, window_bounds = array<i64: 128, 128>}, {pipeline_mode = #tpu.pipeline_mode<synchronous>, transform_indices = @transform_12, window_bounds = array<i64: 1, 128>}, {transform_indices = @transform_13, window_bounds = array<i64: 9, 16, 128>}]} {
    %c0 = arith.constant 0 : index
    %c0_0 = arith.constant 0 : index
    %0 = vector.load %arg2[%c0, %c0_0] : memref<16x272xbf16, #tpu.memory_space<vmem>>, vector<16x272xbf16>
    %c0_1 = arith.constant 0 : index
    %c0_2 = arith.constant 0 : index
    %1 = vector.load %arg6[%c0_1, %c0_2] : memref<272x512xbf16, #tpu.memory_space<vmem>>, vector<272x512xbf16>
    %cst = arith.constant dense<0.000000e+00> : vector<16x512xf32>
    %2 = tpu.matmul %0, %1, %cst {dimension_numbers = #tpu.dot_dimension_numbers<[1], [0], [0], [1], [0, 0, 1, 1], [], []>} : vector<16x272xbf16>, vector<272x512xbf16>, vector<16x512xf32> -> vector<16x512xf32>
    %c0_3 = arith.constant 0 : index
    %c0_4 = arith.constant 0 : index
    %3 = vector.load %arg8[%c0_3, %c0_4] : memref<1x512xf32, #tpu.memory_space<vmem>>, vector<1x512xf32>
    %4 = vector.broadcast %3 : vector<1x512xf32> to vector<16x512xf32>
    %5 = arith.addf %2, %4 : vector<16x512xf32>
    %6 = arith.truncf %5 : vector<16x512xf32> to vector<16x512xbf16>
    %c0_5 = arith.constant 0 : index
    %c0_6 = arith.constant 0 : index
    %c0_7 = arith.constant 0 : index
    %7 = vector.load %arg15[%c0_5, %c0_6, %c0_7] : memref<9x16x512xbf16, #tpu.memory_space<vmem>>, vector<1x16x512xbf16>
    %8 = vector.shape_cast %7 : vector<1x16x512xbf16> to vector<16x512xbf16>
    %9 = vector.shape_cast %6 : vector<16x512xbf16> to vector<1x16x512xbf16>
    tpu.vector_store %arg15[%c0_5, %c0_6, %c0_7], %9 {strides = array<i32>} : memref<9x16x512xbf16, #tpu.memory_space<vmem>>, vector<1x16x512xbf16>,
    %c0_8 = arith.constant 0 : index
    %c0_9 = arith.constant 0 : index
    %10 = vector.load %arg4[%c0_8, %c0_9] : memref<272x256xbf16, #tpu.memory_space<vmem>>, vector<272x256xbf16>
    %cst_10 = arith.constant dense<0.000000e+00> : vector<16x256xf32>
    %11 = tpu.matmul %0, %10, %cst_10 {dimension_numbers = #tpu.dot_dimension_numbers<[1], [0], [0], [1], [0, 0, 1, 1], [], []>} : vector<16x272xbf16>, vector<272x256xbf16>, vector<16x256xf32> -> vector<16x256xf32>
    %c0_11 = arith.constant 0 : index
    %c0_12 = arith.constant 0 : index
    %12 = vector.load %arg5[%c0_11, %c0_12] : memref<1x256xf32, #tpu.memory_space<vmem>>, vector<1x256xf32>
    %13 = vector.broadcast %12 : vector<1x256xf32> to vector<16x256xf32>
    %14 = arith.addf %11, %13 : vector<16x256xf32>
    %15 = arith.truncf %14 : vector<16x256xf32> to vector<16x256xbf16>
    %c0_13 = arith.constant 0 : index
    %c0_14 = arith.constant 0 : index
    %16 = vector.load %arg6[%c0_13, %c0_14] : memref<272x512xbf16, #tpu.memory_space<vmem>>, vector<256x512xbf16>
    %cst_15 = arith.constant dense<0.000000e+00> : vector<16x512xf32>
    %17 = tpu.matmul %15, %16, %cst_15 {dimension_numbers = #tpu.dot_dimension_numbers<[1], [0], [0], [1], [0, 0, 1, 1], [], []>} : vector<16x256xbf16>, vector<256x512xbf16>, vector<16x512xf32> -> vector<16x512xf32>
    %c0_16 = arith.constant 0 : index
    %c0_17 = arith.constant 0 : index
    %18 = vector.load %arg8[%c0_16, %c0_17] : memref<1x512xf32, #tpu.memory_space<vmem>>, vector<1x512xf32>
    %19 = vector.broadcast %18 : vector<1x512xf32> to vector<16x512xf32>
    %20 = arith.addf %17, %19 : vector<16x512xf32>
    %c0_18 = arith.constant 0 : index
    %c0_19 = arith.constant 0 : index
    %c0_20 = arith.constant 0 : index
    %21 = vector.load %arg3[%c0_18, %c0_19, %c0_20] : memref<8x16x16xbf16, #tpu.memory_space<vmem>>, vector<8x16x16xbf16>
    %22 = vector.shape_cast %21 : vector<8x16x16xbf16> to vector<128x16xbf16>
    %c256 = arith.constant 256 : index
    %c0_21 = arith.constant 0 : index
    %23 = vector.load %arg6[%c256, %c0_21] : memref<272x512xbf16, #tpu.memory_space<vmem>>, vector<16x512xbf16>
    %cst_22 = arith.constant dense<0.000000e+00> : vector<128x512xf32>
    %24 = tpu.matmul %22, %23, %cst_22 {dimension_numbers = #tpu.dot_dimension_numbers<[1], [0], [0], [1], [0, 0, 1, 1], [], []>} : vector<128x16xbf16>, vector<16x512xbf16>, vector<128x512xf32> -> vector<128x512xf32>
    %25 = vector.shape_cast %24 : vector<128x512xf32> to vector<8x16x512xf32>
    %26 = vector.shape_cast %20 : vector<16x512xf32> to vector<1x16x512xf32>
    %27 = vector.broadcast %26 : vector<1x16x512xf32> to vector<8x16x512xf32>
    %28 = arith.addf %27, %25 : vector<8x16x512xf32>
    %29 = arith.truncf %28 : vector<8x16x512xf32> to vector<8x16x512xbf16>
    %c1 = arith.constant 1 : index
    %c0_23 = arith.constant 0 : index
    %c0_24 = arith.constant 0 : index
    %30 = vector.load %arg15[%c1, %c0_23, %c0_24] : memref<9x16x512xbf16, #tpu.memory_space<vmem>>, vector<8x16x512xbf16>
    tpu.vector_store %arg15[%c1, %c0_23, %c0_24], %29 {strides = array<i32>} : memref<9x16x512xbf16, #tpu.memory_space<vmem>>, vector<8x16x512xbf16>,
    %cst_25 = arith.constant 0.000000e+00 : bf16
    %31 = vector.broadcast %cst_25 : bf16 to vector<16x128xbf16>
    %c0_26 = arith.constant 0 : index
    %c0_27 = arith.constant 0 : index
    %32 = vector.load %arg17[%c0_26, %c0_27] : memref<16x128xbf16, #tpu.memory_space<vmem>>, vector<16x128xbf16>
    tpu.vector_store %arg17[%c0_26, %c0_27], %31 {strides = array<i32>} : memref<16x128xbf16, #tpu.memory_space<vmem>>, vector<16x128xbf16>,
    %cst_28 = arith.constant 0.000000e+00 : f32
    %33 = vector.broadcast %cst_28 : f32 to vector<16x128xf32>
    %c0_29 = arith.constant 0 : index
    %c0_30 = arith.constant 0 : index
    %34 = vector.load %arg18[%c0_29, %c0_30] : memref<16x128xf32, #tpu.memory_space<vmem>>, vector<16x128xf32>
    tpu.vector_store %arg18[%c0_29, %c0_30], %33 {strides = array<i32>} : memref<16x128xf32, #tpu.memory_space<vmem>>, vector<16x128xf32>,
    %c0_i32 = arith.constant 0 : i32
    %c0_31 = arith.constant 0 : index
    %c0_32 = arith.constant 0 : index
    %35 = vector.load %arg17[%c0_31, %c0_32] : memref<16x128xbf16, #tpu.memory_space<vmem>>, vector<16x128xbf16>
    %c0_33 = arith.constant 0 : index
    %c0_34 = arith.constant 0 : index
    %36 = vector.load %arg18[%c0_33, %c0_34] : memref<16x128xf32, #tpu.memory_space<vmem>>, vector<16x128xf32>
    %37 = arith.index_cast %c0_i32 : i32 to index
    %c0_35 = arith.constant 0 : index
    %c0_36 = arith.constant 0 : index
    %38 = vector.load %arg15[%37, %c0_35, %c0_36] : memref<9x16x512xbf16, #tpu.memory_space<vmem>>, vector<1x16x512xbf16>
    %39 = vector.shape_cast %38 : vector<1x16x512xbf16> to vector<16x512xbf16>
    %40 = arith.extf %39 : vector<16x512xbf16> to vector<16x512xf32>
    %c0_37 = arith.constant 0 : index
    %c0_38 = arith.constant 0 : index
    %41 = vector.load %arg7[%c0_37, %c0_38] : memref<128x512xbf16, #tpu.memory_space<vmem>>, vector<128x512xbf16>
    %cst_39 = arith.constant dense<0.000000e+00> : vector<16x512xf32>
    %42 = tpu.matmul %35, %41, %cst_39 {dimension_numbers = #tpu.dot_dimension_numbers<[1], [0], [0], [1], [0, 0, 1, 1], [], []>} : vector<16x128xbf16>, vector<128x512xbf16>, vector<16x512xf32> -> vector<16x512xf32>
    %43 = arith.addf %40, %42 : vector<16x512xf32>
    %44 = vector.extract_strided_slice %43 {offsets = [0, 0], sizes = [16, 128], strides = [1, 1]} : vector<16x512xf32> to vector<16x128xf32>
    %45 = arith.negf %44 : vector<16x128xf32>
    %46 = math.exp %45 : vector<16x128xf32>
    %cst_40 = arith.constant 1.000000e+00 : f32
    %47 = vector.broadcast %cst_40 : f32 to vector<16x128xf32>
    %48 = arith.addf %47, %46 : vector<16x128xf32>
    %49 = arith.divf %47, %48 : vector<16x128xf32>
    %50 = vector.extract_strided_slice %43 {offsets = [0, 128], sizes = [16, 128], strides = [1, 1]} : vector<16x512xf32> to vector<16x128xf32>
    %51 = arith.negf %50 : vector<16x128xf32>
    %52 = math.exp %51 : vector<16x128xf32>
    %cst_41 = arith.constant 1.000000e+00 : f32
    %53 = vector.broadcast %cst_41 : f32 to vector<16x128xf32>
    %54 = arith.addf %53, %52 : vector<16x128xf32>
    %55 = arith.divf %53, %54 : vector<16x128xf32>
    %56 = vector.extract_strided_slice %43 {offsets = [0, 256], sizes = [16, 128], strides = [1, 1]} : vector<16x512xf32> to vector<16x128xf32>
    %57 = math.tanh %56 : vector<16x128xf32>
    %58 = vector.extract_strided_slice %43 {offsets = [0, 384], sizes = [16, 128], strides = [1, 1]} : vector<16x512xf32> to vector<16x128xf32>
    %59 = arith.negf %58 : vector<16x128xf32>
    %60 = math.exp %59 : vector<16x128xf32>
    %cst_42 = arith.constant 1.000000e+00 : f32
    %61 = vector.broadcast %cst_42 : f32 to vector<16x128xf32>
    %62 = arith.addf %61, %60 : vector<16x128xf32>
    %63 = arith.divf %61, %62 : vector<16x128xf32>
    %64 = arith.mulf %55, %36 : vector<16x128xf32>
    %65 = arith.mulf %49, %57 : vector<16x128xf32>
    %66 = arith.addf %64, %65 : vector<16x128xf32>
    %67 = math.tanh %66 : vector<16x128xf32>
    %68 = arith.mulf %63, %67 : vector<16x128xf32>
    %69 = arith.truncf %68 : vector<16x128xf32> to vector<16x128xbf16>
    %c0_43 = arith.constant 0 : index
    %c0_44 = arith.constant 0 : index
    %70 = vector.load %arg17[%c0_43, %c0_44] : memref<16x128xbf16, #tpu.memory_space<vmem>>, vector<16x128xbf16>
    tpu.vector_store %arg17[%c0_43, %c0_44], %69 {strides = array<i32>} : memref<16x128xbf16, #tpu.memory_space<vmem>>, vector<16x128xbf16>,
    %c0_45 = arith.constant 0 : index
    %c0_46 = arith.constant 0 : index
    %71 = vector.load %arg18[%c0_45, %c0_46] : memref<16x128xf32, #tpu.memory_space<vmem>>, vector<16x128xf32>
    tpu.vector_store %arg18[%c0_45, %c0_46], %66 {strides = array<i32>} : memref<16x128xf32, #tpu.memory_space<vmem>>, vector<16x128xf32>,
    %72 = arith.truncf %68 : vector<16x128xf32> to vector<16x128xbf16>
    %73 = arith.index_cast %c0_i32 : i32 to index
    %c0_47 = arith.constant 0 : index
    %c0_48 = arith.constant 0 : index
    %74 = vector.load %arg16[%73, %c0_47, %c0_48] : memref<9x16x128xbf16, #tpu.memory_space<vmem>>, vector<1x16x128xbf16>
    %75 = vector.shape_cast %74 : vector<1x16x128xbf16> to vector<16x128xbf16>
    %76 = vector.shape_cast %72 : vector<16x128xbf16> to vector<1x16x128xbf16>
    tpu.vector_store %arg16[%73, %c0_47, %c0_48], %76 {strides = array<i32>} : memref<9x16x128xbf16, #tpu.memory_space<vmem>>, vector<1x16x128xbf16>,
    %c1_i32 = arith.constant 1 : i32
    %c0_49 = arith.constant 0 : index
    %c0_50 = arith.constant 0 : index
    %77 = vector.load %arg17[%c0_49, %c0_50] : memref<16x128xbf16, #tpu.memory_space<vmem>>, vector<16x128xbf16>
    %c0_51 = arith.constant 0 : index
    %c0_52 = arith.constant 0 : index
    %78 = vector.load %arg18[%c0_51, %c0_52] : memref<16x128xf32, #tpu.memory_space<vmem>>, vector<16x128xf32>
    %79 = arith.index_cast %c1_i32 : i32 to index
    %c0_53 = arith.constant 0 : index
    %c0_54 = arith.constant 0 : index
    %80 = vector.load %arg15[%79, %c0_53, %c0_54] : memref<9x16x512xbf16, #tpu.memory_space<vmem>>, vector<1x16x512xbf16>
    %81 = vector.shape_cast %80 : vector<1x16x512xbf16> to vector<16x512xbf16>
    %82 = arith.extf %81 : vector<16x512xbf16> to vector<16x512xf32>
    %c0_55 = arith.constant 0 : index
    %c0_56 = arith.constant 0 : index
    %83 = vector.load %arg7[%c0_55, %c0_56] : memref<128x512xbf16, #tpu.memory_space<vmem>>, vector<128x512xbf16>
    %cst_57 = arith.constant dense<0.000000e+00> : vector<16x512xf32>
    %84 = tpu.matmul %77, %83, %cst_57 {dimension_numbers = #tpu.dot_dimension_numbers<[1], [0], [0], [1], [0, 0, 1, 1], [], []>} : vector<16x128xbf16>, vector<128x512xbf16>, vector<16x512xf32> -> vector<16x512xf32>
    %85 = arith.addf %82, %84 : vector<16x512xf32>
    %86 = vector.extract_strided_slice %85 {offsets = [0, 0], sizes = [16, 128], strides = [1, 1]} : vector<16x512xf32> to vector<16x128xf32>
    %87 = arith.negf %86 : vector<16x128xf32>
    %88 = math.exp %87 : vector<16x128xf32>
    %cst_58 = arith.constant 1.000000e+00 : f32
    %89 = vector.broadcast %cst_58 : f32 to vector<16x128xf32>
    %90 = arith.addf %89, %88 : vector<16x128xf32>
    %91 = arith.divf %89, %90 : vector<16x128xf32>
    %92 = vector.extract_strided_slice %85 {offsets = [0, 128], sizes = [16, 128], strides = [1, 1]} : vector<16x512xf32> to vector<16x128xf32>
    %93 = arith.negf %92 : vector<16x128xf32>
    %94 = math.exp %93 : vector<16x128xf32>
    %cst_59 = arith.constant 1.000000e+00 : f32
    %95 = vector.broadcast %cst_59 : f32 to vector<16x128xf32>
    %96 = arith.addf %95, %94 : vector<16x128xf32>
    %97 = arith.divf %95, %96 : vector<16x128xf32>
    %98 = vector.extract_strided_slice %85 {offsets = [0, 256], sizes = [16, 128], strides = [1, 1]} : vector<16x512xf32> to vector<16x128xf32>
    %99 = math.tanh %98 : vector<16x128xf32>
    %100 = vector.extract_strided_slice %85 {offsets = [0, 384], sizes = [16, 128], strides = [1, 1]} : vector<16x512xf32> to vector<16x128xf32>
    %101 = arith.negf %100 : vector<16x128xf32>
    %102 = math.exp %101 : vector<16x128xf32>
    %cst_60 = arith.constant 1.000000e+00 : f32
    %103 = vector.broadcast %cst_60 : f32 to vector<16x128xf32>
    %104 = arith.addf %103, %102 : vector<16x128xf32>
    %105 = arith.divf %103, %104 : vector<16x128xf32>
    %106 = arith.mulf %97, %78 : vector<16x128xf32>
    %107 = arith.mulf %91, %99 : vector<16x128xf32>
    %108 = arith.addf %106, %107 : vector<16x128xf32>
    %109 = math.tanh %108 : vector<16x128xf32>
    %110 = arith.mulf %105, %109 : vector<16x128xf32>
    %111 = arith.truncf %110 : vector<16x128xf32> to vector<16x128xbf16>
    %c0_61 = arith.constant 0 : index
    %c0_62 = arith.constant 0 : index
    %112 = vector.load %arg17[%c0_61, %c0_62] : memref<16x128xbf16, #tpu.memory_space<vmem>>, vector<16x128xbf16>
    tpu.vector_store %arg17[%c0_61, %c0_62], %111 {strides = array<i32>} : memref<16x128xbf16, #tpu.memory_space<vmem>>, vector<16x128xbf16>,
    %c0_63 = arith.constant 0 : index
    %c0_64 = arith.constant 0 : index
    %113 = vector.load %arg18[%c0_63, %c0_64] : memref<16x128xf32, #tpu.memory_space<vmem>>, vector<16x128xf32>
    tpu.vector_store %arg18[%c0_63, %c0_64], %108 {strides = array<i32>} : memref<16x128xf32, #tpu.memory_space<vmem>>, vector<16x128xf32>,
    %114 = arith.truncf %110 : vector<16x128xf32> to vector<16x128xbf16>
    %115 = arith.index_cast %c1_i32 : i32 to index
    %c0_65 = arith.constant 0 : index
    %c0_66 = arith.constant 0 : index
    %116 = vector.load %arg16[%115, %c0_65, %c0_66] : memref<9x16x128xbf16, #tpu.memory_space<vmem>>, vector<1x16x128xbf16>
    %117 = vector.shape_cast %116 : vector<1x16x128xbf16> to vector<16x128xbf16>
    %118 = vector.shape_cast %114 : vector<16x128xbf16> to vector<1x16x128xbf16>
    tpu.vector_store %arg16[%115, %c0_65, %c0_66], %118 {strides = array<i32>} : memref<9x16x128xbf16, #tpu.memory_space<vmem>>, vector<1x16x128xbf16>,
    %c2_i32 = arith.constant 2 : i32
    %c0_67 = arith.constant 0 : index
    %c0_68 = arith.constant 0 : index
    %119 = vector.load %arg17[%c0_67, %c0_68] : memref<16x128xbf16, #tpu.memory_space<vmem>>, vector<16x128xbf16>
    %c0_69 = arith.constant 0 : index
    %c0_70 = arith.constant 0 : index
    %120 = vector.load %arg18[%c0_69, %c0_70] : memref<16x128xf32, #tpu.memory_space<vmem>>, vector<16x128xf32>
    %121 = arith.index_cast %c2_i32 : i32 to index
    %c0_71 = arith.constant 0 : index
    %c0_72 = arith.constant 0 : index
    %122 = vector.load %arg15[%121, %c0_71, %c0_72] : memref<9x16x512xbf16, #tpu.memory_space<vmem>>, vector<1x16x512xbf16>
    %123 = vector.shape_cast %122 : vector<1x16x512xbf16> to vector<16x512xbf16>
    %124 = arith.extf %123 : vector<16x512xbf16> to vector<16x512xf32>
    %c0_73 = arith.constant 0 : index
    %c0_74 = arith.constant 0 : index
    %125 = vector.load %arg7[%c0_73, %c0_74] : memref<128x512xbf16, #tpu.memory_space<vmem>>, vector<128x512xbf16>
    %cst_75 = arith.constant dense<0.000000e+00> : vector<16x512xf32>
    %126 = tpu.matmul %119, %125, %cst_75 {dimension_numbers = #tpu.dot_dimension_numbers<[1], [0], [0], [1], [0, 0, 1, 1], [], []>} : vector<16x128xbf16>, vector<128x512xbf16>, vector<16x512xf32> -> vector<16x512xf32>
    %127 = arith.addf %124, %126 : vector<16x512xf32>
    %128 = vector.extract_strided_slice %127 {offsets = [0, 0], sizes = [16, 128], strides = [1, 1]} : vector<16x512xf32> to vector<16x128xf32>
    %129 = arith.negf %128 : vector<16x128xf32>
    %130 = math.exp %129 : vector<16x128xf32>
    %cst_76 = arith.constant 1.000000e+00 : f32
    %131 = vector.broadcast %cst_76 : f32 to vector<16x128xf32>
    %132 = arith.addf %131, %130 : vector<16x128xf32>
    %133 = arith.divf %131, %132 : vector<16x128xf32>
    %134 = vector.extract_strided_slice %127 {offsets = [0, 128], sizes = [16, 128], strides = [1, 1]} : vector<16x512xf32> to vector<16x128xf32>
    %135 = arith.negf %134 : vector<16x128xf32>
    %136 = math.exp %135 : vector<16x128xf32>
    %cst_77 = arith.constant 1.000000e+00 : f32
    %137 = vector.broadcast %cst_77 : f32 to vector<16x128xf32>
    %138 = arith.addf %137, %136 : vector<16x128xf32>
    %139 = arith.divf %137, %138 : vector<16x128xf32>
    %140 = vector.extract_strided_slice %127 {offsets = [0, 256], sizes = [16, 128], strides = [1, 1]} : vector<16x512xf32> to vector<16x128xf32>
    %141 = math.tanh %140 : vector<16x128xf32>
    %142 = vector.extract_strided_slice %127 {offsets = [0, 384], sizes = [16, 128], strides = [1, 1]} : vector<16x512xf32> to vector<16x128xf32>
    %143 = arith.negf %142 : vector<16x128xf32>
    %144 = math.exp %143 : vector<16x128xf32>
    %cst_78 = arith.constant 1.000000e+00 : f32
    %145 = vector.broadcast %cst_78 : f32 to vector<16x128xf32>
    %146 = arith.addf %145, %144 : vector<16x128xf32>
    %147 = arith.divf %145, %146 : vector<16x128xf32>
    %148 = arith.mulf %139, %120 : vector<16x128xf32>
    %149 = arith.mulf %133, %141 : vector<16x128xf32>
    %150 = arith.addf %148, %149 : vector<16x128xf32>
    %151 = math.tanh %150 : vector<16x128xf32>
    %152 = arith.mulf %147, %151 : vector<16x128xf32>
    %153 = arith.truncf %152 : vector<16x128xf32> to vector<16x128xbf16>
    %c0_79 = arith.constant 0 : index
    %c0_80 = arith.constant 0 : index
    %154 = vector.load %arg17[%c0_79, %c0_80] : memref<16x128xbf16, #tpu.memory_space<vmem>>, vector<16x128xbf16>
    tpu.vector_store %arg17[%c0_79, %c0_80], %153 {strides = array<i32>} : memref<16x128xbf16, #tpu.memory_space<vmem>>, vector<16x128xbf16>,
    %c0_81 = arith.constant 0 : index
    %c0_82 = arith.constant 0 : index
    %155 = vector.load %arg18[%c0_81, %c0_82] : memref<16x128xf32, #tpu.memory_space<vmem>>, vector<16x128xf32>
    tpu.vector_store %arg18[%c0_81, %c0_82], %150 {strides = array<i32>} : memref<16x128xf32, #tpu.memory_space<vmem>>, vector<16x128xf32>,
    %156 = arith.truncf %152 : vector<16x128xf32> to vector<16x128xbf16>
    %157 = arith.index_cast %c2_i32 : i32 to index
    %c0_83 = arith.constant 0 : index
    %c0_84 = arith.constant 0 : index
    %158 = vector.load %arg16[%157, %c0_83, %c0_84] : memref<9x16x128xbf16, #tpu.memory_space<vmem>>, vector<1x16x128xbf16>
    %159 = vector.shape_cast %158 : vector<1x16x128xbf16> to vector<16x128xbf16>
    %160 = vector.shape_cast %156 : vector<16x128xbf16> to vector<1x16x128xbf16>
    tpu.vector_store %arg16[%157, %c0_83, %c0_84], %160 {strides = array<i32>} : memref<9x16x128xbf16, #tpu.memory_space<vmem>>, vector<1x16x128xbf16>,
    %c3_i32 = arith.constant 3 : i32
    %c0_85 = arith.constant 0 : index
    %c0_86 = arith.constant 0 : index
    %161 = vector.load %arg17[%c0_85, %c0_86] : memref<16x128xbf16, #tpu.memory_space<vmem>>, vector<16x128xbf16>
    %c0_87 = arith.constant 0 : index
    %c0_88 = arith.constant 0 : index
    %162 = vector.load %arg18[%c0_87, %c0_88] : memref<16x128xf32, #tpu.memory_space<vmem>>, vector<16x128xf32>
    %163 = arith.index_cast %c3_i32 : i32 to index
    %c0_89 = arith.constant 0 : index
    %c0_90 = arith.constant 0 : index
    %164 = vector.load %arg15[%163, %c0_89, %c0_90] : memref<9x16x512xbf16, #tpu.memory_space<vmem>>, vector<1x16x512xbf16>
    %165 = vector.shape_cast %164 : vector<1x16x512xbf16> to vector<16x512xbf16>
    %166 = arith.extf %165 : vector<16x512xbf16> to vector<16x512xf32>
    %c0_91 = arith.constant 0 : index
    %c0_92 = arith.constant 0 : index
    %167 = vector.load %arg7[%c0_91, %c0_92] : memref<128x512xbf16, #tpu.memory_space<vmem>>, vector<128x512xbf16>
    %cst_93 = arith.constant dense<0.000000e+00> : vector<16x512xf32>
    %168 = tpu.matmul %161, %167, %cst_93 {dimension_numbers = #tpu.dot_dimension_numbers<[1], [0], [0], [1], [0, 0, 1, 1], [], []>} : vector<16x128xbf16>, vector<128x512xbf16>, vector<16x512xf32> -> vector<16x512xf32>
    %169 = arith.addf %166, %168 : vector<16x512xf32>
    %170 = vector.extract_strided_slice %169 {offsets = [0, 0], sizes = [16, 128], strides = [1, 1]} : vector<16x512xf32> to vector<16x128xf32>
    %171 = arith.negf %170 : vector<16x128xf32>
    %172 = math.exp %171 : vector<16x128xf32>
    %cst_94 = arith.constant 1.000000e+00 : f32
    %173 = vector.broadcast %cst_94 : f32 to vector<16x128xf32>
    %174 = arith.addf %173, %172 : vector<16x128xf32>
    %175 = arith.divf %173, %174 : vector<16x128xf32>
    %176 = vector.extract_strided_slice %169 {offsets = [0, 128], sizes = [16, 128], strides = [1, 1]} : vector<16x512xf32> to vector<16x128xf32>
    %177 = arith.negf %176 : vector<16x128xf32>
    %178 = math.exp %177 : vector<16x128xf32>
    %cst_95 = arith.constant 1.000000e+00 : f32
    %179 = vector.broadcast %cst_95 : f32 to vector<16x128xf32>
    %180 = arith.addf %179, %178 : vector<16x128xf32>
    %181 = arith.divf %179, %180 : vector<16x128xf32>
    %182 = vector.extract_strided_slice %169 {offsets = [0, 256], sizes = [16, 128], strides = [1, 1]} : vector<16x512xf32> to vector<16x128xf32>
    %183 = math.tanh %182 : vector<16x128xf32>
    %184 = vector.extract_strided_slice %169 {offsets = [0, 384], sizes = [16, 128], strides = [1, 1]} : vector<16x512xf32> to vector<16x128xf32>
    %185 = arith.negf %184 : vector<16x128xf32>
    %186 = math.exp %185 : vector<16x128xf32>
    %cst_96 = arith.constant 1.000000e+00 : f32
    %187 = vector.broadcast %cst_96 : f32 to vector<16x128xf32>
    %188 = arith.addf %187, %186 : vector<16x128xf32>
    %189 = arith.divf %187, %188 : vector<16x128xf32>
    %190 = arith.mulf %181, %162 : vector<16x128xf32>
    %191 = arith.mulf %175, %183 : vector<16x128xf32>
    %192 = arith.addf %190, %191 : vector<16x128xf32>
    %193 = math.tanh %192 : vector<16x128xf32>
    %194 = arith.mulf %189, %193 : vector<16x128xf32>
    %195 = arith.truncf %194 : vector<16x128xf32> to vector<16x128xbf16>
    %c0_97 = arith.constant 0 : index
    %c0_98 = arith.constant 0 : index
    %196 = vector.load %arg17[%c0_97, %c0_98] : memref<16x128xbf16, #tpu.memory_space<vmem>>, vector<16x128xbf16>
    tpu.vector_store %arg17[%c0_97, %c0_98], %195 {strides = array<i32>} : memref<16x128xbf16, #tpu.memory_space<vmem>>, vector<16x128xbf16>,
    %c0_99 = arith.constant 0 : index
    %c0_100 = arith.constant 0 : index
    %197 = vector.load %arg18[%c0_99, %c0_100] : memref<16x128xf32, #tpu.memory_space<vmem>>, vector<16x128xf32>
    tpu.vector_store %arg18[%c0_99, %c0_100], %192 {strides = array<i32>} : memref<16x128xf32, #tpu.memory_space<vmem>>, vector<16x128xf32>,
    %198 = arith.truncf %194 : vector<16x128xf32> to vector<16x128xbf16>
    %199 = arith.index_cast %c3_i32 : i32 to index
    %c0_101 = arith.constant 0 : index
    %c0_102 = arith.constant 0 : index
    %200 = vector.load %arg16[%199, %c0_101, %c0_102] : memref<9x16x128xbf16, #tpu.memory_space<vmem>>, vector<1x16x128xbf16>
    %201 = vector.shape_cast %200 : vector<1x16x128xbf16> to vector<16x128xbf16>
    %202 = vector.shape_cast %198 : vector<16x128xbf16> to vector<1x16x128xbf16>
    tpu.vector_store %arg16[%199, %c0_101, %c0_102], %202 {strides = array<i32>} : memref<9x16x128xbf16, #tpu.memory_space<vmem>>, vector<1x16x128xbf16>,
    %c4_i32 = arith.constant 4 : i32
    %c0_103 = arith.constant 0 : index
    %c0_104 = arith.constant 0 : index
    %203 = vector.load %arg17[%c0_103, %c0_104] : memref<16x128xbf16, #tpu.memory_space<vmem>>, vector<16x128xbf16>
    %c0_105 = arith.constant 0 : index
    %c0_106 = arith.constant 0 : index
    %204 = vector.load %arg18[%c0_105, %c0_106] : memref<16x128xf32, #tpu.memory_space<vmem>>, vector<16x128xf32>
    %205 = arith.index_cast %c4_i32 : i32 to index
    %c0_107 = arith.constant 0 : index
    %c0_108 = arith.constant 0 : index
    %206 = vector.load %arg15[%205, %c0_107, %c0_108] : memref<9x16x512xbf16, #tpu.memory_space<vmem>>, vector<1x16x512xbf16>
    %207 = vector.shape_cast %206 : vector<1x16x512xbf16> to vector<16x512xbf16>
    %208 = arith.extf %207 : vector<16x512xbf16> to vector<16x512xf32>
    %c0_109 = arith.constant 0 : index
    %c0_110 = arith.constant 0 : index
    %209 = vector.load %arg7[%c0_109, %c0_110] : memref<128x512xbf16, #tpu.memory_space<vmem>>, vector<128x512xbf16>
    %cst_111 = arith.constant dense<0.000000e+00> : vector<16x512xf32>
    %210 = tpu.matmul %203, %209, %cst_111 {dimension_numbers = #tpu.dot_dimension_numbers<[1], [0], [0], [1], [0, 0, 1, 1], [], []>} : vector<16x128xbf16>, vector<128x512xbf16>, vector<16x512xf32> -> vector<16x512xf32>
    %211 = arith.addf %208, %210 : vector<16x512xf32>
    %212 = vector.extract_strided_slice %211 {offsets = [0, 0], sizes = [16, 128], strides = [1, 1]} : vector<16x512xf32> to vector<16x128xf32>
    %213 = arith.negf %212 : vector<16x128xf32>
    %214 = math.exp %213 : vector<16x128xf32>
    %cst_112 = arith.constant 1.000000e+00 : f32
    %215 = vector.broadcast %cst_112 : f32 to vector<16x128xf32>
    %216 = arith.addf %215, %214 : vector<16x128xf32>
    %217 = arith.divf %215, %216 : vector<16x128xf32>
    %218 = vector.extract_strided_slice %211 {offsets = [0, 128], sizes = [16, 128], strides = [1, 1]} : vector<16x512xf32> to vector<16x128xf32>
    %219 = arith.negf %218 : vector<16x128xf32>
    %220 = math.exp %219 : vector<16x128xf32>
    %cst_113 = arith.constant 1.000000e+00 : f32
    %221 = vector.broadcast %cst_113 : f32 to vector<16x128xf32>
    %222 = arith.addf %221, %220 : vector<16x128xf32>
    %223 = arith.divf %221, %222 : vector<16x128xf32>
    %224 = vector.extract_strided_slice %211 {offsets = [0, 256], sizes = [16, 128], strides = [1, 1]} : vector<16x512xf32> to vector<16x128xf32>
    %225 = math.tanh %224 : vector<16x128xf32>
    %226 = vector.extract_strided_slice %211 {offsets = [0, 384], sizes = [16, 128], strides = [1, 1]} : vector<16x512xf32> to vector<16x128xf32>
    %227 = arith.negf %226 : vector<16x128xf32>
    %228 = math.exp %227 : vector<16x128xf32>
    %cst_114 = arith.constant 1.000000e+00 : f32
    %229 = vector.broadcast %cst_114 : f32 to vector<16x128xf32>
    %230 = arith.addf %229, %228 : vector<16x128xf32>
    %231 = arith.divf %229, %230 : vector<16x128xf32>
    %232 = arith.mulf %223, %204 : vector<16x128xf32>
    %233 = arith.mulf %217, %225 : vector<16x128xf32>
    %234 = arith.addf %232, %233 : vector<16x128xf32>
    %235 = math.tanh %234 : vector<16x128xf32>
    %236 = arith.mulf %231, %235 : vector<16x128xf32>
    %237 = arith.truncf %236 : vector<16x128xf32> to vector<16x128xbf16>
    %c0_115 = arith.constant 0 : index
    %c0_116 = arith.constant 0 : index
    %238 = vector.load %arg17[%c0_115, %c0_116] : memref<16x128xbf16, #tpu.memory_space<vmem>>, vector<16x128xbf16>
    tpu.vector_store %arg17[%c0_115, %c0_116], %237 {strides = array<i32>} : memref<16x128xbf16, #tpu.memory_space<vmem>>, vector<16x128xbf16>,
    %c0_117 = arith.constant 0 : index
    %c0_118 = arith.constant 0 : index
    %239 = vector.load %arg18[%c0_117, %c0_118] : memref<16x128xf32, #tpu.memory_space<vmem>>, vector<16x128xf32>
    tpu.vector_store %arg18[%c0_117, %c0_118], %234 {strides = array<i32>} : memref<16x128xf32, #tpu.memory_space<vmem>>, vector<16x128xf32>,
    %240 = arith.truncf %236 : vector<16x128xf32> to vector<16x128xbf16>
    %241 = arith.index_cast %c4_i32 : i32 to index
    %c0_119 = arith.constant 0 : index
    %c0_120 = arith.constant 0 : index
    %242 = vector.load %arg16[%241, %c0_119, %c0_120] : memref<9x16x128xbf16, #tpu.memory_space<vmem>>, vector<1x16x128xbf16>
    %243 = vector.shape_cast %242 : vector<1x16x128xbf16> to vector<16x128xbf16>
    %244 = vector.shape_cast %240 : vector<16x128xbf16> to vector<1x16x128xbf16>
    tpu.vector_store %arg16[%241, %c0_119, %c0_120], %244 {strides = array<i32>} : memref<9x16x128xbf16, #tpu.memory_space<vmem>>, vector<1x16x128xbf16>,
    %c5_i32 = arith.constant 5 : i32
    %c0_121 = arith.constant 0 : index
    %c0_122 = arith.constant 0 : index
    %245 = vector.load %arg17[%c0_121, %c0_122] : memref<16x128xbf16, #tpu.memory_space<vmem>>, vector<16x128xbf16>
    %c0_123 = arith.constant 0 : index
    %c0_124 = arith.constant 0 : index
    %246 = vector.load %arg18[%c0_123, %c0_124] : memref<16x128xf32, #tpu.memory_space<vmem>>, vector<16x128xf32>
    %247 = arith.index_cast %c5_i32 : i32 to index
    %c0_125 = arith.constant 0 : index
    %c0_126 = arith.constant 0 : index
    %248 = vector.load %arg15[%247, %c0_125, %c0_126] : memref<9x16x512xbf16, #tpu.memory_space<vmem>>, vector<1x16x512xbf16>
    %249 = vector.shape_cast %248 : vector<1x16x512xbf16> to vector<16x512xbf16>
    %250 = arith.extf %249 : vector<16x512xbf16> to vector<16x512xf32>
    %c0_127 = arith.constant 0 : index
    %c0_128 = arith.constant 0 : index
    %251 = vector.load %arg7[%c0_127, %c0_128] : memref<128x512xbf16, #tpu.memory_space<vmem>>, vector<128x512xbf16>
    %cst_129 = arith.constant dense<0.000000e+00> : vector<16x512xf32>
    %252 = tpu.matmul %245, %251, %cst_129 {dimension_numbers = #tpu.dot_dimension_numbers<[1], [0], [0], [1], [0, 0, 1, 1], [], []>} : vector<16x128xbf16>, vector<128x512xbf16>, vector<16x512xf32> -> vector<16x512xf32>
    %253 = arith.addf %250, %252 : vector<16x512xf32>
    %254 = vector.extract_strided_slice %253 {offsets = [0, 0], sizes = [16, 128], strides = [1, 1]} : vector<16x512xf32> to vector<16x128xf32>
    %255 = arith.negf %254 : vector<16x128xf32>
    %256 = math.exp %255 : vector<16x128xf32>
    %cst_130 = arith.constant 1.000000e+00 : f32
    %257 = vector.broadcast %cst_130 : f32 to vector<16x128xf32>
    %258 = arith.addf %257, %256 : vector<16x128xf32>
    %259 = arith.divf %257, %258 : vector<16x128xf32>
    %260 = vector.extract_strided_slice %253 {offsets = [0, 128], sizes = [16, 128], strides = [1, 1]} : vector<16x512xf32> to vector<16x128xf32>
    %261 = arith.negf %260 : vector<16x128xf32>
    %262 = math.exp %261 : vector<16x128xf32>
    %cst_131 = arith.constant 1.000000e+00 : f32
    %263 = vector.broadcast %cst_131 : f32 to vector<16x128xf32>
    %264 = arith.addf %263, %262 : vector<16x128xf32>
    %265 = arith.divf %263, %264 : vector<16x128xf32>
    %266 = vector.extract_strided_slice %253 {offsets = [0, 256], sizes = [16, 128], strides = [1, 1]} : vector<16x512xf32> to vector<16x128xf32>
    %267 = math.tanh %266 : vector<16x128xf32>
    %268 = vector.extract_strided_slice %253 {offsets = [0, 384], sizes = [16, 128], strides = [1, 1]} : vector<16x512xf32> to vector<16x128xf32>
    %269 = arith.negf %268 : vector<16x128xf32>
    %270 = math.exp %269 : vector<16x128xf32>
    %cst_132 = arith.constant 1.000000e+00 : f32
    %271 = vector.broadcast %cst_132 : f32 to vector<16x128xf32>
    %272 = arith.addf %271, %270 : vector<16x128xf32>
    %273 = arith.divf %271, %272 : vector<16x128xf32>
    %274 = arith.mulf %265, %246 : vector<16x128xf32>
    %275 = arith.mulf %259, %267 : vector<16x128xf32>
    %276 = arith.addf %274, %275 : vector<16x128xf32>
    %277 = math.tanh %276 : vector<16x128xf32>
    %278 = arith.mulf %273, %277 : vector<16x128xf32>
    %279 = arith.truncf %278 : vector<16x128xf32> to vector<16x128xbf16>
    %c0_133 = arith.constant 0 : index
    %c0_134 = arith.constant 0 : index
    %280 = vector.load %arg17[%c0_133, %c0_134] : memref<16x128xbf16, #tpu.memory_space<vmem>>, vector<16x128xbf16>
    tpu.vector_store %arg17[%c0_133, %c0_134], %279 {strides = array<i32>} : memref<16x128xbf16, #tpu.memory_space<vmem>>, vector<16x128xbf16>,
    %c0_135 = arith.constant 0 : index
    %c0_136 = arith.constant 0 : index
    %281 = vector.load %arg18[%c0_135, %c0_136] : memref<16x128xf32, #tpu.memory_space<vmem>>, vector<16x128xf32>
    tpu.vector_store %arg18[%c0_135, %c0_136], %276 {strides = array<i32>} : memref<16x128xf32, #tpu.memory_space<vmem>>, vector<16x128xf32>,
    %282 = arith.truncf %278 : vector<16x128xf32> to vector<16x128xbf16>
    %283 = arith.index_cast %c5_i32 : i32 to index
    %c0_137 = arith.constant 0 : index
    %c0_138 = arith.constant 0 : index
    %284 = vector.load %arg16[%283, %c0_137, %c0_138] : memref<9x16x128xbf16, #tpu.memory_space<vmem>>, vector<1x16x128xbf16>
    %285 = vector.shape_cast %284 : vector<1x16x128xbf16> to vector<16x128xbf16>
    %286 = vector.shape_cast %282 : vector<16x128xbf16> to vector<1x16x128xbf16>
    tpu.vector_store %arg16[%283, %c0_137, %c0_138], %286 {strides = array<i32>} : memref<9x16x128xbf16, #tpu.memory_space<vmem>>, vector<1x16x128xbf16>,
    %c6_i32 = arith.constant 6 : i32
    %c0_139 = arith.constant 0 : index
    %c0_140 = arith.constant 0 : index
    %287 = vector.load %arg17[%c0_139, %c0_140] : memref<16x128xbf16, #tpu.memory_space<vmem>>, vector<16x128xbf16>
    %c0_141 = arith.constant 0 : index
    %c0_142 = arith.constant 0 : index
    %288 = vector.load %arg18[%c0_141, %c0_142] : memref<16x128xf32, #tpu.memory_space<vmem>>, vector<16x128xf32>
    %289 = arith.index_cast %c6_i32 : i32 to index
    %c0_143 = arith.constant 0 : index
    %c0_144 = arith.constant 0 : index
    %290 = vector.load %arg15[%289, %c0_143, %c0_144] : memref<9x16x512xbf16, #tpu.memory_space<vmem>>, vector<1x16x512xbf16>
    %291 = vector.shape_cast %290 : vector<1x16x512xbf16> to vector<16x512xbf16>
    %292 = arith.extf %291 : vector<16x512xbf16> to vector<16x512xf32>
    %c0_145 = arith.constant 0 : index
    %c0_146 = arith.constant 0 : index
    %293 = vector.load %arg7[%c0_145, %c0_146] : memref<128x512xbf16, #tpu.memory_space<vmem>>, vector<128x512xbf16>
    %cst_147 = arith.constant dense<0.000000e+00> : vector<16x512xf32>
    %294 = tpu.matmul %287, %293, %cst_147 {dimension_numbers = #tpu.dot_dimension_numbers<[1], [0], [0], [1], [0, 0, 1, 1], [], []>} : vector<16x128xbf16>, vector<128x512xbf16>, vector<16x512xf32> -> vector<16x512xf32>
    %295 = arith.addf %292, %294 : vector<16x512xf32>
    %296 = vector.extract_strided_slice %295 {offsets = [0, 0], sizes = [16, 128], strides = [1, 1]} : vector<16x512xf32> to vector<16x128xf32>
    %297 = arith.negf %296 : vector<16x128xf32>
    %298 = math.exp %297 : vector<16x128xf32>
    %cst_148 = arith.constant 1.000000e+00 : f32
    %299 = vector.broadcast %cst_148 : f32 to vector<16x128xf32>
    %300 = arith.addf %299, %298 : vector<16x128xf32>
    %301 = arith.divf %299, %300 : vector<16x128xf32>
    %302 = vector.extract_strided_slice %295 {offsets = [0, 128], sizes = [16, 128], strides = [1, 1]} : vector<16x512xf32> to vector<16x128xf32>
    %303 = arith.negf %302 : vector<16x128xf32>
    %304 = math.exp %303 : vector<16x128xf32>
    %cst_149 = arith.constant 1.000000e+00 : f32
    %305 = vector.broadcast %cst_149 : f32 to vector<16x128xf32>
    %306 = arith.addf %305, %304 : vector<16x128xf32>
    %307 = arith.divf %305, %306 : vector<16x128xf32>
    %308 = vector.extract_strided_slice %295 {offsets = [0, 256], sizes = [16, 128], strides = [1, 1]} : vector<16x512xf32> to vector<16x128xf32>
    %309 = math.tanh %308 : vector<16x128xf32>
    %310 = vector.extract_strided_slice %295 {offsets = [0, 384], sizes = [16, 128], strides = [1, 1]} : vector<16x512xf32> to vector<16x128xf32>
    %311 = arith.negf %310 : vector<16x128xf32>
    %312 = math.exp %311 : vector<16x128xf32>
    %cst_150 = arith.constant 1.000000e+00 : f32
    %313 = vector.broadcast %cst_150 : f32 to vector<16x128xf32>
    %314 = arith.addf %313, %312 : vector<16x128xf32>
    %315 = arith.divf %313, %314 : vector<16x128xf32>
    %316 = arith.mulf %307, %288 : vector<16x128xf32>
    %317 = arith.mulf %301, %309 : vector<16x128xf32>
    %318 = arith.addf %316, %317 : vector<16x128xf32>
    %319 = math.tanh %318 : vector<16x128xf32>
    %320 = arith.mulf %315, %319 : vector<16x128xf32>
    %321 = arith.truncf %320 : vector<16x128xf32> to vector<16x128xbf16>
    %c0_151 = arith.constant 0 : index
    %c0_152 = arith.constant 0 : index
    %322 = vector.load %arg17[%c0_151, %c0_152] : memref<16x128xbf16, #tpu.memory_space<vmem>>, vector<16x128xbf16>
    tpu.vector_store %arg17[%c0_151, %c0_152], %321 {strides = array<i32>} : memref<16x128xbf16, #tpu.memory_space<vmem>>, vector<16x128xbf16>,
    %c0_153 = arith.constant 0 : index
    %c0_154 = arith.constant 0 : index
    %323 = vector.load %arg18[%c0_153, %c0_154] : memref<16x128xf32, #tpu.memory_space<vmem>>, vector<16x128xf32>
    tpu.vector_store %arg18[%c0_153, %c0_154], %318 {strides = array<i32>} : memref<16x128xf32, #tpu.memory_space<vmem>>, vector<16x128xf32>,
    %324 = arith.truncf %320 : vector<16x128xf32> to vector<16x128xbf16>
    %325 = arith.index_cast %c6_i32 : i32 to index
    %c0_155 = arith.constant 0 : index
    %c0_156 = arith.constant 0 : index
    %326 = vector.load %arg16[%325, %c0_155, %c0_156] : memref<9x16x128xbf16, #tpu.memory_space<vmem>>, vector<1x16x128xbf16>
    %327 = vector.shape_cast %326 : vector<1x16x128xbf16> to vector<16x128xbf16>
    %328 = vector.shape_cast %324 : vector<16x128xbf16> to vector<1x16x128xbf16>
    tpu.vector_store %arg16[%325, %c0_155, %c0_156], %328 {strides = array<i32>} : memref<9x16x128xbf16, #tpu.memory_space<vmem>>, vector<1x16x128xbf16>,
    %c7_i32 = arith.constant 7 : i32
    %c0_157 = arith.constant 0 : index
    %c0_158 = arith.constant 0 : index
    %329 = vector.load %arg17[%c0_157, %c0_158] : memref<16x128xbf16, #tpu.memory_space<vmem>>, vector<16x128xbf16>
    %c0_159 = arith.constant 0 : index
    %c0_160 = arith.constant 0 : index
    %330 = vector.load %arg18[%c0_159, %c0_160] : memref<16x128xf32, #tpu.memory_space<vmem>>, vector<16x128xf32>
    %331 = arith.index_cast %c7_i32 : i32 to index
    %c0_161 = arith.constant 0 : index
    %c0_162 = arith.constant 0 : index
    %332 = vector.load %arg15[%331, %c0_161, %c0_162] : memref<9x16x512xbf16, #tpu.memory_space<vmem>>, vector<1x16x512xbf16>
    %333 = vector.shape_cast %332 : vector<1x16x512xbf16> to vector<16x512xbf16>
    %334 = arith.extf %333 : vector<16x512xbf16> to vector<16x512xf32>
    %c0_163 = arith.constant 0 : index
    %c0_164 = arith.constant 0 : index
    %335 = vector.load %arg7[%c0_163, %c0_164] : memref<128x512xbf16, #tpu.memory_space<vmem>>, vector<128x512xbf16>
    %cst_165 = arith.constant dense<0.000000e+00> : vector<16x512xf32>
    %336 = tpu.matmul %329, %335, %cst_165 {dimension_numbers = #tpu.dot_dimension_numbers<[1], [0], [0], [1], [0, 0, 1, 1], [], []>} : vector<16x128xbf16>, vector<128x512xbf16>, vector<16x512xf32> -> vector<16x512xf32>
    %337 = arith.addf %334, %336 : vector<16x512xf32>
    %338 = vector.extract_strided_slice %337 {offsets = [0, 0], sizes = [16, 128], strides = [1, 1]} : vector<16x512xf32> to vector<16x128xf32>
    %339 = arith.negf %338 : vector<16x128xf32>
    %340 = math.exp %339 : vector<16x128xf32>
    %cst_166 = arith.constant 1.000000e+00 : f32
    %341 = vector.broadcast %cst_166 : f32 to vector<16x128xf32>
    %342 = arith.addf %341, %340 : vector<16x128xf32>
    %343 = arith.divf %341, %342 : vector<16x128xf32>
    %344 = vector.extract_strided_slice %337 {offsets = [0, 128], sizes = [16, 128], strides = [1, 1]} : vector<16x512xf32> to vector<16x128xf32>
    %345 = arith.negf %344 : vector<16x128xf32>
    %346 = math.exp %345 : vector<16x128xf32>
    %cst_167 = arith.constant 1.000000e+00 : f32
    %347 = vector.broadcast %cst_167 : f32 to vector<16x128xf32>
    %348 = arith.addf %347, %346 : vector<16x128xf32>
    %349 = arith.divf %347, %348 : vector<16x128xf32>
    %350 = vector.extract_strided_slice %337 {offsets = [0, 256], sizes = [16, 128], strides = [1, 1]} : vector<16x512xf32> to vector<16x128xf32>
    %351 = math.tanh %350 : vector<16x128xf32>
    %352 = vector.extract_strided_slice %337 {offsets = [0, 384], sizes = [16, 128], strides = [1, 1]} : vector<16x512xf32> to vector<16x128xf32>
    %353 = arith.negf %352 : vector<16x128xf32>
    %354 = math.exp %353 : vector<16x128xf32>
    %cst_168 = arith.constant 1.000000e+00 : f32
    %355 = vector.broadcast %cst_168 : f32 to vector<16x128xf32>
    %356 = arith.addf %355, %354 : vector<16x128xf32>
    %357 = arith.divf %355, %356 : vector<16x128xf32>
    %358 = arith.mulf %349, %330 : vector<16x128xf32>
    %359 = arith.mulf %343, %351 : vector<16x128xf32>
    %360 = arith.addf %358, %359 : vector<16x128xf32>
    %361 = math.tanh %360 : vector<16x128xf32>
    %362 = arith.mulf %357, %361 : vector<16x128xf32>
    %363 = arith.truncf %362 : vector<16x128xf32> to vector<16x128xbf16>
    %c0_169 = arith.constant 0 : index
    %c0_170 = arith.constant 0 : index
    %364 = vector.load %arg17[%c0_169, %c0_170] : memref<16x128xbf16, #tpu.memory_space<vmem>>, vector<16x128xbf16>
    tpu.vector_store %arg17[%c0_169, %c0_170], %363 {strides = array<i32>} : memref<16x128xbf16, #tpu.memory_space<vmem>>, vector<16x128xbf16>,
    %c0_171 = arith.constant 0 : index
    %c0_172 = arith.constant 0 : index
    %365 = vector.load %arg18[%c0_171, %c0_172] : memref<16x128xf32, #tpu.memory_space<vmem>>, vector<16x128xf32>
    tpu.vector_store %arg18[%c0_171, %c0_172], %360 {strides = array<i32>} : memref<16x128xf32, #tpu.memory_space<vmem>>, vector<16x128xf32>,
    %366 = arith.truncf %362 : vector<16x128xf32> to vector<16x128xbf16>
    %367 = arith.index_cast %c7_i32 : i32 to index
    %c0_173 = arith.constant 0 : index
    %c0_174 = arith.constant 0 : index
    %368 = vector.load %arg16[%367, %c0_173, %c0_174] : memref<9x16x128xbf16, #tpu.memory_space<vmem>>, vector<1x16x128xbf16>
    %369 = vector.shape_cast %368 : vector<1x16x128xbf16> to vector<16x128xbf16>
    %370 = vector.shape_cast %366 : vector<16x128xbf16> to vector<1x16x128xbf16>
    tpu.vector_store %arg16[%367, %c0_173, %c0_174], %370 {strides = array<i32>} : memref<9x16x128xbf16, #tpu.memory_space<vmem>>, vector<1x16x128xbf16>,
    %c8_i32 = arith.constant 8 : i32
    %c0_175 = arith.constant 0 : index
    %c0_176 = arith.constant 0 : index
    %371 = vector.load %arg17[%c0_175, %c0_176] : memref<16x128xbf16, #tpu.memory_space<vmem>>, vector<16x128xbf16>
    %c0_177 = arith.constant 0 : index
    %c0_178 = arith.constant 0 : index
    %372 = vector.load %arg18[%c0_177, %c0_178] : memref<16x128xf32, #tpu.memory_space<vmem>>, vector<16x128xf32>
    %373 = arith.index_cast %c8_i32 : i32 to index
    %c0_179 = arith.constant 0 : index
    %c0_180 = arith.constant 0 : index
    %374 = vector.load %arg15[%373, %c0_179, %c0_180] : memref<9x16x512xbf16, #tpu.memory_space<vmem>>, vector<1x16x512xbf16>
    %375 = vector.shape_cast %374 : vector<1x16x512xbf16> to vector<16x512xbf16>
    %376 = arith.extf %375 : vector<16x512xbf16> to vector<16x512xf32>
    %c0_181 = arith.constant 0 : index
    %c0_182 = arith.constant 0 : index
    %377 = vector.load %arg7[%c0_181, %c0_182] : memref<128x512xbf16, #tpu.memory_space<vmem>>, vector<128x512xbf16>
    %cst_183 = arith.constant dense<0.000000e+00> : vector<16x512xf32>
    %378 = tpu.matmul %371, %377, %cst_183 {dimension_numbers = #tpu.dot_dimension_numbers<[1], [0], [0], [1], [0, 0, 1, 1], [], []>} : vector<16x128xbf16>, vector<128x512xbf16>, vector<16x512xf32> -> vector<16x512xf32>
    %379 = arith.addf %376, %378 : vector<16x512xf32>
    %380 = vector.extract_strided_slice %379 {offsets = [0, 0], sizes = [16, 128], strides = [1, 1]} : vector<16x512xf32> to vector<16x128xf32>
    %381 = arith.negf %380 : vector<16x128xf32>
    %382 = math.exp %381 : vector<16x128xf32>
    %cst_184 = arith.constant 1.000000e+00 : f32
    %383 = vector.broadcast %cst_184 : f32 to vector<16x128xf32>
    %384 = arith.addf %383, %382 : vector<16x128xf32>
    %385 = arith.divf %383, %384 : vector<16x128xf32>
    %386 = vector.extract_strided_slice %379 {offsets = [0, 128], sizes = [16, 128], strides = [1, 1]} : vector<16x512xf32> to vector<16x128xf32>
    %387 = arith.negf %386 : vector<16x128xf32>
    %388 = math.exp %387 : vector<16x128xf32>
    %cst_185 = arith.constant 1.000000e+00 : f32
    %389 = vector.broadcast %cst_185 : f32 to vector<16x128xf32>
    %390 = arith.addf %389, %388 : vector<16x128xf32>
    %391 = arith.divf %389, %390 : vector<16x128xf32>
    %392 = vector.extract_strided_slice %379 {offsets = [0, 256], sizes = [16, 128], strides = [1, 1]} : vector<16x512xf32> to vector<16x128xf32>
    %393 = math.tanh %392 : vector<16x128xf32>
    %394 = vector.extract_strided_slice %379 {offsets = [0, 384], sizes = [16, 128], strides = [1, 1]} : vector<16x512xf32> to vector<16x128xf32>
    %395 = arith.negf %394 : vector<16x128xf32>
    %396 = math.exp %395 : vector<16x128xf32>
    %cst_186 = arith.constant 1.000000e+00 : f32
    %397 = vector.broadcast %cst_186 : f32 to vector<16x128xf32>
    %398 = arith.addf %397, %396 : vector<16x128xf32>
    %399 = arith.divf %397, %398 : vector<16x128xf32>
    %400 = arith.mulf %391, %372 : vector<16x128xf32>
    %401 = arith.mulf %385, %393 : vector<16x128xf32>
    %402 = arith.addf %400, %401 : vector<16x128xf32>
    %403 = math.tanh %402 : vector<16x128xf32>
    %404 = arith.mulf %399, %403 : vector<16x128xf32>
    %405 = arith.truncf %404 : vector<16x128xf32> to vector<16x128xbf16>
    %c0_187 = arith.constant 0 : index
    %c0_188 = arith.constant 0 : index
    %406 = vector.load %arg17[%c0_187, %c0_188] : memref<16x128xbf16, #tpu.memory_space<vmem>>, vector<16x128xbf16>
    tpu.vector_store %arg17[%c0_187, %c0_188], %405 {strides = array<i32>} : memref<16x128xbf16, #tpu.memory_space<vmem>>, vector<16x128xbf16>,
    %c0_189 = arith.constant 0 : index
    %c0_190 = arith.constant 0 : index
    %407 = vector.load %arg18[%c0_189, %c0_190] : memref<16x128xf32, #tpu.memory_space<vmem>>, vector<16x128xf32>
    tpu.vector_store %arg18[%c0_189, %c0_190], %402 {strides = array<i32>} : memref<16x128xf32, #tpu.memory_space<vmem>>, vector<16x128xf32>,
    %408 = arith.truncf %404 : vector<16x128xf32> to vector<16x128xbf16>
    %409 = arith.index_cast %c8_i32 : i32 to index
    %c0_191 = arith.constant 0 : index
    %c0_192 = arith.constant 0 : index
    %410 = vector.load %arg16[%409, %c0_191, %c0_192] : memref<9x16x128xbf16, #tpu.memory_space<vmem>>, vector<1x16x128xbf16>
    %411 = vector.shape_cast %410 : vector<1x16x128xbf16> to vector<16x128xbf16>
    %412 = vector.shape_cast %408 : vector<16x128xbf16> to vector<1x16x128xbf16>
    tpu.vector_store %arg16[%409, %c0_191, %c0_192], %412 {strides = array<i32>} : memref<9x16x128xbf16, #tpu.memory_space<vmem>>, vector<1x16x128xbf16>,
    %c9_i32 = arith.constant 9 : i32
    %c0_193 = arith.constant 0 : index
    %c0_194 = arith.constant 0 : index
    %c0_195 = arith.constant 0 : index
    %413 = vector.load %arg16[%c0_193, %c0_194, %c0_195] : memref<9x16x128xbf16, #tpu.memory_space<vmem>>, vector<9x16x128xbf16>
    %414 = vector.shape_cast %413 : vector<9x16x128xbf16> to vector<144x128xbf16>
    %c0_196 = arith.constant 0 : index
    %c0_197 = arith.constant 0 : index
    %415 = vector.load %arg9[%c0_196, %c0_197] : memref<128x512xbf16, #tpu.memory_space<vmem>>, vector<128x512xbf16>
    %cst_198 = arith.constant dense<0.000000e+00> : vector<144x512xf32>
    %416 = tpu.matmul %414, %415, %cst_198 {dimension_numbers = #tpu.dot_dimension_numbers<[1], [0], [0], [1], [0, 0, 1, 1], [], []>} : vector<144x128xbf16>, vector<128x512xbf16>, vector<144x512xf32> -> vector<144x512xf32>
    %c0_199 = arith.constant 0 : index
    %c0_200 = arith.constant 0 : index
    %417 = vector.load %arg11[%c0_199, %c0_200] : memref<1x512xf32, #tpu.memory_space<vmem>>, vector<1x512xf32>
    %418 = vector.broadcast %417 : vector<1x512xf32> to vector<144x512xf32>
    %419 = arith.addf %416, %418 : vector<144x512xf32>
    %420 = vector.shape_cast %419 : vector<144x512xf32> to vector<9x16x512xf32>
    %421 = arith.truncf %420 : vector<9x16x512xf32> to vector<9x16x512xbf16>
    %c0_201 = arith.constant 0 : index
    %c0_202 = arith.constant 0 : index
    %c0_203 = arith.constant 0 : index
    %422 = vector.load %arg15[%c0_201, %c0_202, %c0_203] : memref<9x16x512xbf16, #tpu.memory_space<vmem>>, vector<9x16x512xbf16>
    tpu.vector_store %arg15[%c0_201, %c0_202, %c0_203], %421 {strides = array<i32>} : memref<9x16x512xbf16, #tpu.memory_space<vmem>>, vector<9x16x512xbf16>,
    %cst_204 = arith.constant 0.000000e+00 : bf16
    %423 = vector.broadcast %cst_204 : bf16 to vector<16x128xbf16>
    %c0_205 = arith.constant 0 : index
    %c0_206 = arith.constant 0 : index
    %424 = vector.load %arg17[%c0_205, %c0_206] : memref<16x128xbf16, #tpu.memory_space<vmem>>, vector<16x128xbf16>
    tpu.vector_store %arg17[%c0_205, %c0_206], %423 {strides = array<i32>} : memref<16x128xbf16, #tpu.memory_space<vmem>>, vector<16x128xbf16>,
    %cst_207 = arith.constant 0.000000e+00 : f32
    %425 = vector.broadcast %cst_207 : f32 to vector<16x128xf32>
    %c0_208 = arith.constant 0 : index
    %c0_209 = arith.constant 0 : index
    %426 = vector.load %arg18[%c0_208, %c0_209] : memref<16x128xf32, #tpu.memory_space<vmem>>, vector<16x128xf32>
    tpu.vector_store %arg18[%c0_208, %c0_209], %425 {strides = array<i32>} : memref<16x128xf32, #tpu.memory_space<vmem>>, vector<16x128xf32>,
    %c0_i32_210 = arith.constant 0 : i32
    %c0_211 = arith.constant 0 : index
    %c0_212 = arith.constant 0 : index
    %427 = vector.load %arg17[%c0_211, %c0_212] : memref<16x128xbf16, #tpu.memory_space<vmem>>, vector<16x128xbf16>
    %c0_213 = arith.constant 0 : index
    %c0_214 = arith.constant 0 : index
    %428 = vector.load %arg18[%c0_213, %c0_214] : memref<16x128xf32, #tpu.memory_space<vmem>>, vector<16x128xf32>
    %429 = arith.index_cast %c0_i32_210 : i32 to index
    %c0_215 = arith.constant 0 : index
    %c0_216 = arith.constant 0 : index
    %430 = vector.load %arg15[%429, %c0_215, %c0_216] : memref<9x16x512xbf16, #tpu.memory_space<vmem>>, vector<1x16x512xbf16>
    %431 = vector.shape_cast %430 : vector<1x16x512xbf16> to vector<16x512xbf16>
    %432 = arith.extf %431 : vector<16x512xbf16> to vector<16x512xf32>
    %c0_217 = arith.constant 0 : index
    %c0_218 = arith.constant 0 : index
    %433 = vector.load %arg10[%c0_217, %c0_218] : memref<128x512xbf16, #tpu.memory_space<vmem>>, vector<128x512xbf16>
    %cst_219 = arith.constant dense<0.000000e+00> : vector<16x512xf32>
    %434 = tpu.matmul %427, %433, %cst_219 {dimension_numbers = #tpu.dot_dimension_numbers<[1], [0], [0], [1], [0, 0, 1, 1], [], []>} : vector<16x128xbf16>, vector<128x512xbf16>, vector<16x512xf32> -> vector<16x512xf32>
    %435 = arith.addf %432, %434 : vector<16x512xf32>
    %436 = vector.extract_strided_slice %435 {offsets = [0, 0], sizes = [16, 128], strides = [1, 1]} : vector<16x512xf32> to vector<16x128xf32>
    %437 = arith.negf %436 : vector<16x128xf32>
    %438 = math.exp %437 : vector<16x128xf32>
    %cst_220 = arith.constant 1.000000e+00 : f32
    %439 = vector.broadcast %cst_220 : f32 to vector<16x128xf32>
    %440 = arith.addf %439, %438 : vector<16x128xf32>
    %441 = arith.divf %439, %440 : vector<16x128xf32>
    %442 = vector.extract_strided_slice %435 {offsets = [0, 128], sizes = [16, 128], strides = [1, 1]} : vector<16x512xf32> to vector<16x128xf32>
    %443 = arith.negf %442 : vector<16x128xf32>
    %444 = math.exp %443 : vector<16x128xf32>
    %cst_221 = arith.constant 1.000000e+00 : f32
    %445 = vector.broadcast %cst_221 : f32 to vector<16x128xf32>
    %446 = arith.addf %445, %444 : vector<16x128xf32>
    %447 = arith.divf %445, %446 : vector<16x128xf32>
    %448 = vector.extract_strided_slice %435 {offsets = [0, 256], sizes = [16, 128], strides = [1, 1]} : vector<16x512xf32> to vector<16x128xf32>
    %449 = math.tanh %448 : vector<16x128xf32>
    %450 = vector.extract_strided_slice %435 {offsets = [0, 384], sizes = [16, 128], strides = [1, 1]} : vector<16x512xf32> to vector<16x128xf32>
    %451 = arith.negf %450 : vector<16x128xf32>
    %452 = math.exp %451 : vector<16x128xf32>
    %cst_222 = arith.constant 1.000000e+00 : f32
    %453 = vector.broadcast %cst_222 : f32 to vector<16x128xf32>
    %454 = arith.addf %453, %452 : vector<16x128xf32>
    %455 = arith.divf %453, %454 : vector<16x128xf32>
    %456 = arith.mulf %447, %428 : vector<16x128xf32>
    %457 = arith.mulf %441, %449 : vector<16x128xf32>
    %458 = arith.addf %456, %457 : vector<16x128xf32>
    %459 = math.tanh %458 : vector<16x128xf32>
    %460 = arith.mulf %455, %459 : vector<16x128xf32>
    %461 = arith.truncf %460 : vector<16x128xf32> to vector<16x128xbf16>
    %c0_223 = arith.constant 0 : index
    %c0_224 = arith.constant 0 : index
    %462 = vector.load %arg17[%c0_223, %c0_224] : memref<16x128xbf16, #tpu.memory_space<vmem>>, vector<16x128xbf16>
    tpu.vector_store %arg17[%c0_223, %c0_224], %461 {strides = array<i32>} : memref<16x128xbf16, #tpu.memory_space<vmem>>, vector<16x128xbf16>,
    %c0_225 = arith.constant 0 : index
    %c0_226 = arith.constant 0 : index
    %463 = vector.load %arg18[%c0_225, %c0_226] : memref<16x128xf32, #tpu.memory_space<vmem>>, vector<16x128xf32>
    tpu.vector_store %arg18[%c0_225, %c0_226], %458 {strides = array<i32>} : memref<16x128xf32, #tpu.memory_space<vmem>>, vector<16x128xf32>,
    %464 = arith.truncf %460 : vector<16x128xf32> to vector<16x128xbf16>
    %465 = arith.index_cast %c0_i32_210 : i32 to index
    %c0_227 = arith.constant 0 : index
    %c0_228 = arith.constant 0 : index
    %466 = vector.load %arg16[%465, %c0_227, %c0_228] : memref<9x16x128xbf16, #tpu.memory_space<vmem>>, vector<1x16x128xbf16>
    %467 = vector.shape_cast %466 : vector<1x16x128xbf16> to vector<16x128xbf16>
    %468 = vector.shape_cast %464 : vector<16x128xbf16> to vector<1x16x128xbf16>
    tpu.vector_store %arg16[%465, %c0_227, %c0_228], %468 {strides = array<i32>} : memref<9x16x128xbf16, #tpu.memory_space<vmem>>, vector<1x16x128xbf16>,
    %c1_i32_229 = arith.constant 1 : i32
    %c0_230 = arith.constant 0 : index
    %c0_231 = arith.constant 0 : index
    %469 = vector.load %arg17[%c0_230, %c0_231] : memref<16x128xbf16, #tpu.memory_space<vmem>>, vector<16x128xbf16>
    %c0_232 = arith.constant 0 : index
    %c0_233 = arith.constant 0 : index
    %470 = vector.load %arg18[%c0_232, %c0_233] : memref<16x128xf32, #tpu.memory_space<vmem>>, vector<16x128xf32>
    %471 = arith.index_cast %c1_i32_229 : i32 to index
    %c0_234 = arith.constant 0 : index
    %c0_235 = arith.constant 0 : index
    %472 = vector.load %arg15[%471, %c0_234, %c0_235] : memref<9x16x512xbf16, #tpu.memory_space<vmem>>, vector<1x16x512xbf16>
    %473 = vector.shape_cast %472 : vector<1x16x512xbf16> to vector<16x512xbf16>
    %474 = arith.extf %473 : vector<16x512xbf16> to vector<16x512xf32>
    %c0_236 = arith.constant 0 : index
    %c0_237 = arith.constant 0 : index
    %475 = vector.load %arg10[%c0_236, %c0_237] : memref<128x512xbf16, #tpu.memory_space<vmem>>, vector<128x512xbf16>
    %cst_238 = arith.constant dense<0.000000e+00> : vector<16x512xf32>
    %476 = tpu.matmul %469, %475, %cst_238 {dimension_numbers = #tpu.dot_dimension_numbers<[1], [0], [0], [1], [0, 0, 1, 1], [], []>} : vector<16x128xbf16>, vector<128x512xbf16>, vector<16x512xf32> -> vector<16x512xf32>
    %477 = arith.addf %474, %476 : vector<16x512xf32>
    %478 = vector.extract_strided_slice %477 {offsets = [0, 0], sizes = [16, 128], strides = [1, 1]} : vector<16x512xf32> to vector<16x128xf32>
    %479 = arith.negf %478 : vector<16x128xf32>
    %480 = math.exp %479 : vector<16x128xf32>
    %cst_239 = arith.constant 1.000000e+00 : f32
    %481 = vector.broadcast %cst_239 : f32 to vector<16x128xf32>
    %482 = arith.addf %481, %480 : vector<16x128xf32>
    %483 = arith.divf %481, %482 : vector<16x128xf32>
    %484 = vector.extract_strided_slice %477 {offsets = [0, 128], sizes = [16, 128], strides = [1, 1]} : vector<16x512xf32> to vector<16x128xf32>
    %485 = arith.negf %484 : vector<16x128xf32>
    %486 = math.exp %485 : vector<16x128xf32>
    %cst_240 = arith.constant 1.000000e+00 : f32
    %487 = vector.broadcast %cst_240 : f32 to vector<16x128xf32>
    %488 = arith.addf %487, %486 : vector<16x128xf32>
    %489 = arith.divf %487, %488 : vector<16x128xf32>
    %490 = vector.extract_strided_slice %477 {offsets = [0, 256], sizes = [16, 128], strides = [1, 1]} : vector<16x512xf32> to vector<16x128xf32>
    %491 = math.tanh %490 : vector<16x128xf32>
    %492 = vector.extract_strided_slice %477 {offsets = [0, 384], sizes = [16, 128], strides = [1, 1]} : vector<16x512xf32> to vector<16x128xf32>
    %493 = arith.negf %492 : vector<16x128xf32>
    %494 = math.exp %493 : vector<16x128xf32>
    %cst_241 = arith.constant 1.000000e+00 : f32
    %495 = vector.broadcast %cst_241 : f32 to vector<16x128xf32>
    %496 = arith.addf %495, %494 : vector<16x128xf32>
    %497 = arith.divf %495, %496 : vector<16x128xf32>
    %498 = arith.mulf %489, %470 : vector<16x128xf32>
    %499 = arith.mulf %483, %491 : vector<16x128xf32>
    %500 = arith.addf %498, %499 : vector<16x128xf32>
    %501 = math.tanh %500 : vector<16x128xf32>
    %502 = arith.mulf %497, %501 : vector<16x128xf32>
    %503 = arith.truncf %502 : vector<16x128xf32> to vector<16x128xbf16>
    %c0_242 = arith.constant 0 : index
    %c0_243 = arith.constant 0 : index
    %504 = vector.load %arg17[%c0_242, %c0_243] : memref<16x128xbf16, #tpu.memory_space<vmem>>, vector<16x128xbf16>
    tpu.vector_store %arg17[%c0_242, %c0_243], %503 {strides = array<i32>} : memref<16x128xbf16, #tpu.memory_space<vmem>>, vector<16x128xbf16>,
    %c0_244 = arith.constant 0 : index
    %c0_245 = arith.constant 0 : index
    %505 = vector.load %arg18[%c0_244, %c0_245] : memref<16x128xf32, #tpu.memory_space<vmem>>, vector<16x128xf32>
    tpu.vector_store %arg18[%c0_244, %c0_245], %500 {strides = array<i32>} : memref<16x128xf32, #tpu.memory_space<vmem>>, vector<16x128xf32>,
    %506 = arith.truncf %502 : vector<16x128xf32> to vector<16x128xbf16>
    %507 = arith.index_cast %c1_i32_229 : i32 to index
    %c0_246 = arith.constant 0 : index
    %c0_247 = arith.constant 0 : index
    %508 = vector.load %arg16[%507, %c0_246, %c0_247] : memref<9x16x128xbf16, #tpu.memory_space<vmem>>, vector<1x16x128xbf16>
    %509 = vector.shape_cast %508 : vector<1x16x128xbf16> to vector<16x128xbf16>
    %510 = vector.shape_cast %506 : vector<16x128xbf16> to vector<1x16x128xbf16>
    tpu.vector_store %arg16[%507, %c0_246, %c0_247], %510 {strides = array<i32>} : memref<9x16x128xbf16, #tpu.memory_space<vmem>>, vector<1x16x128xbf16>,
    %c2_i32_248 = arith.constant 2 : i32
    %c0_249 = arith.constant 0 : index
    %c0_250 = arith.constant 0 : index
    %511 = vector.load %arg17[%c0_249, %c0_250] : memref<16x128xbf16, #tpu.memory_space<vmem>>, vector<16x128xbf16>
    %c0_251 = arith.constant 0 : index
    %c0_252 = arith.constant 0 : index
    %512 = vector.load %arg18[%c0_251, %c0_252] : memref<16x128xf32, #tpu.memory_space<vmem>>, vector<16x128xf32>
    %513 = arith.index_cast %c2_i32_248 : i32 to index
    %c0_253 = arith.constant 0 : index
    %c0_254 = arith.constant 0 : index
    %514 = vector.load %arg15[%513, %c0_253, %c0_254] : memref<9x16x512xbf16, #tpu.memory_space<vmem>>, vector<1x16x512xbf16>
    %515 = vector.shape_cast %514 : vector<1x16x512xbf16> to vector<16x512xbf16>
    %516 = arith.extf %515 : vector<16x512xbf16> to vector<16x512xf32>
    %c0_255 = arith.constant 0 : index
    %c0_256 = arith.constant 0 : index
    %517 = vector.load %arg10[%c0_255, %c0_256] : memref<128x512xbf16, #tpu.memory_space<vmem>>, vector<128x512xbf16>
    %cst_257 = arith.constant dense<0.000000e+00> : vector<16x512xf32>
    %518 = tpu.matmul %511, %517, %cst_257 {dimension_numbers = #tpu.dot_dimension_numbers<[1], [0], [0], [1], [0, 0, 1, 1], [], []>} : vector<16x128xbf16>, vector<128x512xbf16>, vector<16x512xf32> -> vector<16x512xf32>
    %519 = arith.addf %516, %518 : vector<16x512xf32>
    %520 = vector.extract_strided_slice %519 {offsets = [0, 0], sizes = [16, 128], strides = [1, 1]} : vector<16x512xf32> to vector<16x128xf32>
    %521 = arith.negf %520 : vector<16x128xf32>
    %522 = math.exp %521 : vector<16x128xf32>
    %cst_258 = arith.constant 1.000000e+00 : f32
    %523 = vector.broadcast %cst_258 : f32 to vector<16x128xf32>
    %524 = arith.addf %523, %522 : vector<16x128xf32>
    %525 = arith.divf %523, %524 : vector<16x128xf32>
    %526 = vector.extract_strided_slice %519 {offsets = [0, 128], sizes = [16, 128], strides = [1, 1]} : vector<16x512xf32> to vector<16x128xf32>
    %527 = arith.negf %526 : vector<16x128xf32>
    %528 = math.exp %527 : vector<16x128xf32>
    %cst_259 = arith.constant 1.000000e+00 : f32
    %529 = vector.broadcast %cst_259 : f32 to vector<16x128xf32>
    %530 = arith.addf %529, %528 : vector<16x128xf32>
    %531 = arith.divf %529, %530 : vector<16x128xf32>
    %532 = vector.extract_strided_slice %519 {offsets = [0, 256], sizes = [16, 128], strides = [1, 1]} : vector<16x512xf32> to vector<16x128xf32>
    %533 = math.tanh %532 : vector<16x128xf32>
    %534 = vector.extract_strided_slice %519 {offsets = [0, 384], sizes = [16, 128], strides = [1, 1]} : vector<16x512xf32> to vector<16x128xf32>
    %535 = arith.negf %534 : vector<16x128xf32>
    %536 = math.exp %535 : vector<16x128xf32>
    %cst_260 = arith.constant 1.000000e+00 : f32
    %537 = vector.broadcast %cst_260 : f32 to vector<16x128xf32>
    %538 = arith.addf %537, %536 : vector<16x128xf32>
    %539 = arith.divf %537, %538 : vector<16x128xf32>
    %540 = arith.mulf %531, %512 : vector<16x128xf32>
    %541 = arith.mulf %525, %533 : vector<16x128xf32>
    %542 = arith.addf %540, %541 : vector<16x128xf32>
    %543 = math.tanh %542 : vector<16x128xf32>
    %544 = arith.mulf %539, %543 : vector<16x128xf32>
    %545 = arith.truncf %544 : vector<16x128xf32> to vector<16x128xbf16>
    %c0_261 = arith.constant 0 : index
    %c0_262 = arith.constant 0 : index
    %546 = vector.load %arg17[%c0_261, %c0_262] : memref<16x128xbf16, #tpu.memory_space<vmem>>, vector<16x128xbf16>
    tpu.vector_store %arg17[%c0_261, %c0_262], %545 {strides = array<i32>} : memref<16x128xbf16, #tpu.memory_space<vmem>>, vector<16x128xbf16>,
    %c0_263 = arith.constant 0 : index
    %c0_264 = arith.constant 0 : index
    %547 = vector.load %arg18[%c0_263, %c0_264] : memref<16x128xf32, #tpu.memory_space<vmem>>, vector<16x128xf32>
    tpu.vector_store %arg18[%c0_263, %c0_264], %542 {strides = array<i32>} : memref<16x128xf32, #tpu.memory_space<vmem>>, vector<16x128xf32>,
    %548 = arith.truncf %544 : vector<16x128xf32> to vector<16x128xbf16>
    %549 = arith.index_cast %c2_i32_248 : i32 to index
    %c0_265 = arith.constant 0 : index
    %c0_266 = arith.constant 0 : index
    %550 = vector.load %arg16[%549, %c0_265, %c0_266] : memref<9x16x128xbf16, #tpu.memory_space<vmem>>, vector<1x16x128xbf16>
    %551 = vector.shape_cast %550 : vector<1x16x128xbf16> to vector<16x128xbf16>
    %552 = vector.shape_cast %548 : vector<16x128xbf16> to vector<1x16x128xbf16>
    tpu.vector_store %arg16[%549, %c0_265, %c0_266], %552 {strides = array<i32>} : memref<9x16x128xbf16, #tpu.memory_space<vmem>>, vector<1x16x128xbf16>,
    %c3_i32_267 = arith.constant 3 : i32
    %c0_268 = arith.constant 0 : index
    %c0_269 = arith.constant 0 : index
    %553 = vector.load %arg17[%c0_268, %c0_269] : memref<16x128xbf16, #tpu.memory_space<vmem>>, vector<16x128xbf16>
    %c0_270 = arith.constant 0 : index
    %c0_271 = arith.constant 0 : index
    %554 = vector.load %arg18[%c0_270, %c0_271] : memref<16x128xf32, #tpu.memory_space<vmem>>, vector<16x128xf32>
    %555 = arith.index_cast %c3_i32_267 : i32 to index
    %c0_272 = arith.constant 0 : index
    %c0_273 = arith.constant 0 : index
    %556 = vector.load %arg15[%555, %c0_272, %c0_273] : memref<9x16x512xbf16, #tpu.memory_space<vmem>>, vector<1x16x512xbf16>
    %557 = vector.shape_cast %556 : vector<1x16x512xbf16> to vector<16x512xbf16>
    %558 = arith.extf %557 : vector<16x512xbf16> to vector<16x512xf32>
    %c0_274 = arith.constant 0 : index
    %c0_275 = arith.constant 0 : index
    %559 = vector.load %arg10[%c0_274, %c0_275] : memref<128x512xbf16, #tpu.memory_space<vmem>>, vector<128x512xbf16>
    %cst_276 = arith.constant dense<0.000000e+00> : vector<16x512xf32>
    %560 = tpu.matmul %553, %559, %cst_276 {dimension_numbers = #tpu.dot_dimension_numbers<[1], [0], [0], [1], [0, 0, 1, 1], [], []>} : vector<16x128xbf16>, vector<128x512xbf16>, vector<16x512xf32> -> vector<16x512xf32>
    %561 = arith.addf %558, %560 : vector<16x512xf32>
    %562 = vector.extract_strided_slice %561 {offsets = [0, 0], sizes = [16, 128], strides = [1, 1]} : vector<16x512xf32> to vector<16x128xf32>
    %563 = arith.negf %562 : vector<16x128xf32>
    %564 = math.exp %563 : vector<16x128xf32>
    %cst_277 = arith.constant 1.000000e+00 : f32
    %565 = vector.broadcast %cst_277 : f32 to vector<16x128xf32>
    %566 = arith.addf %565, %564 : vector<16x128xf32>
    %567 = arith.divf %565, %566 : vector<16x128xf32>
    %568 = vector.extract_strided_slice %561 {offsets = [0, 128], sizes = [16, 128], strides = [1, 1]} : vector<16x512xf32> to vector<16x128xf32>
    %569 = arith.negf %568 : vector<16x128xf32>
    %570 = math.exp %569 : vector<16x128xf32>
    %cst_278 = arith.constant 1.000000e+00 : f32
    %571 = vector.broadcast %cst_278 : f32 to vector<16x128xf32>
    %572 = arith.addf %571, %570 : vector<16x128xf32>
    %573 = arith.divf %571, %572 : vector<16x128xf32>
    %574 = vector.extract_strided_slice %561 {offsets = [0, 256], sizes = [16, 128], strides = [1, 1]} : vector<16x512xf32> to vector<16x128xf32>
    %575 = math.tanh %574 : vector<16x128xf32>
    %576 = vector.extract_strided_slice %561 {offsets = [0, 384], sizes = [16, 128], strides = [1, 1]} : vector<16x512xf32> to vector<16x128xf32>
    %577 = arith.negf %576 : vector<16x128xf32>
    %578 = math.exp %577 : vector<16x128xf32>
    %cst_279 = arith.constant 1.000000e+00 : f32
    %579 = vector.broadcast %cst_279 : f32 to vector<16x128xf32>
    %580 = arith.addf %579, %578 : vector<16x128xf32>
    %581 = arith.divf %579, %580 : vector<16x128xf32>
    %582 = arith.mulf %573, %554 : vector<16x128xf32>
    %583 = arith.mulf %567, %575 : vector<16x128xf32>
    %584 = arith.addf %582, %583 : vector<16x128xf32>
    %585 = math.tanh %584 : vector<16x128xf32>
    %586 = arith.mulf %581, %585 : vector<16x128xf32>
    %587 = arith.truncf %586 : vector<16x128xf32> to vector<16x128xbf16>
    %c0_280 = arith.constant 0 : index
    %c0_281 = arith.constant 0 : index
    %588 = vector.load %arg17[%c0_280, %c0_281] : memref<16x128xbf16, #tpu.memory_space<vmem>>, vector<16x128xbf16>
    tpu.vector_store %arg17[%c0_280, %c0_281], %587 {strides = array<i32>} : memref<16x128xbf16, #tpu.memory_space<vmem>>, vector<16x128xbf16>,
    %c0_282 = arith.constant 0 : index
    %c0_283 = arith.constant 0 : index
    %589 = vector.load %arg18[%c0_282, %c0_283] : memref<16x128xf32, #tpu.memory_space<vmem>>, vector<16x128xf32>
    tpu.vector_store %arg18[%c0_282, %c0_283], %584 {strides = array<i32>} : memref<16x128xf32, #tpu.memory_space<vmem>>, vector<16x128xf32>,
    %590 = arith.truncf %586 : vector<16x128xf32> to vector<16x128xbf16>
    %591 = arith.index_cast %c3_i32_267 : i32 to index
    %c0_284 = arith.constant 0 : index
    %c0_285 = arith.constant 0 : index
    %592 = vector.load %arg16[%591, %c0_284, %c0_285] : memref<9x16x128xbf16, #tpu.memory_space<vmem>>, vector<1x16x128xbf16>
    %593 = vector.shape_cast %592 : vector<1x16x128xbf16> to vector<16x128xbf16>
    %594 = vector.shape_cast %590 : vector<16x128xbf16> to vector<1x16x128xbf16>
    tpu.vector_store %arg16[%591, %c0_284, %c0_285], %594 {strides = array<i32>} : memref<9x16x128xbf16, #tpu.memory_space<vmem>>, vector<1x16x128xbf16>,
    %c4_i32_286 = arith.constant 4 : i32
    %c0_287 = arith.constant 0 : index
    %c0_288 = arith.constant 0 : index
    %595 = vector.load %arg17[%c0_287, %c0_288] : memref<16x128xbf16, #tpu.memory_space<vmem>>, vector<16x128xbf16>
    %c0_289 = arith.constant 0 : index
    %c0_290 = arith.constant 0 : index
    %596 = vector.load %arg18[%c0_289, %c0_290] : memref<16x128xf32, #tpu.memory_space<vmem>>, vector<16x128xf32>
    %597 = arith.index_cast %c4_i32_286 : i32 to index
    %c0_291 = arith.constant 0 : index
    %c0_292 = arith.constant 0 : index
    %598 = vector.load %arg15[%597, %c0_291, %c0_292] : memref<9x16x512xbf16, #tpu.memory_space<vmem>>, vector<1x16x512xbf16>
    %599 = vector.shape_cast %598 : vector<1x16x512xbf16> to vector<16x512xbf16>
    %600 = arith.extf %599 : vector<16x512xbf16> to vector<16x512xf32>
    %c0_293 = arith.constant 0 : index
    %c0_294 = arith.constant 0 : index
    %601 = vector.load %arg10[%c0_293, %c0_294] : memref<128x512xbf16, #tpu.memory_space<vmem>>, vector<128x512xbf16>
    %cst_295 = arith.constant dense<0.000000e+00> : vector<16x512xf32>
    %602 = tpu.matmul %595, %601, %cst_295 {dimension_numbers = #tpu.dot_dimension_numbers<[1], [0], [0], [1], [0, 0, 1, 1], [], []>} : vector<16x128xbf16>, vector<128x512xbf16>, vector<16x512xf32> -> vector<16x512xf32>
    %603 = arith.addf %600, %602 : vector<16x512xf32>
    %604 = vector.extract_strided_slice %603 {offsets = [0, 0], sizes = [16, 128], strides = [1, 1]} : vector<16x512xf32> to vector<16x128xf32>
    %605 = arith.negf %604 : vector<16x128xf32>
    %606 = math.exp %605 : vector<16x128xf32>
    %cst_296 = arith.constant 1.000000e+00 : f32
    %607 = vector.broadcast %cst_296 : f32 to vector<16x128xf32>
    %608 = arith.addf %607, %606 : vector<16x128xf32>
    %609 = arith.divf %607, %608 : vector<16x128xf32>
    %610 = vector.extract_strided_slice %603 {offsets = [0, 128], sizes = [16, 128], strides = [1, 1]} : vector<16x512xf32> to vector<16x128xf32>
    %611 = arith.negf %610 : vector<16x128xf32>
    %612 = math.exp %611 : vector<16x128xf32>
    %cst_297 = arith.constant 1.000000e+00 : f32
    %613 = vector.broadcast %cst_297 : f32 to vector<16x128xf32>
    %614 = arith.addf %613, %612 : vector<16x128xf32>
    %615 = arith.divf %613, %614 : vector<16x128xf32>
    %616 = vector.extract_strided_slice %603 {offsets = [0, 256], sizes = [16, 128], strides = [1, 1]} : vector<16x512xf32> to vector<16x128xf32>
    %617 = math.tanh %616 : vector<16x128xf32>
    %618 = vector.extract_strided_slice %603 {offsets = [0, 384], sizes = [16, 128], strides = [1, 1]} : vector<16x512xf32> to vector<16x128xf32>
    %619 = arith.negf %618 : vector<16x128xf32>
    %620 = math.exp %619 : vector<16x128xf32>
    %cst_298 = arith.constant 1.000000e+00 : f32
    %621 = vector.broadcast %cst_298 : f32 to vector<16x128xf32>
    %622 = arith.addf %621, %620 : vector<16x128xf32>
    %623 = arith.divf %621, %622 : vector<16x128xf32>
    %624 = arith.mulf %615, %596 : vector<16x128xf32>
    %625 = arith.mulf %609, %617 : vector<16x128xf32>
    %626 = arith.addf %624, %625 : vector<16x128xf32>
    %627 = math.tanh %626 : vector<16x128xf32>
    %628 = arith.mulf %623, %627 : vector<16x128xf32>
    %629 = arith.truncf %628 : vector<16x128xf32> to vector<16x128xbf16>
    %c0_299 = arith.constant 0 : index
    %c0_300 = arith.constant 0 : index
    %630 = vector.load %arg17[%c0_299, %c0_300] : memref<16x128xbf16, #tpu.memory_space<vmem>>, vector<16x128xbf16>
    tpu.vector_store %arg17[%c0_299, %c0_300], %629 {strides = array<i32>} : memref<16x128xbf16, #tpu.memory_space<vmem>>, vector<16x128xbf16>,
    %c0_301 = arith.constant 0 : index
    %c0_302 = arith.constant 0 : index
    %631 = vector.load %arg18[%c0_301, %c0_302] : memref<16x128xf32, #tpu.memory_space<vmem>>, vector<16x128xf32>
    tpu.vector_store %arg18[%c0_301, %c0_302], %626 {strides = array<i32>} : memref<16x128xf32, #tpu.memory_space<vmem>>, vector<16x128xf32>,
    %632 = arith.truncf %628 : vector<16x128xf32> to vector<16x128xbf16>
    %633 = arith.index_cast %c4_i32_286 : i32 to index
    %c0_303 = arith.constant 0 : index
    %c0_304 = arith.constant 0 : index
    %634 = vector.load %arg16[%633, %c0_303, %c0_304] : memref<9x16x128xbf16, #tpu.memory_space<vmem>>, vector<1x16x128xbf16>
    %635 = vector.shape_cast %634 : vector<1x16x128xbf16> to vector<16x128xbf16>
    %636 = vector.shape_cast %632 : vector<16x128xbf16> to vector<1x16x128xbf16>
    tpu.vector_store %arg16[%633, %c0_303, %c0_304], %636 {strides = array<i32>} : memref<9x16x128xbf16, #tpu.memory_space<vmem>>, vector<1x16x128xbf16>,
    %c5_i32_305 = arith.constant 5 : i32
    %c0_306 = arith.constant 0 : index
    %c0_307 = arith.constant 0 : index
    %637 = vector.load %arg17[%c0_306, %c0_307] : memref<16x128xbf16, #tpu.memory_space<vmem>>, vector<16x128xbf16>
    %c0_308 = arith.constant 0 : index
    %c0_309 = arith.constant 0 : index
    %638 = vector.load %arg18[%c0_308, %c0_309] : memref<16x128xf32, #tpu.memory_space<vmem>>, vector<16x128xf32>
    %639 = arith.index_cast %c5_i32_305 : i32 to index
    %c0_310 = arith.constant 0 : index
    %c0_311 = arith.constant 0 : index
    %640 = vector.load %arg15[%639, %c0_310, %c0_311] : memref<9x16x512xbf16, #tpu.memory_space<vmem>>, vector<1x16x512xbf16>
    %641 = vector.shape_cast %640 : vector<1x16x512xbf16> to vector<16x512xbf16>
    %642 = arith.extf %641 : vector<16x512xbf16> to vector<16x512xf32>
    %c0_312 = arith.constant 0 : index
    %c0_313 = arith.constant 0 : index
    %643 = vector.load %arg10[%c0_312, %c0_313] : memref<128x512xbf16, #tpu.memory_space<vmem>>, vector<128x512xbf16>
    %cst_314 = arith.constant dense<0.000000e+00> : vector<16x512xf32>
    %644 = tpu.matmul %637, %643, %cst_314 {dimension_numbers = #tpu.dot_dimension_numbers<[1], [0], [0], [1], [0, 0, 1, 1], [], []>} : vector<16x128xbf16>, vector<128x512xbf16>, vector<16x512xf32> -> vector<16x512xf32>
    %645 = arith.addf %642, %644 : vector<16x512xf32>
    %646 = vector.extract_strided_slice %645 {offsets = [0, 0], sizes = [16, 128], strides = [1, 1]} : vector<16x512xf32> to vector<16x128xf32>
    %647 = arith.negf %646 : vector<16x128xf32>
    %648 = math.exp %647 : vector<16x128xf32>
    %cst_315 = arith.constant 1.000000e+00 : f32
    %649 = vector.broadcast %cst_315 : f32 to vector<16x128xf32>
    %650 = arith.addf %649, %648 : vector<16x128xf32>
    %651 = arith.divf %649, %650 : vector<16x128xf32>
    %652 = vector.extract_strided_slice %645 {offsets = [0, 128], sizes = [16, 128], strides = [1, 1]} : vector<16x512xf32> to vector<16x128xf32>
    %653 = arith.negf %652 : vector<16x128xf32>
    %654 = math.exp %653 : vector<16x128xf32>
    %cst_316 = arith.constant 1.000000e+00 : f32
    %655 = vector.broadcast %cst_316 : f32 to vector<16x128xf32>
    %656 = arith.addf %655, %654 : vector<16x128xf32>
    %657 = arith.divf %655, %656 : vector<16x128xf32>
    %658 = vector.extract_strided_slice %645 {offsets = [0, 256], sizes = [16, 128], strides = [1, 1]} : vector<16x512xf32> to vector<16x128xf32>
    %659 = math.tanh %658 : vector<16x128xf32>
    %660 = vector.extract_strided_slice %645 {offsets = [0, 384], sizes = [16, 128], strides = [1, 1]} : vector<16x512xf32> to vector<16x128xf32>
    %661 = arith.negf %660 : vector<16x128xf32>
    %662 = math.exp %661 : vector<16x128xf32>
    %cst_317 = arith.constant 1.000000e+00 : f32
    %663 = vector.broadcast %cst_317 : f32 to vector<16x128xf32>
    %664 = arith.addf %663, %662 : vector<16x128xf32>
    %665 = arith.divf %663, %664 : vector<16x128xf32>
    %666 = arith.mulf %657, %638 : vector<16x128xf32>
    %667 = arith.mulf %651, %659 : vector<16x128xf32>
    %668 = arith.addf %666, %667 : vector<16x128xf32>
    %669 = math.tanh %668 : vector<16x128xf32>
    %670 = arith.mulf %665, %669 : vector<16x128xf32>
    %671 = arith.truncf %670 : vector<16x128xf32> to vector<16x128xbf16>
    %c0_318 = arith.constant 0 : index
    %c0_319 = arith.constant 0 : index
    %672 = vector.load %arg17[%c0_318, %c0_319] : memref<16x128xbf16, #tpu.memory_space<vmem>>, vector<16x128xbf16>
    tpu.vector_store %arg17[%c0_318, %c0_319], %671 {strides = array<i32>} : memref<16x128xbf16, #tpu.memory_space<vmem>>, vector<16x128xbf16>,
    %c0_320 = arith.constant 0 : index
    %c0_321 = arith.constant 0 : index
    %673 = vector.load %arg18[%c0_320, %c0_321] : memref<16x128xf32, #tpu.memory_space<vmem>>, vector<16x128xf32>
    tpu.vector_store %arg18[%c0_320, %c0_321], %668 {strides = array<i32>} : memref<16x128xf32, #tpu.memory_space<vmem>>, vector<16x128xf32>,
    %674 = arith.truncf %670 : vector<16x128xf32> to vector<16x128xbf16>
    %675 = arith.index_cast %c5_i32_305 : i32 to index
    %c0_322 = arith.constant 0 : index
    %c0_323 = arith.constant 0 : index
    %676 = vector.load %arg16[%675, %c0_322, %c0_323] : memref<9x16x128xbf16, #tpu.memory_space<vmem>>, vector<1x16x128xbf16>
    %677 = vector.shape_cast %676 : vector<1x16x128xbf16> to vector<16x128xbf16>
    %678 = vector.shape_cast %674 : vector<16x128xbf16> to vector<1x16x128xbf16>
    tpu.vector_store %arg16[%675, %c0_322, %c0_323], %678 {strides = array<i32>} : memref<9x16x128xbf16, #tpu.memory_space<vmem>>, vector<1x16x128xbf16>,
    %c6_i32_324 = arith.constant 6 : i32
    %c0_325 = arith.constant 0 : index
    %c0_326 = arith.constant 0 : index
    %679 = vector.load %arg17[%c0_325, %c0_326] : memref<16x128xbf16, #tpu.memory_space<vmem>>, vector<16x128xbf16>
    %c0_327 = arith.constant 0 : index
    %c0_328 = arith.constant 0 : index
    %680 = vector.load %arg18[%c0_327, %c0_328] : memref<16x128xf32, #tpu.memory_space<vmem>>, vector<16x128xf32>
    %681 = arith.index_cast %c6_i32_324 : i32 to index
    %c0_329 = arith.constant 0 : index
    %c0_330 = arith.constant 0 : index
    %682 = vector.load %arg15[%681, %c0_329, %c0_330] : memref<9x16x512xbf16, #tpu.memory_space<vmem>>, vector<1x16x512xbf16>
    %683 = vector.shape_cast %682 : vector<1x16x512xbf16> to vector<16x512xbf16>
    %684 = arith.extf %683 : vector<16x512xbf16> to vector<16x512xf32>
    %c0_331 = arith.constant 0 : index
    %c0_332 = arith.constant 0 : index
    %685 = vector.load %arg10[%c0_331, %c0_332] : memref<128x512xbf16, #tpu.memory_space<vmem>>, vector<128x512xbf16>
    %cst_333 = arith.constant dense<0.000000e+00> : vector<16x512xf32>
    %686 = tpu.matmul %679, %685, %cst_333 {dimension_numbers = #tpu.dot_dimension_numbers<[1], [0], [0], [1], [0, 0, 1, 1], [], []>} : vector<16x128xbf16>, vector<128x512xbf16>, vector<16x512xf32> -> vector<16x512xf32>
    %687 = arith.addf %684, %686 : vector<16x512xf32>
    %688 = vector.extract_strided_slice %687 {offsets = [0, 0], sizes = [16, 128], strides = [1, 1]} : vector<16x512xf32> to vector<16x128xf32>
    %689 = arith.negf %688 : vector<16x128xf32>
    %690 = math.exp %689 : vector<16x128xf32>
    %cst_334 = arith.constant 1.000000e+00 : f32
    %691 = vector.broadcast %cst_334 : f32 to vector<16x128xf32>
    %692 = arith.addf %691, %690 : vector<16x128xf32>
    %693 = arith.divf %691, %692 : vector<16x128xf32>
    %694 = vector.extract_strided_slice %687 {offsets = [0, 128], sizes = [16, 128], strides = [1, 1]} : vector<16x512xf32> to vector<16x128xf32>
    %695 = arith.negf %694 : vector<16x128xf32>
    %696 = math.exp %695 : vector<16x128xf32>
    %cst_335 = arith.constant 1.000000e+00 : f32
    %697 = vector.broadcast %cst_335 : f32 to vector<16x128xf32>
    %698 = arith.addf %697, %696 : vector<16x128xf32>
    %699 = arith.divf %697, %698 : vector<16x128xf32>
    %700 = vector.extract_strided_slice %687 {offsets = [0, 256], sizes = [16, 128], strides = [1, 1]} : vector<16x512xf32> to vector<16x128xf32>
    %701 = math.tanh %700 : vector<16x128xf32>
    %702 = vector.extract_strided_slice %687 {offsets = [0, 384], sizes = [16, 128], strides = [1, 1]} : vector<16x512xf32> to vector<16x128xf32>
    %703 = arith.negf %702 : vector<16x128xf32>
    %704 = math.exp %703 : vector<16x128xf32>
    %cst_336 = arith.constant 1.000000e+00 : f32
    %705 = vector.broadcast %cst_336 : f32 to vector<16x128xf32>
    %706 = arith.addf %705, %704 : vector<16x128xf32>
    %707 = arith.divf %705, %706 : vector<16x128xf32>
    %708 = arith.mulf %699, %680 : vector<16x128xf32>
    %709 = arith.mulf %693, %701 : vector<16x128xf32>
    %710 = arith.addf %708, %709 : vector<16x128xf32>
    %711 = math.tanh %710 : vector<16x128xf32>
    %712 = arith.mulf %707, %711 : vector<16x128xf32>
    %713 = arith.truncf %712 : vector<16x128xf32> to vector<16x128xbf16>
    %c0_337 = arith.constant 0 : index
    %c0_338 = arith.constant 0 : index
    %714 = vector.load %arg17[%c0_337, %c0_338] : memref<16x128xbf16, #tpu.memory_space<vmem>>, vector<16x128xbf16>
    tpu.vector_store %arg17[%c0_337, %c0_338], %713 {strides = array<i32>} : memref<16x128xbf16, #tpu.memory_space<vmem>>, vector<16x128xbf16>,
    %c0_339 = arith.constant 0 : index
    %c0_340 = arith.constant 0 : index
    %715 = vector.load %arg18[%c0_339, %c0_340] : memref<16x128xf32, #tpu.memory_space<vmem>>, vector<16x128xf32>
    tpu.vector_store %arg18[%c0_339, %c0_340], %710 {strides = array<i32>} : memref<16x128xf32, #tpu.memory_space<vmem>>, vector<16x128xf32>,
    %716 = arith.truncf %712 : vector<16x128xf32> to vector<16x128xbf16>
    %717 = arith.index_cast %c6_i32_324 : i32 to index
    %c0_341 = arith.constant 0 : index
    %c0_342 = arith.constant 0 : index
    %718 = vector.load %arg16[%717, %c0_341, %c0_342] : memref<9x16x128xbf16, #tpu.memory_space<vmem>>, vector<1x16x128xbf16>
    %719 = vector.shape_cast %718 : vector<1x16x128xbf16> to vector<16x128xbf16>
    %720 = vector.shape_cast %716 : vector<16x128xbf16> to vector<1x16x128xbf16>
    tpu.vector_store %arg16[%717, %c0_341, %c0_342], %720 {strides = array<i32>} : memref<9x16x128xbf16, #tpu.memory_space<vmem>>, vector<1x16x128xbf16>,
    %c7_i32_343 = arith.constant 7 : i32
    %c0_344 = arith.constant 0 : index
    %c0_345 = arith.constant 0 : index
    %721 = vector.load %arg17[%c0_344, %c0_345] : memref<16x128xbf16, #tpu.memory_space<vmem>>, vector<16x128xbf16>
    %c0_346 = arith.constant 0 : index
    %c0_347 = arith.constant 0 : index
    %722 = vector.load %arg18[%c0_346, %c0_347] : memref<16x128xf32, #tpu.memory_space<vmem>>, vector<16x128xf32>
    %723 = arith.index_cast %c7_i32_343 : i32 to index
    %c0_348 = arith.constant 0 : index
    %c0_349 = arith.constant 0 : index
    %724 = vector.load %arg15[%723, %c0_348, %c0_349] : memref<9x16x512xbf16, #tpu.memory_space<vmem>>, vector<1x16x512xbf16>
    %725 = vector.shape_cast %724 : vector<1x16x512xbf16> to vector<16x512xbf16>
    %726 = arith.extf %725 : vector<16x512xbf16> to vector<16x512xf32>
    %c0_350 = arith.constant 0 : index
    %c0_351 = arith.constant 0 : index
    %727 = vector.load %arg10[%c0_350, %c0_351] : memref<128x512xbf16, #tpu.memory_space<vmem>>, vector<128x512xbf16>
    %cst_352 = arith.constant dense<0.000000e+00> : vector<16x512xf32>
    %728 = tpu.matmul %721, %727, %cst_352 {dimension_numbers = #tpu.dot_dimension_numbers<[1], [0], [0], [1], [0, 0, 1, 1], [], []>} : vector<16x128xbf16>, vector<128x512xbf16>, vector<16x512xf32> -> vector<16x512xf32>
    %729 = arith.addf %726, %728 : vector<16x512xf32>
    %730 = vector.extract_strided_slice %729 {offsets = [0, 0], sizes = [16, 128], strides = [1, 1]} : vector<16x512xf32> to vector<16x128xf32>
    %731 = arith.negf %730 : vector<16x128xf32>
    %732 = math.exp %731 : vector<16x128xf32>
    %cst_353 = arith.constant 1.000000e+00 : f32
    %733 = vector.broadcast %cst_353 : f32 to vector<16x128xf32>
    %734 = arith.addf %733, %732 : vector<16x128xf32>
    %735 = arith.divf %733, %734 : vector<16x128xf32>
    %736 = vector.extract_strided_slice %729 {offsets = [0, 128], sizes = [16, 128], strides = [1, 1]} : vector<16x512xf32> to vector<16x128xf32>
    %737 = arith.negf %736 : vector<16x128xf32>
    %738 = math.exp %737 : vector<16x128xf32>
    %cst_354 = arith.constant 1.000000e+00 : f32
    %739 = vector.broadcast %cst_354 : f32 to vector<16x128xf32>
    %740 = arith.addf %739, %738 : vector<16x128xf32>
    %741 = arith.divf %739, %740 : vector<16x128xf32>
    %742 = vector.extract_strided_slice %729 {offsets = [0, 256], sizes = [16, 128], strides = [1, 1]} : vector<16x512xf32> to vector<16x128xf32>
    %743 = math.tanh %742 : vector<16x128xf32>
    %744 = vector.extract_strided_slice %729 {offsets = [0, 384], sizes = [16, 128], strides = [1, 1]} : vector<16x512xf32> to vector<16x128xf32>
    %745 = arith.negf %744 : vector<16x128xf32>
    %746 = math.exp %745 : vector<16x128xf32>
    %cst_355 = arith.constant 1.000000e+00 : f32
    %747 = vector.broadcast %cst_355 : f32 to vector<16x128xf32>
    %748 = arith.addf %747, %746 : vector<16x128xf32>
    %749 = arith.divf %747, %748 : vector<16x128xf32>
    %750 = arith.mulf %741, %722 : vector<16x128xf32>
    %751 = arith.mulf %735, %743 : vector<16x128xf32>
    %752 = arith.addf %750, %751 : vector<16x128xf32>
    %753 = math.tanh %752 : vector<16x128xf32>
    %754 = arith.mulf %749, %753 : vector<16x128xf32>
    %755 = arith.truncf %754 : vector<16x128xf32> to vector<16x128xbf16>
    %c0_356 = arith.constant 0 : index
    %c0_357 = arith.constant 0 : index
    %756 = vector.load %arg17[%c0_356, %c0_357] : memref<16x128xbf16, #tpu.memory_space<vmem>>, vector<16x128xbf16>
    tpu.vector_store %arg17[%c0_356, %c0_357], %755 {strides = array<i32>} : memref<16x128xbf16, #tpu.memory_space<vmem>>, vector<16x128xbf16>,
    %c0_358 = arith.constant 0 : index
    %c0_359 = arith.constant 0 : index
    %757 = vector.load %arg18[%c0_358, %c0_359] : memref<16x128xf32, #tpu.memory_space<vmem>>, vector<16x128xf32>
    tpu.vector_store %arg18[%c0_358, %c0_359], %752 {strides = array<i32>} : memref<16x128xf32, #tpu.memory_space<vmem>>, vector<16x128xf32>,
    %758 = arith.truncf %754 : vector<16x128xf32> to vector<16x128xbf16>
    %759 = arith.index_cast %c7_i32_343 : i32 to index
    %c0_360 = arith.constant 0 : index
    %c0_361 = arith.constant 0 : index
    %760 = vector.load %arg16[%759, %c0_360, %c0_361] : memref<9x16x128xbf16, #tpu.memory_space<vmem>>, vector<1x16x128xbf16>
    %761 = vector.shape_cast %760 : vector<1x16x128xbf16> to vector<16x128xbf16>
    %762 = vector.shape_cast %758 : vector<16x128xbf16> to vector<1x16x128xbf16>
    tpu.vector_store %arg16[%759, %c0_360, %c0_361], %762 {strides = array<i32>} : memref<9x16x128xbf16, #tpu.memory_space<vmem>>, vector<1x16x128xbf16>,
    %c8_i32_362 = arith.constant 8 : i32
    %c0_363 = arith.constant 0 : index
    %c0_364 = arith.constant 0 : index
    %763 = vector.load %arg17[%c0_363, %c0_364] : memref<16x128xbf16, #tpu.memory_space<vmem>>, vector<16x128xbf16>
    %c0_365 = arith.constant 0 : index
    %c0_366 = arith.constant 0 : index
    %764 = vector.load %arg18[%c0_365, %c0_366] : memref<16x128xf32, #tpu.memory_space<vmem>>, vector<16x128xf32>
    %765 = arith.index_cast %c8_i32_362 : i32 to index
    %c0_367 = arith.constant 0 : index
    %c0_368 = arith.constant 0 : index
    %766 = vector.load %arg15[%765, %c0_367, %c0_368] : memref<9x16x512xbf16, #tpu.memory_space<vmem>>, vector<1x16x512xbf16>
    %767 = vector.shape_cast %766 : vector<1x16x512xbf16> to vector<16x512xbf16>
    %768 = arith.extf %767 : vector<16x512xbf16> to vector<16x512xf32>
    %c0_369 = arith.constant 0 : index
    %c0_370 = arith.constant 0 : index
    %769 = vector.load %arg10[%c0_369, %c0_370] : memref<128x512xbf16, #tpu.memory_space<vmem>>, vector<128x512xbf16>
    %cst_371 = arith.constant dense<0.000000e+00> : vector<16x512xf32>
    %770 = tpu.matmul %763, %769, %cst_371 {dimension_numbers = #tpu.dot_dimension_numbers<[1], [0], [0], [1], [0, 0, 1, 1], [], []>} : vector<16x128xbf16>, vector<128x512xbf16>, vector<16x512xf32> -> vector<16x512xf32>
    %771 = arith.addf %768, %770 : vector<16x512xf32>
    %772 = vector.extract_strided_slice %771 {offsets = [0, 0], sizes = [16, 128], strides = [1, 1]} : vector<16x512xf32> to vector<16x128xf32>
    %773 = arith.negf %772 : vector<16x128xf32>
    %774 = math.exp %773 : vector<16x128xf32>
    %cst_372 = arith.constant 1.000000e+00 : f32
    %775 = vector.broadcast %cst_372 : f32 to vector<16x128xf32>
    %776 = arith.addf %775, %774 : vector<16x128xf32>
    %777 = arith.divf %775, %776 : vector<16x128xf32>
    %778 = vector.extract_strided_slice %771 {offsets = [0, 128], sizes = [16, 128], strides = [1, 1]} : vector<16x512xf32> to vector<16x128xf32>
    %779 = arith.negf %778 : vector<16x128xf32>
    %780 = math.exp %779 : vector<16x128xf32>
    %cst_373 = arith.constant 1.000000e+00 : f32
    %781 = vector.broadcast %cst_373 : f32 to vector<16x128xf32>
    %782 = arith.addf %781, %780 : vector<16x128xf32>
    %783 = arith.divf %781, %782 : vector<16x128xf32>
    %784 = vector.extract_strided_slice %771 {offsets = [0, 256], sizes = [16, 128], strides = [1, 1]} : vector<16x512xf32> to vector<16x128xf32>
    %785 = math.tanh %784 : vector<16x128xf32>
    %786 = vector.extract_strided_slice %771 {offsets = [0, 384], sizes = [16, 128], strides = [1, 1]} : vector<16x512xf32> to vector<16x128xf32>
    %787 = arith.negf %786 : vector<16x128xf32>
    %788 = math.exp %787 : vector<16x128xf32>
    %cst_374 = arith.constant 1.000000e+00 : f32
    %789 = vector.broadcast %cst_374 : f32 to vector<16x128xf32>
    %790 = arith.addf %789, %788 : vector<16x128xf32>
    %791 = arith.divf %789, %790 : vector<16x128xf32>
    %792 = arith.mulf %783, %764 : vector<16x128xf32>
    %793 = arith.mulf %777, %785 : vector<16x128xf32>
    %794 = arith.addf %792, %793 : vector<16x128xf32>
    %795 = math.tanh %794 : vector<16x128xf32>
    %796 = arith.mulf %791, %795 : vector<16x128xf32>
    %797 = arith.truncf %796 : vector<16x128xf32> to vector<16x128xbf16>
    %c0_375 = arith.constant 0 : index
    %c0_376 = arith.constant 0 : index
    %798 = vector.load %arg17[%c0_375, %c0_376] : memref<16x128xbf16, #tpu.memory_space<vmem>>, vector<16x128xbf16>
    tpu.vector_store %arg17[%c0_375, %c0_376], %797 {strides = array<i32>} : memref<16x128xbf16, #tpu.memory_space<vmem>>, vector<16x128xbf16>,
    %c0_377 = arith.constant 0 : index
    %c0_378 = arith.constant 0 : index
    %799 = vector.load %arg18[%c0_377, %c0_378] : memref<16x128xf32, #tpu.memory_space<vmem>>, vector<16x128xf32>
    tpu.vector_store %arg18[%c0_377, %c0_378], %794 {strides = array<i32>} : memref<16x128xf32, #tpu.memory_space<vmem>>, vector<16x128xf32>,
    %800 = arith.truncf %796 : vector<16x128xf32> to vector<16x128xbf16>
    %801 = arith.index_cast %c8_i32_362 : i32 to index
    %c0_379 = arith.constant 0 : index
    %c0_380 = arith.constant 0 : index
    %802 = vector.load %arg16[%801, %c0_379, %c0_380] : memref<9x16x128xbf16, #tpu.memory_space<vmem>>, vector<1x16x128xbf16>
    %803 = vector.shape_cast %802 : vector<1x16x128xbf16> to vector<16x128xbf16>
    %804 = vector.shape_cast %800 : vector<16x128xbf16> to vector<1x16x128xbf16>
    tpu.vector_store %arg16[%801, %c0_379, %c0_380], %804 {strides = array<i32>} : memref<9x16x128xbf16, #tpu.memory_space<vmem>>, vector<1x16x128xbf16>,
    %c9_i32_381 = arith.constant 9 : i32
    %c0_382 = arith.constant 0 : index
    %c0_383 = arith.constant 0 : index
    %c0_384 = arith.constant 0 : index
    %805 = vector.load %arg16[%c0_382, %c0_383, %c0_384] : memref<9x16x128xbf16, #tpu.memory_space<vmem>>, vector<9x16x128xbf16>
    %806 = vector.shape_cast %805 : vector<9x16x128xbf16> to vector<144x128xbf16>
    %c0_385 = arith.constant 0 : index
    %c0_386 = arith.constant 0 : index
    %807 = vector.load %arg12[%c0_385, %c0_386] : memref<128x128xbf16, #tpu.memory_space<vmem>>, vector<128x128xbf16>
    %cst_387 = arith.constant dense<0.000000e+00> : vector<144x128xf32>
    %808 = tpu.matmul %806, %807, %cst_387 {dimension_numbers = #tpu.dot_dimension_numbers<[1], [0], [0], [1], [0, 0, 1, 1], [], []>} : vector<144x128xbf16>, vector<128x128xbf16>, vector<144x128xf32> -> vector<144x128xf32>
    %c0_388 = arith.constant 0 : index
    %c0_389 = arith.constant 0 : index
    %809 = vector.load %arg13[%c0_388, %c0_389] : memref<1x128xf32, #tpu.memory_space<vmem>>, vector<1x128xf32>
    %810 = vector.broadcast %809 : vector<1x128xf32> to vector<144x128xf32>
    %811 = arith.addf %808, %810 : vector<144x128xf32>
    %812 = vector.shape_cast %811 : vector<144x128xf32> to vector<9x16x128xf32>
    %c0_390 = arith.constant 0 : index
    %c0_391 = arith.constant 0 : index
    %813 = vector.load %arg13[%c0_390, %c0_391] : memref<1x128xf32, #tpu.memory_space<vmem>>, vector<1x128xf32>
    %814 = vector.shape_cast %813 : vector<1x128xf32> to vector<1x1x128xf32>
    %c0_392 = arith.constant 0 : index
    %c0_393 = arith.constant 0 : index
    %c0_394 = arith.constant 0 : index
    %815 = vector.load %arg1[%c0_392, %c0_393, %c0_394] : memref<9x16x1xf32, #tpu.memory_space<vmem>>, vector<9x16x1xf32>
    %cst_395 = arith.constant 0.000000e+00 : f32
    %816 = vector.broadcast %cst_395 : f32 to vector<9x16x1xf32>
    %817 = arith.cmpf ogt, %815, %816 : vector<9x16x1xf32>
    %818 = vector.shape_cast %817 : vector<9x16x1xi1> to vector<9x16x1xi1>
    %819 = vector.broadcast %818 : vector<9x16x1xi1> to vector<9x16x128xi1>
    %820 = vector.shape_cast %814 : vector<1x1x128xf32> to vector<1x1x128xf32>
    %821 = vector.broadcast %820 : vector<1x1x128xf32> to vector<9x16x128xf32>
    %822 = arith.select %819, %812, %821 : vector<9x16x128xi1>, vector<9x16x128xf32>
    %c0_396 = arith.constant 0 : index
    %c0_397 = arith.constant 0 : index
    %c0_398 = arith.constant 0 : index
    %823 = vector.load %arg14[%c0_396, %c0_397, %c0_398] : memref<9x16x128xf32, #tpu.memory_space<vmem>>, vector<9x16x128xf32>
    tpu.vector_store %arg14[%c0_396, %c0_397, %c0_398], %822 {strides = array<i32>} : memref<9x16x128xf32, #tpu.memory_space<vmem>>, vector<9x16x128xf32>,
    return
  }
  func.func @transform_0(%arg0: i32) -> (i32, i32, i32) {
    %c0_i32 = arith.constant 0 : i32
    %c0_i32_0 = arith.constant 0 : i32
    %c0_i32_1 = arith.constant 0 : i32
    return %c0_i32, %arg0, %c0_i32_0 : i32, i32, i32
  }
  func.func @transform_1(%arg0: i32) -> (i32, i32) {
    %c0_i32 = arith.constant 0 : i32
    %c0_i32_0 = arith.constant 0 : i32
    return %arg0, %c0_i32 : i32, i32
  }
  func.func @transform_2(%arg0: i32) -> (i32, i32, i32) {
    %c0_i32 = arith.constant 0 : i32
    %c0_i32_0 = arith.constant 0 : i32
    %c0_i32_1 = arith.constant 0 : i32
    return %c0_i32, %arg0, %c0_i32_0 : i32, i32, i32
  }
  func.func @transform_3(%arg0: i32) -> (i32, i32) {
    %c0_i32 = arith.constant 0 : i32
    %c0_i32_0 = arith.constant 0 : i32
    %c0_i32_1 = arith.constant 0 : i32
    return %c0_i32, %c0_i32_0 : i32, i32
  }
  func.func @transform_4(%arg0: i32) -> (i32, i32) {
    %c0_i32 = arith.constant 0 : i32
    %c0_i32_0 = arith.constant 0 : i32
    %c0_i32_1 = arith.constant 0 : i32
    return %c0_i32, %c0_i32_0 : i32, i32
  }
  func.func @transform_5(%arg0: i32) -> (i32, i32) {
    %c0_i32 = arith.constant 0 : i32
    %c0_i32_0 = arith.constant 0 : i32
    %c0_i32_1 = arith.constant 0 : i32
    return %c0_i32, %c0_i32_0 : i32, i32
  }
  func.func @transform_6(%arg0: i32) -> (i32, i32) {
    %c0_i32 = arith.constant 0 : i32
    %c0_i32_0 = arith.constant 0 : i32
    %c0_i32_1 = arith.constant 0 : i32
    return %c0_i32, %c0_i32_0 : i32, i32
  }
  func.func @transform_7(%arg0: i32) -> (i32, i32) {
    %c0_i32 = arith.constant 0 : i32
    %c0_i32_0 = arith.constant 0 : i32
    %c0_i32_1 = arith.constant 0 : i32
    return %c0_i32, %c0_i32_0 : i32, i32
  }
  func.func @transform_8(%arg0: i32) -> (i32, i32) {
    %c0_i32 = arith.constant 0 : i32
    %c0_i32_0 = arith.constant 0 : i32
    %c0_i32_1 = arith.constant 0 : i32
    return %c0_i32, %c0_i32_0 : i32, i32
  }
  func.func @transform_9(%arg0: i32) -> (i32, i32) {
    %c0_i32 = arith.constant 0 : i32
    %c0_i32_0 = arith.constant 0 : i32
    %c0_i32_1 = arith.constant 0 : i32
    return %c0_i32, %c0_i32_0 : i32, i32
  }
  func.func @transform_10(%arg0: i32) -> (i32, i32) {
    %c0_i32 = arith.constant 0 : i32
    %c0_i32_0 = arith.constant 0 : i32
    %c0_i32_1 = arith.constant 0 : i32
    return %c0_i32, %c0_i32_0 : i32, i32
  }
  func.func @transform_11(%arg0: i32) -> (i32, i32) {
    %c0_i32 = arith.constant 0 : i32
    %c0_i32_0 = arith.constant 0 : i32
    %c0_i32_1 = arith.constant 0 : i32
    return %c0_i32, %c0_i32_0 : i32, i32
  }
  func.func @transform_12(%arg0: i32) -> (i32, i32) {
    %c0_i32 = arith.constant 0 : i32
    %c0_i32_0 = arith.constant 0 : i32
    %c0_i32_1 = arith.constant 0 : i32
    return %c0_i32, %c0_i32_0 : i32, i32
  }
  func.func @transform_13(%arg0: i32) -> (i32, i32, i32) {
    %c0_i32 = arith.constant 0 : i32
    %c0_i32_0 = arith.constant 0 : i32
    %c0_i32_1 = arith.constant 0 : i32
    return %c0_i32, %arg0, %c0_i32_0 : i32, i32, i32
  }
}

</mosaic_0001>

<bundles_post_ra>
// kernel: tpu_custom_call.1
= control target key start
LH: loop header
LB: loop body
LE: loop exit
PB: predicated region body
PF: predicated region fallthrough
CT: control target
= control target key end

     0   :  { %s15057_s0 = inlined_call_operand.vmem [shape: f32[9,32,1], index: 0, kind: input, shape index: {}]   ;;  %s15058_s1 = inlined_call_operand.vmem [shape: bf16[32,272], index: 1, kind: input, shape index: {}]   ;;  %s15059_s2 = inlined_call_operand.vmem [shape: bf16[8,32,16], index: 2, kind: input, shape index: {}]   ;;  %s15060_s3 = inlined_call_operand.vmem [shape: bf16[272,256], index: 3, kind: input, shape index: {}]   ;;  %s15061_s4 = inlined_call_operand.vmem [shape: f32[1,256], index: 4, kind: input, shape index: {}]   ;;  %s15062_s5 = inlined_call_operand.hbm [shape: bf16[272,512], index: 5, kind: input, shape index: {}]   ;;  %s15063_s6 = inlined_call_operand.hbm [shape: bf16[128,512], index: 6, kind: input, shape index: {}]   ;;  %s15064_s7 = inlined_call_operand.vmem [shape: f32[1,512], index: 7, kind: input, shape index: {}]   ;;  %s15065_s8 = inlined_call_operand.hbm [shape: bf16[128,512], index: 8, kind: input, shape index: {}]   ;;  %s15066_s9 = inlined_call_operand.hbm [shape: bf16[128,512], index: 9, kind: input, shape index: {}]   ;;  %s15067_s10 = inlined_call_operand.vmem [shape: f32[1,512], index: 10, kind: input, shape index: {}]   ;;  %s15068_s11 = inlined_call_operand.vmem [shape: bf16[128,128], index: 11, kind: input, shape index: {}]   ;;  %s15069_s12 = inlined_call_operand.vmem [shape: f32[1,128], index: 12, kind: input, shape index: {}]   ;;  %s15070_s13 = inlined_call_operand.hbm [shape: f32[9,32,128], index: 13, kind: output, shape index: {}]  }
   0x1   :  { %15138 = sst [smem:[#allocation57_spill]] %s15061_s4 }
   0x2   :  { %15139 = sst [smem:[#allocation58_spill]] %s15067_s10 }
   0x3   :  { %15140 = sst [smem:[#allocation59_spill]] %s15068_s11 }
   0x4   :  { %15141 = sst [smem:[#allocation60_spill]] %s15069_s12 }
   0x5   :  { %15142 = sst [smem:[#allocation61_spill]] %s15070_s13 }
   0x6   :  { %18 = vsyncpa [#allocation9], 0 }
   0x7   :  { %19 = vsyncpa [#allocation12], 0 }
   0x8   :  { %20 = vsyncpa [#allocation15], 0 }
   0x9   :  { %21 = vsyncpa [#allocation10], 0 }
   0xa   :  { %23 = vsyncpa [#allocation10 + $0x1], 0  ;;  %s12661_s25 = smov 0   ;;  %s12663_s26 = smov 0  }
   0xb   :  { %s12665_s27 = smov 0   ;;  %s12667_s28 = smov 0  }
   0xc LB: > { %15143 = sst [smem:[#allocation23_spill]] %s12561_s25  ;;  %s12682_s29 = sadd.s32 4294967295, %s12573_s28   ;;  %s12573_s28 = sphi %s12667_s28, %s15294_s28   ;;  %s12569_s27 = sphi %s12665_s27, %s15298_s27   ;;  %s12565_s26 = sphi %s12663_s26, %s15297_s26   ;;  %s12561_s25 = sphi %s12661_s25, %s15296_s25  }
   0xd   : > { %s10103_s30 = sadd.s32 4294967294, %s12573_s28   ;;  %s12686_s14 = sadd.s32 1, %s12573_s28  }
   0xe   : > { %15144 = sst [smem:[#allocation24_spill]] %s12686_s14  ;;  %s36_s15 = sadd.s32 1, %s12569_s27 }
   0xf   : > { %s33_s16 = ssub.s32 %s12573_s28, %s12686_s14  ;;  %p43_p0 = scmp.ne.s32.totalorder %s12569_s27, %s12565_s26 }
  0x10   : > { %p34_p1 = scmp.eq.s32.totalorder %s33_s16, 0  ;;  %p44_p2 = scmp.eq.s32.totalorder %s12573_s28, 0 }
  0x11   : > { %p335_p3 = scmp.eq.s32.totalorder %s12682_s29, 1  ;;  %p340_p4 = scmp.ne.s32.totalorder %s12565_s26, %s12561_s25 }
  0x12   : > { %s12698_s17 = scalar_select %p34_p1, %s12569_s27, %s36_s15  }
  0x13   : > { %p12700_p5 = por %p44_p2, %p43_p0  ;;  %p12704_p6 = por %p335_p3, %p43_p0 }
  0x14   : > { %15145 = sst [smem:[#allocation25_spill]] %s12698_s17  ;;  %p341_p7 = scmp.eq.s32.totalorder %s10103_s30, 1 }
  0x15   : > { %s15146_s18 = scalar_select %p12700_p5, 1, 0 }
  0x16   : > { %s15147_s19 = scalar_select %p12704_p6, 1, 0 }
  0x17   : > { %p10104_p8 = scmp.ge.s32.totalorder %s12573_s28, 1  ;;  %p348_p9 = scmp.lt.s32.totalorder %s12573_s28, 3 }
  0x18   : > { %15148 = sst [smem:[#allocation26_spill]] %s15147_s19  ;;  %p12710_p10 = por %p341_p7, %p340_p4 }
  0x19   : > { %p15077_p11 = scmp.eq.s32.totalorder %s12682_s29, 0  ;;  %p12715_p12 = pnand %p10104_p8, %p348_p9 }
  0x1a   : > { %s15149_s20 = scalar_select %p12710_p10, 1, 0 }
  0x1b   : > { %s15151_s21 = scalar_select %p12715_p12, 1, 0 }
  0x1c   : > { %15150 = sst [smem:[#allocation27_spill]] %s15149_s20  ;;  %p11191_p13 = pneg %p12715_p12 }
  0x1d   : > { %s12575_s22 = smov [#allocation11]   ;;  %s12576_s30 = smov [#allocation8]  }
  0x1e   : > { %s379_s23 = sshll.u32 %s12575_s22, 4  ;;  %p12725_p0 = pnand %p15077_p11, %p11191_p13  ;;  %s12721_s23 = int_to_ptr.vmem [resolvable:$true] %s379_s23 }
  0x1f   : > { %s366_s15 = sshll.u32 %s12576_s30, 4  ;;  %s12577_s16 = smov [#allocation13]   ;;  %s12729_s15 = int_to_ptr.vmem [resolvable:$true] %s366_s15 }
  0x20   : > { %s12731_s17 = sshll.u32 %s12577_s16, 4  ;;  %s12415_s25 = scalar_lea.hbm %s15063_s6, 4096  ;;  %s396_s17 = int_to_ptr.vmem [resolvable:$true] %s12731_s17 }
  0x21   : > { %p12416_p1 = scmp.ne.s32.totalorder %s15063_s6, %s12415_s25  ;;  %p12741_p2 = pneg %p12725_p0 }
  0x22   : > { %p12422_p7 = scmp.lt.u32.totalorder %s12415_s25, %s15063_s6 }
  0x23   : > { %p12418_p3 = pnand %p12741_p2, %p12416_p1 }
  0x25   : > { %p12419_p4 = pneg %p12418_p3 }
  0x27   : > { %p12424_p8 = pnand %p12422_p7, %p12419_p4 }
  0x29   : > { %12427 = shalt.err (!%p12424_p8)
}
  0x2a   : > { %s12428_s13 = scalar_lea.vmem %s12721_s23, 4096  ;;  %p12436_p10 = scmp.lt.s32.totalorder %s12721_s23, %s12721_s23 }
  0x2b   : > { %p12429_p9 = scmp.ne.s32.totalorder %s12721_s23, %s12428_s13  ;;  %p12437_p6 = scmp.lt.s32.totalorder %s12428_s13, %s12428_s13 }
  0x2d   : > { %p12431_p13 = pnand %p12429_p9, %p12741_p2  ;;  %p12438_p1 = por %p12437_p6, %p12436_p10 }
  0x2f   : > { %p12432_p11 = pneg %p12431_p13 }
  0x31   : > { %p12439_p3 = pnand %p12438_p1, %p12432_p11 }
  0x33   : > { %12442 = shalt.err (!%p12439_p3)
}
  0x34   : > { %s12578_s14 = smov 256   ;;  %s12579_s25 = smov 16  }
  0x35   : > { %11197 = dma.hbm_to_vmem [thread:$0]  (!%p12725_p0), %s15063_s6, 4096, %s12721_s23, [#allocation12], %s12578_s14, %s12578_s14, %s12579_s25  }
  0x36   : > { %s12443_s13 = scalar_lea.hbm %s15062_s5, 8704 }
  0x37   : > { %p12444_p6 = scmp.ne.s32.totalorder %s15062_s5, %s12443_s13  ;;  %p12450_p4 = scmp.lt.u32.totalorder %s12443_s13, %s15062_s5 }
  0x39   : > { %p12446_p10 = pnand %p12444_p6, %p12741_p2 }
  0x3b   : > { %p12447_p11 = pneg %p12446_p10 }
  0x3d   : > { %p12452_p7 = pnand %p12450_p4, %p12447_p11 }
  0x3f   : > { %12455 = shalt.err (!%p12452_p7)
}
  0x40   : > { %s12456_s23 = scalar_lea.vmem %s12729_s15, 8704  ;;  %p12464_p1 = scmp.lt.s32.totalorder %s12729_s15, %s12729_s15 }
  0x41   : > { %p12457_p8 = scmp.ne.s32.totalorder %s12729_s15, %s12456_s23  ;;  %p12465_p3 = scmp.lt.s32.totalorder %s12456_s23, %s12456_s23 }
  0x43   : > { %p12459_p9 = pnand %p12457_p8, %p12741_p2  ;;  %p12466_p6 = por %p12465_p3, %p12464_p1 }
  0x45   : > { %p12460_p13 = pneg %p12459_p9 }
  0x47   : > { %p12467_p10 = pnand %p12466_p6, %p12460_p13 }
  0x49   : > { %12470 = shalt.err (!%p12467_p10)
}
  0x4a   : > { %11194 = dma.hbm_to_vmem [thread:$0]  (!%p12725_p0), %s15062_s5, 8704, %s12729_s15, [#allocation9], %s12578_s14, %s12578_s14, %s12579_s25  }
  0x4b   : > { %s12471_s20 = scalar_lea.hbm %s15065_s8, 4096 }
  0x4c   : > { %p12472_p11 = scmp.ne.s32.totalorder %s15065_s8, %s12471_s20  ;;  %p12478_p8 = scmp.lt.u32.totalorder %s12471_s20, %s15065_s8 }
  0x4e   : > { %p12474_p4 = pnand %p12472_p11, %p12741_p2 }
  0x50   : > { %p12475_p7 = pneg %p12474_p4 }
  0x52   : > { %p12480_p9 = pnand %p12478_p8, %p12475_p7 }
  0x54   : > { %12483 = shalt.err (!%p12480_p9)
}
  0x55   : > { %s12484_s23 = scalar_lea.vmem %s396_s17, 4096  ;;  %p12492_p6 = scmp.lt.s32.totalorder %s396_s17, %s396_s17 }
  0x56   : > { %p12485_p13 = scmp.ne.s32.totalorder %s396_s17, %s12484_s23  ;;  %p12493_p10 = scmp.lt.s32.totalorder %s12484_s23, %s12484_s23 }
  0x58   : > { %p12487_p1 = pnand %p12485_p13, %p12741_p2  ;;  %p12494_p12 = por %p12493_p10, %p12492_p6 }
  0x5a   : > { %p12488_p3 = pneg %p12487_p1 }
  0x5c   : > { %p12495_p5 = pnand %p12494_p12, %p12488_p3 }
  0x5e   : > { %12498 = shalt.err (!%p12495_p5)
}
  0x5f   : > { %11200 = dma.hbm_to_vmem [thread:$0]  (!%p12725_p0), %s15065_s8, 4096, %s396_s17, [#allocation12], %s12578_s14, %s12578_s14, %s12579_s25  }
  0x60   : > { %s12580_s10 = smov [#allocation14]   ;;  %s12499_s22 = scalar_lea.hbm %s15066_s9, 4096 }
  0x61   : > { %s408_s11 = sshll.u32 %s12580_s10, 4  ;;  %p12500_p5 = scmp.ne.s32.totalorder %s15066_s9, %s12499_s22  ;;  %s409_s11 = int_to_ptr.vmem [resolvable:$true] %s408_s11 }
  0x62   : > { %p12506_p4 = scmp.lt.u32.totalorder %s12499_s22, %s15066_s9 }
  0x63   : > { %p12502_p12 = pnand %p12500_p5, %p12741_p2 }
  0x65   : > { %p12503_p11 = pneg %p12502_p12 }
  0x67   : > { %p12508_p7 = pnand %p12506_p4, %p12503_p11 }
  0x69   : > { %12511 = shalt.err (!%p12508_p7)
}
  0x6a   : > { %s12512_s17 = scalar_lea.vmem %s409_s11, 4096  ;;  %p12520_p1 = scmp.lt.s32.totalorder %s409_s11, %s409_s11 }
  0x6b   : > { %p12513_p8 = scmp.ne.s32.totalorder %s409_s11, %s12512_s17  ;;  %p12521_p3 = scmp.lt.s32.totalorder %s12512_s17, %s12512_s17 }
  0x6d   : > { %p12515_p9 = pnand %p12513_p8, %p12741_p2  ;;  %p12522_p6 = por %p12521_p3, %p12520_p1 }
  0x6f   : > { %p12516_p13 = pneg %p12515_p9 }
  0x71   : > { %p12523_p10 = pnand %p12522_p6, %p12516_p13 }
  0x73   : > { %12526 = shalt.err (!%p12523_p10)
}
  0x74   : > { %11203 = dma.hbm_to_vmem [thread:$0]  (!%p12725_p0), %s15066_s9, 4096, %s409_s11, [#allocation15], %s12578_s14, %s12578_s14, %s12579_s25  }
  0x75   : > { %p10109_p5 = scmp.ge.s32.totalorder %s12573_s28, 2 }
  0x76   : > { %p15154_p2 = scmp.ne.s32.totalorder (!%p10109_p5), %s15146_s18, 0 }
  0x77   : > { %427 = sbr.rel (%p10109_p5) target bundleno = 148 (0x94), region = 56 }
  0x7e   : > { %430 = sbr.rel (!%p15154_p2) target bundleno = 139 (0x8b), region = 60  ;;  %s432_s19 = sand.u32 (%p15154_p2), 1, %s12569_s27  }
  0x7f   : > { %s11052_s10 = sshll.u32 (%p15154_p2), %s12573_s28, 4  ;;  %s11164_s24 = smul.u32 (%p15154_p2), 144, %s432_s19 }
  0x80   : > { %s12844_s22 = scalar_lea.vmem (%p15154_p2), %s15057_s0, %s11052_s10 }
  0x81   : > { %v499_v0 = vld [vmem:[%s12844_s22] sm:$0xff] (%p15154_p2)  ;;  %v501_v1 = vld [vmem:[%s12844_s22 + $0x8] sm:$0xff] (%p15154_p2)  ;;  %s434_s14 = scalar_lea.vmem (%p15154_p2), [#allocation6], %s11164_s24 }
  0x82   : > { %v503_v2 = vld [vmem:[%s12844_s22 + $0x20] sm:$0xff] (%p15154_p2)  ;;  %v505_v3 = vld [vmem:[%s12844_s22 + $0x28] sm:$0xff] (%p15154_p2)  ;;  %500 = vst [vmem:[%s434_s14] sm:$0xff] (%p15154_p2), %v499_v0  ;;  %502 = vst [vmem:[%s434_s14 + $0x8] sm:$0xff] (%p15154_p2), %v501_v1 }
  0x83   : > { %v507_v4 = vld [vmem:[%s12844_s22 + $0x40] sm:$0xff] (%p15154_p2)  ;;  %v509_v5 = vld [vmem:[%s12844_s22 + $0x48] sm:$0xff] (%p15154_p2)  ;;  %504 = vst [vmem:[%s434_s14 + $0x10] sm:$0xff] (%p15154_p2), %v503_v2  ;;  %506 = vst [vmem:[%s434_s14 + $0x18] sm:$0xff] (%p15154_p2), %v505_v3 }
  0x84   : > { %508 = vst [vmem:[%s434_s14 + $0x20] sm:$0xff] (%p15154_p2), %v507_v4  ;;  %510 = vst [vmem:[%s434_s14 + $0x28] sm:$0xff] (%p15154_p2), %v509_v5  ;;  %v511_v6 = vld [vmem:[%s12844_s22 + $0x60] sm:$0xff] (%p15154_p2)  ;;  %v513_v7 = vld [vmem:[%s12844_s22 + $0x68] sm:$0xff] (%p15154_p2) }
  0x85   : > { %v515_v8 = vld [vmem:[%s12844_s22 + $0x80] sm:$0xff]  ;;  %512 = vst [vmem:[%s434_s14 + $0x30] sm:$0xff] %v511_v6  ;;  %514 = vst [vmem:[%s434_s14 + $0x38] sm:$0xff] %v513_v7  ;;  %v517_v9 = vld [vmem:[%s12844_s22 + $0x88] sm:$0xff] }
  0x86   : > { %516 = vst [vmem:[%s434_s14 + $0x40] sm:$0xff] %v515_v8  ;;  %v519_v10 = vld [vmem:[%s12844_s22 + $0xa0] sm:$0xff]  ;;  %v521_v11 = vld [vmem:[%s12844_s22 + $0xa8] sm:$0xff]  ;;  %518 = vst [vmem:[%s434_s14 + $0x48] sm:$0xff] %v517_v9 }
  0x87   : > { %520 = vst [vmem:[%s434_s14 + $0x50] sm:$0xff] %v519_v10  ;;  %522 = vst [vmem:[%s434_s14 + $0x58] sm:$0xff] %v521_v11  ;;  %v523_v12 = vld [vmem:[%s12844_s22 + $0xc0] sm:$0xff]  ;;  %v525_v13 = vld [vmem:[%s12844_s22 + $0xc8] sm:$0xff] }
  0x88   : > { %v527_v14 = vld [vmem:[%s12844_s22 + $0xe0] sm:$0xff]  ;;  %524 = vst [vmem:[%s434_s14 + $0x60] sm:$0xff] %v523_v12  ;;  %526 = vst [vmem:[%s434_s14 + $0x68] sm:$0xff] %v525_v13  ;;  %v529_v15 = vld [vmem:[%s12844_s22 + $0xe8] sm:$0xff] }
  0x89   : > { %528 = vst [vmem:[%s434_s14 + $0x70] sm:$0xff] %v527_v14  ;;  %v531_v16 = vld [vmem:[%s12844_s22 + $0x100] sm:$0xff]  ;;  %v533_v17 = vld [vmem:[%s12844_s22 + $0x108] sm:$0xff]  ;;  %530 = vst [vmem:[%s434_s14 + $0x78] sm:$0xff] %v529_v15 }
  0x8a   : > { %532 = vst [vmem:[%s434_s14 + $0x80] sm:$0xff] %v531_v16  ;;  %534 = vst [vmem:[%s434_s14 + $0x88] sm:$0xff] %v533_v17 }
  0x8b PF: > { %p15155_p0 = scmp.ne.s32.totalorder %s15146_s18, 0 }
  0x8c   : > { %s552_s25 = sand.u32 (%p15155_p0), 1, %s12569_s27   ;;  %s11053_s11 = sshll.u32 (%p15155_p0), %s12573_s28, 3 }
  0x8d   : > { %550 = sbr.rel (!%p15155_p0) target bundleno = 148 (0x94), region = 102  ;;  %s10112_s30 = sshll.u32 (%p15155_p0), %s552_s25, 6 }
  0x8e   : > { %s557_s23 = scalar_lea.vmem (%p15155_p0), %s15059_s2, %s11053_s11  ;;  %s554_s17 = scalar_lea.vmem (%p15155_p0), [#allocation7], %s10112_s30 }
  0x8f   : > { %v573_v18 = vld [vmem:[%s557_s23] sm:$0xff] (%p15155_p0)   ;;  %v577_v19 = vld [vmem:[%s557_s23 + $0x10] sm:$0xff] (%p15155_p0)  }
  0x90   : > { %v581_v20 = vld [vmem:[%s557_s23 + $0x20] sm:$0xff] (%p15155_p0)   ;;  %574 = vst [vmem:[%s554_s17] sm:$0xff] (%p15155_p0), %v573_v18   ;;  %578 = vst [vmem:[%s554_s17 + $0x8] sm:$0xff] (%p15155_p0), %v577_v19   ;;  %v585_v21 = vld [vmem:[%s557_s23 + $0x30] sm:$0xff] (%p15155_p0)  }
  0x91   : > { %582 = vst [vmem:[%s554_s17 + $0x10] sm:$0xff] (%p15155_p0), %v581_v20   ;;  %v589_v22 = vld [vmem:[%s557_s23 + $0x40] sm:$0xff] (%p15155_p0)   ;;  %v593_v23 = vld [vmem:[%s557_s23 + $0x50] sm:$0xff] (%p15155_p0)   ;;  %586 = vst [vmem:[%s554_s17 + $0x18] sm:$0xff] (%p15155_p0), %v585_v21  }
  0x92   : > { %590 = vst [vmem:[%s554_s17 + $0x20] sm:$0xff] (%p15155_p0), %v589_v22   ;;  %594 = vst [vmem:[%s554_s17 + $0x28] sm:$0xff] (%p15155_p0), %v593_v23   ;;  %v597_v24 = vld [vmem:[%s557_s23 + $0x60] sm:$0xff] (%p15155_p0)   ;;  %v601_v25 = vld [vmem:[%s557_s23 + $0x70] sm:$0xff] (%p15155_p0)  }
  0x93   : > { %598 = vst [vmem:[%s554_s17 + $0x30] sm:$0xff] (%p15155_p0), %v597_v24   ;;  %602 = vst [vmem:[%s554_s17 + $0x38] sm:$0xff] (%p15155_p0), %v601_v25  }
  0x94 PF: > { %p15156_p12 = scmp.ne.s32.totalorder %s15151_s21, 0 }
  0x96   : > { %662 = sbr.rel (%p15156_p12) target bundleno = 5391 (0x150f), region = 143 }
  0x9d   : > { %s12874_s18 = sand.u32 1, %s12565_s26   ;;  %p15157_p11 = scmp.eq.s32.totalorder %s12682_s29, 0 }
  0x9e   : > { %s11165_s15 = smul.u32 144, %s12874_s18  ;;  %s10116_s4 = sshll.u32 %s12874_s18, 6 }
  0x9f   : > { %s12882_s10 = scalar_lea.vmem [#allocation7], %s10116_s4 }
  0xa0   : > { %s12880_s19 = scalar_lea.vmem [#allocation6], %s11165_s15 }
  0xa1   : > { %12544 = dma.done.wait (%p15157_p11), [#allocation9], 8704   ;;  %p15158_p4 = pmov %p15157_p11 }
  0xa3   : > { %12546 = vsyncadd (%p15158_p4), [#allocation9], 4294958592  ;;  %p15159_p7 = pmov %p15158_p4 }
  0xa4   : > { %p15160_p8 = pmov %p15158_p4 }
  0xa5   : > { %12548 = dma.done.wait (%p15159_p7), [#allocation12], 8192  }
  0xa6   : > { %12550 = vsyncadd (%p15160_p8), [#allocation12], 4294959104  ;;  %p15161_p9 = pmov %p15158_p4 }
  0xa7   : > { %p15162_p13 = pmov %p15158_p4 }
  0xa8   : > { %12552 = dma.done.wait (%p15161_p9), [#allocation15], 4096  }
  0xa9   : > { %12554 = vsyncadd (%p15162_p13), [#allocation15], 4294963200  ;;  %v15085_v26 = vmov 0   ;;  %v12898_v27 = vld [vmem:[#allocation8 + $0x4] ss:$16 sps:$4 sm:$0xff]   ;;  %s10121_s21 = sshll.u32 %s12682_s29, 1 }
  0xaa   : > { %11265 = vset.pattern.permute.xlu0 %v15085_v26  ;;  %11266 = vset.pattern.permute.xlu1 %v15085_v26  ;;  %v12900_v28 = vld [vmem:[#allocation8] ss:$16 sps:$4 sm:$0xff]   ;;  %v12903_v29 = vld [vmem:[#allocation8 + $0x24] ss:$16 sps:$4 sm:$0xff]   ;;  %p743_p1 = scmp.lt.s32.totalorder %s10121_s21, 3  ;;  %vm1201_vm0 = vcmask 130048  }
  0xab   : > { %1205 = vmatprep.subr.bf16.mxu0 %v12898_v27  ;;  %v12906_v30 = vld [vmem:[#allocation8 + $0x20] ss:$16 sps:$4 sm:$0xff]   ;;  %v12909_v31 = vld [vmem:[#allocation8 + $0x44] ss:$16 sps:$4 sm:$0xff]   ;;  %v11374_v55 = vld [vmem:[#allocation8 + $0xc] ss:$16 sps:$4 sm:$0xff]  }
  0xac   : > { %1206 = vmatpush1.bf16.msra.mxu0 %v12900_v28  ;;  %v12913_v32 = vld [vmem:[#allocation8 + $0x40] ss:$16 sps:$4 sm:$0xff]   ;;  %v12916_v33 = vld [vmem:[#allocation8 + $0x64] ss:$16 sps:$4 sm:$0xff]   ;;  %s15300_s21 = smov (!%p743_p1, %s10121_s21), 3  ;;  %1291 = vmatprep.subr.bf16.mxu1 %v11374_v55  ;;  %s15167_s25 = sld [smem:[#allocation57_spill]] }
  0xad   : > { %1207 = vmatprep.subr.bf16.mxu0 %v12903_v29  ;;  %v12919_v34 = vld [vmem:[#allocation8 + $0x60] ss:$16 sps:$4 sm:$0xff]   ;;  %v12922_v35 = vld [vmem:[#allocation8 + $0x84] ss:$16 sps:$4 sm:$0xff]   ;;  %s11166_s24 = smul.u32 12, %s15300_s21  ;;  %s15235_s23 = sld [smem:[#allocation58_spill]] }
  0xae   : > { %v12925_v36 = vld [vmem:[#allocation8 + $0x80] ss:$16 sps:$4 sm:$0xff]   ;;  %v12928_v37 = vld [vmem:[#allocation8 + $0xa4] ss:$16 sps:$4 sm:$0xff]   ;;  %v11376_v56 = vld [vmem:[#allocation8 + $0x8] ss:$16 sps:$4 sm:$0xff]  }
  0xaf   : > { %v12931_v38 = vld [vmem:[#allocation8 + $0xa0] ss:$16 sps:$4 sm:$0xff]   ;;  %s12936_s22 = scalar_lea.vmem %s15058_s1, %s11166_s24  ;;  %v12939_v39 = vld [vmem:[#allocation8 + $0xc4] ss:$16 sps:$4 sm:$0xff]   ;;  %1292 = vmatpush1.bf16.msra.mxu1 %v11376_v56  ;;  %v11380_v59 = vld [vmem:[#allocation8 + $0x2c] ss:$16 sps:$4 sm:$0xff]  }
  0xb0   : > { %1208 = vmatpush1.bf16.msra.mxu0 %v12906_v30  ;;  %v12942_v40 = vld [vmem:[%s12936_s22 + $0x4] ss:$12 sps:$4 sm:$0xff]   ;;  %v11383_v60 = vld [vmem:[#allocation8 + $0x28] ss:$16 sps:$4 sm:$0xff]   ;;  %1293 = vmatprep.subr.bf16.mxu1 %v11380_v59  ;;  %v11384_v62 = vld [vmem:[#allocation8 + $0x4c] ss:$16 sps:$4 sm:$0xff]  }
  0xb1   : > { %1209 = vmatprep.subr.bf16.mxu0 %v12909_v31  ;;  %v12945_v41 = vld [vmem:[#allocation8 + $0xc0] ss:$16 sps:$4 sm:$0xff]   ;;  %v12948_v42 = vld [vmem:[#allocation8 + $0xe4] ss:$16 sps:$4 sm:$0xff]   ;;  %1237 = vmatprep.mubr.bf16.mxu0 %v12942_v40  ;;  %v11386_v0 = vld [vmem:[#allocation8 + $0x48] ss:$16 sps:$4 sm:$0xff]  }
  0xb2   : > { %1323 = vmatprep.mubr.bf16.mxu1 %v12942_v40  ;;  %v12953_v43 = vld [vmem:[#allocation8 + $0xe0] ss:$16 sps:$4 sm:$0xff]   ;;  %v12956_v44 = vld [vmem:[#allocation8 + $0x104] ss:$16 sps:$4 sm:$0xff]   ;;  %v11390_v1 = vld [vmem:[#allocation8 + $0x6c] ss:$16 sps:$4 sm:$0xff]  }
  0xb3   : > { %v12959_v45 = vld [vmem:[#allocation8 + $0x100] ss:$16 sps:$4 sm:$0xff]   ;;  %v12962_v46 = vld [vmem:[#allocation8 + $0x124] ss:$16 sps:$4 sm:$0xff]   ;;  %1294 = vmatpush1.bf16.msra.mxu1 %v11383_v60  ;;  %v11393_v4 = vld [vmem:[#allocation8 + $0x68] ss:$16 sps:$4 sm:$0xff]  }
  0xb4   : > { %1210 = vmatpush1.bf16.msra.mxu0 %v12913_v32  ;;  %v12965_v47 = vld [vmem:[#allocation8 + $0x120] ss:$16 sps:$4 sm:$0xff]   ;;  %v12968_v48 = vld [vmem:[#allocation8 + $0x144] ss:$16 sps:$4 sm:$0xff]   ;;  %1295 = vmatprep.subr.bf16.mxu1 %v11384_v62  ;;  %v11394_v5 = vld [vmem:[#allocation8 + $0x8c] ss:$16 sps:$4 sm:$0xff]  }
  0xb5   : > { %1211 = vmatprep.subr.bf16.mxu0 %v12916_v33  ;;  %v11299_v49 = vld [vmem:[#allocation8 + $0x140] ss:$16 sps:$4 sm:$0xff]   ;;  %v11300_v50 = vld [vmem:[#allocation8 + $0x164] ss:$16 sps:$4 sm:$0xff]   ;;  %v11396_v9 = vld [vmem:[#allocation8 + $0x88] ss:$16 sps:$4 sm:$0xff]  }
  0xb6   : > { %v11302_v51 = vld [vmem:[#allocation8 + $0x160] ss:$16 sps:$4 sm:$0xff]   ;;  %v11303_v52 = vld [vmem:[#allocation8 + $0x184] ss:$16 sps:$4 sm:$0xff]   ;;  %v11400_v10 = vld [vmem:[#allocation8 + $0xac] ss:$16 sps:$4 sm:$0xff]  }
  0xb7   : > { %v11305_v53 = vld [vmem:[#allocation8 + $0x180] ss:$16 sps:$4 sm:$0xff]   ;;  %v11306_v54 = vld [vmem:[#allocation8 + $0x1a4] ss:$16 sps:$4 sm:$0xff]   ;;  %1296 = vmatpush1.bf16.msra.mxu1 %v11386_v0  ;;  %v11403_v11 = vld [vmem:[#allocation8 + $0xa8] ss:$16 sps:$4 sm:$0xff]  }
  0xb8   : > { %1212 = vmatpush1.bf16.msra.mxu0 %v12919_v34  ;;  %v11308_v57 = vld [vmem:[#allocation8 + $0x1a0] ss:$16 sps:$4 sm:$0xff]   ;;  %v11309_v58 = vld [vmem:[#allocation8 + $0x1c4] ss:$16 sps:$4 sm:$0xff]   ;;  %1297 = vmatprep.subr.bf16.mxu1 %v11390_v1  ;;  %v11404_v12 = vld [vmem:[#allocation8 + $0xcc] ss:$16 sps:$4 sm:$0xff]  }
  0xb9   : > { %1213 = vmatprep.subr.bf16.mxu0 %v12922_v35  ;;  %v11311_v61 = vld [vmem:[#allocation8 + $0x1c0] ss:$16 sps:$4 sm:$0xff]   ;;  %v11312_v63 = vld [vmem:[#allocation8 + $0x1e4] ss:$16 sps:$4 sm:$0xff]   ;;  %v11406_v13 = vld [vmem:[#allocation8 + $0xc8] ss:$16 sps:$4 sm:$0xff]  }
  0xba   : > { %v12972_v2 = vld [vmem:[#allocation8 + $0x1e0] ss:$16 sps:$4 sm:$0xff]   ;;  %v12974_v3 = vld [vmem:[#allocation8 + $0x204] ss:$16 sps:$4 sm:$0xff]   ;;  %v11410_v14 = vld [vmem:[#allocation8 + $0xec] ss:$16 sps:$4 sm:$0xff]  }
  0xbb   : > { %v12977_v6 = vld [vmem:[%s12936_s22] ss:$12 sps:$4 sm:$0xff]   ;;  %1298 = vmatpush1.bf16.msra.mxu1 %v11393_v4  ;;  %v12993_v16 = vld [vmem:[%s12936_s22 + $0x8] ss:$12 sps:$4 sm:$0xff]   ;;  %v11325_v19 = vld [vmem:[%s15060_s3 + $0x10] ss:$8 sps:$4 sm:$0xff]  }
  0xbc   : > { %1214 = vmatpush1.bf16.msra.mxu0 %v12925_v36  ;;  %v12980_v7 = vld [vmem:[#allocation8 + $0x200] ss:$16 sps:$4 sm:$0xff]   ;;  %v11323_v8 = vld [vmem:[%s15060_s3 + $0x4] ss:$8 sps:$4 sm:$0xff]   ;;  %1299 = vmatprep.subr.bf16.mxu1 %v11394_v5  ;;  %v11327_v17 = vld [vmem:[%s15060_s3 + $0x14] ss:$8 sps:$4 sm:$0xff]  }
  0xbd   : > { %1215 = vmatprep.subr.bf16.mxu0 %v12928_v37  ;;  %v11321_v15 = vld [vmem:[%s15060_s3] ss:$8 sps:$4 sm:$0xff]   ;;  %v11414_v20 = vld [vmem:[#allocation8 + $0x10c] ss:$16 sps:$4 sm:$0xff]   ;;  %v11343_v4 = vld [vmem:[%s15060_s3 + $0x70] ss:$8 sps:$4 sm:$0xff]  }
  0xbe   : > { %v11413_v18 = vld [vmem:[#allocation8 + $0xe8] ss:$16 sps:$4 sm:$0xff]   ;;  %v11330_v21 = vld [vmem:[%s15060_s3 + $0x24] ss:$8 sps:$4 sm:$0xff]   ;;  %v11333_v25 = vld [vmem:[%s15060_s3 + $0x34] ss:$8 sps:$4 sm:$0xff]  }
  0xbf   : > { %1300 = vmatpush1.bf16.msra.mxu1 %v11396_v9  ;;  %v11416_v22 = vld [vmem:[#allocation8 + $0x108] ss:$16 sps:$4 sm:$0xff]   ;;  %v11420_v23 = vld [vmem:[#allocation8 + $0x12c] ss:$16 sps:$4 sm:$0xff]   ;;  %s15280_s21 = sld [smem:[#allocation59_spill]]  ;;  %s15287_s12 = sld [smem:[#allocation60_spill]] }
  0xc0   : > { %1216 = vmatpush1.bf16.msra.mxu0 %v12931_v38  ;;  %1301 = vmatprep.subr.bf16.mxu1 %v11400_v10  ;;  %v11328_v24 = vld [vmem:[%s15060_s3 + $0x20] ss:$8 sps:$4 sm:$0xff]   ;;  %v11339_v55 = vld [vmem:[%s15060_s3 + $0x54] ss:$8 sps:$4 sm:$0xff]   ;;  %v11342_v59 = vld [vmem:[%s15060_s3 + $0x64] ss:$8 sps:$4 sm:$0xff]  }
  0xc1   : > { %1217 = vmatprep.subr.bf16.mxu0 %v12939_v39  ;;  %v11433_v56 = vld [vmem:[#allocation8 + $0x168] ss:$16 sps:$4 sm:$0xff]   ;;  %v11440_v62 = vld [vmem:[#allocation8 + $0x1ac] ss:$16 sps:$4 sm:$0xff]  }
  0xc2   : > { %v11436_v60 = vld [vmem:[#allocation8 + $0x188] ss:$16 sps:$4 sm:$0xff]   ;;  %v11447_v1 = vld [vmem:[#allocation8 + $0x1cc] ss:$16 sps:$4 sm:$0xff]  }
  0xc3   : > { %1302 = vmatpush1.bf16.msra.mxu1 %v11403_v11  ;;  %v11443_v0 = vld [vmem:[#allocation8 + $0x1a8] ss:$16 sps:$4 sm:$0xff]   ;;  %v11348_v5 = vld [vmem:[%s15060_s3 + $0x84] ss:$8 sps:$4 sm:$0xff]   ;;  %v11351_v11 = vld [vmem:[%s15060_s3 + $0x94] ss:$8 sps:$4 sm:$0xff]  }
  0xc4   : > { %1218 = vmatpush1.bf16.msra.mxu0 %v12945_v41  ;;  %1303 = vmatprep.subr.bf16.mxu1 %v11404_v12  ;;  %v13045_v9 = vld [vmem:[#allocation8 + $0x1ec] ss:$16 sps:$4 sm:$0xff]   ;;  %v11346_v10 = vld [vmem:[%s15060_s3 + $0x80] ss:$8 sps:$4 sm:$0xff]  }
  0xc5   : > { %1219 = vmatprep.subr.bf16.mxu0 %v12948_v42  ;;  %v13054_v12 = vld [vmem:[#allocation8 + $0x1e8] ss:$16 sps:$4 sm:$0xff]  }
  0xc7   : > { %1304 = vmatpush1.bf16.msra.mxu1 %v11406_v13  ;;  %v13056_v13 = vld [vmem:[#allocation8 + $0x20c] ss:$16 sps:$4 sm:$0xff]  }
  0xc8   : > { %1220 = vmatpush1.bf16.msra.mxu0 %v12953_v43  ;;  %1305 = vmatprep.subr.bf16.mxu1 %v11410_v14  ;;  %v11349_v14 = vld [vmem:[%s15060_s3 + $0x90] ss:$8 sps:$4 sm:$0xff]  }
  0xc9   : > { %1221 = vmatprep.subr.bf16.mxu0 %v12956_v44 }
  0xcb   : > { %1306 = vmatpush1.bf16.msra.mxu1 %v11413_v18  ;;  %v11352_v18 = vld [vmem:[%s15060_s3 + $0xa0] ss:$8 sps:$4 sm:$0xff]  }
  0xcc   : > { %1222 = vmatpush1.bf16.msra.mxu0 %v12959_v45  ;;  %1307 = vmatprep.subr.bf16.mxu1 %v11414_v20  ;;  %v11355_v20 = vld [vmem:[%s15060_s3 + $0xb0] ss:$8 sps:$4 sm:$0xff]  }
  0xcd   : > { %1223 = vmatprep.subr.bf16.mxu0 %v12962_v46 }
  0xcf   : > { %1308 = vmatpush1.bf16.msra.mxu1 %v11416_v22  ;;  %v11358_v22 = vld [vmem:[%s15060_s3 + $0xc0] ss:$8 sps:$4 sm:$0xff]  }
  0xd0   : > { %1224 = vmatpush1.bf16.msra.mxu0 %v12965_v47  ;;  %1309 = vmatprep.subr.bf16.mxu1 %v11420_v23  ;;  %v11363_v23 = vld [vmem:[%s15060_s3 + $0xd4] ss:$8 sps:$4 sm:$0xff]  }
  0xd1   : > { %1225 = vmatprep.subr.bf16.mxu0 %v12968_v48 }
  0xd4   : > { %1226 = vmatpush1.bf16.msra.mxu0 %v11299_v49  ;;  %v11423_v49 = vld [vmem:[#allocation8 + $0x128] ss:$16 sps:$4 sm:$0xff]  }
  0xd5   : > { %1227 = vmatprep.subr.bf16.mxu0 %v11300_v50  ;;  %v11424_v50 = vld [vmem:[#allocation8 + $0x14c] ss:$16 sps:$4 sm:$0xff]   ;;  %1310 = vmatpush1.bf16.msra.mxu1 %v11423_v49 }
  0xd6   : > { %1311 = vmatprep.subr.bf16.mxu1 %v11424_v50  ;;  %v11369_v49 = vld [vmem:[%s15060_s3 + $0xf4] ss:$8 sps:$4 sm:$0xff]   ;;  %v11367_v50 = vld [vmem:[%s15060_s3 + $0xf0] ss:$8 sps:$4 sm:$0xff]  }
  0xd8   : > { %1228 = vmatpush1.bf16.msra.mxu0 %v11302_v51  ;;  %v11336_v51 = vld [vmem:[%s15060_s3 + $0x44] ss:$8 sps:$4 sm:$0xff]  }
  0xd9   : > { %1229 = vmatprep.subr.bf16.mxu0 %v11303_v52  ;;  %v11426_v52 = vld [vmem:[#allocation8 + $0x148] ss:$16 sps:$4 sm:$0xff]  }
  0xda   : > { %1312 = vmatpush1.bf16.msra.mxu1 %v11426_v52  ;;  %v13160_v52 = vld [vmem:[%s12882_s10 + $0x18] sm:$0xff]  }
  0xdc   : > { %1230 = vmatpush1.bf16.msra.mxu0 %v11305_v53  ;;  %v11430_v53 = vld [vmem:[#allocation8 + $0x16c] ss:$16 sps:$4 sm:$0xff]  }
  0xdd   : > { %1231 = vmatprep.subr.bf16.mxu0 %v11306_v54  ;;  %v11334_v54 = vld [vmem:[%s15060_s3 + $0x40] ss:$8 sps:$4 sm:$0xff]   ;;  %1313 = vmatprep.subr.bf16.mxu1 %v11430_v53 }
  0xde   : > { %1314 = vmatpush1.bf16.msra.mxu1 %v11433_v56  ;;  %v11437_v53 = vld [vmem:[#allocation11 + $0xc0] ss:$16 sps:$4 sm:$0xff]   ;;  %v12385_v56 = vld [vmem:[#allocation8 + $0x1e4] ss:$16 sps:$4 sm:$0xff]  }
  0xe0   : > { %1232 = vmatpush1.bf16.msra.mxu0 %v11308_v57  ;;  %v11434_v57 = vld [vmem:[#allocation8 + $0x18c] ss:$16 sps:$4 sm:$0xff]  }
  0xe1   : > { %1233 = vmatprep.subr.bf16.mxu0 %v11309_v58  ;;  %v11337_v58 = vld [vmem:[%s15060_s3 + $0x50] ss:$8 sps:$4 sm:$0xff]   ;;  %1315 = vmatprep.subr.bf16.mxu1 %v11434_v57 }
  0xe2   : > { %1316 = vmatpush1.bf16.msra.mxu1 %v11436_v60  ;;  %v11444_v57 = vld [vmem:[#allocation11 + $0xe0] ss:$16 sps:$4 sm:$0xff]  }
  0xe3   : > { %1317 = vmatprep.subr.bf16.mxu1 %v11440_v62  ;;  %v13167_v60 = vld [vmem:[%s12882_s10 + $0x20] sm:$0xff]   ;;  %v13179_v62 = vld [vmem:[%s12882_s10 + $0x30] sm:$0xff]  }
  0xe4   : > { %1234 = vmatpush1.bf16.msra.mxu0 %v11311_v61  ;;  %v11340_v61 = vld [vmem:[%s15060_s3 + $0x60] ss:$8 sps:$4 sm:$0xff]  }
  0xe5   : > { %1235 = vmatprep.subr.bf16.mxu0 %v11312_v63  ;;  %v11345_v63 = vld [vmem:[%s15060_s3 + $0x74] ss:$8 sps:$4 sm:$0xff]  }
  0xe6   : > { %1318 = vmatpush1.bf16.msra.mxu1 %v11443_v0  ;;  %v11458_v0 = vld [vmem:[#allocation11 + $0x2c] ss:$16 sps:$4 sm:$0xff]  }
  0xe7   : > { %1319 = vmatprep.subr.bf16.mxu1 %v11447_v1  ;;  %v11456_v1 = vld [vmem:[#allocation11 + $0x28] ss:$16 sps:$4 sm:$0xff]  }
  0xe8   : > { %1236 = vmatpush1.bf16.msra.mxu0 %v12972_v2 }
  0xe9   : > { %1248 = vmatprep.subr.bf16.mxu0 %v12974_v3 }
  0xeb   : > { %1238 = vmatmul.mubr.bf16.vlgmr.msra.gmra.mrb[0].mxu0 %v12977_v6 }
  0xec   : > { %1249 = vmatpush1.bf16.msra.mxu0 %v12980_v7  ;;  %1280 = vmatprep.mubr.bf16.mxu0 %v15085_v26 }
  0xed   : > { %1601 = vmatprep.subr.bf16.mxu0 %v11323_v8  ;;  %v13043_v8 = vld [vmem:[#allocation8 + $0x1c8] ss:$16 sps:$4 sm:$0xff]  }
  0xee   : > { %1320 = vmatpush1.bf16.msra.mxu1 %v13043_v8 }
  0xef   : > { %1321 = vmatprep.subr.bf16.mxu1 %v13045_v9 }
  0xf2   : > { %1322 = vmatpush1.bf16.msra.mxu1 %v13054_v12 }
  0xf3   : > { %1334 = vmatprep.subr.bf16.mxu1 %v13056_v13 }
  0xf5   : > { %1324 = vmatmul.mubr.bf16.vlgmr.msra.gmra.mrb[0].mxu1 %v12977_v6 }
  0xf6   : > { %1366 = vmatprep.mubr.bf16.mxu1 %v15085_v26 }
  0xf7   : > { %10194 = vmatmul.mubr.msk.bf16.vlgmr.msra.gmra.mrb[0].mxu0 %vm1201_vm0, %v12993_v16 }
  0xf8   : > { %1602 = vmatpush1.bf16.msra.mxu0 %v11321_v15  ;;  %1633 = vmatprep.mubr.bf16.mxu0 %v12942_v40  ;;  %v11331_v40 = vld [vmem:[%s15060_s3 + $0x30] ss:$8 sps:$4 sm:$0xff]   ;;  %v11354_v15 = vld [vmem:[%s15060_s3 + $0xa4] ss:$8 sps:$4 sm:$0xff]  }
  0xf9   : > { %1603 = vmatprep.subr.bf16.mxu0 %v11327_v17  ;;  %v13065_v17 = vld [vmem:[#allocation8 + $0x208] ss:$16 sps:$4 sm:$0xff]  }
  0xfa   : > { %1335 = vmatpush1.bf16.msra.mxu1 %v13065_v17 }
  0xfb   : > { %2095 = vmatprep.subr.bf16.mxu1 %v12898_v27  ;;  %v11361_v27 = vld [vmem:[%s15060_s3 + $0xd0] ss:$8 sps:$4 sm:$0xff]  }
  0xfc   : > { %1604 = vmatpush1.bf16.msra.mxu0 %v11325_v19  ;;  %v11357_v19 = vld [vmem:[%s15060_s3 + $0xb4] ss:$8 sps:$4 sm:$0xff]  }
  0xfd   : > { %1605 = vmatprep.subr.bf16.mxu0 %v11330_v21  ;;  %v11360_v21 = vld [vmem:[%s15060_s3 + $0xc4] ss:$8 sps:$4 sm:$0xff]  }
 0x100   : > { %1606 = vmatpush1.bf16.msra.mxu0 %v11328_v24  ;;  %v11366_v24 = vld [vmem:[%s15060_s3 + $0xe4] ss:$8 sps:$4 sm:$0xff]  }
 0x101   : > { %1607 = vmatprep.subr.bf16.mxu0 %v11333_v25  ;;  %10195 = vmatmul.mubr.msk.bf16.vlgmr.msra.gmra.mrb[0].mxu1 %vm1201_vm0, %v12993_v16  ;;  %v11364_v25 = vld [vmem:[%s15060_s3 + $0xe0] ss:$8 sps:$4 sm:$0xff]  }
 0x102   : > { %2096 = vmatpush1.bf16.msra.mxu1 %v12900_v28  ;;  %v11372_v28 = vld [vmem:[%s15060_s3 + $0x104] ss:$8 sps:$4 sm:$0xff]  }
 0x103   : > { %2097 = vmatprep.subr.bf16.mxu1 %v12903_v29  ;;  %v11370_v29 = vld [vmem:[%s15060_s3 + $0x100] ss:$8 sps:$4 sm:$0xff]  }
 0x104   : > { %1608 = vmatpush1.bf16.msra.mxu0 %v11331_v40  ;;  %v12382_v40 = vld [vmem:[#allocation8 + $0x1a0] ss:$16 sps:$4 sm:$0xff]  }
 0x105   : > { %1609 = vmatprep.subr.bf16.mxu0 %v11336_v51  ;;  %v12383_v51 = vld [vmem:[#allocation8 + $0x1c4] ss:$16 sps:$4 sm:$0xff]  }
 0x106   : > { %2098 = vmatpush1.bf16.msra.mxu1 %v12906_v30  ;;  %v11379_v30 = vld [vmem:[#allocation11 + $0x4] ss:$16 sps:$4 sm:$0xff]  }
 0x107   : > { %2099 = vmatprep.subr.bf16.mxu1 %v12909_v31  ;;  %v13136_v31 = vld [vmem:[%s12882_s10] sm:$0xff]  }
 0x108   : > { %1610 = vmatpush1.bf16.msra.mxu0 %v11334_v54  ;;  %v11446_v54 = vld [vmem:[#allocation11 + $0xe4] ss:$16 sps:$4 sm:$0xff]  }
 0x109   : > { %1611 = vmatprep.subr.bf16.mxu0 %v11339_v55  ;;  %v12384_v55 = vld [vmem:[#allocation8 + $0x1c0] ss:$16 sps:$4 sm:$0xff]  }
 0x10a   : > { %2100 = vmatpush1.bf16.msra.mxu1 %v12913_v32  ;;  %v11377_v32 = vld [vmem:[#allocation11] ss:$16 sps:$4 sm:$0xff]  }
 0x10b   : > { %2101 = vmatprep.subr.bf16.mxu1 %v12916_v33  ;;  %v11389_v33 = vld [vmem:[#allocation11 + $0x24] ss:$16 sps:$4 sm:$0xff]  }
 0x10c   : > { %1612 = vmatpush1.bf16.msra.mxu0 %v11337_v58  ;;  %v11452_v58 = vld [vmem:[#allocation11 + $0xc] ss:$16 sps:$4 sm:$0xff]  }
 0x10d   : > { %1613 = vmatprep.subr.bf16.mxu0 %v11342_v59  ;;  %v12386_v59 = vld [vmem:[#allocation8 + $0xc] ss:$16 sps:$4 sm:$0xff]  }
 0x10e   : > { %2102 = vmatpush1.bf16.msra.mxu1 %v12919_v34  ;;  %v11387_v34 = vld [vmem:[#allocation11 + $0x20] ss:$16 sps:$4 sm:$0xff]  }
 0x10f   : > { %2103 = vmatprep.subr.bf16.mxu1 %v12922_v35  ;;  %v11399_v35 = vld [vmem:[#allocation11 + $0x44] ss:$16 sps:$4 sm:$0xff]  }
 0x110   : > { %1614 = vmatpush1.bf16.msra.mxu0 %v11340_v61  ;;  %v13173_v61 = vld [vmem:[%s12882_s10 + $0x28] sm:$0xff]  }
 0x111   : > { %1615 = vmatprep.subr.bf16.mxu0 %v11345_v63  ;;  %v11450_v63 = vld [vmem:[#allocation11 + $0x8] ss:$16 sps:$4 sm:$0xff]  }
 0x112   : > { %2104 = vmatpush1.bf16.msra.mxu1 %v12925_v36  ;;  %v13146_v36 = vld [vmem:[%s12882_s10 + $0x8] sm:$0xff]  }
 0x113   : > { %2105 = vmatprep.subr.bf16.mxu1 %v12928_v37  ;;  %v11397_v37 = vld [vmem:[#allocation11 + $0x40] ss:$16 sps:$4 sm:$0xff]  }
 0x114   : > { %1616 = vmatpush1.bf16.msra.mxu0 %v11343_v4  ;;  %v11461_v4 = vld [vmem:[#allocation11 + $0x4c] ss:$16 sps:$4 sm:$0xff]  }
 0x115   : > { %1617 = vmatprep.subr.bf16.mxu0 %v11348_v5  ;;  %v11459_v5 = vld [vmem:[#allocation11 + $0x48] ss:$16 sps:$4 sm:$0xff]  }
 0x116   : > { %2106 = vmatpush1.bf16.msra.mxu1 %v12931_v38  ;;  %v11409_v38 = vld [vmem:[#allocation11 + $0x64] ss:$16 sps:$4 sm:$0xff]  }
 0x117   : > { %2107 = vmatprep.subr.bf16.mxu1 %v12939_v39  ;;  %v12376_v39 = vld [vmem:[#allocation8 + $0x140] ss:$16 sps:$4 sm:$0xff]  }
 0x118   : > { %1618 = vmatpush1.bf16.msra.mxu0 %v11346_v10  ;;  %v11464_v10 = vld [vmem:[#allocation11 + $0x6c] ss:$16 sps:$4 sm:$0xff]  }
 0x119   : > { %1619 = vmatprep.subr.bf16.mxu0 %v11351_v11  ;;  %v11462_v11 = vld [vmem:[#allocation11 + $0x68] ss:$16 sps:$4 sm:$0xff]  }
 0x11a   : > { %2108 = vmatpush1.bf16.msra.mxu1 %v12945_v41  ;;  %v11407_v41 = vld [vmem:[#allocation11 + $0x60] ss:$16 sps:$4 sm:$0xff]  }
 0x11b   : > { %2109 = vmatprep.subr.bf16.mxu1 %v12948_v42  ;;  %v12377_v42 = vld [vmem:[#allocation8 + $0x164] ss:$16 sps:$4 sm:$0xff]  }
 0x11c   : > { %1620 = vmatpush1.bf16.msra.mxu0 %v11349_v14  ;;  %v11470_v14 = vld [vmem:[#allocation11 + $0x8c] ss:$16 sps:$4 sm:$0xff]  }
 0x11d   : > { %1621 = vmatprep.subr.bf16.mxu0 %v11354_v15  ;;  %v11468_v15 = vld [vmem:[#allocation11 + $0x88] ss:$16 sps:$4 sm:$0xff]  }
 0x11e   : > { %2110 = vmatpush1.bf16.msra.mxu1 %v12953_v43  ;;  %v11419_v43 = vld [vmem:[#allocation11 + $0x84] ss:$16 sps:$4 sm:$0xff]  }
 0x11f   : > { %2111 = vmatprep.subr.bf16.mxu1 %v12956_v44  ;;  %v13154_v44 = vld [vmem:[%s12882_s10 + $0x10] sm:$0xff]  }
 0x120   : > { %1622 = vmatpush1.bf16.msra.mxu0 %v11352_v18  ;;  %v11473_v18 = vld [vmem:[#allocation11 + $0xac] ss:$16 sps:$4 sm:$0xff]  }
 0x121   : > { %1623 = vmatprep.subr.bf16.mxu0 %v11357_v19  ;;  %v11471_v19 = vld [vmem:[#allocation11 + $0xa8] ss:$16 sps:$4 sm:$0xff]  }
 0x122   : > { %2112 = vmatpush1.bf16.msra.mxu1 %v12959_v45  ;;  %v12378_v45 = vld [vmem:[#allocation8 + $0x160] ss:$16 sps:$4 sm:$0xff]  }
 0x123   : > { %2113 = vmatprep.subr.bf16.mxu1 %v12962_v46  ;;  %v12379_v46 = vld [vmem:[#allocation8 + $0x184] ss:$16 sps:$4 sm:$0xff]  }
 0x124   : > { %1624 = vmatpush1.bf16.msra.mxu0 %v11355_v20  ;;  %v11476_v20 = vld [vmem:[#allocation11 + $0xcc] ss:$16 sps:$4 sm:$0xff]  }
 0x125   : > { %1625 = vmatprep.subr.bf16.mxu0 %v11360_v21  ;;  %v11474_v21 = vld [vmem:[#allocation11 + $0xc8] ss:$16 sps:$4 sm:$0xff]  }
 0x126   : > { %2114 = vmatpush1.bf16.msra.mxu1 %v12965_v47  ;;  %v11417_v47 = vld [vmem:[#allocation11 + $0x80] ss:$16 sps:$4 sm:$0xff]  }
 0x127   : > { %2115 = vmatprep.subr.bf16.mxu1 %v12968_v48  ;;  %v11429_v48 = vld [vmem:[#allocation11 + $0xa4] ss:$16 sps:$4 sm:$0xff]  }
 0x128   : > { %1626 = vmatpush1.bf16.msra.mxu0 %v11358_v22  ;;  %v11479_v22 = vld [vmem:[#allocation11 + $0xec] ss:$16 sps:$4 sm:$0xff]  }
 0x129   : > { %1627 = vmatprep.subr.bf16.mxu0 %v11363_v23  ;;  %v11477_v23 = vld [vmem:[#allocation11 + $0xe8] ss:$16 sps:$4 sm:$0xff]  }
 0x12a   : > { %2116 = vmatpush1.bf16.msra.mxu1 %v12376_v39 }
 0x12b   : > { %2117 = vmatprep.subr.bf16.mxu1 %v12377_v42 }
 0x12c   : > { %1628 = vmatpush1.bf16.msra.mxu0 %v11361_v27  ;;  %v826_v27 = vlaneseq }
 0x12d   : > { %1629 = vmatprep.subr.bf16.mxu0 %v11366_v24 }
 0x12e   : > { %2118 = vmatpush1.bf16.msra.mxu1 %v12378_v45  ;;  %v827_v24 = vshrl.u32 %v826_v27, 7  ;;  %v12389_v27 = vld [vmem:[#allocation8 + $0x28] ss:$16 sps:$4 sm:$0xff]  }
 0x12f   : > { %2119 = vmatprep.subr.bf16.mxu1 %v12379_v46 }
 0x130   : > { %1630 = vmatpush1.bf16.msra.mxu0 %v11364_v25  ;;  %v13194_v25 = vsub.s32 0, %v827_v24  ;;  %v13209_v45 = vsub.s32 3, %v827_v24 }
 0x131   : > { %1631 = vmatprep.subr.bf16.mxu0 %v11369_v49  ;;  %v824_v49 = vld [vmem:[%s15064_s7] sm:$0xf] }
 0x132   : > { %15163 = vst [vmem:[#allocation28_spill] sm:$0xff] %v13194_v25  ;;  %15166 = vst [vmem:[#allocation31_spill] sm:$0xff] %v13209_v45 }
 0x134   : > { %1632 = vmatpush1.bf16.msra.mxu0 %v11367_v50  ;;  %v13199_v50 = vsub.s32 1, %v827_v24 }
 0x135   : > { %1644 = vmatprep.subr.bf16.mxu0 %v11372_v28  ;;  %v829_v28 = vrot.slane %v824_v49, %v13194_v25 }
 0x136   : > { %15164 = vst [vmem:[#allocation29_spill] sm:$0xff] %v13199_v50 }
 0x137   : > { %1634 = vmatmul.mubr.bf16.vlgmr.msra.gmra.mrb[4].mxu0 %v12977_v6  ;;  %v12381_v6 = vld [vmem:[#allocation8 + $0x1a4] ss:$16 sps:$4 sm:$0xff]  }
 0x138   : > { %1645 = vmatpush1.bf16.msra.mxu0 %v11370_v29  ;;  %1676 = vmatprep.mubr.bf16.mxu0 %v15085_v26 }
 0x139   : > { %2285 = vmatprep.subr.bf16.mxu0 %v12974_v3  ;;  %v12380_v3 = vld [vmem:[#allocation8 + $0x180] ss:$16 sps:$4 sm:$0xff]  }
 0x13a   : > { %2120 = vmatpush1.bf16.msra.mxu1 %v12380_v3 }
 0x13b   : > { %2121 = vmatprep.subr.bf16.mxu1 %v12381_v6 }
 0x13e   : > { %2122 = vmatpush1.bf16.msra.mxu1 %v12382_v40 }
 0x13f   : > { %2123 = vmatprep.subr.bf16.mxu1 %v12383_v51 }
 0x142   : > { %2124 = vmatpush1.bf16.msra.mxu1 %v12384_v55 }
 0x143   : > { %10230 = vmatmul.mubr.msk.bf16.vlgmr.msra.gmra.mrb[4].mxu0 %vm1201_vm0, %v12993_v16  ;;  %v11439_v16 = vld [vmem:[#allocation11 + $0xc4] ss:$16 sps:$4 sm:$0xff]   ;;  %2125 = vmatprep.subr.bf16.mxu1 %v12385_v56  ;;  %v1419_v56 = vld [vmem:[%s15167_s25] sm:$0x3] }
 0x144   : > { %2286 = vmatpush1.bf16.msra.mxu0 %v12980_v7  ;;  %2317 = vmatprep.mubr.bf16.mxu0 %v15085_v26  ;;  %v11427_v7 = vld [vmem:[#allocation11 + $0xa0] ss:$16 sps:$4 sm:$0xff]  }
 0x145   : > { %2850 = vmatprep.subr.bf16.mxu0 %v11379_v30  ;;  %v833_v30 = vrot.slane %v824_v49, %v13199_v50 }
 0x146   : > { %2126 = vmatpush1.bf16.msra.mxu1 %v12972_v2  ;;  %v13185_v2 = vld [vmem:[%s12882_s10 + $0x38] sm:$0xff]   ;;  %s14966_s10 = scalar_lea.vmem [#allocation16], %s11165_s15  ;;  %s9922_s15 = scalar_lea.sflag [#allocation10], %s12874_s18 }
 0x147   : > { %2138 = vmatprep.subr.bf16.mxu1 %v12386_v59  ;;  %v1428_v59 = vrot.slane %v1419_v56, %v13199_v50 }
 0x14b   : > { %10307 = vmatmul.mubr.msk.bf16.vlgmr.msra.gmra.mrb[8].mxu0 %vm1201_vm0, %v13136_v31 }
 0x14c   : > { %2851 = vmatpush1.bf16.msra.mxu0 %v11377_v32  ;;  %2327 = vmatprep.mubr.bf16.mxu0 %v15085_v26 }
 0x14d   : > { %2852 = vmatprep.subr.bf16.mxu0 %v11389_v33 }
 0x150   : > { %2853 = vmatpush1.bf16.msra.mxu0 %v11387_v34 }
 0x151   : > { %2854 = vmatprep.subr.bf16.mxu0 %v11399_v35 }
 0x153   : > { %10308 = vmatmul.mubr.msk.bf16.gmra.mrb[12].mxu0 %vm1201_vm0, %v13146_v36 }
 0x154   : > { %2337 = vmatprep.mubr.bf16.mxu0 %v15085_v26  ;;  %2855 = vmatpush1.bf16.msra.mxu0 %v11397_v37 }
 0x155   : > { %2856 = vmatprep.subr.bf16.mxu0 %v11409_v38 }
 0x158   : > { %2857 = vmatpush1.bf16.msra.mxu0 %v11407_v41 }
 0x159   : > { %2858 = vmatprep.subr.bf16.mxu0 %v11419_v43  ;;  %v13207_v43 = vsub.s32 2, %v827_v24  ;;  %v12390_v24 = vld [vmem:[#allocation8 + $0x4c] ss:$16 sps:$4 sm:$0xff]  }
 0x15b   : > { %10309 = vmatmul.mubr.msk.bf16.gmra.mrb[16].mxu0 %vm1201_vm0, %v13154_v44  ;;  %15165 = vst [vmem:[#allocation30_spill] sm:$0xff] %v13207_v43  ;;  %v837_v46 = vrot.slane %v824_v49, %v13207_v43  ;;  %v13347_v43 = vld [vmem:[#allocation11 + $0xc0] ss:$16 sps:$4 sm:$0xff]  }
 0x15c   : > { %2347 = vmatprep.mubr.bf16.mxu0 %v15085_v26  ;;  %2859 = vmatpush1.bf16.msra.mxu0 %v11417_v47  ;;  %v841_v47 = vrot.slane %v824_v49, %v13209_v45  ;;  %v13303_v45 = vld [vmem:[#allocation11] ss:$16 sps:$4 sm:$0xff]  }
 0x15d   : > { %2860 = vmatprep.subr.bf16.mxu0 %v11429_v48 }
 0x160   : > { %2861 = vmatpush1.bf16.msra.mxu0 %v11427_v7 }
 0x161   : > { %2862 = vmatprep.subr.bf16.mxu0 %v11439_v16 }
 0x163   : > { %10310 = vmatmul.mubr.msk.bf16.gmra.mrb[20].mxu0 %vm1201_vm0, %v13160_v52 }
 0x164   : > { %2357 = vmatprep.mubr.bf16.mxu0 %v15085_v26  ;;  %2863 = vmatpush1.bf16.msra.mxu0 %v11437_v53 }
 0x165   : > { %2864 = vmatprep.subr.bf16.mxu0 %v11446_v54 }
 0x168   : > { %2865 = vmatpush1.bf16.msra.mxu0 %v11444_v57  ;;  %v1424_v57 = vrot.slane %v1419_v56, %v13194_v25 }
 0x169   : > { %2893 = vmatprep.subr.bf16.mxu0 %v11452_v58 }
 0x16b   : > { %10311 = vmatmul.mubr.msk.bf16.gmra.mrb[24].mxu0 %vm1201_vm0, %v13167_v60 }
 0x16c   : > { %2367 = vmatprep.mubr.bf16.mxu0 %v15085_v26 }
 0x173   : > { %10312 = vmatmul.mubr.msk.bf16.gmra.mrb[28].mxu0 %vm1201_vm0, %v13173_v61 }
 0x174   : > { %2377 = vmatprep.mubr.bf16.mxu0 %v15085_v26 }
 0x17b   : > { %10313 = vmatmul.mubr.msk.bf16.gmra.mrb[32].mxu0 %vm1201_vm0, %v13179_v62 }
 0x17c   : > { %2387 = vmatprep.mubr.bf16.mxu0 %v15085_v26 }
 0x183   : > { %10314 = vmatmul.mubr.msk.bf16.gmra.mrb[36].mxu0 %vm1201_vm0, %v13185_v2 }
 0x184   : > { %2882 = vmatprep.mubr.bf16.mxu0 %v15085_v26 }
 0x18b   : > { %2883 = vmatmul.mubr.bf16.vlgmr.msra.gmra.mrb[40].mxu0 %v15085_v26 }
 0x18c   : > { %2894 = vmatpush1.bf16.msra.mxu0 %v11450_v63  ;;  %2925 = vmatprep.mubr.bf16.mxu0 %v15085_v26 }
 0x18d   : > { %2895 = vmatprep.subr.bf16.mxu0 %v11458_v0 }
 0x190   : > { %2896 = vmatpush1.bf16.msra.mxu0 %v11456_v1 }
 0x191   : > { %2897 = vmatprep.subr.bf16.mxu0 %v11461_v4 }
 0x194   : > { %2898 = vmatpush1.bf16.msra.mxu0 %v11459_v5 }
 0x195   : > { %2899 = vmatprep.subr.bf16.mxu0 %v11464_v10 }
 0x198   : > { %2900 = vmatpush1.bf16.msra.mxu0 %v11462_v11 }
 0x199   : > { %2901 = vmatprep.subr.bf16.mxu0 %v11470_v14 }
 0x19c   : > { %2902 = vmatpush1.bf16.msra.mxu0 %v11468_v15 }
 0x19d   : > { %2903 = vmatprep.subr.bf16.mxu0 %v11473_v18 }
 0x1a0   : > { %2904 = vmatpush1.bf16.msra.mxu0 %v11471_v19 }
 0x1a1   : > { %2905 = vmatprep.subr.bf16.mxu0 %v11476_v20 }
 0x1a4   : > { %2906 = vmatpush1.bf16.msra.mxu0 %v11474_v21 }
 0x1a5   : > { %2907 = vmatprep.subr.bf16.mxu0 %v11479_v22 }
 0x1a8   : > { %2908 = vmatpush1.bf16.msra.mxu0 %v11477_v23 }
 0x1a9   : > { %3247 = vmatprep.subr.bf16.mxu0 %v11452_v58 }
 0x1ab   : > { %2926 = vmatmul.mubr.bf16.vlgmr.msra.gmra.mrb[44].mxu0 %v15085_v26 }
 0x1ac   : > { %3248 = vmatpush1.bf16.msra.mxu0 %v11450_v63  ;;  %3279 = vmatprep.mubr.bf16.mxu0 %v15085_v26 }
 0x1ad   : > { %3249 = vmatprep.subr.bf16.mxu0 %v11458_v0 }
 0x1b0   : > { %3250 = vmatpush1.bf16.msra.mxu0 %v11456_v1 }
 0x1b1   : > { %3251 = vmatprep.subr.bf16.mxu0 %v11461_v4 }
 0x1b4   : > { %3252 = vmatpush1.bf16.msra.mxu0 %v11459_v5 }
 0x1b5   : > { %3253 = vmatprep.subr.bf16.mxu0 %v11464_v10 }
 0x1b8   : > { %3254 = vmatpush1.bf16.msra.mxu0 %v11462_v11 }
 0x1b9   : > { %3255 = vmatprep.subr.bf16.mxu0 %v11470_v14 }
 0x1bc   : > { %3256 = vmatpush1.bf16.msra.mxu0 %v11468_v15 }
 0x1bd   : > { %3257 = vmatprep.subr.bf16.mxu0 %v11473_v18 }
 0x1c0   : > { %3258 = vmatpush1.bf16.msra.mxu0 %v11471_v19 }
 0x1c1   : > { %3259 = vmatprep.subr.bf16.mxu0 %v11476_v20  ;;  %v12387_v20 = vld [vmem:[#allocation8 + $0x8] ss:$16 sps:$4 sm:$0xff]  }
 0x1c4   : > { %3260 = vmatpush1.bf16.msra.mxu0 %v11474_v21 }
 0x1c5   : > { %3261 = vmatprep.subr.bf16.mxu0 %v11479_v22  ;;  %v12388_v22 = vld [vmem:[#allocation8 + $0x2c] ss:$16 sps:$4 sm:$0xff]  }
 0x1c8   : > { %3262 = vmatpush1.bf16.msra.mxu0 %v11477_v23 }
 0x1ca   : > { %v1282_v29 = vpop.f32.mrb[0].mxu0 }
 0x1cb   : > { %v1284_v32 = vpop.f32.mrb[1].mxu0  ;;  %v11140_v34 = vadd.f32 %v1282_v29, %v829_v28  ;;  %v12391_v29 = vld [vmem:[#allocation8 + $0x48] ss:$16 sps:$4 sm:$0xff]  }
 0x1cc   : > { %v1286_v33 = vpop.f32.mrb[2].mxu0  ;;  %v11141_v38 = vadd.f32 %v1284_v32, %v833_v30  ;;  %v12392_v32 = vld [vmem:[#allocation8 + $0x6c] ss:$16 sps:$4 sm:$0xff]  }
 0x1cd   : > { %v11142_v35 = vadd.f32 %v1286_v33, %v829_v28  ;;  %v1288_v37 = vpop.f32.mrb[3].mxu0 }
 0x1ce   : > { %v11143_v39 = vadd.f32 %v1288_v37, %v833_v30 }
 0x1cf   : > { %v13203_v41 = vpack.c.bf16 %v11142_v35, %v11140_v34  ;;  %v12393_v34 = vld [vmem:[#allocation8 + $0x68] ss:$16 sps:$4 sm:$0xff]   ;;  %v12394_v35 = vld [vmem:[#allocation8 + $0x8c] ss:$16 sps:$4 sm:$0xff]  }
 0x1d0   : > { %v13205_v42 = vpack.c.bf16 %v11143_v39, %v11141_v38  ;;  %v12395_v39 = vld [vmem:[#allocation8 + $0x88] ss:$16 sps:$4 sm:$0xff]  }
 0x1d4   : > { %v1368_v48 = vpop.f32.mrb[0].mxu1 }
 0x1d5   : > { %v11144_v3 = vadd.f32 %v1368_v48, %v837_v46  ;;  %v1370_v6 = vpop.f32.mrb[1].mxu1 }
 0x1d6   : > { %v1372_v7 = vpop.f32.mrb[2].mxu1  ;;  %v11145_v16 = vadd.f32 %v1370_v6, %v841_v47  ;;  %v12398_v6 = vld [vmem:[#allocation8 + $0xcc] ss:$16 sps:$4 sm:$0xff]  }
 0x1d7   : > { %v11146_v40 = vadd.f32 %v1372_v7, %v837_v46  ;;  %v1374_v51 = vpop.f32.mrb[3].mxu1 }
 0x1d8   : > { %v11147_v54 = vadd.f32 %v1374_v51, %v841_v47  ;;  %v12396_v47 = vld [vmem:[#allocation8 + $0xac] ss:$16 sps:$4 sm:$0xff]  }
 0x1d9   : > { %v13213_v53 = vpack.c.bf16 %v11146_v40, %v11144_v3  ;;  %v12397_v3 = vld [vmem:[#allocation8 + $0xa8] ss:$16 sps:$4 sm:$0xff]  }
 0x1da   : > { %v13215_v55 = vpack.c.bf16 %v11147_v54, %v11145_v16  ;;  %v12399_v40 = vld [vmem:[#allocation8 + $0xc8] ss:$16 sps:$4 sm:$0xff]   ;;  %v12400_v54 = vld [vmem:[#allocation8 + $0xec] ss:$16 sps:$4 sm:$0xff]  }
 0x216   : > { %v1678_v58 = vpop.f32.mrb[4].mxu0 }
 0x217   : > { %v1680_v63 = vpop.f32.mrb[5].mxu0  ;;  %v11148_v1 = vadd.f32 %v1678_v58, %v1424_v57  ;;  %v12402_v58 = vld [vmem:[#allocation8 + $0x10c] ss:$16 sps:$4 sm:$0xff]  }
 0x218   : > { %v1682_v0 = vpop.f32.mrb[6].mxu0  ;;  %v11149_v10 = vadd.f32 %v1680_v63, %v1428_v59 }
 0x219   : > { %v11150_v4 = vadd.f32 %v1682_v0, %v1424_v57  ;;  %v1684_v5 = vpop.f32.mrb[7].mxu0  ;;  %v12401_v57 = vld [vmem:[#allocation8 + $0xe8] ss:$16 sps:$4 sm:$0xff]  }
 0x21a   : > { %v11151_v11 = vadd.f32 %v1684_v5, %v1428_v59  ;;  %v12403_v0 = vld [vmem:[#allocation8 + $0x108] ss:$16 sps:$4 sm:$0xff]  }
 0x21b   : > { %v13222_v14 = vpack.c.bf16 %v11150_v4, %v11148_v1  ;;  %v12404_v4 = vld [vmem:[#allocation8 + $0x12c] ss:$16 sps:$4 sm:$0xff]  }
 0x21c   : > { %v1688_v15 = vpack.c.bf16 %v11151_v11, %v11149_v10  ;;  %v12405_v10 = vld [vmem:[#allocation8 + $0x128] ss:$16 sps:$4 sm:$0xff]   ;;  %v12406_v11 = vld [vmem:[#allocation8 + $0x14c] ss:$16 sps:$4 sm:$0xff]  }
 0x21e   : > { %2127 = vmatprep.mubr.bf16.mxu1 %v1688_v15  ;;  %v13224_v18 = vpop.f32.mrb[8].mxu0 }
 0x21f   : > { %2128 = vmatmul.mubr.bf16.vlgmr.msra.gmra.mrb[4].mxu1 %v13222_v14  ;;  %v13227_v19 = vpop.f32.mrb[9].mxu0 }
 0x220   : > { %2139 = vmatpush1.bf16.msra.mxu1 %v12387_v20  ;;  %2170 = vmatprep.mubr.bf16.mxu1 %v1688_v15  ;;  %v13229_v21 = vpop.f32.mrb[10].mxu0 }
 0x221   : > { %2140 = vmatprep.subr.bf16.mxu1 %v12388_v22  ;;  %v13231_v23 = vpop.f32.mrb[11].mxu0  ;;  %v12407_v22 = vld [vmem:[#allocation8 + $0x148] ss:$16 sps:$4 sm:$0xff]  }
 0x224   : > { %2141 = vmatpush1.bf16.msra.mxu1 %v12389_v27 }
 0x225   : > { %2142 = vmatprep.subr.bf16.mxu1 %v12390_v24  ;;  %v12408_v24 = vld [vmem:[#allocation8 + $0x16c] ss:$16 sps:$4 sm:$0xff]  }
 0x226   : > { %v13233_v49 = vpop.f32.mrb[12].mxu0 }
 0x227   : > { %v13235_v28 = vpop.f32.mrb[13].mxu0 }
 0x228   : > { %2143 = vmatpush1.bf16.msra.mxu1 %v12391_v29  ;;  %v13237_v30 = vpop.f32.mrb[14].mxu0 }
 0x229   : > { %2144 = vmatprep.subr.bf16.mxu1 %v12392_v32  ;;  %v13239_v33 = vpop.f32.mrb[15].mxu0  ;;  %v12409_v32 = vld [vmem:[#allocation8 + $0x168] ss:$16 sps:$4 sm:$0xff]  }
 0x22c   : > { %2145 = vmatpush1.bf16.msra.mxu1 %v12393_v34  ;;  %v12410_v34 = vld [vmem:[#allocation8 + $0x18c] ss:$16 sps:$4 sm:$0xff]  }
 0x22d   : > { %2146 = vmatprep.subr.bf16.mxu1 %v12394_v35 }
 0x22e   : > { %v13241_v37 = vpop.f32.mrb[16].mxu0 }
 0x22f   : > { %v13243_v38 = vpop.f32.mrb[17].mxu0 }
 0x230   : > { %2147 = vmatpush1.bf16.msra.mxu1 %v12395_v39  ;;  %v13245_v46 = vpop.f32.mrb[18].mxu0 }
 0x231   : > { %2148 = vmatprep.subr.bf16.mxu1 %v12396_v47  ;;  %v13247_v48 = vpop.f32.mrb[19].mxu0  ;;  %v12411_v47 = vld [vmem:[#allocation8 + $0x188] ss:$16 sps:$4 sm:$0xff]  }
 0x234   : > { %2149 = vmatpush1.bf16.msra.mxu1 %v12397_v3 }
 0x235   : > { %2150 = vmatprep.subr.bf16.mxu1 %v12398_v6  ;;  %v12412_v6 = vld [vmem:[#allocation8 + $0x1ac] ss:$16 sps:$4 sm:$0xff]  }
 0x236   : > { %v13249_v7 = vpop.f32.mrb[20].mxu0 }
 0x237   : > { %v13251_v16 = vpop.f32.mrb[21].mxu0 }
 0x238   : > { %2151 = vmatpush1.bf16.msra.mxu1 %v12399_v40  ;;  %v13253_v51 = vpop.f32.mrb[22].mxu0 }
 0x239   : > { %2152 = vmatprep.subr.bf16.mxu1 %v12400_v54  ;;  %v13255_v56 = vpop.f32.mrb[23].mxu0  ;;  %v12413_v54 = vld [vmem:[#allocation8 + $0x1a8] ss:$16 sps:$4 sm:$0xff]  }
 0x23c   : > { %2153 = vmatpush1.bf16.msra.mxu1 %v12401_v57  ;;  %v12414_v57 = vld [vmem:[#allocation8 + $0x1cc] ss:$16 sps:$4 sm:$0xff]  }
 0x23d   : > { %2154 = vmatprep.subr.bf16.mxu1 %v12402_v58 }
 0x23e   : > { %v13257_v59 = vpop.f32.mrb[24].mxu0 }
 0x23f   : > { %v13259_v63 = vpop.f32.mrb[25].mxu0 }
 0x240   : > { %2155 = vmatpush1.bf16.msra.mxu1 %v12403_v0  ;;  %v13261_v1 = vpop.f32.mrb[26].mxu0 }
 0x241   : > { %2156 = vmatprep.subr.bf16.mxu1 %v12404_v4  ;;  %v13263_v5 = vpop.f32.mrb[27].mxu0 }
 0x244   : > { %2157 = vmatpush1.bf16.msra.mxu1 %v12405_v10 }
 0x245   : > { %2158 = vmatprep.subr.bf16.mxu1 %v12406_v11  ;;  %v2650_v11 = vunpack.c.l.bf16 %v13203_v41 }
 0x246   : > { %v13265_v15 = vpop.f32.mrb[28].mxu0 }
 0x247   : > { %v13267_v20 = vpop.f32.mrb[29].mxu0 }
 0x248   : > { %2159 = vmatpush1.bf16.msra.mxu1 %v12407_v22  ;;  %v13269_v27 = vpop.f32.mrb[30].mxu0  ;;  %v13294_v22 = vld [vmem:[#allocation11 + $0x4] ss:$16 sps:$4 sm:$0xff]  }
 0x249   : > { %2160 = vmatprep.subr.bf16.mxu1 %v12408_v24  ;;  %v13271_v29 = vpop.f32.mrb[31].mxu0 }
 0x24c   : > { %2161 = vmatpush1.bf16.msra.mxu1 %v12409_v32  ;;  %v2651_v32 = vunpack.c.l.bf16 %v13205_v42 }
 0x24d   : > { %2162 = vmatprep.subr.bf16.mxu1 %v12410_v34 }
 0x24e   : > { %v13273_v35 = vpop.f32.mrb[32].mxu0 }
 0x24f   : > { %v13275_v39 = vpop.f32.mrb[33].mxu0 }
 0x250   : > { %15168 = vst [vmem:[#allocation32_spill] sm:$0xff] %v13275_v39  ;;  %2163 = vmatpush1.bf16.msra.mxu1 %v12411_v47  ;;  %v13277_v3 = vpop.f32.mrb[34].mxu0  ;;  %v2654_v47 = vunpack.c.h.bf16 %v13203_v41  ;;  %v2657_v39 = vunpack.c.h.bf16 %v13215_v55 }
 0x251   : > { %15169 = vst [vmem:[#allocation33_spill] sm:$0xff] %v13277_v3  ;;  %2164 = vmatprep.subr.bf16.mxu1 %v12412_v6  ;;  %v13279_v40 = vpop.f32.mrb[35].mxu0  ;;  %v15175_v3 = vmov 0  }
 0x252   : > { %15170 = vst [vmem:[#allocation34_spill] sm:$0xff] %v13279_v40 }
 0x254   : > { %2165 = vmatpush1.bf16.msra.mxu1 %v12413_v54 }
 0x255   : > { %2166 = vmatprep.subr.bf16.mxu1 %v12414_v57 }
 0x256   : > { %v13281_v58 = vpop.f32.mrb[36].mxu0 }
 0x257   : > { %15171 = vst [vmem:[#allocation35_spill] sm:$0xff] %v13281_v58  ;;  %v13283_v0 = vpop.f32.mrb[37].mxu0 }
 0x258   : > { %15172 = vst [vmem:[#allocation36_spill] sm:$0xff] %v13283_v0  ;;  %2167 = vmatpush1.bf16.msra.mxu1 %v13043_v8  ;;  %v13286_v4 = vpop.f32.mrb[38].mxu0 }
 0x259   : > { %15173 = vst [vmem:[#allocation37_spill] sm:$0xff] %v13286_v4  ;;  %2168 = vmatprep.subr.bf16.mxu1 %v13045_v9  ;;  %v13289_v10 = vpop.f32.mrb[39].mxu0  ;;  %v2653_v4 = vunpack.c.l.bf16 %v13215_v55 }
 0x25a   : > { %15174 = vst [vmem:[#allocation38_spill] sm:$0xff] %v13289_v10 }
 0x25c   : > { %2169 = vmatpush1.bf16.msra.mxu1 %v13054_v12  ;;  %v2655_v12 = vunpack.c.h.bf16 %v13205_v42  ;;  %v13314_v42 = vld [vmem:[#allocation11 + $0x44] ss:$16 sps:$4 sm:$0xff]  }
 0x25d   : > { %2398 = vmatprep.subr.bf16.mxu1 %v13056_v13 }
 0x25e   : > { %v2884_v24 = vpop.f32.mrb[40].mxu0 }
 0x25f   : > { %2171 = vmatmul.mubr.bf16.vlgmr.msra.gmra.mrb[8].mxu1 %v13222_v14  ;;  %v2936_v8 = vadd.f32 %v2884_v24, %v2650_v11  ;;  %v2886_v34 = vpop.f32.mrb[41].mxu0  ;;  %v13305_v14 = vld [vmem:[#allocation11 + $0x24] ss:$16 sps:$4 sm:$0xff]  }
 0x260   : > { %2399 = vmatpush1.bf16.msra.mxu1 %v13065_v17  ;;  %v2937_v9 = vadd.f32 %v2886_v34, %v2651_v32  ;;  %v2888_v6 = vpop.f32.mrb[42].mxu0  ;;  %2430 = vmatprep.mubr.bf16.mxu1 %v15085_v26  ;;  %v13311_v17 = vld [vmem:[#allocation11 + $0x20] ss:$16 sps:$4 sm:$0xff]  }
 0x261   : > { %v2940_v13 = vadd.f32 %v2888_v6, %v2654_v47  ;;  %v2890_v54 = vpop.f32.mrb[43].mxu0  ;;  %3204 = vmatprep.subr.bf16.mxu1 %v13294_v22  ;;  %v10355_v41 = vmul.f32 -1.442695, %v2936_v8  ;;  %v13317_v32 = vld [vmem:[#allocation11 + $0x40] ss:$16 sps:$4 sm:$0xff]  }
 0x262   : > { %v2941_v57 = vadd.f32 %v2890_v54, %v2655_v12  ;;  %v10357_v11 = vmul.f32 -1.442695, %v2937_v9  ;;  %v13326_v8 = vld [vmem:[#allocation11 + $0x60] ss:$16 sps:$4 sm:$0xff]   ;;  %v13329_v47 = vld [vmem:[#allocation11 + $0x84] ss:$16 sps:$4 sm:$0xff]  }
 0x263   : > { %11800 = vpow2.f32 %v10355_v41  ;;  %v10356_v34 = vmul.f32 -1.442695, %v2940_v13  ;;  %v13332_v9 = vld [vmem:[#allocation11 + $0x80] ss:$16 sps:$4 sm:$0xff]   ;;  %v13335_v6 = vld [vmem:[#allocation11 + $0xa4] ss:$16 sps:$4 sm:$0xff]  }
 0x264   : > { %v10358_v24 = vmul.f32 -1.442695, %v2941_v57  ;;  %11802 = vpow2.f32 %v10357_v11  ;;  %v13341_v13 = vld [vmem:[#allocation11 + $0xa0] ss:$16 sps:$4 sm:$0xff]   ;;  %v13344_v57 = vld [vmem:[#allocation11 + $0xc4] ss:$16 sps:$4 sm:$0xff]  }
 0x266   : > { %11804 = vpow2.f32 %v10358_v24 }
 0x267   : > { %10315 = vmatmul.mubr.msk.bf16.vlgmr.msra.gmra.mrb[12].mxu1 %vm1201_vm0, %v13136_v31  ;;  %v13320_v31 = vld [vmem:[#allocation11 + $0x64] ss:$16 sps:$4 sm:$0xff]   ;;  %11806 = vpow2.f32 %v10356_v34 }
 0x268   : > { %3205 = vmatpush1.bf16.msra.mxu1 %v13303_v45  ;;  %2440 = vmatprep.mubr.bf16.mxu1 %v15085_v26 }
 0x269   : > { %3206 = vmatprep.subr.bf16.mxu1 %v13305_v14 }
 0x26c   : > { %3207 = vmatpush1.bf16.msra.mxu1 %v13311_v17 }
 0x26d   : > { %3208 = vmatprep.subr.bf16.mxu1 %v13314_v42 }
 0x26f   : > { %10316 = vmatmul.mubr.msk.bf16.gmra.mrb[16].mxu1 %vm1201_vm0, %v13146_v36  ;;  %v11801_v36 = vpop.eup %11800 }
 0x270   : > { %2450 = vmatprep.mubr.bf16.mxu1 %v15085_v26  ;;  %3209 = vmatpush1.bf16.msra.mxu1 %v13317_v32  ;;  %v11803_v12 = vpop.eup %11802  ;;  %v2950_v41 = vadd.f32 1.0, %v11801_v36 }
 0x271   : > { %3210 = vmatprep.subr.bf16.mxu1 %v13320_v31  ;;  %v11805_v54 = vpop.eup %11804  ;;  %v2962_v24 = vadd.f32 1.0, %v11803_v12 }
 0x272   : > { %v11807_v11 = vpop.eup %11806  ;;  %v2963_v34 = vadd.f32 1.0, %v11805_v54  ;;  %11808 = vrcp.f32 %v2950_v41  ;;  %v2656_v54 = vunpack.c.h.bf16 %v13213_v53  ;;  %v13360_v41 = vld [vmem:[#allocation11 + $0xe0] ss:$16 sps:$4 sm:$0xff]  }
 0x273   : > { %v2951_v10 = vadd.f32 1.0, %v11807_v11  ;;  %11810 = vrcp.f32 %v2962_v24 }
 0x274   : > { %3211 = vmatpush1.bf16.msra.mxu1 %v13326_v8  ;;  %11812 = vrcp.f32 %v2963_v34 }
 0x275   : > { %3212 = vmatprep.subr.bf16.mxu1 %v13329_v47 }
 0x277   : > { %10317 = vmatmul.mubr.msk.bf16.gmra.mrb[20].mxu1 %vm1201_vm0, %v13154_v44  ;;  %v2652_v44 = vunpack.c.l.bf16 %v13213_v53 }
 0x278   : > { %2460 = vmatprep.mubr.bf16.mxu1 %v15085_v26  ;;  %3213 = vmatpush1.bf16.msra.mxu1 %v13332_v9  ;;  %v13351_v26 = vld [vmem:[#allocation11 + $0xe4] ss:$16 sps:$4 sm:$0xff]  }
 0x279   : > { %3214 = vmatprep.subr.bf16.mxu1 %v13335_v6 }
 0x27c   : > { %3215 = vmatpush1.bf16.msra.mxu1 %v13341_v13  ;;  %v11809_v55 = vpop.eup %11808 }
 0x27d   : > { %3216 = vmatprep.subr.bf16.mxu1 %v13344_v57 }
 0x27e   : > { %v2927_v0 = vpop.f32.mrb[44].mxu0 }
 0x27f   : > { %v2938_v36 = vadd.f32 %v2927_v0, %v2652_v44  ;;  %10318 = vmatmul.mubr.msk.bf16.gmra.mrb[24].mxu1 %vm1201_vm0, %v13160_v52  ;;  %v2929_v12 = vpop.f32.mrb[45].mxu0 }
 0x280   : > { %v2939_v58 = vadd.f32 %v2929_v12, %v2653_v4  ;;  %v2931_v40 = vpop.f32.mrb[46].mxu0  ;;  %2470 = vmatprep.mubr.bf16.mxu1 %v15175_v3  ;;  %3217 = vmatpush1.bf16.msra.mxu1 %v13347_v43 }
 0x281   : > { %11814 = vtanh.f32 %v2938_v36  ;;  %v2942_v11 = vadd.f32 %v2931_v40, %v2656_v54  ;;  %v2933_v0 = vpop.f32.mrb[47].mxu0  ;;  %3218 = vmatprep.subr.bf16.mxu1 %v13351_v26  ;;  %v11811_v40 = vpop.eup %11810 }
 0x282   : > { %11816 = vrcp.f32 %v2951_v10  ;;  %v10359_v52 = vmul.f32 -1.442695, %v2939_v58  ;;  %v2943_v24 = vadd.f32 %v2933_v0, %v2657_v39  ;;  %v11813_v4 = vpop.eup %11812  ;;  %v2982_v58 = vmul.f32 0.0, %v11811_v40 }
 0x283   : > { %11818 = vtanh.f32 %v2942_v11  ;;  %v2983_v12 = vmul.f32 0.0, %v11813_v4 }
 0x284   : > { %11820 = vpow2.f32 %v10359_v52  ;;  %v10360_v53 = vmul.f32 -1.442695, %v2943_v24  ;;  %3219 = vmatpush1.bf16.msra.mxu1 %v13360_v41 }
 0x285   : > { %3560 = vmatprep.subr.bf16.mxu1 %v13294_v22 }
 0x286   : > { %11822 = vpow2.f32 %v10360_v53 }
 0x287   : > { %10319 = vmatmul.mubr.msk.bf16.gmra.mrb[28].mxu1 %vm1201_vm0, %v13167_v60 }
 0x288   : > { %2480 = vmatprep.mubr.bf16.mxu1 %v15175_v3 }
 0x28b   : > { %v11815_v34 = vpop.eup %11814 }
 0x28c   : > { %v11817_v10 = vpop.eup %11816  ;;  %v2984_v39 = vmul.f32 %v11815_v34, %v11809_v55 }
 0x28d   : > { %v11819_v44 = vpop.eup %11818 }
 0x28e   : > { %v11821_v36 = vpop.eup %11820  ;;  %v13368_v54 = vadd.f32 %v2984_v39, %v2982_v58  ;;  %v2985_v11 = vmul.f32 %v11819_v44, %v11817_v10 }
 0x28f   : > { %v2976_v0 = vadd.f32 1.0, %v11821_v36  ;;  %10320 = vmatmul.mubr.msk.bf16.gmra.mrb[32].mxu1 %vm1201_vm0, %v13173_v61 }
 0x290   : > { %v11823_v60 = vpop.eup %11822  ;;  %11824 = vtanh.f32 %v13368_v54  ;;  %v13373_v52 = vadd.f32 %v2985_v11, %v2983_v12  ;;  %2490 = vmatprep.mubr.bf16.mxu1 %v15175_v3 }
 0x291   : > { %11826 = vrcp.f32 %v2976_v0  ;;  %v2977_v24 = vadd.f32 1.0, %v11823_v60 }
 0x292   : > { %11828 = vtanh.f32 %v13373_v52 }
 0x293   : > { %11830 = vrcp.f32 %v2977_v24 }
 0x297   : > { %10321 = vmatmul.mubr.msk.bf16.gmra.mrb[36].mxu1 %vm1201_vm0, %v13179_v62  ;;  %v13408_v62 = vld [vmem:[%s15064_s7] sm:$0xf] }
 0x298   : > { %2500 = vmatprep.mubr.bf16.mxu1 %v15175_v3  ;;  %v1762_v58 = vrot.slane %v13408_v62, %v13199_v50 }
 0x29a   : > { %v11825_v53 = vpop.eup %11824 }
 0x29b   : > { %v11827_v55 = vpop.eup %11826 }
 0x29c   : > { %v11829_v61 = vpop.eup %11828  ;;  %v2990_v4 = vmul.f32 %v11827_v55, %v11825_v53 }
 0x29d   : > { %v11831_v40 = vpop.eup %11830 }
 0x29e   : > { %v2991_v34 = vmul.f32 %v11831_v40, %v11829_v61 }
 0x29f   : > { %10322 = vmatmul.mubr.msk.bf16.gmra.mrb[40].mxu1 %vm1201_vm0, %v13185_v2  ;;  %v1758_v2 = vrot.slane %v13408_v62, %v13194_v25 }
 0x2a0   : > { %v13382_v10 = vpack.c.bf16 %v2991_v34, %v2990_v4  ;;  %3236 = vmatprep.mubr.bf16.mxu1 %v15175_v3 }
 0x2a2   : > { %15176 = vst [vmem:[#allocation39_spill] sm:$0xff] %v13382_v10  ;;  %3280 = vmatmul.mubr.bf16.vlgmr.msra.gmra.mrb[48].mxu0 %v13382_v10 }
 0x2a3   : > { %3635 = vmatprep.mubr.bf16.mxu0 %v15175_v3 }
 0x2a7   : > { %3237 = vmatmul.mubr.bf16.vlgmr.msra.gmra.mrb[44].mxu1 %v13382_v10 }
 0x2a8   : > { %3561 = vmatpush1.bf16.msra.mxu1 %v13303_v45  ;;  %3592 = vmatprep.mubr.bf16.mxu1 %v15175_v3 }
 0x2a9   : > { %3562 = vmatprep.subr.bf16.mxu1 %v13305_v14 }
 0x2ac   : > { %3563 = vmatpush1.bf16.msra.mxu1 %v13311_v17 }
 0x2ad   : > { %3564 = vmatprep.subr.bf16.mxu1 %v13314_v42 }
 0x2b0   : > { %3565 = vmatpush1.bf16.msra.mxu1 %v13317_v32 }
 0x2b1   : > { %3566 = vmatprep.subr.bf16.mxu1 %v13320_v31 }
 0x2b4   : > { %3567 = vmatpush1.bf16.msra.mxu1 %v13326_v8 }
 0x2b5   : > { %3568 = vmatprep.subr.bf16.mxu1 %v13329_v47 }
 0x2b8   : > { %3569 = vmatpush1.bf16.msra.mxu1 %v13332_v9 }
 0x2b9   : > { %3570 = vmatprep.subr.bf16.mxu1 %v13335_v6 }
 0x2bc   : > { %3571 = vmatpush1.bf16.msra.mxu1 %v13341_v13 }
 0x2bd   : > { %3572 = vmatprep.subr.bf16.mxu1 %v13344_v57 }
 0x2c0   : > { %3573 = vmatpush1.bf16.msra.mxu1 %v13347_v43 }
 0x2c1   : > { %3574 = vmatprep.subr.bf16.mxu1 %v13351_v26 }
 0x2c4   : > { %3575 = vmatpush1.bf16.msra.mxu1 %v13360_v41 }
 0x2c5   : > { %3916 = vmatprep.subr.bf16.mxu1 %v13294_v22 }
 0x2f2   : > { %v2129_v39 = vpop.f32.mrb[4].mxu1 }
 0x2f3   : > { %v2130_v44 = vadd.f32 %v2129_v39, %v1758_v2  ;;  %v2131_v36 = vpop.f32.mrb[5].mxu1 }
 0x2f4   : > { %v2132_v12 = vadd.f32 %v2131_v36, %v1762_v58  ;;  %v2133_v11 = vpop.f32.mrb[6].mxu1 }
 0x2f5   : > { %v2134_v0 = vadd.f32 %v2133_v11, %v1758_v2  ;;  %v2135_v60 = vpop.f32.mrb[7].mxu1  ;;  %v2511_v22 = vadd.f32 %v13224_v18, %v2130_v44  ;;  %v2519_v24 = vadd.f32 %v13233_v49, %v2130_v44  ;;  %v2527_v53 = vadd.f32 %v13241_v37, %v2130_v44 }
 0x2f6   : > { %v2136_v55 = vadd.f32 %v2135_v60, %v1762_v58  ;;  %v2512_v61 = vadd.f32 %v13227_v19, %v2132_v12  ;;  %v2520_v40 = vadd.f32 %v13235_v28, %v2132_v12  ;;  %v2528_v4 = vadd.f32 %v13243_v38, %v2132_v12 }
 0x2f7   : > { %v2515_v34 = vadd.f32 %v13229_v21, %v2134_v0  ;;  %v2523_v39 = vadd.f32 %v13237_v30, %v2134_v0  ;;  %v2531_v2 = vadd.f32 %v13245_v46, %v2134_v0  ;;  %v2535_v36 = vadd.f32 %v13249_v7, %v2130_v44 }
 0x2f8   : > { %v2516_v18 = vadd.f32 %v13231_v23, %v2136_v55  ;;  %v2524_v49 = vadd.f32 %v13239_v33, %v2136_v55  ;;  %v2532_v37 = vadd.f32 %v13247_v48, %v2136_v55  ;;  %v2539_v19 = vadd.f32 %v13253_v51, %v2134_v0 }
 0x2f9   : > { %v13428_v58 = vpack.c.bf16 %v2515_v34, %v2511_v22  ;;  %v13430_v28 = vpack.c.bf16 %v2523_v39, %v2519_v24  ;;  %v13432_v38 = vpack.c.bf16 %v2531_v2, %v2527_v53  ;;  %v2536_v21 = vadd.f32 %v13251_v16, %v2132_v12  ;;  %v15187_v34 = vld [vmem:[#allocation32_spill] sm:$0xff]  ;;  %v15188_v39 = vld [vmem:[#allocation34_spill] sm:$0xff]  ;;  %v15189_v2 = vld [vmem:[#allocation35_spill] sm:$0xff] }
 0x2fa   : > { %v13435_v30 = vpack.c.bf16 %v2516_v18, %v2512_v61  ;;  %v13437_v46 = vpack.c.bf16 %v2524_v49, %v2520_v40  ;;  %v13439_v7 = vpack.c.bf16 %v2532_v37, %v2528_v4  ;;  %v13441_v23 = vpack.c.bf16 %v2539_v19, %v2535_v36  ;;  %v15190_v36 = vld [vmem:[#allocation37_spill] sm:$0xff]  ;;  %v15191_v49 = vld [vmem:[#allocation36_spill] sm:$0xff]  ;;  %v15192_v19 = vld [vmem:[#allocation38_spill] sm:$0xff] }
 0x2fb   : > { %15177 = vst [vmem:[#allocation40_spill] sm:$0xff] %v13432_v38  ;;  %v2540_v33 = vadd.f32 %v13255_v56, %v2136_v55  ;;  %v2543_v48 = vadd.f32 %v13257_v59, %v2130_v44  ;;  %v2547_v51 = vadd.f32 %v13261_v1, %v2134_v0  ;;  %v2544_v11 = vadd.f32 %v13259_v63, %v2132_v12  ;;  %v15183_v1 = vld [vmem:[#allocation33_spill] sm:$0xff] }
 0x2fc   : > { %15178 = vst [vmem:[#allocation41_spill] sm:$0xff] %v13439_v7  ;;  %15179 = vst [vmem:[#allocation42_spill] sm:$0xff] %v13441_v23  ;;  %v2548_v60 = vadd.f32 %v13263_v5, %v2136_v55  ;;  %v2551_v16 = vadd.f32 %v13265_v15, %v2130_v44  ;;  %v2555_v24 = vadd.f32 %v13269_v27, %v2134_v0 }
 0x2fd   : > { %v13449_v22 = vpack.c.bf16 %v2540_v33, %v2536_v21  ;;  %v2552_v53 = vadd.f32 %v13267_v20, %v2132_v12  ;;  %v2556_v61 = vadd.f32 %v13271_v29, %v2136_v55  ;;  %v13454_v40 = vpack.c.bf16 %v2547_v51, %v2543_v48  ;;  %v13478_v51 = vld [vmem:[#allocation11 + $0xc] ss:$16 sps:$4 sm:$0xff]  }
 0x2fe   : > { %v13456_v56 = vpack.c.bf16 %v2548_v60, %v2544_v11  ;;  %v2559_v59 = vadd.f32 %v13273_v35, %v2130_v44  ;;  %v2563_v63 = vadd.f32 %v15183_v1, %v2134_v0  ;;  %v13460_v4 = vpack.c.bf16 %v2555_v24, %v2551_v16  ;;  %v13480_v11 = vld [vmem:[#allocation11 + $0x8] ss:$16 sps:$4 sm:$0xff]   ;;  %3603 = vmatprep.subr.bf16.mxu0 %v13478_v51  ;;  %v13496_v60 = vld [vmem:[#allocation11 + $0x6c] ss:$16 sps:$4 sm:$0xff]  }
 0x2ff   : > { %15180 = vst [vmem:[#allocation43_spill] sm:$0xff] %v13449_v22  ;;  %15181 = vst [vmem:[#allocation44_spill] sm:$0xff] %v13454_v40  ;;  %v13462_v5 = vpack.c.bf16 %v2556_v61, %v2552_v53  ;;  %v2560_v27 = vadd.f32 %v15187_v34, %v2132_v12  ;;  %v2564_v20 = vadd.f32 %v15188_v39, %v2136_v55  ;;  %3604 = vmatpush1.bf16.msra.mxu0 %v13480_v11  ;;  %v13498_v16 = vld [vmem:[#allocation11 + $0x68] ss:$16 sps:$4 sm:$0xff]   ;;  %v13502_v24 = vld [vmem:[#allocation11 + $0x8c] ss:$16 sps:$4 sm:$0xff]  }
 0x300   : > { %15182 = vst [vmem:[#allocation45_spill] sm:$0xff] %v13456_v56  ;;  %15184 = vst [vmem:[#allocation33_spill] sm:$0xff] %v13460_v4  ;;  %v13464_v15 = vpack.c.bf16 %v2563_v63, %v2559_v59  ;;  %v2567_v29 = vadd.f32 %v15189_v2, %v2130_v44  ;;  %v2571_v18 = vadd.f32 %v15190_v36, %v2134_v0  ;;  %v13484_v44 = vld [vmem:[#allocation11 + $0x2c] ss:$16 sps:$4 sm:$0xff]   ;;  %v13486_v0 = vld [vmem:[#allocation11 + $0x28] ss:$16 sps:$4 sm:$0xff]  }
 0x301   : > { %15185 = vst [vmem:[#allocation46_spill] sm:$0xff] %v13462_v5  ;;  %v2568_v37 = vadd.f32 %v15191_v49, %v2132_v12  ;;  %v2572_v35 = vadd.f32 %v15192_v19, %v2136_v55  ;;  %v13472_v21 = vpack.c.bf16 %v2564_v20, %v2560_v27  ;;  %3605 = vmatprep.subr.bf16.mxu0 %v13484_v44  ;;  %v13490_v12 = vld [vmem:[#allocation11 + $0x4c] ss:$16 sps:$4 sm:$0xff]   ;;  %v13492_v55 = vld [vmem:[#allocation11 + $0x48] ss:$16 sps:$4 sm:$0xff]   ;;  %v15196_v39 = vld [vmem:[#allocation30_spill] sm:$0xff] }
 0x302   : > { %15186 = vst [vmem:[#allocation47_spill] sm:$0xff] %v13464_v15  ;;  %v13474_v33 = vpack.c.bf16 %v2571_v18, %v2567_v29  ;;  %v13504_v53 = vld [vmem:[#allocation11 + $0x88] ss:$16 sps:$4 sm:$0xff]   ;;  %v13510_v59 = vld [vmem:[#allocation11 + $0xac] ss:$16 sps:$4 sm:$0xff]   ;;  %v1766_v20 = vrot.slane %v13408_v62, %v15196_v39 }
 0x303   : > { %15193 = vst [vmem:[#allocation32_spill] sm:$0xff] %v13472_v21  ;;  %v13476_v48 = vpack.c.bf16 %v2572_v35, %v2568_v37  ;;  %3606 = vmatpush1.bf16.msra.mxu0 %v13486_v0  ;;  %v13508_v61 = vld [vmem:[#allocation11 + $0xa8] ss:$16 sps:$4 sm:$0xff]   ;;  %v13512_v1 = vld [vmem:[#allocation11 + $0xcc] ss:$16 sps:$4 sm:$0xff]  }
 0x304   : > { %15194 = vst [vmem:[#allocation34_spill] sm:$0xff] %v13474_v33  ;;  %3607 = vmatprep.subr.bf16.mxu0 %v13490_v12  ;;  %v13516_v63 = vld [vmem:[#allocation11 + $0xc8] ss:$16 sps:$4 sm:$0xff]   ;;  %v13519_v34 = vld [vmem:[#allocation11 + $0xec] ss:$16 sps:$4 sm:$0xff]  }
 0x305   : > { %15195 = vst [vmem:[#allocation35_spill] sm:$0xff] %v13476_v48  ;;  %v13522_v27 = vld [vmem:[#allocation11 + $0xe8] ss:$16 sps:$4 sm:$0xff]  }
 0x306   : > { %v15197_v2 = vld [vmem:[#allocation31_spill] sm:$0xff] }
 0x307   : > { %3608 = vmatpush1.bf16.msra.mxu0 %v13492_v55  ;;  %v1770_v29 = vrot.slane %v13408_v62, %v15197_v2 }
 0x308   : > { %3609 = vmatprep.subr.bf16.mxu0 %v13496_v60 }
 0x30b   : > { %3610 = vmatpush1.bf16.msra.mxu0 %v13498_v16 }
 0x30c   : > { %3611 = vmatprep.subr.bf16.mxu0 %v13502_v24 }
 0x30f   : > { %3612 = vmatpush1.bf16.msra.mxu0 %v13504_v53 }
 0x310   : > { %3613 = vmatprep.subr.bf16.mxu0 %v13510_v59 }
 0x313   : > { %3614 = vmatpush1.bf16.msra.mxu0 %v13508_v61 }
 0x314   : > { %3615 = vmatprep.subr.bf16.mxu0 %v13512_v1 }
 0x317   : > { %3616 = vmatpush1.bf16.msra.mxu0 %v13516_v63 }
 0x318   : > { %3617 = vmatprep.subr.bf16.mxu0 %v13519_v34 }
 0x31b   : > { %3618 = vmatpush1.bf16.msra.mxu0 %v13522_v27 }
 0x31c   : > { %3959 = vmatprep.subr.bf16.mxu0 %v13478_v51 }
 0x332   : > { %v2172_v36 = vpop.f32.mrb[8].mxu1 }
 0x333   : > { %v13531_v18 = vadd.f32 %v2172_v36, %v1766_v20  ;;  %v2174_v49 = vpop.f32.mrb[9].mxu1 }
 0x334   : > { %v13533_v37 = vadd.f32 %v2174_v49, %v1770_v29  ;;  %v2176_v19 = vpop.f32.mrb[10].mxu1 }
 0x335   : > { %v13535_v35 = vadd.f32 %v2176_v19, %v1766_v20  ;;  %v2178_v50 = vpop.f32.mrb[11].mxu1 }
 0x336   : > { %v13537_v25 = vadd.f32 %v2178_v50, %v1770_v29 }
 0x33a   : > { %v2432_v48 = vpop.f32.mrb[12].mxu1 }
 0x33b   : > { %v2513_v33 = vadd.f32 %v2432_v48, %v13531_v18  ;;  %v2434_v10 = vpop.f32.mrb[13].mxu1 }
 0x33c   : > { %v2514_v39 = vadd.f32 %v2434_v10, %v13533_v37  ;;  %v2436_v21 = vpop.f32.mrb[14].mxu1 }
 0x33d   : > { %v2517_v62 = vadd.f32 %v2436_v21, %v13535_v35  ;;  %v2438_v36 = vpop.f32.mrb[15].mxu1 }
 0x33e   : > { %v2518_v2 = vadd.f32 %v2438_v36, %v13537_v25 }
 0x33f   : > { %v13543_v49 = vpack.c.bf16 %v2517_v62, %v2513_v33 }
 0x340   : > { %v13545_v15 = vpack.c.bf16 %v2518_v2, %v2514_v39 }
 0x342   : > { %v2442_v20 = vpop.f32.mrb[16].mxu1 }
 0x343   : > { %v2521_v50 = vadd.f32 %v2442_v20, %v13531_v18  ;;  %v2444_v29 = vpop.f32.mrb[17].mxu1 }
 0x344   : > { %v2522_v19 = vadd.f32 %v2444_v29, %v13533_v37  ;;  %v2446_v48 = vpop.f32.mrb[18].mxu1 }
 0x345   : > { %v2525_v5 = vadd.f32 %v2446_v48, %v13535_v35  ;;  %v2448_v10 = vpop.f32.mrb[19].mxu1 }
 0x346   : > { %v2526_v4 = vadd.f32 %v2448_v10, %v13537_v25 }
 0x347   : > { %v13551_v21 = vpack.c.bf16 %v2525_v5, %v2521_v50 }
 0x348   : > { %v13553_v56 = vpack.c.bf16 %v2526_v4, %v2522_v19 }
 0x34a   : > { %v2452_v33 = vpop.f32.mrb[20].mxu1 }
 0x34b   : > { %v2529_v39 = vadd.f32 %v2452_v33, %v13531_v18  ;;  %v2454_v2 = vpop.f32.mrb[21].mxu1 }
 0x34c   : > { %v2530_v62 = vadd.f32 %v2454_v2, %v13533_v37  ;;  %v2456_v36 = vpop.f32.mrb[22].mxu1 }
 0x34d   : > { %v2533_v20 = vadd.f32 %v2456_v36, %v13535_v35  ;;  %v2458_v29 = vpop.f32.mrb[23].mxu1 }
 0x34e   : > { %v2534_v40 = vadd.f32 %v2458_v29, %v13537_v25 }
 0x34f   : > { %v13559_v48 = vpack.c.bf16 %v2533_v20, %v2529_v39 }
 0x350   : > { %v13561_v22 = vpack.c.bf16 %v2534_v40, %v2530_v62 }
 0x351   : > { %15198 = vst [vmem:[#allocation37_spill] sm:$0xff] %v13559_v48 }
 0x352   : > { %15199 = vst [vmem:[#allocation36_spill] sm:$0xff] %v13561_v22  ;;  %v2462_v5 = vpop.f32.mrb[24].mxu1 }
 0x353   : > { %v2537_v4 = vadd.f32 %v2462_v5, %v13531_v18  ;;  %v2464_v50 = vpop.f32.mrb[25].mxu1 }
 0x354   : > { %v2538_v19 = vadd.f32 %v2464_v50, %v13533_v37  ;;  %v2466_v10 = vpop.f32.mrb[26].mxu1 }
 0x355   : > { %v2541_v33 = vadd.f32 %v2466_v10, %v13535_v35  ;;  %v2468_v2 = vpop.f32.mrb[27].mxu1 }
 0x356   : > { %v2542_v23 = vadd.f32 %v2468_v2, %v13537_v25 }
 0x357   : > { %v13567_v36 = vpack.c.bf16 %v2541_v33, %v2537_v4 }
 0x358   : > { %v13569_v7 = vpack.c.bf16 %v2542_v23, %v2538_v19 }
 0x359   : > { %15200 = vst [vmem:[#allocation38_spill] sm:$0xff] %v13567_v36 }
 0x35a   : > { %15201 = vst [vmem:[#allocation48_spill] sm:$0xff] %v13569_v7  ;;  %v2472_v39 = vpop.f32.mrb[28].mxu1 }
 0x35b   : > { %v2545_v40 = vadd.f32 %v2472_v39, %v13531_v18  ;;  %v2474_v62 = vpop.f32.mrb[29].mxu1 }
 0x35c   : > { %v2546_v20 = vadd.f32 %v2474_v62, %v13533_v37  ;;  %v2476_v29 = vpop.f32.mrb[30].mxu1 }
 0x35d   : > { %v2549_v5 = vadd.f32 %v2476_v29, %v13535_v35  ;;  %v2478_v50 = vpop.f32.mrb[31].mxu1 }
 0x35e   : > { %v2550_v22 = vadd.f32 %v2478_v50, %v13537_v25 }
 0x35f   : > { %v13575_v10 = vpack.c.bf16 %v2549_v5, %v2545_v40 }
 0x360   : > { %v13577_v48 = vpack.c.bf16 %v2550_v22, %v2546_v20 }
 0x361   : > { %15202 = vst [vmem:[#allocation49_spill] sm:$0xff] %v13575_v10 }
 0x362   : > { %15203 = vst [vmem:[#allocation50_spill] sm:$0xff] %v13577_v48  ;;  %v2482_v4 = vpop.f32.mrb[32].mxu1 }
 0x363   : > { %v2553_v23 = vadd.f32 %v2482_v4, %v13531_v18  ;;  %v2484_v19 = vpop.f32.mrb[33].mxu1 }
 0x364   : > { %v2554_v33 = vadd.f32 %v2484_v19, %v13533_v37  ;;  %v2486_v2 = vpop.f32.mrb[34].mxu1 }
 0x365   : > { %v2557_v39 = vadd.f32 %v2486_v2, %v13535_v35  ;;  %v2488_v62 = vpop.f32.mrb[35].mxu1 }
 0x366   : > { %v2558_v7 = vadd.f32 %v2488_v62, %v13537_v25 }
 0x367   : > { %v13583_v29 = vpack.c.bf16 %v2557_v39, %v2553_v23 }
 0x368   : > { %v13585_v36 = vpack.c.bf16 %v2558_v7, %v2554_v33 }
 0x369   : > { %15204 = vst [vmem:[#allocation51_spill] sm:$0xff] %v13583_v29  ;;  %v3007_v29 = vunpack.c.l.bf16 %v13545_v15 }
 0x36a   : > { %15205 = vst [vmem:[#allocation52_spill] sm:$0xff] %v13585_v36  ;;  %v2492_v40 = vpop.f32.mrb[36].mxu1 }
 0x36b   : > { %v2561_v22 = vadd.f32 %v2492_v40, %v13531_v18  ;;  %v2494_v20 = vpop.f32.mrb[37].mxu1  ;;  %v3006_v40 = vunpack.c.l.bf16 %v13543_v49 }
 0x36c   : > { %v2562_v5 = vadd.f32 %v2494_v20, %v13533_v37  ;;  %v2496_v50 = vpop.f32.mrb[38].mxu1 }
 0x36d   : > { %v2565_v4 = vadd.f32 %v2496_v50, %v13535_v35  ;;  %v2498_v19 = vpop.f32.mrb[39].mxu1 }
 0x36e   : > { %v2566_v48 = vadd.f32 %v2498_v19, %v13537_v25 }
 0x36f   : > { %v13591_v2 = vpack.c.bf16 %v2565_v4, %v2561_v22 }
 0x370   : > { %v13593_v10 = vpack.c.bf16 %v2566_v48, %v2562_v5  ;;  %v3010_v5 = vunpack.c.h.bf16 %v13543_v49  ;;  %v3008_v49 = vunpack.c.h.bf16 %v13428_v58 }
 0x371   : > { %15206 = vst [vmem:[#allocation53_spill] sm:$0xff] %v13591_v2  ;;  %v3004_v2 = vunpack.c.l.bf16 %v13428_v58 }
 0x372   : > { %15207 = vst [vmem:[#allocation54_spill] sm:$0xff] %v13593_v10  ;;  %v2502_v23 = vpop.f32.mrb[40].mxu1 }
 0x373   : > { %v2569_v7 = vadd.f32 %v2502_v23, %v13531_v18  ;;  %v2504_v33 = vpop.f32.mrb[41].mxu1 }
 0x374   : > { %v2570_v39 = vadd.f32 %v2504_v33, %v13533_v37  ;;  %v2506_v62 = vpop.f32.mrb[42].mxu1  ;;  %v3011_v37 = vunpack.c.h.bf16 %v13545_v15 }
 0x375   : > { %v2573_v20 = vadd.f32 %v2506_v62, %v13535_v35  ;;  %v2508_v36 = vpop.f32.mrb[43].mxu1  ;;  %v3281_v50 = vpop.f32.mrb[48].mxu0 }
 0x376   : > { %v2574_v22 = vadd.f32 %v2508_v36, %v13537_v25  ;;  %v3292_v4 = vadd.f32 %v3281_v50, %v3006_v40  ;;  %v3283_v48 = vpop.f32.mrb[49].mxu0  ;;  %v3005_v25 = vunpack.c.l.bf16 %v13435_v30 }
 0x377   : > { %v13602_v19 = vpack.c.bf16 %v2573_v20, %v2569_v7  ;;  %v3293_v18 = vadd.f32 %v3283_v48, %v3007_v29  ;;  %v3285_v23 = vpop.f32.mrb[50].mxu0  ;;  %v3009_v29 = vunpack.c.h.bf16 %v13435_v30 }
 0x378   : > { %v13605_v33 = vpack.c.bf16 %v2574_v22, %v2570_v39  ;;  %v3296_v10 = vadd.f32 %v3285_v23, %v3010_v5  ;;  %v3287_v35 = vpop.f32.mrb[51].mxu0 }
 0x379   : > { %15208 = vst [vmem:[#allocation55_spill] sm:$0xff] %v13602_v19  ;;  %v3297_v62 = vadd.f32 %v3287_v35, %v3011_v37  ;;  %v10397_v37 = vmul.f32 -1.442695, %v3293_v18 }
 0x37a   : > { %15209 = vst [vmem:[#allocation56_spill] sm:$0xff] %v13605_v33  ;;  %v3238_v38 = vpop.f32.mrb[44].mxu1 }
 0x37b   : > { %v3290_v36 = vadd.f32 %v3238_v38, %v3004_v2  ;;  %v3240_v40 = vpop.f32.mrb[45].mxu1  ;;  %v10398_v38 = vmul.f32 -1.442695, %v3297_v62 }
 0x37c   : > { %v3291_v7 = vadd.f32 %v3240_v40, %v3005_v25  ;;  %v3242_v20 = vpop.f32.mrb[46].mxu1 }
 0x37d   : > { %v10393_v50 = vmul.f32 -1.442695, %v3290_v36  ;;  %v3294_v15 = vadd.f32 %v3242_v20, %v3008_v49  ;;  %v3244_v39 = vpop.f32.mrb[47].mxu1 }
 0x37e   : > { %v10395_v22 = vmul.f32 -1.442695, %v3291_v7  ;;  %v3295_v48 = vadd.f32 %v3244_v39, %v3009_v29 }
 0x37f   : > { %11832 = vpow2.f32 %v10393_v50  ;;  %v10394_v5 = vmul.f32 -1.442695, %v3294_v15 }
 0x380   : > { %11834 = vpow2.f32 %v10395_v22  ;;  %v10396_v23 = vmul.f32 -1.442695, %v3295_v48 }
 0x381   : > { %11836 = vpow2.f32 %v10394_v5 }
 0x382   : > { %11838 = vpow2.f32 %v10396_v23 }
 0x383   : > { %11840 = vtanh.f32 %v3292_v4 }
 0x384   : > { %11842 = vtanh.f32 %v3296_v10 }
 0x385   : > { %11844 = vpow2.f32 %v10397_v37 }
 0x386   : > { %11846 = vpow2.f32 %v10398_v38 }
 0x389   : > { %v11833_v2 = vpop.eup %11832 }
 0x38a   : > { %v11835_v58 = vpop.eup %11834  ;;  %v3304_v35 = vadd.f32 1.0, %v11833_v2 }
 0x38b   : > { %v11837_v30 = vpop.eup %11836  ;;  %v3316_v25 = vadd.f32 1.0, %v11835_v58 }
 0x38c   : > { %v11839_v36 = vpop.eup %11838  ;;  %11848 = vrcp.f32 %v3304_v35  ;;  %v3305_v40 = vadd.f32 1.0, %v11837_v30 }
 0x38d   : > { %11850 = vrcp.f32 %v3316_v25  ;;  %v3317_v49 = vadd.f32 1.0, %v11839_v36  ;;  %v11841_v7 = vpop.eup %11840 }
 0x38e   : > { %11852 = vrcp.f32 %v3305_v40  ;;  %v11843_v20 = vpop.eup %11842  ;;  %v3365_v40 = vunpack.c.h.bf16 %v13437_v46 }
 0x38f   : > { %11854 = vrcp.f32 %v3317_v49  ;;  %v11845_v18 = vpop.eup %11844  ;;  %v3367_v49 = vunpack.c.h.bf16 %v13553_v56 }
 0x390   : > { %v11847_v62 = vpop.eup %11846  ;;  %v3330_v10 = vadd.f32 1.0, %v11845_v18 }
 0x391   : > { %v3331_v48 = vadd.f32 1.0, %v11847_v62 }
 0x392   : > { %11856 = vrcp.f32 %v3330_v10 }
 0x396   : > { %v11849_v4 = vpop.eup %11848 }
 0x397   : > { %v11851_v29 = vpop.eup %11850  ;;  %v3338_v50 = vmul.f32 %v11849_v4, %v11841_v7 }
 0x398   : > { %v11853_v15 = vpop.eup %11852  ;;  %v3336_v39 = vmul.f32 %v11851_v29, %v13368_v54 }
 0x399   : > { %v11855_v22 = vpop.eup %11854  ;;  %v3339_v5 = vmul.f32 %v11853_v15, %v11843_v20 }
 0x39a   : > { %v13612_v23 = vadd.f32 %v3338_v50, %v3336_v39  ;;  %v3337_v37 = vmul.f32 %v11855_v22, %v13373_v52 }
 0x39c   : > { %11858 = vtanh.f32 %v13612_v23  ;;  %v13616_v38 = vadd.f32 %v3339_v5, %v3337_v37  ;;  %v11857_v2 = vpop.eup %11856 }
 0x39d   : > { %11860 = vrcp.f32 %v3331_v48 }
 0x39e   : > { %11862 = vtanh.f32 %v13616_v38 }
 0x3a6   : > { %v11859_v58 = vpop.eup %11858 }
 0x3a7   : > { %v11861_v35 = vpop.eup %11860  ;;  %v3344_v54 = vmul.f32 %v11859_v58, %v11857_v2 }
 0x3a8   : > { %v11863_v30 = vpop.eup %11862 }
 0x3a9   : > { %v3345_v25 = vmul.f32 %v11863_v30, %v11861_v35 }
 0x3ab   : > { %v13619_v36 = vpack.c.bf16 %v3345_v25, %v3344_v54 }
 0x3ad   : > { %3593 = vmatmul.mubr.bf16.vlgmr.msra.gmra.mrb[48].mxu1 %v13619_v36  ;;  %3636 = vmatmul.mubr.bf16.vlgmr.msra.gmra.mrb[52].mxu0 %v13619_v36 }
 0x3ae   : > { %3917 = vmatpush1.bf16.msra.mxu1 %v13303_v45  ;;  %3960 = vmatpush1.bf16.msra.mxu0 %v13480_v11  ;;  %v3360_v45 = vunpack.c.l.bf16 %v13430_v28 }
 0x3af   : > { %3918 = vmatprep.subr.bf16.mxu1 %v13305_v14  ;;  %3961 = vmatprep.subr.bf16.mxu0 %v13484_v44  ;;  %v3362_v14 = vunpack.c.l.bf16 %v13551_v21 }
 0x3b0   : > { %3948 = vmatprep.mubr.bf16.mxu1 %v15175_v3  ;;  %3991 = vmatprep.mubr.bf16.mxu0 %v15175_v3 }
 0x3b2   : > { %3919 = vmatpush1.bf16.msra.mxu1 %v13311_v17  ;;  %3962 = vmatpush1.bf16.msra.mxu0 %v13486_v0 }
 0x3b3   : > { %3920 = vmatprep.subr.bf16.mxu1 %v13314_v42  ;;  %3963 = vmatprep.subr.bf16.mxu0 %v13490_v12 }
 0x3b6   : > { %3921 = vmatpush1.bf16.msra.mxu1 %v13317_v32  ;;  %3964 = vmatpush1.bf16.msra.mxu0 %v13492_v55  ;;  %v3363_v32 = vunpack.c.l.bf16 %v13553_v56 }
 0x3b7   : > { %3922 = vmatprep.subr.bf16.mxu1 %v13320_v31  ;;  %3965 = vmatprep.subr.bf16.mxu0 %v13496_v60 }
 0x3ba   : > { %3923 = vmatpush1.bf16.msra.mxu1 %v13326_v8  ;;  %3966 = vmatpush1.bf16.msra.mxu0 %v13498_v16 }
 0x3bb   : > { %3924 = vmatprep.subr.bf16.mxu1 %v13329_v47  ;;  %3967 = vmatprep.subr.bf16.mxu0 %v13502_v24 }
 0x3be   : > { %3925 = vmatpush1.bf16.msra.mxu1 %v13332_v9  ;;  %3968 = vmatpush1.bf16.msra.mxu0 %v13504_v53  ;;  %v3364_v9 = vunpack.c.h.bf16 %v13430_v28 }
 0x3bf   : > { %3926 = vmatprep.subr.bf16.mxu1 %v13335_v6  ;;  %3969 = vmatprep.subr.bf16.mxu0 %v13510_v59  ;;  %v3366_v6 = vunpack.c.h.bf16 %v13551_v21 }
 0x3c2   : > { %3927 = vmatpush1.bf16.msra.mxu1 %v13341_v13  ;;  %3970 = vmatpush1.bf16.msra.mxu0 %v13508_v61 }
 0x3c3   : > { %3928 = vmatprep.subr.bf16.mxu1 %v13344_v57  ;;  %3971 = vmatprep.subr.bf16.mxu0 %v13512_v1 }
 0x3c6   : > { %3929 = vmatpush1.bf16.msra.mxu1 %v13347_v43  ;;  %3972 = vmatpush1.bf16.msra.mxu0 %v13516_v63  ;;  %v3361_v43 = vunpack.c.l.bf16 %v13437_v46 }
 0x3c7   : > { %3930 = vmatprep.subr.bf16.mxu1 %v13351_v26  ;;  %3973 = vmatprep.subr.bf16.mxu0 %v13519_v34 }
 0x3ca   : > { %3931 = vmatpush1.bf16.msra.mxu1 %v13360_v41  ;;  %3974 = vmatpush1.bf16.msra.mxu0 %v13522_v27 }
 0x3cb   : > { %4315 = vmatprep.subr.bf16.mxu0 %v13478_v51 }
 0x480   : > { %v3594_v17 = vpop.f32.mrb[48].mxu1  ;;  %v3637_v42 = vpop.f32.mrb[52].mxu0 }
 0x481   : > { %v3646_v31 = vadd.f32 %v3594_v17, %v3360_v45  ;;  %v3648_v26 = vadd.f32 %v3637_v42, %v3362_v14  ;;  %v3596_v8 = vpop.f32.mrb[49].mxu1  ;;  %v3639_v47 = vpop.f32.mrb[53].mxu0 }
 0x482   : > { %v3647_v13 = vadd.f32 %v3596_v8, %v3361_v43  ;;  %v3649_v57 = vadd.f32 %v3639_v47, %v3363_v32  ;;  %v3598_v41 = vpop.f32.mrb[50].mxu1  ;;  %v3641_v52 = vpop.f32.mrb[54].mxu0 }
 0x483   : > { %v10431_v7 = vmul.f32 -1.442695, %v3646_v31  ;;  %v3650_v20 = vadd.f32 %v3598_v41, %v3364_v9  ;;  %v3652_v18 = vadd.f32 %v3641_v52, %v3366_v6  ;;  %v3600_v62 = vpop.f32.mrb[51].mxu1  ;;  %v3643_v4 = vpop.f32.mrb[55].mxu0 }
 0x484   : > { %v10433_v29 = vmul.f32 -1.442695, %v3647_v13  ;;  %v3651_v10 = vadd.f32 %v3600_v62, %v3365_v40  ;;  %v3653_v50 = vadd.f32 %v3643_v4, %v3367_v49  ;;  %v10435_v15 = vmul.f32 -1.442695, %v3649_v57  ;;  %v13706_v62 = vld [vmem:[#allocation11 + $0x44] ss:$16 sps:$4 sm:$0xff]  }
 0x485   : > { %11864 = vpow2.f32 %v10431_v7  ;;  %v10432_v28 = vmul.f32 -1.442695, %v3650_v20  ;;  %v13696_v7 = vld [vmem:[#allocation11] ss:$16 sps:$4 sm:$0xff]   ;;  %v13700_v20 = vld [vmem:[#allocation11 + $0x24] ss:$16 sps:$4 sm:$0xff]  }
 0x486   : > { %11866 = vpow2.f32 %v10433_v29  ;;  %v10434_v21 = vmul.f32 -1.442695, %v3651_v10  ;;  %v10436_v56 = vmul.f32 -1.442695, %v3653_v50  ;;  %v13708_v4 = vld [vmem:[#allocation11 + $0x40] ss:$16 sps:$4 sm:$0xff]  }
 0x487   : > { %11868 = vpow2.f32 %v10432_v28  ;;  %v13714_v29 = vld [vmem:[#allocation11 + $0x60] ss:$16 sps:$4 sm:$0xff]   ;;  %v13718_v10 = vld [vmem:[#allocation11 + $0x84] ss:$16 sps:$4 sm:$0xff]  }
 0x488   : > { %11870 = vpow2.f32 %v10434_v21  ;;  %v13720_v50 = vld [vmem:[#allocation11 + $0x80] ss:$16 sps:$4 sm:$0xff]   ;;  %v13722_v28 = vld [vmem:[#allocation11 + $0xa4] ss:$16 sps:$4 sm:$0xff]  }
 0x489   : > { %11872 = vtanh.f32 %v3648_v26  ;;  %v13726_v21 = vld [vmem:[#allocation11 + $0xa0] ss:$16 sps:$4 sm:$0xff]  }
 0x48a   : > { %11874 = vpow2.f32 %v10435_v15  ;;  %v13729_v15 = vld [vmem:[#allocation11 + $0xc4] ss:$16 sps:$4 sm:$0xff]  }
 0x48b   : > { %11876 = vtanh.f32 %v3652_v18  ;;  %v13702_v18 = vld [vmem:[#allocation11 + $0x20] ss:$16 sps:$4 sm:$0xff]  }
 0x48f   : > { %v11865_v39 = vpop.eup %11864 }
 0x490   : > { %v11867_v46 = vpop.eup %11866  ;;  %v3660_v22 = vadd.f32 1.0, %v11865_v39  ;;  %v13732_v39 = vld [vmem:[#allocation11 + $0xc0] ss:$16 sps:$4 sm:$0xff]  }
 0x491   : > { %v3672_v48 = vadd.f32 1.0, %v11867_v46  ;;  %v11869_v5 = vpop.eup %11868  ;;  %v13735_v46 = vld [vmem:[#allocation11 + $0xe4] ss:$16 sps:$4 sm:$0xff]  }
 0x492   : > { %11878 = vrcp.f32 %v3660_v22  ;;  %v3661_v37 = vadd.f32 1.0, %v11869_v5  ;;  %v11871_v2 = vpop.eup %11870  ;;  %v13738_v22 = vld [vmem:[#allocation11 + $0xe0] ss:$16 sps:$4 sm:$0xff]   ;;  %v15211_v5 = vld [vmem:[#allocation37_spill] sm:$0xff] }
 0x493   : > { %11880 = vrcp.f32 %v3672_v48  ;;  %v3673_v58 = vadd.f32 1.0, %v11871_v2  ;;  %v11873_v35 = vpop.eup %11872 }
 0x494   : > { %11882 = vpow2.f32 %v10436_v56  ;;  %v11875_v30 = vpop.eup %11874  ;;  %v15210_v56 = vld [vmem:[#allocation40_spill] sm:$0xff] }
 0x495   : > { %11884 = vrcp.f32 %v3661_v37  ;;  %v11877_v54 = vpop.eup %11876  ;;  %v3686_v32 = vadd.f32 1.0, %v11875_v30  ;;  %v3716_v48 = vunpack.c.l.bf16 %v15210_v56  ;;  %v3718_v37 = vunpack.c.l.bf16 %v15211_v5 }
 0x496   : > { %11886 = vrcp.f32 %v3673_v58 }
 0x497   : > { %11888 = vrcp.f32 %v3686_v32  ;;  %v3722_v32 = vunpack.c.h.bf16 %v15211_v5 }
 0x49c   : > { %v11879_v25 = vpop.eup %11878 }
 0x49d   : > { %v11881_v45 = vpop.eup %11880  ;;  %v3694_v14 = vmul.f32 %v11879_v25, %v11873_v35  ;;  %v15212_v35 = vld [vmem:[#allocation41_spill] sm:$0xff] }
 0x49e   : > { %v11883_v17 = vpop.eup %11882  ;;  %v3692_v42 = vmul.f32 %v11881_v45, %v13612_v23  ;;  %v3717_v30 = vunpack.c.l.bf16 %v15212_v35 }
 0x49f   : > { %v11885_v43 = vpop.eup %11884  ;;  %v3687_v47 = vadd.f32 1.0, %v11883_v17 }
 0x4a0   : > { %v13665_v31 = vadd.f32 %v3694_v14, %v3692_v42  ;;  %v3695_v26 = vmul.f32 %v11885_v43, %v11877_v54  ;;  %v11887_v8 = vpop.eup %11886  ;;  %v15213_v54 = vld [vmem:[#allocation36_spill] sm:$0xff]  ;;  %v3720_v43 = vunpack.c.h.bf16 %v15210_v56 }
 0x4a1   : > { %v3693_v9 = vmul.f32 %v11887_v8, %v13616_v38  ;;  %v11889_v13 = vpop.eup %11888  ;;  %v13694_v38 = vld [vmem:[#allocation11 + $0x4] ss:$16 sps:$4 sm:$0xff]   ;;  %v3719_v25 = vunpack.c.l.bf16 %v15213_v54 }
 0x4a2   : > { %11890 = vtanh.f32 %v13665_v31  ;;  %4272 = vmatprep.subr.bf16.mxu1 %v13694_v38 }
 0x4a3   : > { %v13669_v6 = vadd.f32 %v3695_v26, %v3693_v9  ;;  %11892 = vrcp.f32 %v3687_v47 }
 0x4a5   : > { %11894 = vtanh.f32 %v13669_v6 }
 0x4ac   : > { %v11891_v57 = vpop.eup %11890 }
 0x4ad   : > { %v11893_v23 = vpop.eup %11892  ;;  %v3700_v52 = vmul.f32 %v11891_v57, %v11889_v13  ;;  %v3721_v13 = vunpack.c.h.bf16 %v15212_v35  ;;  %v3723_v57 = vunpack.c.h.bf16 %v15213_v54 }
 0x4af   : > { %v11895_v41 = vpop.eup %11894 }
 0x4b0   : > { %v3701_v40 = vmul.f32 %v11895_v41, %v11893_v23 }
 0x4b2   : > { %v13672_v49 = vpack.c.bf16 %v3701_v40, %v3700_v52 }
 0x4b4   : > { %3949 = vmatmul.mubr.bf16.vlgmr.msra.gmra.mrb[52].mxu1 %v13672_v49  ;;  %3992 = vmatmul.mubr.bf16.vlgmr.msra.gmra.mrb[56].mxu0 %v13672_v49 }
 0x4b5   : > { %4316 = vmatpush1.bf16.msra.mxu0 %v13480_v11  ;;  %4304 = vmatprep.mubr.bf16.mxu1 %v15175_v3 }
 0x4b6   : > { %4317 = vmatprep.subr.bf16.mxu0 %v13484_v44  ;;  %4347 = vmatprep.mubr.bf16.mxu0 %v15175_v3 }
 0x4b7   : > { %4273 = vmatpush1.bf16.msra.mxu1 %v13696_v7 }
 0x4b8   : > { %4274 = vmatprep.subr.bf16.mxu1 %v13700_v20 }
 0x4b9   : > { %4318 = vmatpush1.bf16.msra.mxu0 %v13486_v0 }
 0x4ba   : > { %4319 = vmatprep.subr.bf16.mxu0 %v13490_v12 }
 0x4bb   : > { %4275 = vmatpush1.bf16.msra.mxu1 %v13702_v18 }
 0x4bc   : > { %4276 = vmatprep.subr.bf16.mxu1 %v13706_v62 }
 0x4bd   : > { %4320 = vmatpush1.bf16.msra.mxu0 %v13492_v55 }
 0x4be   : > { %4321 = vmatprep.subr.bf16.mxu0 %v13496_v60 }
 0x4bf   : > { %4277 = vmatpush1.bf16.msra.mxu1 %v13708_v4 }
 0x4c1   : > { %4322 = vmatpush1.bf16.msra.mxu0 %v13498_v16 }
 0x4c2   : > { %4323 = vmatprep.subr.bf16.mxu0 %v13502_v24 }
 0x4c5   : > { %4324 = vmatpush1.bf16.msra.mxu0 %v13504_v53 }
 0x4c6   : > { %4325 = vmatprep.subr.bf16.mxu0 %v13510_v59 }
 0x4c9   : > { %4326 = vmatpush1.bf16.msra.mxu0 %v13508_v61 }
 0x4ca   : > { %4327 = vmatprep.subr.bf16.mxu0 %v13512_v1 }
 0x4cd   : > { %4328 = vmatpush1.bf16.msra.mxu0 %v13516_v63 }
 0x4ce   : > { %4329 = vmatprep.subr.bf16.mxu0 %v13519_v34 }
 0x4d1   : > { %4330 = vmatpush1.bf16.msra.mxu0 %v13522_v27 }
 0x4d2   : > { %4671 = vmatprep.subr.bf16.mxu0 %v13478_v51  ;;  %v13712_v51 = vld [vmem:[#allocation11 + $0x64] ss:$16 sps:$4 sm:$0xff]  }
 0x4d3   : > { %4278 = vmatprep.subr.bf16.mxu1 %v13712_v51 }
 0x4d4   : > { %4279 = vmatpush1.bf16.msra.mxu1 %v13714_v29 }
 0x4d5   : > { %4280 = vmatprep.subr.bf16.mxu1 %v13718_v10 }
 0x4d8   : > { %4281 = vmatpush1.bf16.msra.mxu1 %v13720_v50 }
 0x4d9   : > { %4282 = vmatprep.subr.bf16.mxu1 %v13722_v28 }
 0x4dc   : > { %4283 = vmatpush1.bf16.msra.mxu1 %v13726_v21 }
 0x4dd   : > { %4284 = vmatprep.subr.bf16.mxu1 %v13729_v15 }
 0x4e0   : > { %4285 = vmatpush1.bf16.msra.mxu1 %v13732_v39 }
 0x4e1   : > { %4286 = vmatprep.subr.bf16.mxu1 %v13735_v46 }
 0x4e4   : > { %4287 = vmatpush1.bf16.msra.mxu1 %v13738_v22 }
 0x4e5   : > { %4628 = vmatprep.subr.bf16.mxu1 %v13694_v38 }
 0x587   : > { %v3950_v2 = vpop.f32.mrb[52].mxu1  ;;  %v3993_v58 = vpop.f32.mrb[56].mxu0 }
 0x588   : > { %v4002_v45 = vadd.f32 %v3950_v2, %v3716_v48  ;;  %v4004_v14 = vadd.f32 %v3993_v58, %v3718_v37  ;;  %v3952_v17 = vpop.f32.mrb[53].mxu1  ;;  %v3995_v42 = vpop.f32.mrb[57].mxu0 }
 0x589   : > { %v4003_v26 = vadd.f32 %v3952_v17, %v3717_v30  ;;  %v4005_v8 = vadd.f32 %v3995_v42, %v3719_v25  ;;  %v3954_v47 = vpop.f32.mrb[54].mxu1  ;;  %v3997_v9 = vpop.f32.mrb[58].mxu0 }
 0x58a   : > { %v10469_v23 = vmul.f32 -1.442695, %v4002_v45  ;;  %v4006_v41 = vadd.f32 %v3954_v47, %v3720_v43  ;;  %v4008_v52 = vadd.f32 %v3997_v9, %v3722_v32  ;;  %v3956_v40 = vpop.f32.mrb[55].mxu1  ;;  %v3999_v48 = vpop.f32.mrb[59].mxu0 }
 0x58b   : > { %v10471_v37 = vmul.f32 -1.442695, %v4003_v26  ;;  %v4007_v2 = vadd.f32 %v3956_v40, %v3721_v13  ;;  %v4009_v58 = vadd.f32 %v3999_v48, %v3723_v57  ;;  %v10473_v30 = vmul.f32 -1.442695, %v4005_v8 }
 0x58c   : > { %11896 = vpow2.f32 %v10469_v23  ;;  %v10470_v56 = vmul.f32 -1.442695, %v4006_v41 }
 0x58d   : > { %11898 = vpow2.f32 %v10471_v37  ;;  %v10472_v5 = vmul.f32 -1.442695, %v4007_v2  ;;  %v10474_v54 = vmul.f32 -1.442695, %v4009_v58 }
 0x58e   : > { %11900 = vpow2.f32 %v10470_v56 }
 0x58f   : > { %11902 = vpow2.f32 %v10472_v5 }
 0x590   : > { %11904 = vtanh.f32 %v4004_v14 }
 0x591   : > { %11906 = vpow2.f32 %v10473_v30 }
 0x592   : > { %11908 = vtanh.f32 %v4008_v52 }
 0x596   : > { %v11897_v25 = vpop.eup %11896 }
 0x597   : > { %v11899_v35 = vpop.eup %11898  ;;  %v4016_v17 = vadd.f32 1.0, %v11897_v25 }
 0x598   : > { %v4028_v45 = vadd.f32 1.0, %v11899_v35  ;;  %v11901_v42 = vpop.eup %11900 }
 0x599   : > { %11910 = vrcp.f32 %v4016_v17  ;;  %v4017_v43 = vadd.f32 1.0, %v11901_v42  ;;  %v11903_v32 = vpop.eup %11902 }
 0x59a   : > { %11912 = vrcp.f32 %v4028_v45  ;;  %v4029_v26 = vadd.f32 1.0, %v11903_v32  ;;  %v11905_v47 = vpop.eup %11904 }
 0x59b   : > { %11914 = vpow2.f32 %v10474_v54  ;;  %v11907_v9 = vpop.eup %11906 }
 0x59c   : > { %11916 = vrcp.f32 %v4017_v43  ;;  %v11909_v8 = vpop.eup %11908  ;;  %v4042_v52 = vadd.f32 1.0, %v11907_v9 }
 0x59d   : > { %11918 = vrcp.f32 %v4029_v26 }
 0x59e   : > { %11920 = vrcp.f32 %v4042_v52 }
 0x5a3   : > { %v11911_v13 = vpop.eup %11910 }
 0x5a4   : > { %v11913_v14 = vpop.eup %11912  ;;  %v4050_v57 = vmul.f32 %v11911_v13, %v11905_v47 }
 0x5a5   : > { %v11915_v23 = vpop.eup %11914  ;;  %v4048_v41 = vmul.f32 %v11913_v14, %v13665_v31 }
 0x5a6   : > { %v11917_v40 = vpop.eup %11916  ;;  %v4043_v58 = vadd.f32 1.0, %v11915_v23 }
 0x5a7   : > { %v13752_v48 = vadd.f32 %v4050_v57, %v4048_v41  ;;  %v4051_v37 = vmul.f32 %v11917_v40, %v11909_v8  ;;  %v11919_v2 = vpop.eup %11918 }
 0x5a8   : > { %v4049_v56 = vmul.f32 %v11919_v2, %v13669_v6  ;;  %v11921_v30 = vpop.eup %11920 }
 0x5a9   : > { %11922 = vtanh.f32 %v13752_v48 }
 0x5aa   : > { %v13756_v5 = vadd.f32 %v4051_v37, %v4049_v56  ;;  %11924 = vrcp.f32 %v4043_v58 }
 0x5ac   : > { %11926 = vtanh.f32 %v13756_v5 }
 0x5b3   : > { %v11923_v25 = vpop.eup %11922 }
 0x5b4   : > { %v11925_v31 = vpop.eup %11924  ;;  %v4056_v17 = vmul.f32 %v11923_v25, %v11921_v30 }
 0x5b6   : > { %v11927_v35 = vpop.eup %11926 }
 0x5b7   : > { %v4057_v54 = vmul.f32 %v11927_v35, %v11925_v31 }
 0x5b9   : > { %v13759_v45 = vpack.c.bf16 %v4057_v54, %v4056_v17 }
 0x5bb   : > { %4305 = vmatmul.mubr.bf16.vlgmr.msra.gmra.mrb[56].mxu1 %v13759_v45  ;;  %4348 = vmatmul.mubr.bf16.vlgmr.msra.gmra.mrb[60].mxu0 %v13759_v45 }
 0x5bc   : > { %4629 = vmatpush1.bf16.msra.mxu1 %v13696_v7  ;;  %4672 = vmatpush1.bf16.msra.mxu0 %v13480_v11  ;;  %v15214_v11 = vld [vmem:[#allocation42_spill] sm:$0xff] }
 0x5bd   : > { %4630 = vmatprep.subr.bf16.mxu1 %v13700_v20  ;;  %4673 = vmatprep.subr.bf16.mxu0 %v13484_v44  ;;  %v4072_v44 = vunpack.c.l.bf16 %v15214_v11  ;;  %v4076_v6 = vunpack.c.h.bf16 %v15214_v11 }
 0x5be   : > { %4660 = vmatprep.mubr.bf16.mxu1 %v15175_v3  ;;  %4703 = vmatprep.mubr.bf16.mxu0 %v15175_v3 }
 0x5c0   : > { %4631 = vmatpush1.bf16.msra.mxu1 %v13702_v18  ;;  %4674 = vmatpush1.bf16.msra.mxu0 %v13486_v0  ;;  %v15215_v0 = vld [vmem:[#allocation38_spill] sm:$0xff] }
 0x5c1   : > { %4632 = vmatprep.subr.bf16.mxu1 %v13706_v62  ;;  %4675 = vmatprep.subr.bf16.mxu0 %v13490_v12  ;;  %v4074_v12 = vunpack.c.l.bf16 %v15215_v0 }
 0x5c4   : > { %4633 = vmatpush1.bf16.msra.mxu1 %v13708_v4  ;;  %4676 = vmatpush1.bf16.msra.mxu0 %v13492_v55 }
 0x5c5   : > { %4634 = vmatprep.subr.bf16.mxu1 %v13712_v51  ;;  %4677 = vmatprep.subr.bf16.mxu0 %v13496_v60 }
 0x5c8   : > { %4635 = vmatpush1.bf16.msra.mxu1 %v13714_v29  ;;  %4678 = vmatpush1.bf16.msra.mxu0 %v13498_v16  ;;  %v15216_v16 = vld [vmem:[#allocation43_spill] sm:$0xff] }
 0x5c9   : > { %4636 = vmatprep.subr.bf16.mxu1 %v13718_v10  ;;  %4679 = vmatprep.subr.bf16.mxu0 %v13502_v24  ;;  %v4073_v24 = vunpack.c.l.bf16 %v15216_v16  ;;  %v4077_v47 = vunpack.c.h.bf16 %v15216_v16 }
 0x5cc   : > { %4637 = vmatpush1.bf16.msra.mxu1 %v13720_v50  ;;  %4680 = vmatpush1.bf16.msra.mxu0 %v13504_v53  ;;  %v15217_v53 = vld [vmem:[#allocation48_spill] sm:$0xff] }
 0x5cd   : > { %4638 = vmatprep.subr.bf16.mxu1 %v13722_v28  ;;  %4681 = vmatprep.subr.bf16.mxu0 %v13510_v59  ;;  %v4079_v9 = vunpack.c.h.bf16 %v15217_v53 }
 0x5d0   : > { %4639 = vmatpush1.bf16.msra.mxu1 %v13726_v21  ;;  %4682 = vmatpush1.bf16.msra.mxu0 %v13508_v61  ;;  %v4075_v61 = vunpack.c.l.bf16 %v15217_v53 }
 0x5d1   : > { %4640 = vmatprep.subr.bf16.mxu1 %v13729_v15  ;;  %4683 = vmatprep.subr.bf16.mxu0 %v13512_v1 }
 0x5d4   : > { %4641 = vmatpush1.bf16.msra.mxu1 %v13732_v39  ;;  %4684 = vmatpush1.bf16.msra.mxu0 %v13516_v63 }
 0x5d5   : > { %4642 = vmatprep.subr.bf16.mxu1 %v13735_v46  ;;  %4685 = vmatprep.subr.bf16.mxu0 %v13519_v34 }
 0x5d8   : > { %4643 = vmatpush1.bf16.msra.mxu1 %v13738_v22  ;;  %4686 = vmatpush1.bf16.msra.mxu0 %v13522_v27  ;;  %v4078_v27 = vunpack.c.h.bf16 %v15215_v0 }
 0x5d9   : > { %4984 = vmatprep.subr.bf16.mxu1 %v13694_v38 }
 0x68e   : > { %v4306_v55 = vpop.f32.mrb[56].mxu1  ;;  %v4349_v60 = vpop.f32.mrb[60].mxu0 }
 0x68f   : > { %v4358_v59 = vadd.f32 %v4306_v55, %v4072_v44  ;;  %v4360_v1 = vadd.f32 %v4349_v60, %v4074_v12  ;;  %v4308_v63 = vpop.f32.mrb[57].mxu1  ;;  %v4351_v34 = vpop.f32.mrb[61].mxu0 }
 0x690   : > { %v4359_v42 = vadd.f32 %v4308_v63, %v4073_v24  ;;  %v4361_v43 = vadd.f32 %v4351_v34, %v4075_v61  ;;  %v4310_v32 = vpop.f32.mrb[58].mxu1  ;;  %v4353_v26 = vpop.f32.mrb[62].mxu0 }
 0x691   : > { %v10507_v8 = vmul.f32 -1.442695, %v4358_v59  ;;  %v4362_v13 = vadd.f32 %v4310_v32, %v4076_v6  ;;  %v4364_v14 = vadd.f32 %v4353_v26, %v4078_v27  ;;  %v4312_v57 = vpop.f32.mrb[59].mxu1  ;;  %v4355_v23 = vpop.f32.mrb[63].mxu0 }
 0x692   : > { %v10509_v41 = vmul.f32 -1.442695, %v4359_v42  ;;  %v4363_v40 = vadd.f32 %v4312_v57, %v4077_v47  ;;  %v4365_v52 = vadd.f32 %v4355_v23, %v4079_v9  ;;  %v10511_v58 = vmul.f32 -1.442695, %v4361_v43  ;;  %v13840_v57 = vld [vmem:[#allocation11 + $0x2c] ss:$16 sps:$4 sm:$0xff]  }
 0x693   : > { %11928 = vpow2.f32 %v10507_v8  ;;  %v10508_v37 = vmul.f32 -1.442695, %v4362_v13  ;;  %v13842_v23 = vld [vmem:[#allocation11 + $0x28] ss:$16 sps:$4 sm:$0xff]  }
 0x694   : > { %11930 = vpow2.f32 %v10509_v41  ;;  %v10510_v2 = vmul.f32 -1.442695, %v4363_v40  ;;  %v10512_v31 = vmul.f32 -1.442695, %v4365_v52  ;;  %v13846_v41 = vld [vmem:[#allocation11 + $0x4c] ss:$16 sps:$4 sm:$0xff]  }
 0x695   : > { %11932 = vpow2.f32 %v10508_v37  ;;  %v13848_v40 = vld [vmem:[#allocation11 + $0x48] ss:$16 sps:$4 sm:$0xff]   ;;  %v13858_v37 = vld [vmem:[#allocation11 + $0x8c] ss:$16 sps:$4 sm:$0xff]  }
 0x696   : > { %11934 = vpow2.f32 %v10510_v2  ;;  %v13854_v52 = vld [vmem:[#allocation11 + $0x68] ss:$16 sps:$4 sm:$0xff]  }
 0x697   : > { %11936 = vtanh.f32 %v4360_v1  ;;  %v13860_v2 = vld [vmem:[#allocation11 + $0x88] ss:$16 sps:$4 sm:$0xff]  }
 0x698   : > { %11938 = vpow2.f32 %v10511_v58  ;;  %v13862_v58 = vld [vmem:[#allocation11 + $0xac] ss:$16 sps:$4 sm:$0xff]  }
 0x699   : > { %11940 = vtanh.f32 %v4364_v14  ;;  %v13836_v14 = vld [vmem:[#allocation11 + $0x8] ss:$16 sps:$4 sm:$0xff]  }
 0x69d   : > { %v11929_v56 = vpop.eup %11928 }
 0x69e   : > { %v11931_v30 = vpop.eup %11930  ;;  %v4372_v25 = vadd.f32 1.0, %v11929_v56  ;;  %v13866_v56 = vld [vmem:[#allocation11 + $0xa8] ss:$16 sps:$4 sm:$0xff]  }
 0x69f   : > { %v4384_v35 = vadd.f32 1.0, %v11931_v30  ;;  %v11933_v17 = vpop.eup %11932  ;;  %v13869_v30 = vld [vmem:[#allocation11 + $0xcc] ss:$16 sps:$4 sm:$0xff]  }
 0x6a0   : > { %11942 = vrcp.f32 %v4372_v25  ;;  %v4373_v54 = vadd.f32 1.0, %v11933_v17  ;;  %v11935_v11 = vpop.eup %11934  ;;  %v13872_v25 = vld [vmem:[#allocation11 + $0xc8] ss:$16 sps:$4 sm:$0xff]   ;;  %v15218_v17 = vld [vmem:[#allocation44_spill] sm:$0xff] }
 0x6a1   : > { %11944 = vrcp.f32 %v4384_v35  ;;  %v4385_v44 = vadd.f32 1.0, %v11935_v11  ;;  %v11937_v0 = vpop.eup %11936  ;;  %v13878_v35 = vld [vmem:[#allocation11 + $0xe8] ss:$16 sps:$4 sm:$0xff]  }
 0x6a2   : > { %11946 = vpow2.f32 %v10512_v31  ;;  %v11939_v12 = vpop.eup %11938  ;;  %v13875_v31 = vld [vmem:[#allocation11 + $0xec] ss:$16 sps:$4 sm:$0xff]  }
 0x6a3   : > { %11948 = vrcp.f32 %v4373_v54  ;;  %v11941_v55 = vpop.eup %11940  ;;  %v4398_v1 = vadd.f32 1.0, %v11939_v12  ;;  %v4428_v54 = vunpack.c.l.bf16 %v15218_v17  ;;  %v15219_v11 = vld [vmem:[#allocation49_spill] sm:$0xff] }
 0x6a4   : > { %11950 = vrcp.f32 %v4385_v44  ;;  %v4430_v44 = vunpack.c.l.bf16 %v15219_v11 }
 0x6a5   : > { %11952 = vrcp.f32 %v4398_v1 }
 0x6aa   : > { %v11943_v60 = vpop.eup %11942 }
 0x6ab   : > { %v11945_v16 = vpop.eup %11944  ;;  %v4406_v24 = vmul.f32 %v11943_v60, %v11937_v0 }
 0x6ac   : > { %v11947_v53 = vpop.eup %11946  ;;  %v4404_v61 = vmul.f32 %v11945_v16, %v13752_v48  ;;  %v15221_v16 = vld [vmem:[#allocation50_spill] sm:$0xff] }
 0x6ad   : > { %v11949_v59 = vpop.eup %11948  ;;  %v4399_v27 = vadd.f32 1.0, %v11947_v53 }
 0x6ae   : > { %v13805_v63 = vadd.f32 %v4406_v24, %v4404_v61  ;;  %v4407_v34 = vmul.f32 %v11949_v59, %v11941_v55  ;;  %v11951_v6 = vpop.eup %11950  ;;  %v15220_v55 = vld [vmem:[#allocation45_spill] sm:$0xff]  ;;  %v4431_v24 = vunpack.c.l.bf16 %v15221_v16 }
 0x6af   : > { %v4405_v42 = vmul.f32 %v11951_v6, %v13756_v5  ;;  %v11953_v32 = vpop.eup %11952  ;;  %v13834_v5 = vld [vmem:[#allocation11 + $0xc] ss:$16 sps:$4 sm:$0xff]   ;;  %v4429_v60 = vunpack.c.l.bf16 %v15220_v55  ;;  %v4434_v6 = vunpack.c.h.bf16 %v15219_v11 }
 0x6b0   : > { %11954 = vtanh.f32 %v13805_v63  ;;  %5027 = vmatprep.subr.bf16.mxu0 %v13834_v5 }
 0x6b1   : > { %v13809_v43 = vadd.f32 %v4407_v34, %v4405_v42  ;;  %11956 = vrcp.f32 %v4399_v27  ;;  %v4432_v34 = vunpack.c.h.bf16 %v15218_v17 }
 0x6b3   : > { %11958 = vtanh.f32 %v13809_v43 }
 0x6ba   : > { %v11955_v26 = vpop.eup %11954 }
 0x6bb   : > { %v11957_v48 = vpop.eup %11956  ;;  %v4412_v9 = vmul.f32 %v11955_v26, %v11953_v32 }
 0x6bd   : > { %v11959_v47 = vpop.eup %11958 }
 0x6be   : > { %v4413_v8 = vmul.f32 %v11959_v47, %v11957_v48  ;;  %v4433_v48 = vunpack.c.h.bf16 %v15220_v55  ;;  %v4435_v47 = vunpack.c.h.bf16 %v15221_v16 }
 0x6c0   : > { %v13812_v13 = vpack.c.bf16 %v4413_v8, %v4412_v9 }
 0x6c2   : > { %4661 = vmatmul.mubr.bf16.vlgmr.msra.gmra.mrb[60].mxu1 %v13812_v13  ;;  %4704 = vmatmul.mubr.bf16.vlgmr.msra.gmra.mrb[64].mxu0 %v13812_v13 }
 0x6c3   : > { %4985 = vmatpush1.bf16.msra.mxu1 %v13696_v7  ;;  %5016 = vmatprep.mubr.bf16.mxu1 %v15175_v3 }
 0x6c4   : > { %4986 = vmatprep.subr.bf16.mxu1 %v13700_v20  ;;  %5059 = vmatprep.mubr.bf16.mxu0 %v15175_v3 }
 0x6c5   : > { %5028 = vmatpush1.bf16.msra.mxu0 %v13836_v14 }
 0x6c6   : > { %5029 = vmatprep.subr.bf16.mxu0 %v13840_v57 }
 0x6c7   : > { %4987 = vmatpush1.bf16.msra.mxu1 %v13702_v18 }
 0x6c8   : > { %4988 = vmatprep.subr.bf16.mxu1 %v13706_v62 }
 0x6c9   : > { %5030 = vmatpush1.bf16.msra.mxu0 %v13842_v23 }
 0x6ca   : > { %5031 = vmatprep.subr.bf16.mxu0 %v13846_v41 }
 0x6cb   : > { %4989 = vmatpush1.bf16.msra.mxu1 %v13708_v4 }
 0x6cc   : > { %4990 = vmatprep.subr.bf16.mxu1 %v13712_v51 }
 0x6cd   : > { %5032 = vmatpush1.bf16.msra.mxu0 %v13848_v40 }
 0x6cf   : > { %4991 = vmatpush1.bf16.msra.mxu1 %v13714_v29 }
 0x6d0   : > { %4992 = vmatprep.subr.bf16.mxu1 %v13718_v10 }
 0x6d3   : > { %4993 = vmatpush1.bf16.msra.mxu1 %v13720_v50 }
 0x6d4   : > { %4994 = vmatprep.subr.bf16.mxu1 %v13722_v28 }
 0x6d7   : > { %4995 = vmatpush1.bf16.msra.mxu1 %v13726_v21 }
 0x6d8   : > { %4996 = vmatprep.subr.bf16.mxu1 %v13729_v15 }
 0x6db   : > { %4997 = vmatpush1.bf16.msra.mxu1 %v13732_v39 }
 0x6dc   : > { %4998 = vmatprep.subr.bf16.mxu1 %v13735_v46 }
 0x6df   : > { %4999 = vmatpush1.bf16.msra.mxu1 %v13738_v22 }
 0x6e0   : > { %5340 = vmatprep.subr.bf16.mxu1 %v13694_v38  ;;  %v13852_v38 = vld [vmem:[#allocation11 + $0x6c] ss:$16 sps:$4 sm:$0xff]  }
 0x6e1   : > { %5033 = vmatprep.subr.bf16.mxu0 %v13852_v38 }
 0x6e2   : > { %5034 = vmatpush1.bf16.msra.mxu0 %v13854_v52 }
 0x6e3   : > { %5035 = vmatprep.subr.bf16.mxu0 %v13858_v37 }
 0x6e6   : > { %5036 = vmatpush1.bf16.msra.mxu0 %v13860_v2 }
 0x6e7   : > { %5037 = vmatprep.subr.bf16.mxu0 %v13862_v58 }
 0x6ea   : > { %5038 = vmatpush1.bf16.msra.mxu0 %v13866_v56 }
 0x6eb   : > { %5039 = vmatprep.subr.bf16.mxu0 %v13869_v30 }
 0x6ee   : > { %5040 = vmatpush1.bf16.msra.mxu0 %v13872_v25 }
 0x6ef   : > { %5041 = vmatprep.subr.bf16.mxu0 %v13875_v31 }
 0x6f2   : > { %5042 = vmatpush1.bf16.msra.mxu0 %v13878_v35 }
 0x6f3   : > { %5383 = vmatprep.subr.bf16.mxu0 %v13834_v5 }
 0x795   : > { %v4662_v0 = vpop.f32.mrb[60].mxu1  ;;  %v4705_v12 = vpop.f32.mrb[64].mxu0 }
 0x796   : > { %v4714_v53 = vadd.f32 %v4662_v0, %v4428_v54  ;;  %v4716_v61 = vadd.f32 %v4705_v12, %v4430_v44  ;;  %v4664_v59 = vpop.f32.mrb[61].mxu1  ;;  %v4707_v1 = vpop.f32.mrb[65].mxu0 }
 0x797   : > { %v4715_v27 = vadd.f32 %v4664_v59, %v4429_v60  ;;  %v4717_v42 = vadd.f32 %v4707_v1, %v4431_v24  ;;  %v4666_v32 = vpop.f32.mrb[62].mxu1  ;;  %v4709_v26 = vpop.f32.mrb[66].mxu0 }
 0x798   : > { %v10545_v9 = vmul.f32 -1.442695, %v4714_v53  ;;  %v4718_v8 = vadd.f32 %v4666_v32, %v4432_v34  ;;  %v4720_v33 = vadd.f32 %v4709_v26, %v4434_v6  ;;  %v4668_v19 = vpop.f32.mrb[63].mxu1  ;;  %v4711_v54 = vpop.f32.mrb[67].mxu0 }
 0x799   : > { %v10547_v44 = vmul.f32 -1.442695, %v4715_v27  ;;  %v4719_v0 = vadd.f32 %v4668_v19, %v4433_v48  ;;  %v4721_v12 = vadd.f32 %v4711_v54, %v4435_v47  ;;  %v10549_v60 = vmul.f32 -1.442695, %v4717_v42 }
 0x79a   : > { %11960 = vpow2.f32 %v10545_v9  ;;  %v10546_v17 = vmul.f32 -1.442695, %v4718_v8 }
 0x79b   : > { %11962 = vpow2.f32 %v10547_v44  ;;  %v10548_v11 = vmul.f32 -1.442695, %v4719_v0  ;;  %v10550_v16 = vmul.f32 -1.442695, %v4721_v12 }
 0x79c   : > { %11964 = vpow2.f32 %v10546_v17 }
 0x79d   : > { %11966 = vpow2.f32 %v10548_v11 }
 0x79e   : > { %11968 = vtanh.f32 %v4716_v61 }
 0x79f   : > { %11970 = vpow2.f32 %v10549_v60 }
 0x7a0   : > { %11972 = vtanh.f32 %v4720_v33 }
 0x7a4   : > { %v11961_v24 = vpop.eup %11960 }
 0x7a5   : > { %v11963_v55 = vpop.eup %11962  ;;  %v4728_v59 = vadd.f32 1.0, %v11961_v24 }
 0x7a6   : > { %v4740_v53 = vadd.f32 1.0, %v11963_v55  ;;  %v11965_v1 = vpop.eup %11964 }
 0x7a7   : > { %11974 = vrcp.f32 %v4728_v59  ;;  %v4729_v19 = vadd.f32 1.0, %v11965_v1  ;;  %v11967_v34 = vpop.eup %11966 }
 0x7a8   : > { %11976 = vrcp.f32 %v4740_v53  ;;  %v4741_v6 = vadd.f32 1.0, %v11967_v34  ;;  %v11969_v27 = vpop.eup %11968 }
 0x7a9   : > { %11978 = vpow2.f32 %v10550_v16  ;;  %v11971_v32 = vpop.eup %11970 }
 0x7aa   : > { %11980 = vrcp.f32 %v4729_v19  ;;  %v11973_v42 = vpop.eup %11972  ;;  %v4754_v33 = vadd.f32 1.0, %v11971_v32 }
 0x7ab   : > { %11982 = vrcp.f32 %v4741_v6 }
 0x7ac   : > { %11984 = vrcp.f32 %v4754_v33 }
 0x7b1   : > { %v11975_v26 = vpop.eup %11974 }
 0x7b2   : > { %v11977_v61 = vpop.eup %11976  ;;  %v4762_v48 = vmul.f32 %v11975_v26, %v11969_v27 }
 0x7b3   : > { %v11979_v47 = vpop.eup %11978  ;;  %v4760_v9 = vmul.f32 %v11977_v61, %v13805_v63 }
 0x7b4   : > { %v11981_v8 = vpop.eup %11980  ;;  %v4755_v12 = vadd.f32 1.0, %v11979_v47 }
 0x7b5   : > { %v13892_v54 = vadd.f32 %v4762_v48, %v4760_v9  ;;  %v4763_v44 = vmul.f32 %v11981_v8, %v11973_v42  ;;  %v11983_v0 = vpop.eup %11982 }
 0x7b6   : > { %v4761_v17 = vmul.f32 %v11983_v0, %v13809_v43  ;;  %v11985_v60 = vpop.eup %11984 }
 0x7b7   : > { %11986 = vtanh.f32 %v13892_v54 }
 0x7b8   : > { %v13896_v11 = vadd.f32 %v4763_v44, %v4761_v17  ;;  %11988 = vrcp.f32 %v4755_v12 }
 0x7ba   : > { %11990 = vtanh.f32 %v13896_v11 }
 0x7c1   : > { %v11987_v24 = vpop.eup %11986 }
 0x7c2   : > { %v11989_v63 = vpop.eup %11988  ;;  %v4768_v59 = vmul.f32 %v11987_v24, %v11985_v60 }
 0x7c4   : > { %v11991_v55 = vpop.eup %11990 }
 0x7c5   : > { %v4769_v16 = vmul.f32 %v11991_v55, %v11989_v63 }
 0x7c7   : > { %v13899_v53 = vpack.c.bf16 %v4769_v16, %v4768_v59 }
 0x7c9   : > { %5017 = vmatmul.mubr.bf16.vlgmr.msra.gmra.mrb[64].mxu1 %v13899_v53  ;;  %5060 = vmatmul.mubr.bf16.vlgmr.msra.gmra.mrb[68].mxu0 %v13899_v53 }
 0x7ca   : > { %5341 = vmatpush1.bf16.msra.mxu1 %v13696_v7  ;;  %5384 = vmatpush1.bf16.msra.mxu0 %v13836_v14  ;;  %v15222_v7 = vld [vmem:[#allocation33_spill] sm:$0xff] }
 0x7cb   : > { %5342 = vmatprep.subr.bf16.mxu1 %v13700_v20  ;;  %5385 = vmatprep.subr.bf16.mxu0 %v13840_v57  ;;  %v4784_v20 = vunpack.c.l.bf16 %v15222_v7 }
 0x7cc   : > { %5372 = vmatprep.mubr.bf16.mxu1 %v15175_v3  ;;  %5415 = vmatprep.mubr.bf16.mxu0 %v15175_v3 }
 0x7ce   : > { %5343 = vmatpush1.bf16.msra.mxu1 %v13702_v18  ;;  %5386 = vmatpush1.bf16.msra.mxu0 %v13842_v23  ;;  %v15223_v18 = vld [vmem:[#allocation51_spill] sm:$0xff] }
 0x7cf   : > { %5344 = vmatprep.subr.bf16.mxu1 %v13706_v62  ;;  %5387 = vmatprep.subr.bf16.mxu0 %v13846_v41  ;;  %v4786_v62 = vunpack.c.l.bf16 %v15223_v18  ;;  %v4790_v43 = vunpack.c.h.bf16 %v15223_v18 }
 0x7d2   : > { %5345 = vmatpush1.bf16.msra.mxu1 %v13708_v4  ;;  %5388 = vmatpush1.bf16.msra.mxu0 %v13848_v40 }
 0x7d3   : > { %5346 = vmatprep.subr.bf16.mxu1 %v13712_v51  ;;  %5389 = vmatprep.subr.bf16.mxu0 %v13852_v38 }
 0x7d6   : > { %5347 = vmatpush1.bf16.msra.mxu1 %v13714_v29  ;;  %5390 = vmatpush1.bf16.msra.mxu0 %v13854_v52  ;;  %v15224_v29 = vld [vmem:[#allocation46_spill] sm:$0xff] }
 0x7d7   : > { %5348 = vmatprep.subr.bf16.mxu1 %v13718_v10  ;;  %5391 = vmatprep.subr.bf16.mxu0 %v13858_v37  ;;  %v4785_v10 = vunpack.c.l.bf16 %v15224_v29  ;;  %v4789_v6 = vunpack.c.h.bf16 %v15224_v29 }
 0x7da   : > { %5349 = vmatpush1.bf16.msra.mxu1 %v13720_v50  ;;  %5392 = vmatpush1.bf16.msra.mxu0 %v13860_v2  ;;  %v15225_v50 = vld [vmem:[#allocation52_spill] sm:$0xff] }
 0x7db   : > { %5350 = vmatprep.subr.bf16.mxu1 %v13722_v28  ;;  %5393 = vmatprep.subr.bf16.mxu0 %v13862_v58  ;;  %v4787_v28 = vunpack.c.l.bf16 %v15225_v50  ;;  %v4791_v27 = vunpack.c.h.bf16 %v15225_v50 }
 0x7de   : > { %5351 = vmatpush1.bf16.msra.mxu1 %v13726_v21  ;;  %5394 = vmatpush1.bf16.msra.mxu0 %v13866_v56 }
 0x7df   : > { %5352 = vmatprep.subr.bf16.mxu1 %v13729_v15  ;;  %5395 = vmatprep.subr.bf16.mxu0 %v13869_v30 }
 0x7e2   : > { %5353 = vmatpush1.bf16.msra.mxu1 %v13732_v39  ;;  %5396 = vmatpush1.bf16.msra.mxu0 %v13872_v25 }
 0x7e3   : > { %5354 = vmatprep.subr.bf16.mxu1 %v13735_v46  ;;  %5397 = vmatprep.subr.bf16.mxu0 %v13875_v31 }
 0x7e6   : > { %5355 = vmatpush1.bf16.msra.mxu1 %v13738_v22  ;;  %5398 = vmatpush1.bf16.msra.mxu0 %v13878_v35  ;;  %v4788_v22 = vunpack.c.h.bf16 %v15222_v7 }
 0x7e7   : > { %5739 = vmatprep.subr.bf16.mxu0 %v13834_v5 }
 0x89c   : > { %v5018_v4 = vpop.f32.mrb[64].mxu1  ;;  %v5061_v51 = vpop.f32.mrb[68].mxu0 }
 0x89d   : > { %v5070_v21 = vadd.f32 %v5018_v4, %v4784_v20  ;;  %v5072_v15 = vadd.f32 %v5061_v51, %v4786_v62  ;;  %v5020_v39 = vpop.f32.mrb[65].mxu1  ;;  %v5063_v46 = vpop.f32.mrb[69].mxu0 }
 0x89e   : > { %v5071_v1 = vadd.f32 %v5020_v39, %v4785_v10  ;;  %v5073_v5 = vadd.f32 %v5063_v46, %v4787_v28  ;;  %v5022_v19 = vpop.f32.mrb[66].mxu1  ;;  %v5065_v34 = vpop.f32.mrb[70].mxu0 }
 0x89f   : > { %v10583_v32 = vmul.f32 -1.442695, %v5070_v21  ;;  %v5074_v42 = vadd.f32 %v5022_v19, %v4788_v22  ;;  %v5076_v26 = vadd.f32 %v5065_v34, %v4790_v43  ;;  %v5024_v61 = vpop.f32.mrb[67].mxu1  ;;  %v5067_v48 = vpop.f32.mrb[71].mxu0 }
 0x8a0   : > { %v10585_v47 = vmul.f32 -1.442695, %v5071_v1  ;;  %v5075_v9 = vadd.f32 %v5024_v61, %v4789_v6  ;;  %v5077_v8 = vadd.f32 %v5067_v48, %v4791_v27  ;;  %v10587_v0 = vmul.f32 -1.442695, %v5073_v5  ;;  %v15227_v48 = vld [vmem:[#allocation53_spill] sm:$0xff] }
 0x8a1   : > { %11992 = vpow2.f32 %v10583_v32  ;;  %v10584_v33 = vmul.f32 -1.442695, %v5074_v42  ;;  %v11597_v42 = vld [vmem:[#allocation11 + $0xe0] ss:$16 sps:$4 sm:$0xff]  }
 0x8a2   : > { %11994 = vpow2.f32 %v10585_v47  ;;  %v10586_v44 = vmul.f32 -1.442695, %v5075_v9  ;;  %v10588_v24 = vmul.f32 -1.442695, %v5077_v8  ;;  %v5142_v47 = vunpack.c.l.bf16 %v15227_v48 }
 0x8a3   : > { %11996 = vpow2.f32 %v10584_v33  ;;  %v15228_v33 = vld [vmem:[#allocation32_spill] sm:$0xff] }
 0x8a4   : > { %11998 = vpow2.f32 %v10586_v44  ;;  %v5141_v44 = vunpack.c.l.bf16 %v15228_v33 }
 0x8a5   : > { %12000 = vtanh.f32 %v5072_v15 }
 0x8a6   : > { %12002 = vpow2.f32 %v10587_v0  ;;  %v15229_v0 = vld [vmem:[#allocation54_spill] sm:$0xff] }
 0x8a7   : > { %12004 = vtanh.f32 %v5076_v26  ;;  %v15226_v26 = vld [vmem:[#allocation47_spill] sm:$0xff] }
 0x8a8   : > { %v5140_v61 = vunpack.c.l.bf16 %v15226_v26 }
 0x8ab   : > { %v11993_v12 = vpop.eup %11992 }
 0x8ac   : > { %v11995_v17 = vpop.eup %11994  ;;  %v5084_v60 = vadd.f32 1.0, %v11993_v12  ;;  %v5143_v12 = vunpack.c.l.bf16 %v15229_v0 }
 0x8ad   : > { %v5096_v63 = vadd.f32 1.0, %v11995_v17  ;;  %v11997_v55 = vpop.eup %11996 }
 0x8ae   : > { %12006 = vrcp.f32 %v5084_v60  ;;  %v5085_v59 = vadd.f32 1.0, %v11997_v55  ;;  %v11999_v16 = vpop.eup %11998  ;;  %v5144_v55 = vunpack.c.h.bf16 %v15226_v26 }
 0x8af   : > { %12008 = vrcp.f32 %v5096_v63  ;;  %v5097_v7 = vadd.f32 1.0, %v11999_v16  ;;  %v12001_v20 = vpop.eup %12000 }
 0x8b0   : > { %12010 = vpow2.f32 %v10588_v24  ;;  %v12003_v18 = vpop.eup %12002 }
 0x8b1   : > { %12012 = vrcp.f32 %v5085_v59  ;;  %v12005_v62 = vpop.eup %12004  ;;  %v5110_v21 = vadd.f32 1.0, %v12003_v18  ;;  %v5146_v59 = vunpack.c.h.bf16 %v15227_v48 }
 0x8b2   : > { %12014 = vrcp.f32 %v5097_v7 }
 0x8b3   : > { %12016 = vrcp.f32 %v5110_v21 }
 0x8b8   : > { %v12007_v4 = vpop.eup %12006 }
 0x8b9   : > { %v12009_v51 = vpop.eup %12008  ;;  %v5118_v29 = vmul.f32 %v12007_v4, %v12001_v20  ;;  %v5147_v4 = vunpack.c.h.bf16 %v15229_v0  ;;  %v11600_v0 = vld [vmem:[#allocation13] ss:$16 sps:$4 sm:$0xff]  }
 0x8ba   : > { %v12011_v10 = vpop.eup %12010  ;;  %v5116_v50 = vmul.f32 %v12009_v51, %v13892_v54 }
 0x8bb   : > { %v12013_v28 = vpop.eup %12012  ;;  %v5111_v22 = vadd.f32 1.0, %v12011_v10 }
 0x8bc   : > { %v13945_v15 = vadd.f32 %v5118_v29, %v5116_v50  ;;  %v5119_v39 = vmul.f32 %v12013_v28, %v12005_v62  ;;  %v12015_v46 = vpop.eup %12014  ;;  %v5145_v62 = vunpack.c.h.bf16 %v15228_v33 }
 0x8bd   : > { %v5117_v43 = vmul.f32 %v12015_v46, %v13896_v11  ;;  %v12017_v5 = vpop.eup %12016  ;;  %v11599_v11 = vld [vmem:[#allocation11 + $0xe4] ss:$16 sps:$4 sm:$0xff]  }
 0x8be   : > { %12018 = vtanh.f32 %v13945_v15 }
 0x8bf   : > { %v13949_v1 = vadd.f32 %v5119_v39, %v5117_v43  ;;  %12020 = vrcp.f32 %v5111_v22 }
 0x8c1   : > { %12022 = vtanh.f32 %v13949_v1 }
 0x8c8   : > { %v12019_v19 = vpop.eup %12018 }
 0x8c9   : > { %v12021_v54 = vpop.eup %12020  ;;  %v5124_v6 = vmul.f32 %v12019_v19, %v12017_v5 }
 0x8cb   : > { %v12023_v34 = vpop.eup %12022 }
 0x8cc   : > { %v5125_v27 = vmul.f32 %v12023_v34, %v12021_v54 }
 0x8ce   : > { %v13952_v32 = vpack.c.bf16 %v5125_v27, %v5124_v6 }
 0x8d0   : > { %5373 = vmatmul.mubr.bf16.vlgmr.msra.gmra.mrb[68].mxu1 %v13952_v32  ;;  %5416 = vmatmul.mubr.bf16.vlgmr.msra.gmra.mrb[72].mxu0 %v13952_v32 }
 0x8d1   : > { %5740 = vmatpush1.bf16.msra.mxu0 %v13836_v14  ;;  %5728 = vmatprep.mubr.bf16.mxu1 %v15175_v3  ;;  %v11578_v14 = vld [vmem:[#allocation11 + $0x4] ss:$16 sps:$4 sm:$0xff]  }
 0x8d2   : > { %5741 = vmatprep.subr.bf16.mxu0 %v13840_v57  ;;  %5771 = vmatprep.mubr.bf16.mxu0 %v15175_v3  ;;  %v11576_v57 = vld [vmem:[#allocation11] ss:$16 sps:$4 sm:$0xff]  }
 0x8d3   : > { %5696 = vmatprep.subr.bf16.mxu1 %v11578_v14 }
 0x8d4   : > { %5697 = vmatpush1.bf16.msra.mxu1 %v11576_v57 }
 0x8d5   : > { %5742 = vmatpush1.bf16.msra.mxu0 %v13842_v23  ;;  %v11581_v23 = vld [vmem:[#allocation11 + $0x24] ss:$16 sps:$4 sm:$0xff]  }
 0x8d6   : > { %5743 = vmatprep.subr.bf16.mxu0 %v13846_v41  ;;  %v11579_v41 = vld [vmem:[#allocation11 + $0x20] ss:$16 sps:$4 sm:$0xff]   ;;  %5698 = vmatprep.subr.bf16.mxu1 %v11581_v23 }
 0x8d8   : > { %5699 = vmatpush1.bf16.msra.mxu1 %v11579_v41 }
 0x8d9   : > { %5744 = vmatpush1.bf16.msra.mxu0 %v13848_v40  ;;  %v11584_v40 = vld [vmem:[#allocation11 + $0x44] ss:$16 sps:$4 sm:$0xff]  }
 0x8da   : > { %5745 = vmatprep.subr.bf16.mxu0 %v13852_v38  ;;  %v11582_v38 = vld [vmem:[#allocation11 + $0x40] ss:$16 sps:$4 sm:$0xff]   ;;  %5700 = vmatprep.subr.bf16.mxu1 %v11584_v40 }
 0x8dc   : > { %5701 = vmatpush1.bf16.msra.mxu1 %v11582_v38 }
 0x8dd   : > { %5746 = vmatpush1.bf16.msra.mxu0 %v13854_v52  ;;  %v11587_v52 = vld [vmem:[#allocation11 + $0x64] ss:$16 sps:$4 sm:$0xff]  }
 0x8de   : > { %5747 = vmatprep.subr.bf16.mxu0 %v13858_v37  ;;  %v11585_v37 = vld [vmem:[#allocation11 + $0x60] ss:$16 sps:$4 sm:$0xff]   ;;  %5702 = vmatprep.subr.bf16.mxu1 %v11587_v52 }
 0x8e0   : > { %5703 = vmatpush1.bf16.msra.mxu1 %v11585_v37 }
 0x8e1   : > { %5748 = vmatpush1.bf16.msra.mxu0 %v13860_v2  ;;  %v11590_v2 = vld [vmem:[#allocation11 + $0x84] ss:$16 sps:$4 sm:$0xff]  }
 0x8e2   : > { %5749 = vmatprep.subr.bf16.mxu0 %v13862_v58  ;;  %v11588_v58 = vld [vmem:[#allocation11 + $0x80] ss:$16 sps:$4 sm:$0xff]   ;;  %5704 = vmatprep.subr.bf16.mxu1 %v11590_v2 }
 0x8e4   : > { %5705 = vmatpush1.bf16.msra.mxu1 %v11588_v58 }
 0x8e5   : > { %5750 = vmatpush1.bf16.msra.mxu0 %v13866_v56  ;;  %v11593_v56 = vld [vmem:[#allocation11 + $0xa4] ss:$16 sps:$4 sm:$0xff]  }
 0x8e6   : > { %5751 = vmatprep.subr.bf16.mxu0 %v13869_v30  ;;  %v11591_v30 = vld [vmem:[#allocation11 + $0xa0] ss:$16 sps:$4 sm:$0xff]   ;;  %5706 = vmatprep.subr.bf16.mxu1 %v11593_v56 }
 0x8e8   : > { %5707 = vmatpush1.bf16.msra.mxu1 %v11591_v30 }
 0x8e9   : > { %5752 = vmatpush1.bf16.msra.mxu0 %v13872_v25  ;;  %v11596_v25 = vld [vmem:[#allocation11 + $0xc4] ss:$16 sps:$4 sm:$0xff]  }
 0x8ea   : > { %5753 = vmatprep.subr.bf16.mxu0 %v13875_v31  ;;  %v11602_v31 = vld [vmem:[#allocation13 + $0x4] ss:$16 sps:$4 sm:$0xff]   ;;  %5708 = vmatprep.subr.bf16.mxu1 %v11596_v25 }
 0x8ed   : > { %5754 = vmatpush1.bf16.msra.mxu0 %v13878_v35  ;;  %v11594_v35 = vld [vmem:[#allocation11 + $0xc0] ss:$16 sps:$4 sm:$0xff]  }
 0x8ee   : > { %6067 = vmatprep.subr.bf16.mxu0 %v11602_v31  ;;  %5709 = vmatpush1.bf16.msra.mxu1 %v11594_v35 }
 0x8ef   : > { %5710 = vmatprep.subr.bf16.mxu1 %v11599_v11 }
 0x8f2   : > { %5711 = vmatpush1.bf16.msra.mxu1 %v11597_v42 }
 0x8f3   : > { %11124 = vmatprep.subr.bf16.mxu1 %v11602_v31 }
 0x9a3   : > { %v5374_v9 = vpop.f32.mrb[68].mxu1  ;;  %v5417_v8 = vpop.f32.mrb[72].mxu0 }
 0x9a4   : > { %v5426_v17 = vadd.f32 %v5374_v9, %v5140_v61  ;;  %v5428_v60 = vadd.f32 %v5417_v8, %v5142_v47  ;;  %v5376_v24 = vpop.f32.mrb[69].mxu1  ;;  %v5419_v63 = vpop.f32.mrb[73].mxu0 }
 0x9a5   : > { %v5427_v16 = vadd.f32 %v5376_v24, %v5141_v44  ;;  %v5429_v7 = vadd.f32 %v5419_v63, %v5143_v12  ;;  %v5378_v20 = vpop.f32.mrb[70].mxu1  ;;  %v5421_v18 = vpop.f32.mrb[74].mxu0  ;;  %v11606_v24 = vld [vmem:[#allocation13 + $0x40] ss:$16 sps:$4 sm:$0xff]   ;;  %v11611_v63 = vld [vmem:[#allocation13 + $0x64] ss:$16 sps:$4 sm:$0xff]  }
 0x9a6   : > { %v10621_v51 = vmul.f32 -1.442695, %v5426_v17  ;;  %v5430_v29 = vadd.f32 %v5378_v20, %v5144_v55  ;;  %v5432_v10 = vadd.f32 %v5421_v18, %v5146_v59  ;;  %v5380_v50 = vpop.f32.mrb[71].mxu1  ;;  %v5423_v28 = vpop.f32.mrb[75].mxu0  ;;  %v11605_v17 = vld [vmem:[#allocation13 + $0x24] ss:$16 sps:$4 sm:$0xff]  }
 0x9a7   : > { %v10623_v21 = vmul.f32 -1.442695, %v5427_v16  ;;  %v5431_v39 = vadd.f32 %v5380_v50, %v5145_v62  ;;  %v5433_v46 = vadd.f32 %v5423_v28, %v5147_v4  ;;  %v10625_v5 = vmul.f32 -1.442695, %v5429_v7  ;;  %v11609_v55 = vld [vmem:[#allocation13 + $0x60] ss:$16 sps:$4 sm:$0xff]  }
 0x9a8   : > { %12024 = vpow2.f32 %v10621_v51  ;;  %v10622_v22 = vmul.f32 -1.442695, %v5430_v29  ;;  %v11614_v59 = vld [vmem:[#allocation13 + $0x84] ss:$16 sps:$4 sm:$0xff]   ;;  %v11612_v16 = vld [vmem:[#allocation13 + $0x80] ss:$16 sps:$4 sm:$0xff]  }
 0x9a9   : > { %12026 = vpow2.f32 %v10623_v21  ;;  %v10624_v43 = vmul.f32 -1.442695, %v5431_v39  ;;  %v10626_v6 = vmul.f32 -1.442695, %v5433_v46  ;;  %v11617_v7 = vld [vmem:[#allocation13 + $0xa4] ss:$16 sps:$4 sm:$0xff]  }
 0x9aa   : > { %12028 = vpow2.f32 %v10622_v22  ;;  %v11615_v20 = vld [vmem:[#allocation13 + $0xa0] ss:$16 sps:$4 sm:$0xff]   ;;  %v11620_v18 = vld [vmem:[#allocation13 + $0xc4] ss:$16 sps:$4 sm:$0xff]   ;;  %v11626_v29 = vld [vmem:[#allocation13 + $0xc] ss:$16 sps:$4 sm:$0xff]  }
 0x9ab   : > { %12030 = vpow2.f32 %v10624_v43  ;;  %v11618_v62 = vld [vmem:[#allocation13 + $0xc0] ss:$16 sps:$4 sm:$0xff]   ;;  %v11623_v4 = vld [vmem:[#allocation13 + $0xe4] ss:$16 sps:$4 sm:$0xff]   ;;  %v11629_v50 = vld [vmem:[#allocation13 + $0x2c] ss:$16 sps:$4 sm:$0xff]  }
 0x9ac   : > { %12032 = vtanh.f32 %v5428_v60  ;;  %v11608_v60 = vld [vmem:[#allocation13 + $0x44] ss:$16 sps:$4 sm:$0xff]   ;;  %v11621_v51 = vld [vmem:[#allocation13 + $0xe0] ss:$16 sps:$4 sm:$0xff]   ;;  %v15230_v28 = vld [vmem:[#allocation39_spill] sm:$0xff] }
 0x9ad   : > { %12034 = vpow2.f32 %v10625_v5  ;;  %v11627_v21 = vld [vmem:[#allocation13 + $0x28] ss:$16 sps:$4 sm:$0xff]   ;;  %v11632_v39 = vld [vmem:[#allocation13 + $0x4c] ss:$16 sps:$4 sm:$0xff]  }
 0x9ae   : > { %12036 = vtanh.f32 %v5432_v10  ;;  %v11624_v10 = vld [vmem:[#allocation13 + $0x8] ss:$16 sps:$4 sm:$0xff]   ;;  %v11635_v22 = vld [vmem:[#allocation13 + $0x6c] ss:$16 sps:$4 sm:$0xff]  }
 0x9af   : > { %v11630_v46 = vld [vmem:[#allocation13 + $0x48] ss:$16 sps:$4 sm:$0xff]   ;;  %v11638_v5 = vld [vmem:[#allocation13 + $0x8c] ss:$16 sps:$4 sm:$0xff]  }
 0x9b0   : > { %v11633_v43 = vld [vmem:[#allocation13 + $0x68] ss:$16 sps:$4 sm:$0xff]  }
 0x9b2   : > { %v12025_v19 = vpop.eup %12024 }
 0x9b3   : > { %v12027_v54 = vpop.eup %12026  ;;  %v5440_v34 = vadd.f32 1.0, %v12025_v19  ;;  %v11636_v19 = vld [vmem:[#allocation13 + $0x88] ss:$16 sps:$4 sm:$0xff]  }
 0x9b4   : > { %v5452_v27 = vadd.f32 1.0, %v12027_v54  ;;  %v12029_v14 = vpop.eup %12028  ;;  %v11641_v54 = vld [vmem:[#allocation13 + $0xac] ss:$16 sps:$4 sm:$0xff]  }
 0x9b5   : > { %12038 = vrcp.f32 %v5440_v34  ;;  %v5441_v57 = vadd.f32 1.0, %v12029_v14  ;;  %v12031_v23 = vpop.eup %12030  ;;  %v11639_v34 = vld [vmem:[#allocation13 + $0xa8] ss:$16 sps:$4 sm:$0xff]   ;;  %v11647_v14 = vld [vmem:[#allocation13 + $0xec] ss:$16 sps:$4 sm:$0xff]  }
 0x9b6   : > { %12040 = vrcp.f32 %v5452_v27  ;;  %v5453_v41 = vadd.f32 1.0, %v12031_v23  ;;  %v12033_v40 = vpop.eup %12032  ;;  %v11642_v27 = vld [vmem:[#allocation13 + $0xc8] ss:$16 sps:$4 sm:$0xff]   ;;  %v14022_v23 = vld [vmem:[#allocation14 + $0xc] ss:$16 sps:$4 sm:$0xff]  }
 0x9b7   : > { %12042 = vpow2.f32 %v10626_v6  ;;  %v12035_v38 = vpop.eup %12034  ;;  %v11644_v6 = vld [vmem:[#allocation13 + $0xcc] ss:$16 sps:$4 sm:$0xff]  }
 0x9b8   : > { %12044 = vrcp.f32 %v5441_v57  ;;  %v12037_v52 = vpop.eup %12036  ;;  %v5466_v31 = vadd.f32 1.0, %v12035_v38  ;;  %v11645_v57 = vld [vmem:[#allocation13 + $0xe8] ss:$16 sps:$4 sm:$0xff]   ;;  %v14044_v38 = vld [vmem:[#allocation14 + $0x20] ss:$16 sps:$4 sm:$0xff]  }
 0x9b9   : > { %12046 = vrcp.f32 %v5453_v41  ;;  %v14024_v41 = vld [vmem:[#allocation14 + $0x4] ss:$16 sps:$4 sm:$0xff]  }
 0x9ba   : > { %12048 = vrcp.f32 %v5466_v31  ;;  %v14074_v31 = vld [vmem:[#allocation14 + $0x88] ss:$16 sps:$4 sm:$0xff]  }
 0x9bf   : > { %v12039_v37 = vpop.eup %12038 }
 0x9c0   : > { %v12041_v2 = vpop.eup %12040  ;;  %v5474_v58 = vmul.f32 %v12039_v37, %v12033_v40  ;;  %v14041_v40 = vld [vmem:[#allocation14 + $0x4c] ss:$16 sps:$4 sm:$0xff]  }
 0x9c1   : > { %v12043_v56 = vpop.eup %12042  ;;  %v5472_v30 = vmul.f32 %v12041_v2, %v13945_v15  ;;  %v14052_v37 = vld [vmem:[#allocation14 + $0x6c] ss:$16 sps:$4 sm:$0xff]   ;;  %v14054_v2 = vld [vmem:[#allocation14 + $0x44] ss:$16 sps:$4 sm:$0xff]  }
 0x9c2   : > { %v12045_v25 = vpop.eup %12044  ;;  %v5467_v26 = vadd.f32 1.0, %v12043_v56  ;;  %v14062_v56 = vld [vmem:[#allocation14 + $0x68] ss:$16 sps:$4 sm:$0xff]  }
 0x9c3   : > { %v13982_v35 = vadd.f32 %v5474_v58, %v5472_v30  ;;  %v5475_v11 = vmul.f32 %v12045_v25, %v12037_v52  ;;  %v12047_v42 = vpop.eup %12046  ;;  %v14048_v52 = vld [vmem:[#allocation14 + $0x48] ss:$16 sps:$4 sm:$0xff]   ;;  %v14058_v58 = vld [vmem:[#allocation14 + $0x40] ss:$16 sps:$4 sm:$0xff]   ;;  %v14067_v30 = vld [vmem:[#allocation14 + $0x64] ss:$16 sps:$4 sm:$0xff]  }
 0x9c4   : > { %v5473_v61 = vmul.f32 %v12047_v42, %v13949_v1  ;;  %v12049_v47 = vpop.eup %12048  ;;  %v11603_v1 = vld [vmem:[#allocation13 + $0x20] ss:$16 sps:$4 sm:$0xff]  }
 0x9c5   : > { %12050 = vtanh.f32 %v13982_v35  ;;  %v14070_v25 = vld [vmem:[#allocation14 + $0x60] ss:$16 sps:$4 sm:$0xff]  }
 0x9c6   : > { %v13986_v48 = vadd.f32 %v5475_v11, %v5473_v61  ;;  %12052 = vrcp.f32 %v5467_v26  ;;  %v14078_v11 = vld [vmem:[#allocation14 + $0x84] ss:$16 sps:$4 sm:$0xff]   ;;  %v14081_v42 = vld [vmem:[#allocation14 + $0x80] ss:$16 sps:$4 sm:$0xff]   ;;  %v14088_v61 = vld [vmem:[#allocation14 + $0xa8] ss:$16 sps:$4 sm:$0xff]  }
 0x9c7   : > { %v14086_v26 = vld [vmem:[#allocation14 + $0xa4] ss:$16 sps:$4 sm:$0xff]  }
 0x9c8   : > { %12054 = vtanh.f32 %v13986_v48 }
 0x9cf   : > { %v12051_v9 = vpop.eup %12050 }
 0x9d0   : > { %v12053_v15 = vpop.eup %12052  ;;  %v5480_v33 = vmul.f32 %v12051_v9, %v12049_v47  ;;  %v14091_v47 = vld [vmem:[#allocation14 + $0xa0] ss:$16 sps:$4 sm:$0xff]   ;;  %v14093_v9 = vld [vmem:[#allocation14 + $0xac] ss:$16 sps:$4 sm:$0xff]  }
 0x9d2   : > { %v12055_v8 = vpop.eup %12054 }
 0x9d3   : > { %v5481_v44 = vmul.f32 %v12055_v8, %v12053_v15  ;;  %v14098_v15 = vld [vmem:[#allocation14 + $0xc4] ss:$16 sps:$4 sm:$0xff]   ;;  %v14100_v8 = vld [vmem:[#allocation14 + $0xcc] ss:$16 sps:$4 sm:$0xff]  }
 0x9d5   : > { %v13989_v12 = vpack.c.bf16 %v5481_v44, %v5480_v33  ;;  %v14103_v33 = vld [vmem:[#allocation14 + $0xc0] ss:$16 sps:$4 sm:$0xff]   ;;  %v14105_v44 = vld [vmem:[#allocation14 + $0xc8] ss:$16 sps:$4 sm:$0xff]  }
 0x9d7   : > { %5729 = vmatmul.mubr.bf16.vlgmr.msra.gmra.mrb[72].mxu1 %v13989_v12  ;;  %5772 = vmatmul.mubr.bf16.vlgmr.msra.gmra.mrb[76].mxu0 %v13989_v12 }
 0x9d8   : > { %6068 = vmatpush1.bf16.msra.mxu0 %v11600_v0  ;;  %11132 = vmatpush1.bf16.msra.mxu1 %v11600_v0  ;;  %v14110_v0 = vld [vmem:[#allocation14 + $0xe4] ss:$16 sps:$4 sm:$0xff]  }
 0x9d9   : > { %6069 = vmatprep.subr.bf16.mxu0 %v11605_v17  ;;  %11125 = vmatprep.subr.bf16.mxu1 %v11605_v17  ;;  %v14115_v17 = vld [vmem:[#allocation14 + $0xe0] ss:$16 sps:$4 sm:$0xff]  }
 0x9da   : > { %6099 = vmatprep.mubr.bf16.mxu0 %v15175_v3  ;;  %6149 = vmatprep.mubr.bf16.mxu1 %v15175_v3 }
 0x9dc   : > { %6070 = vmatpush1.bf16.msra.mxu0 %v11603_v1  ;;  %11133 = vmatpush1.bf16.msra.mxu1 %v11603_v1  ;;  %v14117_v1 = vld [vmem:[#allocation14 + $0xec] ss:$16 sps:$4 sm:$0xff]  }
 0x9dd   : > { %6071 = vmatprep.subr.bf16.mxu0 %v11608_v60  ;;  %11126 = vmatprep.subr.bf16.mxu1 %v11608_v60  ;;  %v15231_v60 = vld [vmem:[#allocation34_spill] sm:$0xff] }
 0x9e0   : > { %6072 = vmatpush1.bf16.msra.mxu0 %v11606_v24  ;;  %11134 = vmatpush1.bf16.msra.mxu1 %v11606_v24  ;;  %v5496_v24 = vunpack.c.l.bf16 %v15231_v60 }
 0x9e1   : > { %6073 = vmatprep.subr.bf16.mxu0 %v11611_v63  ;;  %11127 = vmatprep.subr.bf16.mxu1 %v11611_v63  ;;  %v15232_v63 = vld [vmem:[#allocation55_spill] sm:$0xff] }
 0x9e4   : > { %6074 = vmatpush1.bf16.msra.mxu0 %v11609_v55  ;;  %11135 = vmatpush1.bf16.msra.mxu1 %v11609_v55  ;;  %v5498_v55 = vunpack.c.l.bf16 %v15232_v63 }
 0x9e5   : > { %6075 = vmatprep.subr.bf16.mxu0 %v11614_v59  ;;  %11128 = vmatprep.subr.bf16.mxu1 %v11614_v59 }
 0x9e8   : > { %6076 = vmatpush1.bf16.msra.mxu0 %v11612_v16  ;;  %11136 = vmatpush1.bf16.msra.mxu1 %v11612_v16 }
 0x9e9   : > { %6077 = vmatprep.subr.bf16.mxu0 %v11617_v7  ;;  %11129 = vmatprep.subr.bf16.mxu1 %v11617_v7  ;;  %v15233_v7 = vld [vmem:[#allocation35_spill] sm:$0xff] }
 0x9ec   : > { %6078 = vmatpush1.bf16.msra.mxu0 %v11615_v20  ;;  %11137 = vmatpush1.bf16.msra.mxu1 %v11615_v20  ;;  %v5497_v20 = vunpack.c.l.bf16 %v15233_v7 }
 0x9ed   : > { %6079 = vmatprep.subr.bf16.mxu0 %v11620_v18  ;;  %11130 = vmatprep.subr.bf16.mxu1 %v11620_v18  ;;  %v15234_v18 = vld [vmem:[#allocation56_spill] sm:$0xff] }
 0x9f0   : > { %6080 = vmatpush1.bf16.msra.mxu0 %v11618_v62  ;;  %11138 = vmatpush1.bf16.msra.mxu1 %v11618_v62  ;;  %v5499_v62 = vunpack.c.l.bf16 %v15234_v18 }
 0x9f1   : > { %6081 = vmatprep.subr.bf16.mxu0 %v11623_v4  ;;  %11131 = vmatprep.subr.bf16.mxu1 %v11623_v4 }
 0x9f4   : > { %6082 = vmatpush1.bf16.msra.mxu0 %v11621_v51  ;;  %11139 = vmatpush1.bf16.msra.mxu1 %v11621_v51 }
 0x9f5   : > { %6190 = vmatprep.subr.bf16.mxu0 %v11626_v29  ;;  %6595 = vmatprep.subr.bf16.mxu1 %v14024_v41 }
 0x9f7   : > { %6100 = vmatmul.mubr.bf16.vlgmr.msra.gmra.mrb[80].mxu0 %v15230_v28  ;;  %6150 = vmatmul.mubr.bf16.vlgmr.msra.gmra.mrb[76].mxu1 %v13899_v53 }
 0x9f8   : > { %6109 = vmatprep.mubr.bf16.mxu0 %v15175_v3  ;;  %6159 = vmatprep.mubr.bf16.mxu1 %v15175_v3 }
 0x9f9   : > { %6191 = vmatpush1.bf16.msra.mxu0 %v11624_v10 }
 0x9fa   : > { %6192 = vmatprep.subr.bf16.mxu0 %v11629_v50  ;;  %v5500_v50 = vunpack.c.h.bf16 %v15231_v60 }
 0x9fd   : > { %6193 = vmatpush1.bf16.msra.mxu0 %v11627_v21 }
 0x9fe   : > { %6194 = vmatprep.subr.bf16.mxu0 %v11632_v39 }
 0x9ff   : > { %6110 = vmatmul.mubr.bf16.gmra.mrb[84].mxu0 %v13619_v36  ;;  %6160 = vmatmul.mubr.bf16.gmra.mrb[80].mxu1 %v13952_v32 }
 0xa00   : > { %6119 = vmatprep.mubr.bf16.mxu0 %v15175_v3  ;;  %6169 = vmatprep.mubr.bf16.mxu1 %v15175_v3 }
 0xa01   : > { %6195 = vmatpush1.bf16.msra.mxu0 %v11630_v46 }
 0xa02   : > { %6196 = vmatprep.subr.bf16.mxu0 %v11635_v22 }
 0xa05   : > { %6197 = vmatpush1.bf16.msra.mxu0 %v11633_v43  ;;  %v5501_v43 = vunpack.c.h.bf16 %v15233_v7 }
 0xa06   : > { %6198 = vmatprep.subr.bf16.mxu0 %v11638_v5  ;;  %v5503_v5 = vunpack.c.h.bf16 %v15234_v18 }
 0xa07   : > { %6120 = vmatmul.mubr.bf16.gmra.mrb[88].mxu0 %v13672_v49  ;;  %6170 = vmatmul.mubr.bf16.gmra.mrb[84].mxu1 %v13989_v12 }
 0xa08   : > { %6129 = vmatprep.mubr.bf16.mxu0 %v15175_v3  ;;  %6179 = vmatprep.mubr.bf16.mxu1 %v15175_v3 }
 0xa09   : > { %6199 = vmatpush1.bf16.msra.mxu0 %v11636_v19 }
 0xa0a   : > { %6200 = vmatprep.subr.bf16.mxu0 %v11641_v54 }
 0xa0d   : > { %6201 = vmatpush1.bf16.msra.mxu0 %v11639_v34 }
 0xa0e   : > { %6202 = vmatprep.subr.bf16.mxu0 %v11644_v6 }
 0xa0f   : > { %6130 = vmatmul.mubr.bf16.gmra.mrb[92].mxu0 %v13759_v45 }
 0xa10   : > { %6139 = vmatprep.mubr.bf16.mxu0 %v15175_v3 }
 0xa11   : > { %6203 = vmatpush1.bf16.msra.mxu0 %v11642_v27 }
 0xa12   : > { %6204 = vmatprep.subr.bf16.mxu0 %v11647_v14 }
 0xa15   : > { %6205 = vmatpush1.bf16.msra.mxu0 %v11645_v57 }
 0xa16   : > { %6638 = vmatprep.subr.bf16.mxu0 %v14022_v23 }
 0xa17   : > { %6140 = vmatmul.mubr.bf16.gmra.mrb[96].mxu0 %v13812_v13 }
 0xa18   : > { %6222 = vmatprep.mubr.bf16.mxu0 %v15175_v3 }
 0xa1f   : > { %6223 = vmatmul.mubr.bf16.vlgmr.msra.gmra.mrb[100].mxu0 %v15230_v28  ;;  %v5502_v28 = vunpack.c.h.bf16 %v15232_v63 }
 0xa20   : > { %6232 = vmatprep.mubr.bf16.mxu0 %v15175_v3 }
 0xa27   : > { %6233 = vmatmul.mubr.bf16.gmra.mrb[104].mxu0 %v13619_v36  ;;  %v14027_v36 = vld [vmem:[#allocation14 + $0x8] ss:$16 sps:$4 sm:$0xff]  }
 0xa28   : > { %6242 = vmatprep.mubr.bf16.mxu0 %v15175_v3  ;;  %6639 = vmatpush1.bf16.msra.mxu0 %v14027_v36 }
 0xa2f   : > { %6243 = vmatmul.mubr.bf16.gmra.mrb[108].mxu0 %v13672_v49  ;;  %v14029_v49 = vld [vmem:[#allocation14] ss:$16 sps:$4 sm:$0xff]  }
 0xa30   : > { %6252 = vmatprep.mubr.bf16.mxu0 %v15175_v3  ;;  %6596 = vmatpush1.bf16.msra.mxu1 %v14029_v49 }
 0xa37   : > { %6253 = vmatmul.mubr.bf16.gmra.mrb[112].mxu0 %v13759_v45  ;;  %v14035_v45 = vld [vmem:[#allocation14 + $0x2c] ss:$16 sps:$4 sm:$0xff]  }
 0xa38   : > { %6262 = vmatprep.mubr.bf16.mxu0 %v15175_v3  ;;  %6640 = vmatprep.subr.bf16.mxu0 %v14035_v45 }
 0xa3f   : > { %6263 = vmatmul.mubr.bf16.gmra.mrb[116].mxu0 %v13812_v13  ;;  %v14037_v13 = vld [vmem:[#allocation14 + $0x24] ss:$16 sps:$4 sm:$0xff]  }
 0xa40   : > { %6272 = vmatprep.mubr.bf16.mxu0 %v15175_v3  ;;  %6597 = vmatprep.subr.bf16.mxu1 %v14037_v13 }
 0xa41   : > { %6598 = vmatpush1.bf16.msra.mxu1 %v14044_v38 }
 0xa42   : > { %6599 = vmatprep.subr.bf16.mxu1 %v14054_v2 }
 0xa45   : > { %6600 = vmatpush1.bf16.msra.mxu1 %v14058_v58 }
 0xa46   : > { %6601 = vmatprep.subr.bf16.mxu1 %v14067_v30 }
 0xa47   : > { %6273 = vmatmul.mubr.bf16.gmra.mrb[120].mxu0 %v13899_v53  ;;  %v14039_v53 = vld [vmem:[#allocation14 + $0x28] ss:$16 sps:$4 sm:$0xff]  }
 0xa48   : > { %6282 = vmatprep.mubr.bf16.mxu0 %v15175_v3  ;;  %6641 = vmatpush1.bf16.msra.mxu0 %v14039_v53 }
 0xa49   : > { %6642 = vmatprep.subr.bf16.mxu0 %v14041_v40  ;;  %6602 = vmatpush1.bf16.msra.mxu1 %v14070_v25 }
 0xa4a   : > { %6603 = vmatprep.subr.bf16.mxu1 %v14078_v11 }
 0xa4c   : > { %6643 = vmatpush1.bf16.msra.mxu0 %v14048_v52 }
 0xa4d   : > { %6644 = vmatprep.subr.bf16.mxu0 %v14052_v37  ;;  %6604 = vmatpush1.bf16.msra.mxu1 %v14081_v42 }
 0xa4e   : > { %6605 = vmatprep.subr.bf16.mxu1 %v14086_v26 }
 0xa4f   : > { %6283 = vmatmul.mubr.bf16.gmra.mrb[124].mxu0 %v13952_v32  ;;  %v14065_v32 = vld [vmem:[#allocation14 + $0x8c] ss:$16 sps:$4 sm:$0xff]  }
 0xa50   : > { %6292 = vmatprep.mubr.bf16.mxu0 %v15175_v3  ;;  %6645 = vmatpush1.bf16.msra.mxu0 %v14062_v56 }
 0xa51   : > { %6646 = vmatprep.subr.bf16.mxu0 %v14065_v32  ;;  %6606 = vmatpush1.bf16.msra.mxu1 %v14091_v47 }
 0xa52   : > { %6607 = vmatprep.subr.bf16.mxu1 %v14098_v15 }
 0xa54   : > { %6647 = vmatpush1.bf16.msra.mxu0 %v14074_v31 }
 0xa55   : > { %6648 = vmatprep.subr.bf16.mxu0 %v14093_v9  ;;  %6608 = vmatpush1.bf16.msra.mxu1 %v14103_v33 }
 0xa56   : > { %6609 = vmatprep.subr.bf16.mxu1 %v14110_v0 }
 0xa57   : > { %6293 = vmatmul.mubr.bf16.gmra.mrb[128].mxu0 %v13989_v12  ;;  %v14112_v12 = vld [vmem:[#allocation14 + $0xe8] ss:$16 sps:$4 sm:$0xff]  }
 0xa58   : > { %6302 = vmatprep.mubr.bf16.mxu0 %v15175_v3  ;;  %6649 = vmatpush1.bf16.msra.mxu0 %v14088_v61 }
 0xa59   : > { %6650 = vmatprep.subr.bf16.mxu0 %v14100_v8  ;;  %6610 = vmatpush1.bf16.msra.mxu1 %v14115_v17 }
 0xa5a   : > { %6949 = vmatprep.subr.bf16.mxu1 %v14024_v41 }
 0xa5c   : > { %6651 = vmatpush1.bf16.msra.mxu0 %v14105_v44 }
 0xa5d   : > { %6652 = vmatprep.subr.bf16.mxu0 %v14117_v1 }
 0xa60   : > { %6653 = vmatpush1.bf16.msra.mxu0 %v14112_v12 }
 0xa61   : > { %6992 = vmatprep.subr.bf16.mxu0 %v14022_v23 }
 0xaaa   : > { %v5730_v59 = vpop.f32.mrb[72].mxu1  ;;  %v5773_v16 = vpop.f32.mrb[76].mxu0 }
 0xaab   : > { %v5782_v4 = vadd.f32 %v5730_v59, %v5496_v24  ;;  %v5784_v51 = vadd.f32 %v5773_v16, %v5498_v55  ;;  %v5732_v29 = vpop.f32.mrb[73].mxu1  ;;  %v5775_v10 = vpop.f32.mrb[77].mxu0 }
 0xaac   : > { %v5783_v21 = vadd.f32 %v5732_v29, %v5497_v20  ;;  %v5785_v39 = vadd.f32 %v5775_v10, %v5499_v62  ;;  %v5734_v46 = vpop.f32.mrb[74].mxu1  ;;  %v5777_v22 = vpop.f32.mrb[78].mxu0 }
 0xaad   : > { %v10659_v19 = vmul.f32 -1.442695, %v5782_v4  ;;  %v5786_v54 = vadd.f32 %v5734_v46, %v5500_v50  ;;  %v5788_v34 = vadd.f32 %v5777_v22, %v5502_v28  ;;  %v5736_v6 = vpop.f32.mrb[75].mxu1  ;;  %v5779_v27 = vpop.f32.mrb[79].mxu0 }
 0xaae   : > { %v10661_v14 = vmul.f32 -1.442695, %v5783_v21  ;;  %v5787_v57 = vadd.f32 %v5736_v6, %v5501_v43  ;;  %v5789_v23 = vadd.f32 %v5779_v27, %v5503_v5  ;;  %v10663_v63 = vmul.f32 -1.442695, %v5785_v39  ;;  %v15236_v5 = vld [vmem:[#allocation28_spill] sm:$0xff]  ;;  %v15237_v6 = vld [vmem:[#allocation29_spill] sm:$0xff] }
 0xaaf   : > { %12056 = vpow2.f32 %v10659_v19  ;;  %v10660_v60 = vmul.f32 -1.442695, %v5786_v54 }
 0xab0   : > { %12058 = vpow2.f32 %v10661_v14  ;;  %v10662_v24 = vmul.f32 -1.442695, %v5787_v57  ;;  %v10664_v7 = vmul.f32 -1.442695, %v5789_v23 }
 0xab1   : > { %12060 = vpow2.f32 %v10660_v60 }
 0xab2   : > { %12062 = vpow2.f32 %v10662_v24 }
 0xab3   : > { %12064 = vtanh.f32 %v5784_v51  ;;  %v14136_v51 = vld [vmem:[%s15235_s23] sm:$0xf] }
 0xab4   : > { %12066 = vpow2.f32 %v10663_v63  ;;  %v14140_v19 = vrot.slane %v14136_v51, %v15236_v5  ;;  %v14145_v27 = vrot.slane %v14136_v51, %v15237_v6 }
 0xab5   : > { %12068 = vtanh.f32 %v5788_v34 }
 0xab9   : > { %v12057_v55 = vpop.eup %12056 }
 0xaba   : > { %v12059_v59 = vpop.eup %12058  ;;  %v5796_v16 = vadd.f32 1.0, %v12057_v55 }
 0xabb   : > { %v5808_v20 = vadd.f32 1.0, %v12059_v59  ;;  %v12061_v18 = vpop.eup %12060 }
 0xabc   : > { %12070 = vrcp.f32 %v5796_v16  ;;  %v5797_v62 = vadd.f32 1.0, %v12061_v18  ;;  %v12063_v4 = vpop.eup %12062 }
 0xabd   : > { %12072 = vrcp.f32 %v5808_v20  ;;  %v5809_v29 = vadd.f32 1.0, %v12063_v4  ;;  %v12065_v10 = vpop.eup %12064 }
 0xabe   : > { %12074 = vpow2.f32 %v10664_v7  ;;  %v12067_v50 = vpop.eup %12066 }
 0xabf   : > { %12076 = vrcp.f32 %v5797_v62  ;;  %v12069_v28 = vpop.eup %12068  ;;  %v5822_v22 = vadd.f32 1.0, %v12067_v50 }
 0xac0   : > { %12078 = vrcp.f32 %v5809_v29 }
 0xac1   : > { %12080 = vrcp.f32 %v5822_v22 }
 0xac6   : > { %v12071_v21 = vpop.eup %12070 }
 0xac7   : > { %v12073_v39 = vpop.eup %12072  ;;  %v5830_v46 = vmul.f32 %v12071_v21, %v12065_v10 }
 0xac8   : > { %v12075_v43 = vpop.eup %12074  ;;  %v5828_v54 = vmul.f32 %v12073_v39, %v13982_v35 }
 0xac9   : > { %v12077_v34 = vpop.eup %12076  ;;  %v5823_v63 = vadd.f32 1.0, %v12075_v43 }
 0xaca   : > { %v5831_v14 = vmul.f32 %v12077_v34, %v12069_v28  ;;  %v6101_v57 = vpop.f32.mrb[80].mxu0  ;;  %v6151_v23 = vpop.f32.mrb[76].mxu1  ;;  %v5832_v60 = vadd.f32 %v5830_v46, %v5828_v54 }
 0xacb   : > { %v12079_v24 = vpop.eup %12078  ;;  %v6103_v55 = vpop.f32.mrb[81].mxu0  ;;  %v6102_v7 = vadd.f32 %v6101_v57, %v14140_v19  ;;  %v6152_v18 = vadd.f32 %v6151_v23, %v14140_v19 }
 0xacc   : > { %v6153_v59 = vpop.f32.mrb[77].mxu1  ;;  %v5829_v16 = vmul.f32 %v12079_v24, %v13986_v48  ;;  %v6105_v20 = vpop.f32.mrb[82].mxu0  ;;  %12082 = vtanh.f32 %v5832_v60  ;;  %v6104_v62 = vadd.f32 %v6103_v55, %v14145_v27 }
 0xacd   : > { %v6155_v35 = vpop.f32.mrb[78].mxu1  ;;  %v6106_v4 = vadd.f32 %v6105_v20, %v14140_v19  ;;  %v6107_v10 = vpop.f32.mrb[83].mxu0  ;;  %v6154_v28 = vadd.f32 %v6153_v59, %v14145_v27  ;;  %12084 = vrcp.f32 %v5823_v63 }
 0xace   : > { %v6156_v29 = vadd.f32 %v6155_v35, %v14140_v19  ;;  %v6157_v50 = vpop.f32.mrb[79].mxu1  ;;  %v6108_v21 = vadd.f32 %v6107_v10, %v14145_v27  ;;  %v5833_v39 = vadd.f32 %v5831_v14, %v5829_v16  ;;  %v12081_v24 = vpop.eup %12080 }
 0xacf   : > { %v6158_v48 = vadd.f32 %v6157_v50, %v14145_v27  ;;  %v14156_v46 = vpack.c.bf16 %v6106_v4, %v6102_v7 }
 0xad0   : > { %v14158_v22 = vpack.c.bf16 %v6156_v29, %v6152_v18  ;;  %v14160_v43 = vpack.c.bf16 %v6108_v21, %v6104_v62  ;;  %12086 = vtanh.f32 %v5833_v39 }
 0xad1   : > { %v14162_v5 = vpack.c.bf16 %v6158_v48, %v6154_v28 }
 0xad2   : > { %15238 = vst [vmem:[#allocation40_spill] sm:$0xff] %v14158_v22  ;;  %v6111_v54 = vpop.f32.mrb[84].mxu0  ;;  %v6161_v34 = vpop.f32.mrb[80].mxu1 }
 0xad3   : > { %15239 = vst [vmem:[#allocation37_spill] sm:$0xff] %v14162_v5  ;;  %v6113_v6 = vpop.f32.mrb[85].mxu0  ;;  %v6163_v57 = vpop.f32.mrb[81].mxu1  ;;  %v6112_v55 = vadd.f32 %v6111_v54, %v14140_v19  ;;  %v6162_v14 = vadd.f32 %v6161_v34, %v14140_v19 }
 0xad4   : > { %v6115_v23 = vpop.f32.mrb[86].mxu0  ;;  %v6165_v60 = vpop.f32.mrb[82].mxu1  ;;  %v6114_v35 = vadd.f32 %v6113_v6, %v14145_v27  ;;  %v6164_v18 = vadd.f32 %v6163_v57, %v14145_v27 }
 0xad5   : > { %v6116_v63 = vadd.f32 %v6115_v23, %v14140_v19  ;;  %v6166_v59 = vadd.f32 %v6165_v60, %v14140_v19  ;;  %v6117_v16 = vpop.f32.mrb[87].mxu0  ;;  %v6167_v7 = vpop.f32.mrb[83].mxu1 }
 0xad6   : > { %v12083_v20 = vpop.eup %12082  ;;  %v6118_v62 = vadd.f32 %v6117_v16, %v14145_v27  ;;  %v6168_v4 = vadd.f32 %v6167_v7, %v14145_v27 }
 0xad7   : > { %v14172_v29 = vpack.c.bf16 %v6116_v63, %v6112_v55  ;;  %v14174_v10 = vpack.c.bf16 %v6166_v59, %v6162_v14  ;;  %v5836_v50 = vmul.f32 %v12083_v20, %v12081_v24  ;;  %v12085_v48 = vpop.eup %12084 }
 0xad8   : > { %v14176_v28 = vpack.c.bf16 %v6118_v62, %v6114_v35  ;;  %v14178_v21 = vpack.c.bf16 %v6168_v4, %v6164_v18 }
 0xad9   : > { %15240 = vst [vmem:[#allocation41_spill] sm:$0xff] %v14174_v10 }
 0xada   : > { %15241 = vst [vmem:[#allocation36_spill] sm:$0xff] %v14178_v21  ;;  %v12087_v39 = vpop.eup %12086  ;;  %v6121_v54 = vpop.f32.mrb[88].mxu0 }
 0xadb   : > { %v6171_v34 = vpop.f32.mrb[84].mxu1  ;;  %v6123_v6 = vpop.f32.mrb[89].mxu0  ;;  %v5837_v57 = vmul.f32 %v12087_v39, %v12085_v48  ;;  %v6122_v60 = vadd.f32 %v6121_v54, %v14140_v19 }
 0xadc   : > { %v6173_v23 = vpop.f32.mrb[85].mxu1  ;;  %v6125_v16 = vpop.f32.mrb[90].mxu0  ;;  %v6172_v55 = vadd.f32 %v6171_v34, %v14140_v19  ;;  %v6124_v35 = vadd.f32 %v6123_v6, %v14145_v27 }
 0xadd   : > { %v6175_v7 = vpop.f32.mrb[86].mxu1  ;;  %v6126_v14 = vadd.f32 %v6125_v16, %v14140_v19  ;;  %v6127_v63 = vpop.f32.mrb[91].mxu0  ;;  %v5838_v20 = vpack.c.bf16 %v5837_v57, %v5836_v50  ;;  %v6174_v18 = vadd.f32 %v6173_v23, %v14145_v27 }
 0xade   : > { %v6176_v24 = vadd.f32 %v6175_v7, %v14140_v19  ;;  %v6177_v59 = vpop.f32.mrb[87].mxu1  ;;  %v6128_v62 = vadd.f32 %v6127_v63, %v14145_v27 }
 0xadf   : > { %v6178_v4 = vadd.f32 %v6177_v59, %v14145_v27  ;;  %v14188_v48 = vpack.c.bf16 %v6126_v14, %v6122_v60  ;;  %6180 = vmatmul.mubr.bf16.gmra.mrb[88].mxu1 %v5838_v20  ;;  %6303 = vmatmul.mubr.bf16.gmra.mrb[132].mxu0 %v5838_v20 }
 0xae0   : > { %v14190_v39 = vpack.c.bf16 %v6176_v24, %v6172_v55  ;;  %v14192_v54 = vpack.c.bf16 %v6128_v62, %v6124_v35  ;;  %6627 = vmatprep.mubr.bf16.mxu1 %v15175_v3  ;;  %6670 = vmatprep.mubr.bf16.mxu0 %v15175_v3 }
 0xae1   : > { %v14194_v34 = vpack.c.bf16 %v6178_v4, %v6174_v18 }
 0xae2   : > { %15242 = vst [vmem:[#allocation42_spill] sm:$0xff] %v14190_v39  ;;  %v6131_v50 = vpop.f32.mrb[92].mxu0 }
 0xae3   : > { %15243 = vst [vmem:[#allocation38_spill] sm:$0xff] %v14194_v34  ;;  %v6133_v6 = vpop.f32.mrb[93].mxu0  ;;  %v6132_v57 = vadd.f32 %v6131_v50, %v14140_v19 }
 0xae4   : > { %v6135_v23 = vpop.f32.mrb[94].mxu0  ;;  %v6134_v7 = vadd.f32 %v6133_v6, %v14145_v27 }
 0xae5   : > { %v6136_v60 = vadd.f32 %v6135_v23, %v14140_v19  ;;  %v6137_v16 = vpop.f32.mrb[95].mxu0 }
 0xae6   : > { %v6138_v55 = vadd.f32 %v6137_v16, %v14145_v27 }
 0xae7   : > { %v14202_v14 = vpack.c.bf16 %v6136_v60, %v6132_v57  ;;  %6628 = vmatmul.mubr.bf16.vlgmr.msra.gmra.mrb[92].mxu1 %v15175_v3  ;;  %6671 = vmatmul.mubr.bf16.vlgmr.msra.gmra.mrb[136].mxu0 %v15175_v3 }
 0xae8   : > { %v14206_v24 = vpack.c.bf16 %v6138_v55, %v6134_v7  ;;  %6950 = vmatpush1.bf16.msra.mxu1 %v14029_v49  ;;  %6993 = vmatpush1.bf16.msra.mxu0 %v14027_v36 }
 0xae9   : > { %6951 = vmatprep.subr.bf16.mxu1 %v14037_v13  ;;  %6994 = vmatprep.subr.bf16.mxu0 %v14035_v45 }
 0xaea   : > { %v6141_v63 = vpop.f32.mrb[96].mxu0  ;;  %6981 = vmatprep.mubr.bf16.mxu1 %v15175_v3  ;;  %7024 = vmatprep.mubr.bf16.mxu0 %v15175_v3 }
 0xaeb   : > { %v6143_v59 = vpop.f32.mrb[97].mxu0  ;;  %v6142_v35 = vadd.f32 %v6141_v63, %v14140_v19 }
 0xaec   : > { %v6145_v20 = vpop.f32.mrb[98].mxu0  ;;  %6952 = vmatpush1.bf16.msra.mxu1 %v14044_v38  ;;  %6995 = vmatpush1.bf16.msra.mxu0 %v14039_v53  ;;  %v6144_v45 = vadd.f32 %v6143_v59, %v14145_v27  ;;  %v15246_v53 = vld [vmem:[#allocation30_spill] sm:$0xff] }
 0xaed   : > { %v6146_v18 = vadd.f32 %v6145_v20, %v14140_v19  ;;  %v6147_v36 = vpop.f32.mrb[99].mxu0  ;;  %6953 = vmatprep.subr.bf16.mxu1 %v14054_v2  ;;  %6996 = vmatprep.subr.bf16.mxu0 %v14041_v40  ;;  %v14230_v6 = vrot.slane %v14136_v51, %v15246_v53  ;;  %v15247_v40 = vld [vmem:[#allocation31_spill] sm:$0xff] }
 0xaee   : > { %v6148_v62 = vadd.f32 %v6147_v36, %v14145_v27  ;;  %v14236_v23 = vrot.slane %v14136_v51, %v15247_v40 }
 0xaef   : > { %v14222_v4 = vpack.c.bf16 %v6146_v18, %v6142_v35 }
 0xaf0   : > { %v14224_v50 = vpack.c.bf16 %v6148_v62, %v6144_v45  ;;  %6954 = vmatpush1.bf16.msra.mxu1 %v14058_v58  ;;  %6997 = vmatpush1.bf16.msra.mxu0 %v14048_v52 }
 0xaf1   : > { %15244 = vst [vmem:[#allocation43_spill] sm:$0xff] %v14222_v4  ;;  %6955 = vmatprep.subr.bf16.mxu1 %v14067_v30  ;;  %6998 = vmatprep.subr.bf16.mxu0 %v14052_v37 }
 0xaf2   : > { %15245 = vst [vmem:[#allocation48_spill] sm:$0xff] %v14224_v50  ;;  %v6224_v57 = vpop.f32.mrb[100].mxu0 }
 0xaf3   : > { %v6226_v60 = vpop.f32.mrb[101].mxu0  ;;  %v6225_v52 = vadd.f32 %v6224_v57, %v14230_v6 }
 0xaf4   : > { %v6228_v16 = vpop.f32.mrb[102].mxu0  ;;  %6956 = vmatpush1.bf16.msra.mxu1 %v14070_v25  ;;  %6999 = vmatpush1.bf16.msra.mxu0 %v14062_v56  ;;  %v6227_v37 = vadd.f32 %v6226_v60, %v14236_v23 }
 0xaf5   : > { %v6229_v7 = vadd.f32 %v6228_v16, %v14230_v6  ;;  %v6230_v55 = vpop.f32.mrb[103].mxu0  ;;  %6957 = vmatprep.subr.bf16.mxu1 %v14078_v11  ;;  %7000 = vmatprep.subr.bf16.mxu0 %v14065_v32 }
 0xaf6   : > { %v6231_v51 = vadd.f32 %v6230_v55, %v14236_v23 }
 0xaf7   : > { %v14246_v63 = vpack.c.bf16 %v6229_v7, %v6225_v52 }
 0xaf8   : > { %v14248_v59 = vpack.c.bf16 %v6231_v51, %v6227_v37  ;;  %6958 = vmatpush1.bf16.msra.mxu1 %v14081_v42  ;;  %7001 = vmatpush1.bf16.msra.mxu0 %v14074_v31 }
 0xaf9   : > { %6959 = vmatprep.subr.bf16.mxu1 %v14086_v26  ;;  %7002 = vmatprep.subr.bf16.mxu0 %v14093_v9 }
 0xafa   : > { %v6234_v56 = vpop.f32.mrb[104].mxu0 }
 0xafb   : > { %v6236_v20 = vpop.f32.mrb[105].mxu0  ;;  %v6235_v18 = vadd.f32 %v6234_v56, %v14230_v6 }
 0xafc   : > { %v6238_v35 = vpop.f32.mrb[106].mxu0  ;;  %6960 = vmatpush1.bf16.msra.mxu1 %v14091_v47  ;;  %7003 = vmatpush1.bf16.msra.mxu0 %v14088_v61  ;;  %v6237_v62 = vadd.f32 %v6236_v20, %v14236_v23 }
 0xafd   : > { %v6239_v36 = vadd.f32 %v6238_v35, %v14230_v6  ;;  %v6240_v45 = vpop.f32.mrb[107].mxu0  ;;  %6961 = vmatprep.subr.bf16.mxu1 %v14098_v15  ;;  %7004 = vmatprep.subr.bf16.mxu0 %v14100_v8 }
 0xafe   : > { %v6241_v53 = vadd.f32 %v6240_v45, %v14236_v23 }
 0xaff   : > { %v14262_v40 = vpack.c.bf16 %v6239_v36, %v6235_v18 }
 0xb00   : > { %v14264_v57 = vpack.c.bf16 %v6241_v53, %v6237_v62  ;;  %6962 = vmatpush1.bf16.msra.mxu1 %v14103_v33  ;;  %7005 = vmatpush1.bf16.msra.mxu0 %v14105_v44 }
 0xb01   : > { %6963 = vmatprep.subr.bf16.mxu1 %v14110_v0  ;;  %7006 = vmatprep.subr.bf16.mxu0 %v14117_v1 }
 0xb02   : > { %v6244_v60 = vpop.f32.mrb[108].mxu0 }
 0xb03   : > { %v6246_v16 = vpop.f32.mrb[109].mxu0  ;;  %v6245_v7 = vadd.f32 %v6244_v60, %v14230_v6 }
 0xb04   : > { %v6248_v52 = vpop.f32.mrb[110].mxu0  ;;  %6964 = vmatpush1.bf16.msra.mxu1 %v14115_v17  ;;  %7007 = vmatpush1.bf16.msra.mxu0 %v14112_v12  ;;  %v6247_v51 = vadd.f32 %v6246_v16, %v14236_v23 }
 0xb05   : > { %v6249_v55 = vadd.f32 %v6248_v52, %v14230_v6  ;;  %v6250_v37 = vpop.f32.mrb[111].mxu0  ;;  %7303 = vmatprep.subr.bf16.mxu1 %v14024_v41 }
 0xb06   : > { %v6251_v56 = vadd.f32 %v6250_v37, %v14236_v23 }
 0xb07   : > { %v14277_v20 = vpack.c.bf16 %v6249_v55, %v6245_v7 }
 0xb08   : > { %v14279_v35 = vpack.c.bf16 %v6251_v56, %v6247_v51 }
 0xb0a   : > { %v6254_v18 = vpop.f32.mrb[112].mxu0 }
 0xb0b   : > { %v6256_v36 = vpop.f32.mrb[113].mxu0  ;;  %v6255_v62 = vadd.f32 %v6254_v18, %v14230_v6 }
 0xb0c   : > { %v6258_v45 = vpop.f32.mrb[114].mxu0  ;;  %v6257_v52 = vadd.f32 %v6256_v36, %v14236_v23 }
 0xb0d   : > { %v6259_v53 = vadd.f32 %v6258_v45, %v14230_v6  ;;  %v6260_v60 = vpop.f32.mrb[115].mxu0 }
 0xb0e   : > { %v6261_v41 = vadd.f32 %v6260_v60, %v14236_v23 }
 0xb0f   : > { %v14285_v34 = vpack.c.bf16 %v6259_v53, %v6255_v62 }
 0xb10   : > { %v14287_v16 = vpack.c.bf16 %v6261_v41, %v6257_v52 }
 0xb12   : > { %15248 = vst [vmem:[#allocation44_spill] sm:$0xff] %v14287_v16  ;;  %v6264_v7 = vpop.f32.mrb[116].mxu0 }
 0xb13   : > { %v6266_v55 = vpop.f32.mrb[117].mxu0  ;;  %v6265_v51 = vadd.f32 %v6264_v7, %v14230_v6 }
 0xb14   : > { %v6268_v37 = vpop.f32.mrb[118].mxu0  ;;  %v6267_v18 = vadd.f32 %v6266_v55, %v14236_v23 }
 0xb15   : > { %v6269_v56 = vadd.f32 %v6268_v37, %v14230_v6  ;;  %v6270_v39 = vpop.f32.mrb[119].mxu0 }
 0xb16   : > { %v6271_v45 = vadd.f32 %v6270_v39, %v14236_v23 }
 0xb17   : > { %v14293_v21 = vpack.c.bf16 %v6269_v56, %v6265_v51 }
 0xb18   : > { %v14295_v36 = vpack.c.bf16 %v6271_v45, %v6267_v18 }
 0xb19   : > { %15249 = vst [vmem:[#allocation49_spill] sm:$0xff] %v14293_v21 }
 0xb1a   : > { %15250 = vst [vmem:[#allocation45_spill] sm:$0xff] %v14295_v36  ;;  %v6274_v62 = vpop.f32.mrb[120].mxu0 }
 0xb1b   : > { %v6276_v53 = vpop.f32.mrb[121].mxu0  ;;  %v6275_v52 = vadd.f32 %v6274_v62, %v14230_v6 }
 0xb1c   : > { %v6278_v60 = vpop.f32.mrb[122].mxu0  ;;  %v6277_v7 = vadd.f32 %v6276_v53, %v14236_v23 }
 0xb1d   : > { %v6279_v41 = vadd.f32 %v6278_v60, %v14230_v6  ;;  %v6280_v10 = vpop.f32.mrb[123].mxu0 }
 0xb1e   : > { %v6281_v37 = vadd.f32 %v6280_v10, %v14236_v23 }
 0xb1f   : > { %v14301_v5 = vpack.c.bf16 %v6279_v41, %v6275_v52 }
 0xb20   : > { %v14303_v55 = vpack.c.bf16 %v6281_v37, %v6277_v7 }
 0xb21   : > { %15251 = vst [vmem:[#allocation50_spill] sm:$0xff] %v14301_v5 }
 0xb22   : > { %15252 = vst [vmem:[#allocation33_spill] sm:$0xff] %v14303_v55  ;;  %v6284_v39 = vpop.f32.mrb[124].mxu0 }
 0xb23   : > { %v6286_v51 = vpop.f32.mrb[125].mxu0  ;;  %v6285_v18 = vadd.f32 %v6284_v39, %v14230_v6 }
 0xb24   : > { %v6288_v56 = vpop.f32.mrb[126].mxu0  ;;  %v6287_v62 = vadd.f32 %v6286_v51, %v14236_v23 }
 0xb25   : > { %v6289_v45 = vadd.f32 %v6288_v56, %v14230_v6  ;;  %v6290_v22 = vpop.f32.mrb[127].mxu0 }
 0xb26   : > { %v6291_v60 = vadd.f32 %v6290_v22, %v14236_v23 }
 0xb27   : > { %v14309_v36 = vpack.c.bf16 %v6289_v45, %v6285_v18 }
 0xb28   : > { %v14311_v53 = vpack.c.bf16 %v6291_v60, %v6287_v62 }
 0xb29   : > { %15253 = vst [vmem:[#allocation51_spill] sm:$0xff] %v14309_v36 }
 0xb2a   : > { %15254 = vst [vmem:[#allocation46_spill] sm:$0xff] %v14311_v53  ;;  %v6294_v10 = vpop.f32.mrb[128].mxu0 }
 0xb2b   : > { %v6296_v52 = vpop.f32.mrb[129].mxu0  ;;  %v6295_v7 = vadd.f32 %v6294_v10, %v14230_v6 }
 0xb2c   : > { %v6298_v41 = vpop.f32.mrb[130].mxu0  ;;  %v6297_v39 = vadd.f32 %v6296_v52, %v14236_v23 }
 0xb2d   : > { %v6299_v37 = vadd.f32 %v6298_v41, %v14230_v6  ;;  %v6300_v55 = vpop.f32.mrb[131].mxu0 }
 0xb2e   : > { %v6301_v56 = vadd.f32 %v6300_v55, %v14236_v23 }
 0xb2f   : > { %v14317_v5 = vpack.c.bf16 %v6299_v37, %v6295_v7 }
 0xb30   : > { %v14319_v51 = vpack.c.bf16 %v6301_v56, %v6297_v39 }
 0xb31   : > { %15255 = vst [vmem:[#allocation52_spill] sm:$0xff] %v14317_v5 }
 0xb32   : > { %15256 = vst [vmem:[#allocation47_spill] sm:$0xff] %v14319_v51 }
 0xbb2   : > { %v6181_v22 = vpop.f32.mrb[88].mxu1  ;;  %v6304_v18 = vpop.f32.mrb[132].mxu0 }
 0xbb3   : > { %v6183_v45 = vpop.f32.mrb[89].mxu1  ;;  %v6306_v62 = vpop.f32.mrb[133].mxu0  ;;  %v6182_v36 = vadd.f32 %v6181_v22, %v14140_v19  ;;  %v6305_v10 = vadd.f32 %v6304_v18, %v14230_v6 }
 0xbb4   : > { %v6185_v60 = vpop.f32.mrb[90].mxu1  ;;  %v6308_v53 = vpop.f32.mrb[134].mxu0  ;;  %v6184_v7 = vadd.f32 %v6183_v45, %v14145_v27  ;;  %v6307_v37 = vadd.f32 %v6306_v62, %v14236_v23  ;;  %v6396_v62 = vunpack.c.l.bf16 %v14160_v43 }
 0xbb5   : > { %v6186_v41 = vadd.f32 %v6185_v60, %v14140_v19  ;;  %v6309_v52 = vadd.f32 %v6308_v53, %v14230_v6  ;;  %v6187_v50 = vpop.f32.mrb[91].mxu1  ;;  %v6310_v55 = vpop.f32.mrb[135].mxu0  ;;  %v6395_v19 = vunpack.c.l.bf16 %v14156_v46  ;;  %v6397_v6 = vunpack.c.l.bf16 %v14246_v63 }
 0xbb6   : > { %v6188_v39 = vadd.f32 %v6187_v50, %v14145_v27  ;;  %v6311_v56 = vadd.f32 %v6310_v55, %v14236_v23  ;;  %v6398_v27 = vunpack.c.l.bf16 %v14248_v59 }
 0xbb7   : > { %v14329_v51 = vpack.c.bf16 %v6186_v41, %v6182_v36  ;;  %v14331_v5 = vpack.c.bf16 %v6309_v52, %v6305_v10  ;;  %v6399_v10 = vunpack.c.h.bf16 %v14156_v46  ;;  %v6401_v41 = vunpack.c.h.bf16 %v14246_v63 }
 0xbb8   : > { %v14333_v22 = vpack.c.bf16 %v6188_v39, %v6184_v7  ;;  %v14335_v18 = vpack.c.bf16 %v6311_v56, %v6307_v37  ;;  %v6400_v39 = vunpack.c.h.bf16 %v14160_v43  ;;  %v6402_v56 = vunpack.c.h.bf16 %v14248_v59 }
 0xbb9   : > { %15257 = vst [vmem:[#allocation53_spill] sm:$0xff] %v14329_v51  ;;  %15258 = vst [vmem:[#allocation32_spill] sm:$0xff] %v14331_v5 }
 0xbba   : > { %15259 = vst [vmem:[#allocation54_spill] sm:$0xff] %v14333_v22  ;;  %15260 = vst [vmem:[#allocation39_spill] sm:$0xff] %v14335_v18  ;;  %v6629_v53 = vpop.f32.mrb[92].mxu1  ;;  %v6672_v45 = vpop.f32.mrb[136].mxu0 }
 0xbbb   : > { %v6681_v50 = vadd.f32 %v6629_v53, %v6395_v19  ;;  %v6683_v23 = vadd.f32 %v6672_v45, %v6397_v6  ;;  %v6631_v36 = vpop.f32.mrb[93].mxu1  ;;  %v6674_v60 = vpop.f32.mrb[137].mxu0 }
 0xbbc   : > { %v6682_v52 = vadd.f32 %v6631_v36, %v6396_v62  ;;  %v6684_v55 = vadd.f32 %v6674_v60, %v6398_v27  ;;  %v6633_v7 = vpop.f32.mrb[94].mxu1  ;;  %v6676_v37 = vpop.f32.mrb[138].mxu0 }
 0xbbd   : > { %v10729_v18 = vmul.f32 -1.442695, %v6681_v50  ;;  %v6685_v22 = vadd.f32 %v6633_v7, %v6399_v10  ;;  %v6687_v5 = vadd.f32 %v6676_v37, %v6401_v41  ;;  %v6635_v51 = vpop.f32.mrb[95].mxu1  ;;  %v6678_v19 = vpop.f32.mrb[139].mxu0 }
 0xbbe   : > { %v10731_v6 = vmul.f32 -1.442695, %v6682_v52  ;;  %v6686_v53 = vadd.f32 %v6635_v51, %v6400_v39  ;;  %v6688_v45 = vadd.f32 %v6678_v19, %v6402_v56  ;;  %v10733_v62 = vmul.f32 -1.442695, %v6684_v55 }
 0xbbf   : > { %12088 = vpow2.f32 %v10729_v18  ;;  %v10730_v46 = vmul.f32 -1.442695, %v6685_v22 }
 0xbc0   : > { %12090 = vpow2.f32 %v10731_v6  ;;  %v10732_v63 = vmul.f32 -1.442695, %v6686_v53  ;;  %v10734_v59 = vmul.f32 -1.442695, %v6688_v45 }
 0xbc1   : > { %12092 = vpow2.f32 %v10730_v46 }
 0xbc2   : > { %12094 = vpow2.f32 %v10732_v63 }
 0xbc3   : > { %12096 = vtanh.f32 %v6683_v23 }
 0xbc4   : > { %12098 = vpow2.f32 %v10733_v62 }
 0xbc5   : > { %12100 = vtanh.f32 %v6687_v5 }
 0xbc9   : > { %v12089_v27 = vpop.eup %12088 }
 0xbca   : > { %v12091_v43 = vpop.eup %12090  ;;  %v6695_v36 = vadd.f32 1.0, %v12089_v27 }
 0xbcb   : > { %v6707_v50 = vadd.f32 1.0, %v12091_v43  ;;  %v12093_v60 = vpop.eup %12092 }
 0xbcc   : > { %12102 = vrcp.f32 %v6695_v36  ;;  %v6696_v51 = vadd.f32 1.0, %v12093_v60  ;;  %v12095_v10 = vpop.eup %12094 }
 0xbcd   : > { %12104 = vrcp.f32 %v6707_v50  ;;  %v6708_v22 = vadd.f32 1.0, %v12095_v10  ;;  %v12097_v18 = vpop.eup %12096  ;;  %v6754_v10 = vunpack.c.h.bf16 %v14176_v28 }
 0xbce   : > { %12106 = vpow2.f32 %v10734_v59  ;;  %v12099_v41 = vpop.eup %12098 }
 0xbcf   : > { %12108 = vrcp.f32 %v6696_v51  ;;  %v12101_v52 = vpop.eup %12100  ;;  %v6721_v19 = vadd.f32 1.0, %v12099_v41 }
 0xbd0   : > { %12110 = vrcp.f32 %v6708_v22  ;;  %v6756_v22 = vunpack.c.h.bf16 %v14264_v57 }
 0xbd1   : > { %12112 = vrcp.f32 %v6721_v19 }
 0xbd6   : > { %v12103_v55 = vpop.eup %12102 }
 0xbd7   : > { %v12105_v23 = vpop.eup %12104  ;;  %v6729_v7 = vmul.f32 %v12103_v55, %v12097_v18 }
 0xbd8   : > { %v12107_v37 = vpop.eup %12106  ;;  %v6727_v39 = vmul.f32 0.0, %v12105_v23 }
 0xbd9   : > { %v12109_v56 = vpop.eup %12108  ;;  %v6722_v45 = vadd.f32 1.0, %v12107_v37 }
 0xbda   : > { %v14345_v5 = vadd.f32 %v6729_v7, %v6727_v39  ;;  %v6730_v6 = vmul.f32 %v12109_v56, %v12101_v52  ;;  %v12111_v53 = vpop.eup %12110 }
 0xbdb   : > { %v6728_v46 = vmul.f32 0.0, %v12111_v53  ;;  %v12113_v62 = vpop.eup %12112 }
 0xbdc   : > { %12114 = vtanh.f32 %v14345_v5 }
 0xbdd   : > { %v14348_v63 = vadd.f32 %v6730_v6, %v6728_v46  ;;  %12116 = vrcp.f32 %v6722_v45 }
 0xbdf   : > { %12118 = vtanh.f32 %v14348_v63 }
 0xbe6   : > { %v12115_v27 = vpop.eup %12114 }
 0xbe7   : > { %v12117_v43 = vpop.eup %12116  ;;  %v6735_v59 = vmul.f32 %v12115_v27, %v12113_v62 }
 0xbe9   : > { %v12119_v36 = vpop.eup %12118 }
 0xbea   : > { %v6736_v50 = vmul.f32 %v12119_v36, %v12117_v43 }
 0xbec   : > { %v14351_v60 = vpack.c.bf16 %v6736_v50, %v6735_v59 }
 0xbee   : > { %15261 = vst [vmem:[#allocation34_spill] sm:$0xff] %v14351_v60  ;;  %6982 = vmatmul.mubr.bf16.vlgmr.msra.gmra.mrb[96].mxu1 %v14351_v60  ;;  %7025 = vmatmul.mubr.bf16.vlgmr.msra.gmra.mrb[140].mxu0 %v14351_v60 }
 0xbef   : > { %7304 = vmatpush1.bf16.msra.mxu1 %v14029_v49  ;;  %7335 = vmatprep.mubr.bf16.mxu1 %v15175_v3  ;;  %v14372_v49 = vld [vmem:[#allocation14 + $0xc] ss:$16 sps:$4 sm:$0xff]  }
 0xbf0   : > { %7305 = vmatprep.subr.bf16.mxu1 %v14037_v13  ;;  %7378 = vmatprep.mubr.bf16.mxu0 %v15175_v3  ;;  %v14374_v13 = vld [vmem:[#allocation14 + $0x8] ss:$16 sps:$4 sm:$0xff]  }
 0xbf1   : > { %7346 = vmatprep.subr.bf16.mxu0 %v14372_v49 }
 0xbf2   : > { %7347 = vmatpush1.bf16.msra.mxu0 %v14374_v13 }
 0xbf3   : > { %7306 = vmatpush1.bf16.msra.mxu1 %v14044_v38  ;;  %v14378_v38 = vld [vmem:[#allocation14 + $0x2c] ss:$16 sps:$4 sm:$0xff]  }
 0xbf4   : > { %7307 = vmatprep.subr.bf16.mxu1 %v14054_v2  ;;  %v14380_v2 = vld [vmem:[#allocation14 + $0x28] ss:$16 sps:$4 sm:$0xff]   ;;  %7348 = vmatprep.subr.bf16.mxu0 %v14378_v38 }
 0xbf6   : > { %7349 = vmatpush1.bf16.msra.mxu0 %v14380_v2 }
 0xbf7   : > { %7308 = vmatpush1.bf16.msra.mxu1 %v14058_v58  ;;  %v14384_v58 = vld [vmem:[#allocation14 + $0x4c] ss:$16 sps:$4 sm:$0xff]  }
 0xbf8   : > { %7309 = vmatprep.subr.bf16.mxu1 %v14067_v30  ;;  %v14386_v30 = vld [vmem:[#allocation14 + $0x48] ss:$16 sps:$4 sm:$0xff]   ;;  %7350 = vmatprep.subr.bf16.mxu0 %v14384_v58 }
 0xbfa   : > { %7351 = vmatpush1.bf16.msra.mxu0 %v14386_v30 }
 0xbfb   : > { %7310 = vmatpush1.bf16.msra.mxu1 %v14070_v25  ;;  %v14390_v25 = vld [vmem:[#allocation14 + $0x6c] ss:$16 sps:$4 sm:$0xff]  }
 0xbfc   : > { %7311 = vmatprep.subr.bf16.mxu1 %v14078_v11  ;;  %v14392_v11 = vld [vmem:[#allocation14 + $0x68] ss:$16 sps:$4 sm:$0xff]   ;;  %7352 = vmatprep.subr.bf16.mxu0 %v14390_v25 }
 0xbfe   : > { %7353 = vmatpush1.bf16.msra.mxu0 %v14392_v11 }
 0xbff   : > { %7312 = vmatpush1.bf16.msra.mxu1 %v14081_v42  ;;  %7354 = vmatprep.subr.bf16.mxu0 %v14065_v32  ;;  %v6749_v42 = vunpack.c.l.bf16 %v14172_v29  ;;  %v6751_v32 = vunpack.c.l.bf16 %v14262_v40 }
 0xc00   : > { %7313 = vmatprep.subr.bf16.mxu1 %v14086_v26 }
 0xc02   : > { %7355 = vmatpush1.bf16.msra.mxu0 %v14074_v31 }
 0xc03   : > { %7314 = vmatpush1.bf16.msra.mxu1 %v14091_v47  ;;  %7356 = vmatprep.subr.bf16.mxu0 %v14093_v9  ;;  %v6750_v47 = vunpack.c.l.bf16 %v14176_v28 }
 0xc04   : > { %7315 = vmatprep.subr.bf16.mxu1 %v14098_v15 }
 0xc06   : > { %7357 = vmatpush1.bf16.msra.mxu0 %v14088_v61  ;;  %v6752_v61 = vunpack.c.l.bf16 %v14264_v57 }
 0xc07   : > { %7316 = vmatpush1.bf16.msra.mxu1 %v14103_v33  ;;  %7358 = vmatprep.subr.bf16.mxu0 %v14100_v8 }
 0xc08   : > { %7317 = vmatprep.subr.bf16.mxu1 %v14110_v0  ;;  %v6755_v0 = vunpack.c.h.bf16 %v14262_v40 }
 0xc0a   : > { %7359 = vmatpush1.bf16.msra.mxu0 %v14105_v44  ;;  %v6753_v44 = vunpack.c.h.bf16 %v14172_v29 }
 0xc0b   : > { %7318 = vmatpush1.bf16.msra.mxu1 %v14115_v17  ;;  %7360 = vmatprep.subr.bf16.mxu0 %v14117_v1 }
 0xc0e   : > { %7361 = vmatpush1.bf16.msra.mxu0 %v14112_v12 }
 0xc0f   : > { %7700 = vmatprep.subr.bf16.mxu0 %v14372_v49 }
 0xcc1   : > { %v6983_v26 = vpop.f32.mrb[96].mxu1  ;;  %v7026_v31 = vpop.f32.mrb[140].mxu0 }
 0xcc2   : > { %v7035_v9 = vadd.f32 %v6983_v26, %v6749_v42  ;;  %v7037_v15 = vadd.f32 %v7026_v31, %v6751_v32  ;;  %v6985_v8 = vpop.f32.mrb[97].mxu1  ;;  %v7028_v33 = vpop.f32.mrb[141].mxu0 }
 0xcc3   : > { %v7036_v12 = vadd.f32 %v6985_v8, %v6750_v47  ;;  %v7038_v17 = vadd.f32 %v7028_v33, %v6752_v61  ;;  %v6987_v1 = vpop.f32.mrb[98].mxu1  ;;  %v7030_v51 = vpop.f32.mrb[142].mxu0 }
 0xcc4   : > { %v10767_v18 = vmul.f32 -1.442695, %v7035_v9  ;;  %v7039_v41 = vadd.f32 %v6987_v1, %v6753_v44  ;;  %v7041_v52 = vadd.f32 %v7030_v51, %v6755_v0  ;;  %v6989_v55 = vpop.f32.mrb[99].mxu1  ;;  %v7032_v23 = vpop.f32.mrb[143].mxu0 }
 0xcc5   : > { %v10769_v7 = vmul.f32 -1.442695, %v7036_v12  ;;  %v7040_v37 = vadd.f32 %v6989_v55, %v6754_v10  ;;  %v7042_v39 = vadd.f32 %v7032_v23, %v6756_v22  ;;  %v10771_v56 = vmul.f32 -1.442695, %v7038_v17  ;;  %v14446_v55 = vld [vmem:[#allocation14 + $0x44] ss:$16 sps:$4 sm:$0xff]  }
 0xcc6   : > { %12120 = vpow2.f32 %v10767_v18  ;;  %v10768_v29 = vmul.f32 -1.442695, %v7039_v41  ;;  %v14436_v18 = vld [vmem:[#allocation14] ss:$16 sps:$4 sm:$0xff]   ;;  %v14440_v41 = vld [vmem:[#allocation14 + $0x24] ss:$16 sps:$4 sm:$0xff]  }
 0xcc7   : > { %12122 = vpow2.f32 %v10769_v7  ;;  %v10770_v40 = vmul.f32 -1.442695, %v7040_v37  ;;  %v10772_v57 = vmul.f32 -1.442695, %v7042_v39  ;;  %v14448_v23 = vld [vmem:[#allocation14 + $0x40] ss:$16 sps:$4 sm:$0xff]  }
 0xcc8   : > { %12124 = vpow2.f32 %v10768_v29  ;;  %v14452_v7 = vld [vmem:[#allocation14 + $0x64] ss:$16 sps:$4 sm:$0xff]   ;;  %v14454_v37 = vld [vmem:[#allocation14 + $0x60] ss:$16 sps:$4 sm:$0xff]   ;;  %v14460_v29 = vld [vmem:[#allocation14 + $0x8c] ss:$16 sps:$4 sm:$0xff]  }
 0xcc9   : > { %12126 = vpow2.f32 %v10770_v40  ;;  %v14458_v39 = vld [vmem:[#allocation14 + $0x84] ss:$16 sps:$4 sm:$0xff]   ;;  %v14462_v40 = vld [vmem:[#allocation14 + $0x80] ss:$16 sps:$4 sm:$0xff]  }
 0xcca   : > { %12128 = vtanh.f32 %v7037_v15 }
 0xccb   : > { %12130 = vpow2.f32 %v10771_v56  ;;  %v14464_v56 = vld [vmem:[#allocation14 + $0x88] ss:$16 sps:$4 sm:$0xff]  }
 0xccc   : > { %12132 = vtanh.f32 %v7041_v52  ;;  %v14442_v52 = vld [vmem:[#allocation14 + $0x20] ss:$16 sps:$4 sm:$0xff]  }
 0xcd0   : > { %v12121_v19 = vpop.eup %12120 }
 0xcd1   : > { %v12123_v28 = vpop.eup %12122  ;;  %v7049_v6 = vadd.f32 1.0, %v12121_v19  ;;  %v14468_v19 = vld [vmem:[#allocation14 + $0xa4] ss:$16 sps:$4 sm:$0xff]  }
 0xcd2   : > { %v7061_v53 = vadd.f32 1.0, %v12123_v28  ;;  %v12125_v45 = vpop.eup %12124  ;;  %v14470_v28 = vld [vmem:[#allocation14 + $0xac] ss:$16 sps:$4 sm:$0xff]  }
 0xcd3   : > { %12134 = vrcp.f32 %v7049_v6  ;;  %v7050_v46 = vadd.f32 1.0, %v12125_v45  ;;  %v12127_v62 = vpop.eup %12126  ;;  %v14474_v6 = vld [vmem:[#allocation14 + $0xa0] ss:$16 sps:$4 sm:$0xff]   ;;  %v14482_v45 = vld [vmem:[#allocation14 + $0xcc] ss:$16 sps:$4 sm:$0xff]  }
 0xcd4   : > { %12136 = vrcp.f32 %v7061_v53  ;;  %v7062_v27 = vadd.f32 1.0, %v12127_v62  ;;  %v12129_v43 = vpop.eup %12128  ;;  %v14480_v53 = vld [vmem:[#allocation14 + $0xc4] ss:$16 sps:$4 sm:$0xff]   ;;  %v14488_v62 = vld [vmem:[#allocation14 + $0xc8] ss:$16 sps:$4 sm:$0xff]  }
 0xcd5   : > { %12138 = vpow2.f32 %v10772_v57  ;;  %v12131_v36 = vpop.eup %12130  ;;  %v14476_v57 = vld [vmem:[#allocation14 + $0xa8] ss:$16 sps:$4 sm:$0xff]  }
 0xcd6   : > { %12140 = vrcp.f32 %v7050_v46  ;;  %v12133_v59 = vpop.eup %12132  ;;  %v7075_v61 = vadd.f32 1.0, %v12131_v36  ;;  %v14486_v46 = vld [vmem:[#allocation14 + $0xc0] ss:$16 sps:$4 sm:$0xff]  }
 0xcd7   : > { %12142 = vrcp.f32 %v7062_v27  ;;  %v14492_v27 = vld [vmem:[#allocation14 + $0xe4] ss:$16 sps:$4 sm:$0xff]   ;;  %v14498_v36 = vld [vmem:[#allocation14 + $0xe0] ss:$16 sps:$4 sm:$0xff]  }
 0xcd8   : > { %12144 = vrcp.f32 %v7075_v61 }
 0xcdd   : > { %v12135_v50 = vpop.eup %12134 }
 0xcde   : > { %v12137_v42 = vpop.eup %12136  ;;  %v7083_v32 = vmul.f32 %v12135_v50, %v12129_v43  ;;  %v14494_v43 = vld [vmem:[#allocation14 + $0xec] ss:$16 sps:$4 sm:$0xff]   ;;  %v7103_v50 = vunpack.c.l.bf16 %v14188_v48 }
 0xcdf   : > { %v12139_v26 = vpop.eup %12138  ;;  %v7081_v31 = vmul.f32 %v12137_v42, %v14345_v5  ;;  %v7105_v42 = vunpack.c.l.bf16 %v14277_v20 }
 0xce0   : > { %v12141_v47 = vpop.eup %12140  ;;  %v7076_v33 = vadd.f32 1.0, %v12139_v26 }
 0xce1   : > { %v14414_v9 = vadd.f32 %v7083_v32, %v7081_v31  ;;  %v7084_v15 = vmul.f32 %v12141_v47, %v12133_v59  ;;  %v12143_v8 = vpop.eup %12142  ;;  %v14500_v59 = vld [vmem:[#allocation14 + $0xe8] ss:$16 sps:$4 sm:$0xff]   ;;  %v7104_v31 = vunpack.c.l.bf16 %v14192_v54  ;;  %v7106_v47 = vunpack.c.l.bf16 %v14279_v35 }
 0xce2   : > { %v7082_v44 = vmul.f32 %v12143_v8, %v14348_v63  ;;  %v12145_v12 = vpop.eup %12144  ;;  %v14434_v63 = vld [vmem:[#allocation14 + $0x4] ss:$16 sps:$4 sm:$0xff]  }
 0xce3   : > { %12146 = vtanh.f32 %v14414_v9  ;;  %7657 = vmatprep.subr.bf16.mxu1 %v14434_v63 }
 0xce4   : > { %v14418_v0 = vadd.f32 %v7084_v15, %v7082_v44  ;;  %12148 = vrcp.f32 %v7076_v33  ;;  %v7107_v44 = vunpack.c.h.bf16 %v14188_v48 }
 0xce6   : > { %12150 = vtanh.f32 %v14418_v0 }
 0xced   : > { %v12147_v17 = vpop.eup %12146 }
 0xcee   : > { %v12149_v5 = vpop.eup %12148  ;;  %v7089_v51 = vmul.f32 %v12147_v17, %v12145_v12  ;;  %v7109_v12 = vunpack.c.h.bf16 %v14277_v20 }
 0xcf0   : > { %v12151_v1 = vpop.eup %12150 }
 0xcf1   : > { %v7090_v10 = vmul.f32 %v12151_v1, %v12149_v5 }
 0xcf3   : > { %v14421_v22 = vpack.c.bf16 %v7090_v10, %v7089_v51  ;;  %v7108_v10 = vunpack.c.h.bf16 %v14192_v54 }
 0xcf5   : > { %15262 = vst [vmem:[#allocation55_spill] sm:$0xff] %v14421_v22  ;;  %7336 = vmatmul.mubr.bf16.vlgmr.msra.gmra.mrb[100].mxu1 %v14421_v22  ;;  %7379 = vmatmul.mubr.bf16.vlgmr.msra.gmra.mrb[144].mxu0 %v14421_v22  ;;  %v7110_v22 = vunpack.c.h.bf16 %v14279_v35 }
 0xcf6   : > { %7701 = vmatpush1.bf16.msra.mxu0 %v14374_v13  ;;  %7689 = vmatprep.mubr.bf16.mxu1 %v15175_v3 }
 0xcf7   : > { %7702 = vmatprep.subr.bf16.mxu0 %v14378_v38  ;;  %7732 = vmatprep.mubr.bf16.mxu0 %v15175_v3 }
 0xcf8   : > { %7658 = vmatpush1.bf16.msra.mxu1 %v14436_v18 }
 0xcf9   : > { %7659 = vmatprep.subr.bf16.mxu1 %v14440_v41 }
 0xcfa   : > { %7703 = vmatpush1.bf16.msra.mxu0 %v14380_v2 }
 0xcfb   : > { %7704 = vmatprep.subr.bf16.mxu0 %v14384_v58 }
 0xcfc   : > { %7660 = vmatpush1.bf16.msra.mxu1 %v14442_v52 }
 0xcfd   : > { %7661 = vmatprep.subr.bf16.mxu1 %v14446_v55 }
 0xcfe   : > { %7705 = vmatpush1.bf16.msra.mxu0 %v14386_v30 }
 0xcff   : > { %7706 = vmatprep.subr.bf16.mxu0 %v14390_v25 }
 0xd00   : > { %7662 = vmatpush1.bf16.msra.mxu1 %v14448_v23 }
 0xd01   : > { %7663 = vmatprep.subr.bf16.mxu1 %v14452_v7 }
 0xd02   : > { %7707 = vmatpush1.bf16.msra.mxu0 %v14392_v11 }
 0xd03   : > { %7708 = vmatprep.subr.bf16.mxu0 %v14460_v29 }
 0xd04   : > { %7664 = vmatpush1.bf16.msra.mxu1 %v14454_v37 }
 0xd05   : > { %7665 = vmatprep.subr.bf16.mxu1 %v14458_v39 }
 0xd06   : > { %7709 = vmatpush1.bf16.msra.mxu0 %v14464_v56 }
 0xd07   : > { %7710 = vmatprep.subr.bf16.mxu0 %v14470_v28 }
 0xd08   : > { %7666 = vmatpush1.bf16.msra.mxu1 %v14462_v40 }
 0xd09   : > { %7667 = vmatprep.subr.bf16.mxu1 %v14468_v19 }
 0xd0a   : > { %7711 = vmatpush1.bf16.msra.mxu0 %v14476_v57 }
 0xd0b   : > { %7712 = vmatprep.subr.bf16.mxu0 %v14482_v45 }
 0xd0c   : > { %7668 = vmatpush1.bf16.msra.mxu1 %v14474_v6 }
 0xd0d   : > { %7669 = vmatprep.subr.bf16.mxu1 %v14480_v53 }
 0xd0e   : > { %7713 = vmatpush1.bf16.msra.mxu0 %v14488_v62 }
 0xd0f   : > { %7714 = vmatprep.subr.bf16.mxu0 %v14494_v43 }
 0xd10   : > { %7670 = vmatpush1.bf16.msra.mxu1 %v14486_v46 }
 0xd11   : > { %7671 = vmatprep.subr.bf16.mxu1 %v14492_v27 }
 0xd12   : > { %7715 = vmatpush1.bf16.msra.mxu0 %v14500_v59 }
 0xd13   : > { %8054 = vmatprep.subr.bf16.mxu0 %v14372_v49 }
 0xd14   : > { %7672 = vmatpush1.bf16.msra.mxu1 %v14498_v36 }
 0xd15   : > { %8011 = vmatprep.subr.bf16.mxu1 %v14434_v63 }
 0xdc8   : > { %v7337_v32 = vpop.f32.mrb[100].mxu1  ;;  %v7380_v26 = vpop.f32.mrb[144].mxu0 }
 0xdc9   : > { %v7389_v61 = vadd.f32 %v7337_v32, %v7103_v50  ;;  %v7391_v15 = vadd.f32 %v7380_v26, %v7105_v42  ;;  %v7339_v8 = vpop.f32.mrb[101].mxu1  ;;  %v7382_v33 = vpop.f32.mrb[145].mxu0 }
 0xdca   : > { %v7390_v17 = vadd.f32 %v7339_v8, %v7104_v31  ;;  %v7392_v5 = vadd.f32 %v7382_v33, %v7106_v47  ;;  %v7341_v1 = vpop.f32.mrb[102].mxu1  ;;  %v7384_v51 = vpop.f32.mrb[146].mxu0 }
 0xdcb   : > { %v10805_v60 = vmul.f32 -1.442695, %v7389_v61  ;;  %v7393_v21 = vadd.f32 %v7341_v1, %v7107_v44  ;;  %v7395_v4 = vadd.f32 %v7384_v51, %v7109_v12  ;;  %v7343_v16 = vpop.f32.mrb[103].mxu1  ;;  %v7386_v50 = vpop.f32.mrb[147].mxu0 }
 0xdcc   : > { %v10807_v42 = vmul.f32 -1.442695, %v7390_v17  ;;  %v7394_v32 = vadd.f32 %v7343_v16, %v7108_v10  ;;  %v7396_v26 = vadd.f32 %v7386_v50, %v7110_v22  ;;  %v10809_v31 = vmul.f32 -1.442695, %v7392_v5 }
 0xdcd   : > { %12152 = vpow2.f32 %v10805_v60  ;;  %v10806_v48 = vmul.f32 -1.442695, %v7393_v21 }
 0xdce   : > { %12154 = vpow2.f32 %v10807_v42  ;;  %v10808_v20 = vmul.f32 -1.442695, %v7394_v32  ;;  %v10810_v35 = vmul.f32 -1.442695, %v7396_v26 }
 0xdcf   : > { %12156 = vpow2.f32 %v10806_v48 }
 0xdd0   : > { %12158 = vpow2.f32 %v10808_v20 }
 0xdd1   : > { %12160 = vtanh.f32 %v7391_v15 }
 0xdd2   : > { %12162 = vpow2.f32 %v10809_v31 }
 0xdd3   : > { %12164 = vtanh.f32 %v7395_v4 }
 0xdd7   : > { %v12153_v47 = vpop.eup %12152 }
 0xdd8   : > { %v12155_v54 = vpop.eup %12154  ;;  %v7403_v8 = vadd.f32 1.0, %v12153_v47 }
 0xdd9   : > { %v7415_v61 = vadd.f32 1.0, %v12155_v54  ;;  %v12157_v33 = vpop.eup %12156 }
 0xdda   : > { %12166 = vrcp.f32 %v7403_v8  ;;  %v7404_v16 = vadd.f32 1.0, %v12157_v33  ;;  %v12159_v22 = vpop.eup %12158  ;;  %v7459_v33 = vunpack.c.l.bf16 %v14285_v34 }
 0xddb   : > { %12168 = vrcp.f32 %v7415_v61  ;;  %v7416_v21 = vadd.f32 1.0, %v12159_v22  ;;  %v12161_v60 = vpop.eup %12160 }
 0xddc   : > { %12170 = vpow2.f32 %v10810_v35  ;;  %v12163_v44 = vpop.eup %12162 }
 0xddd   : > { %12172 = vrcp.f32 %v7404_v16  ;;  %v12165_v12 = vpop.eup %12164  ;;  %v7429_v4 = vadd.f32 1.0, %v12163_v44 }
 0xdde   : > { %12174 = vrcp.f32 %v7416_v21  ;;  %v7458_v21 = vunpack.c.l.bf16 %v14206_v24 }
 0xddf   : > { %12176 = vrcp.f32 %v7429_v4 }
 0xde4   : > { %v12167_v17 = vpop.eup %12166 }
 0xde5   : > { %v12169_v15 = vpop.eup %12168  ;;  %v7437_v5 = vmul.f32 %v12167_v17, %v12161_v60  ;;  %v15263_v60 = vld [vmem:[#allocation44_spill] sm:$0xff] }
 0xde6   : > { %v12171_v1 = vpop.eup %12170  ;;  %v7435_v51 = vmul.f32 %v12169_v15, %v14414_v9  ;;  %v7460_v44 = vunpack.c.l.bf16 %v15263_v60 }
 0xde7   : > { %v12173_v10 = vpop.eup %12172  ;;  %v7430_v26 = vadd.f32 1.0, %v12171_v1  ;;  %v7461_v1 = vunpack.c.h.bf16 %v14202_v14 }
 0xde8   : > { %v14517_v50 = vadd.f32 %v7437_v5, %v7435_v51  ;;  %v7438_v42 = vmul.f32 %v12173_v10, %v12165_v12  ;;  %v12175_v32 = vpop.eup %12174  ;;  %v7463_v51 = vunpack.c.h.bf16 %v14285_v34 }
 0xde9   : > { %v7436_v48 = vmul.f32 %v12175_v32, %v14418_v0  ;;  %v12177_v31 = vpop.eup %12176  ;;  %v7457_v0 = vunpack.c.l.bf16 %v14202_v14  ;;  %v7462_v32 = vunpack.c.h.bf16 %v14206_v24 }
 0xdea   : > { %12178 = vtanh.f32 %v14517_v50 }
 0xdeb   : > { %v14521_v20 = vadd.f32 %v7438_v42, %v7436_v48  ;;  %12180 = vrcp.f32 %v7430_v26  ;;  %v7464_v26 = vunpack.c.h.bf16 %v15263_v60 }
 0xded   : > { %12182 = vtanh.f32 %v14521_v20 }
 0xdf4   : > { %v12179_v47 = vpop.eup %12178 }
 0xdf5   : > { %v12181_v9 = vpop.eup %12180  ;;  %v7443_v8 = vmul.f32 %v12179_v47, %v12177_v31 }
 0xdf7   : > { %v12183_v54 = vpop.eup %12182 }
 0xdf8   : > { %v7444_v35 = vmul.f32 %v12183_v54, %v12181_v9 }
 0xdfa   : > { %v14524_v61 = vpack.c.bf16 %v7444_v35, %v7443_v8 }
 0xdfc   : > { %7690 = vmatmul.mubr.bf16.vlgmr.msra.gmra.mrb[104].mxu1 %v14524_v61  ;;  %7733 = vmatmul.mubr.bf16.vlgmr.msra.gmra.mrb[148].mxu0 %v14524_v61 }
 0xdfd   : > { %8012 = vmatpush1.bf16.msra.mxu1 %v14436_v18  ;;  %8055 = vmatpush1.bf16.msra.mxu0 %v14374_v13 }
 0xdfe   : > { %8013 = vmatprep.subr.bf16.mxu1 %v14440_v41  ;;  %8056 = vmatprep.subr.bf16.mxu0 %v14378_v38 }
 0xdff   : > { %8043 = vmatprep.mubr.bf16.mxu1 %v15175_v3  ;;  %8086 = vmatprep.mubr.bf16.mxu0 %v15175_v3 }
 0xe01   : > { %8014 = vmatpush1.bf16.msra.mxu1 %v14442_v52  ;;  %8057 = vmatpush1.bf16.msra.mxu0 %v14380_v2 }
 0xe02   : > { %8015 = vmatprep.subr.bf16.mxu1 %v14446_v55  ;;  %8058 = vmatprep.subr.bf16.mxu0 %v14384_v58 }
 0xe05   : > { %8016 = vmatpush1.bf16.msra.mxu1 %v14448_v23  ;;  %8059 = vmatpush1.bf16.msra.mxu0 %v14386_v30 }
 0xe06   : > { %8017 = vmatprep.subr.bf16.mxu1 %v14452_v7  ;;  %8060 = vmatprep.subr.bf16.mxu0 %v14390_v25 }
 0xe09   : > { %8018 = vmatpush1.bf16.msra.mxu1 %v14454_v37  ;;  %8061 = vmatpush1.bf16.msra.mxu0 %v14392_v11 }
 0xe0a   : > { %8019 = vmatprep.subr.bf16.mxu1 %v14458_v39  ;;  %8062 = vmatprep.subr.bf16.mxu0 %v14460_v29 }
 0xe0d   : > { %8020 = vmatpush1.bf16.msra.mxu1 %v14462_v40  ;;  %8063 = vmatpush1.bf16.msra.mxu0 %v14464_v56 }
 0xe0e   : > { %8021 = vmatprep.subr.bf16.mxu1 %v14468_v19  ;;  %8064 = vmatprep.subr.bf16.mxu0 %v14470_v28 }
 0xe11   : > { %8022 = vmatpush1.bf16.msra.mxu1 %v14474_v6  ;;  %8065 = vmatpush1.bf16.msra.mxu0 %v14476_v57 }
 0xe12   : > { %8023 = vmatprep.subr.bf16.mxu1 %v14480_v53  ;;  %8066 = vmatprep.subr.bf16.mxu0 %v14482_v45 }
 0xe15   : > { %8024 = vmatpush1.bf16.msra.mxu1 %v14486_v46  ;;  %8067 = vmatpush1.bf16.msra.mxu0 %v14488_v62 }
 0xe16   : > { %8025 = vmatprep.subr.bf16.mxu1 %v14492_v27  ;;  %8068 = vmatprep.subr.bf16.mxu0 %v14494_v43 }
 0xe19   : > { %8026 = vmatpush1.bf16.msra.mxu1 %v14498_v36  ;;  %8069 = vmatpush1.bf16.msra.mxu0 %v14500_v59 }
 0xe1a   : > { %8365 = vmatprep.subr.bf16.mxu1 %v14434_v63  ;;  %8408 = vmatprep.subr.bf16.mxu0 %v14372_v49 }
 0xecf   : > { %v7691_v16 = vpop.f32.mrb[104].mxu1  ;;  %v7734_v22 = vpop.f32.mrb[148].mxu0 }
 0xed0   : > { %v7743_v12 = vadd.f32 %v7691_v16, %v7457_v0  ;;  %v7745_v17 = vadd.f32 %v7734_v22, %v7459_v33  ;;  %v7693_v15 = vpop.f32.mrb[105].mxu1  ;;  %v7736_v5 = vpop.f32.mrb[149].mxu0 }
 0xed1   : > { %v7744_v10 = vadd.f32 %v7693_v15, %v7458_v21  ;;  %v7746_v49 = vadd.f32 %v7736_v5, %v7460_v44  ;;  %v7695_v4 = vpop.f32.mrb[106].mxu1  ;;  %v7738_v42 = vpop.f32.mrb[150].mxu0 }
 0xed2   : > { %v10843_v48 = vmul.f32 -1.442695, %v7743_v12  ;;  %v7747_v31 = vadd.f32 %v7695_v4, %v7461_v1  ;;  %v7749_v47 = vadd.f32 %v7738_v42, %v7463_v51  ;;  %v7697_v9 = vpop.f32.mrb[107].mxu1  ;;  %v7740_v54 = vpop.f32.mrb[151].mxu0 }
 0xed3   : > { %v10845_v8 = vmul.f32 -1.442695, %v7744_v10  ;;  %v7748_v35 = vadd.f32 %v7697_v9, %v7462_v32  ;;  %v7750_v0 = vadd.f32 %v7740_v54, %v7464_v26  ;;  %v10847_v33 = vmul.f32 -1.442695, %v7746_v49 }
 0xed4   : > { %12184 = vpow2.f32 %v10843_v48  ;;  %v10844_v14 = vmul.f32 -1.442695, %v7747_v31 }
 0xed5   : > { %12186 = vpow2.f32 %v10845_v8  ;;  %v10846_v34 = vmul.f32 -1.442695, %v7748_v35  ;;  %v10848_v21 = vmul.f32 -1.442695, %v7750_v0 }
 0xed6   : > { %12188 = vpow2.f32 %v10844_v14 }
 0xed7   : > { %12190 = vpow2.f32 %v10846_v34 }
 0xed8   : > { %12192 = vtanh.f32 %v7745_v17 }
 0xed9   : > { %12194 = vpow2.f32 %v10847_v33 }
 0xeda   : > { %12196 = vtanh.f32 %v7749_v47 }
 0xede   : > { %v12185_v16 = vpop.eup %12184 }
 0xedf   : > { %v12187_v24 = vpop.eup %12186  ;;  %v7757_v22 = vadd.f32 1.0, %v12185_v16 }
 0xee0   : > { %v7769_v60 = vadd.f32 1.0, %v12187_v24  ;;  %v12189_v44 = vpop.eup %12188 }
 0xee1   : > { %12198 = vrcp.f32 %v7757_v22  ;;  %v7758_v12 = vadd.f32 1.0, %v12189_v44  ;;  %v12191_v15 = vpop.eup %12190  ;;  %v15267_v22 = vld [vmem:[#allocation45_spill] sm:$0xff] }
 0xee2   : > { %12200 = vrcp.f32 %v7769_v60  ;;  %v7770_v5 = vadd.f32 1.0, %v12191_v15  ;;  %v12193_v1 = vpop.eup %12192 }
 0xee3   : > { %12202 = vpow2.f32 %v10848_v21  ;;  %v12195_v51 = vpop.eup %12194  ;;  %v7814_v21 = vunpack.c.l.bf16 %v15267_v22 }
 0xee4   : > { %12204 = vrcp.f32 %v7758_v12  ;;  %v12197_v10 = vpop.eup %12196  ;;  %v7783_v48 = vadd.f32 1.0, %v12195_v51 }
 0xee5   : > { %12206 = vrcp.f32 %v7770_v5 }
 0xee6   : > { %12208 = vrcp.f32 %v7783_v48 }
 0xeeb   : > { %v12199_v49 = vpop.eup %12198 }
 0xeec   : > { %v12201_v17 = vpop.eup %12200  ;;  %v7791_v4 = vmul.f32 %v12199_v49, %v12193_v1 }
 0xeed   : > { %v12203_v42 = vpop.eup %12202  ;;  %v7789_v32 = vmul.f32 %v12201_v17, %v14517_v50 }
 0xeee   : > { %v12205_v26 = vpop.eup %12204  ;;  %v7784_v54 = vadd.f32 1.0, %v12203_v42 }
 0xeef   : > { %v14571_v31 = vadd.f32 %v7791_v4, %v7789_v32  ;;  %v7792_v47 = vmul.f32 %v12205_v26, %v12197_v10  ;;  %v12207_v9 = vpop.eup %12206  ;;  %v7818_v4 = vunpack.c.h.bf16 %v15267_v22 }
 0xef0   : > { %v7790_v8 = vmul.f32 %v12207_v9, %v14521_v20  ;;  %v12209_v0 = vpop.eup %12208 }
 0xef1   : > { %12210 = vtanh.f32 %v14571_v31 }
 0xef2   : > { %v14575_v35 = vadd.f32 %v7792_v47, %v7790_v8  ;;  %12212 = vrcp.f32 %v7784_v54 }
 0xef4   : > { %12214 = vtanh.f32 %v14575_v35 }
 0xefb   : > { %v12211_v14 = vpop.eup %12210 }
 0xefc   : > { %v12213_v50 = vpop.eup %12212  ;;  %v7797_v33 = vmul.f32 %v12211_v14, %v12209_v0 }
 0xefe   : > { %v12215_v34 = vpop.eup %12214 }
 0xeff   : > { %v7798_v16 = vmul.f32 %v12215_v34, %v12213_v50 }
 0xf01   : > { %v14578_v24 = vpack.c.bf16 %v7798_v16, %v7797_v33 }
 0xf03   : > { %8044 = vmatmul.mubr.bf16.vlgmr.msra.gmra.mrb[108].mxu1 %v14578_v24  ;;  %8087 = vmatmul.mubr.bf16.vlgmr.msra.gmra.mrb[152].mxu0 %v14578_v24 }
 0xf04   : > { %8366 = vmatpush1.bf16.msra.mxu1 %v14436_v18  ;;  %8409 = vmatpush1.bf16.msra.mxu0 %v14374_v13  ;;  %v15264_v13 = vld [vmem:[#allocation43_spill] sm:$0xff] }
 0xf05   : > { %8367 = vmatprep.subr.bf16.mxu1 %v14440_v41  ;;  %8410 = vmatprep.subr.bf16.mxu0 %v14378_v38  ;;  %v7811_v38 = vunpack.c.l.bf16 %v15264_v13  ;;  %v7815_v5 = vunpack.c.h.bf16 %v15264_v13 }
 0xf06   : > { %8397 = vmatprep.mubr.bf16.mxu1 %v15175_v3  ;;  %8440 = vmatprep.mubr.bf16.mxu0 %v15175_v3 }
 0xf08   : > { %8368 = vmatpush1.bf16.msra.mxu1 %v14442_v52  ;;  %8411 = vmatpush1.bf16.msra.mxu0 %v14380_v2  ;;  %v15265_v2 = vld [vmem:[#allocation49_spill] sm:$0xff] }
 0xf09   : > { %8369 = vmatprep.subr.bf16.mxu1 %v14446_v55  ;;  %8412 = vmatprep.subr.bf16.mxu0 %v14384_v58  ;;  %v7813_v58 = vunpack.c.l.bf16 %v15265_v2  ;;  %v7817_v1 = vunpack.c.h.bf16 %v15265_v2 }
 0xf0c   : > { %8370 = vmatpush1.bf16.msra.mxu1 %v14448_v23  ;;  %8413 = vmatpush1.bf16.msra.mxu0 %v14386_v30 }
 0xf0d   : > { %8371 = vmatprep.subr.bf16.mxu1 %v14452_v7  ;;  %8414 = vmatprep.subr.bf16.mxu0 %v14390_v25 }
 0xf10   : > { %8372 = vmatpush1.bf16.msra.mxu1 %v14454_v37  ;;  %8415 = vmatpush1.bf16.msra.mxu0 %v14392_v11  ;;  %v15266_v11 = vld [vmem:[#allocation48_spill] sm:$0xff] }
 0xf11   : > { %8373 = vmatprep.subr.bf16.mxu1 %v14458_v39  ;;  %8416 = vmatprep.subr.bf16.mxu0 %v14460_v29  ;;  %v7812_v20 = vunpack.c.l.bf16 %v15266_v11  ;;  %v7816_v17 = vunpack.c.h.bf16 %v15266_v11 }
 0xf14   : > { %8374 = vmatpush1.bf16.msra.mxu1 %v14462_v40  ;;  %8417 = vmatpush1.bf16.msra.mxu0 %v14464_v56 }
 0xf15   : > { %8375 = vmatprep.subr.bf16.mxu1 %v14468_v19  ;;  %8418 = vmatprep.subr.bf16.mxu0 %v14470_v28 }
 0xf18   : > { %8376 = vmatpush1.bf16.msra.mxu1 %v14474_v6  ;;  %8419 = vmatpush1.bf16.msra.mxu0 %v14476_v57 }
 0xf19   : > { %8377 = vmatprep.subr.bf16.mxu1 %v14480_v53  ;;  %8420 = vmatprep.subr.bf16.mxu0 %v14482_v45 }
 0xf1c   : > { %8378 = vmatpush1.bf16.msra.mxu1 %v14486_v46  ;;  %8421 = vmatpush1.bf16.msra.mxu0 %v14488_v62 }
 0xf1d   : > { %8379 = vmatprep.subr.bf16.mxu1 %v14492_v27  ;;  %8422 = vmatprep.subr.bf16.mxu0 %v14494_v43 }
 0xf20   : > { %8380 = vmatpush1.bf16.msra.mxu1 %v14498_v36  ;;  %8423 = vmatpush1.bf16.msra.mxu0 %v14500_v59 }
 0xf21   : > { %8719 = vmatprep.subr.bf16.mxu1 %v14434_v63 }
 0xfd6   : > { %v8045_v30 = vpop.f32.mrb[108].mxu1  ;;  %v8088_v25 = vpop.f32.mrb[152].mxu0 }
 0xfd7   : > { %v8097_v60 = vadd.f32 %v8045_v30, %v7811_v38  ;;  %v8099_v44 = vadd.f32 %v8088_v25, %v7813_v58  ;;  %v8047_v12 = vpop.f32.mrb[109].mxu1  ;;  %v8090_v15 = vpop.f32.mrb[153].mxu0 }
 0xfd8   : > { %v8098_v51 = vadd.f32 %v8047_v12, %v7812_v20  ;;  %v8100_v63 = vadd.f32 %v8090_v15, %v7814_v21  ;;  %v8049_v10 = vpop.f32.mrb[110].mxu1  ;;  %v8092_v49 = vpop.f32.mrb[154].mxu0 }
 0xfd9   : > { %v10881_v42 = vmul.f32 -1.442695, %v8097_v60  ;;  %v8101_v32 = vadd.f32 %v8049_v10, %v7815_v5  ;;  %v8103_v26 = vadd.f32 %v8092_v49, %v7817_v1  ;;  %v8051_v48 = vpop.f32.mrb[111].mxu1  ;;  %v8094_v47 = vpop.f32.mrb[155].mxu0 }
 0xfda   : > { %v10883_v9 = vmul.f32 -1.442695, %v8098_v51  ;;  %v8102_v54 = vadd.f32 %v8051_v48, %v7816_v17  ;;  %v8104_v8 = vadd.f32 %v8094_v47, %v7818_v4  ;;  %v10885_v50 = vmul.f32 -1.442695, %v8100_v63 }
 0xfdb   : > { %12216 = vpow2.f32 %v10881_v42  ;;  %v10882_v0 = vmul.f32 -1.442695, %v8101_v32 }
 0xfdc   : > { %12218 = vpow2.f32 %v10883_v9  ;;  %v10884_v14 = vmul.f32 -1.442695, %v8102_v54  ;;  %v10886_v13 = vmul.f32 -1.442695, %v8104_v8 }
 0xfdd   : > { %12220 = vpow2.f32 %v10882_v0 }
 0xfde   : > { %12222 = vpow2.f32 %v10884_v14 }
 0xfdf   : > { %12224 = vtanh.f32 %v8099_v44 }
 0xfe0   : > { %12226 = vpow2.f32 %v10885_v50 }
 0xfe1   : > { %12228 = vtanh.f32 %v8103_v26 }
 0xfe5   : > { %v12217_v34 = vpop.eup %12216 }
 0xfe6   : > { %v12219_v33 = vpop.eup %12218  ;;  %v8111_v16 = vadd.f32 1.0, %v12217_v34 }
 0xfe7   : > { %v8123_v38 = vadd.f32 1.0, %v12219_v33  ;;  %v12221_v2 = vpop.eup %12220 }
 0xfe8   : > { %12230 = vrcp.f32 %v8111_v16  ;;  %v8112_v58 = vadd.f32 1.0, %v12221_v2  ;;  %v12223_v30 = vpop.eup %12222 }
 0xfe9   : > { %12232 = vrcp.f32 %v8123_v38  ;;  %v8124_v25 = vadd.f32 1.0, %v12223_v30  ;;  %v12225_v11 = vpop.eup %12224 }
 0xfea   : > { %12234 = vpow2.f32 %v10886_v13  ;;  %v12227_v20 = vpop.eup %12226 }
 0xfeb   : > { %12236 = vrcp.f32 %v8112_v58  ;;  %v12229_v22 = vpop.eup %12228  ;;  %v8137_v1 = vadd.f32 1.0, %v12227_v20 }
 0xfec   : > { %12238 = vrcp.f32 %v8124_v25 }
 0xfed   : > { %12240 = vrcp.f32 %v8137_v1 }
 0xff2   : > { %v12231_v21 = vpop.eup %12230 }
 0xff3   : > { %v12233_v60 = vpop.eup %12232  ;;  %v8145_v44 = vmul.f32 %v12231_v21, %v12225_v11 }
 0xff4   : > { %v12235_v12 = vpop.eup %12234  ;;  %v8143_v15 = vmul.f32 %v12233_v60, %v14571_v31 }
 0xff5   : > { %v12237_v5 = vpop.eup %12236  ;;  %v8138_v49 = vadd.f32 1.0, %v12235_v12 }
 0xff6   : > { %v14624_v51 = vadd.f32 %v8145_v44, %v8143_v15  ;;  %v8146_v63 = vmul.f32 %v12237_v5, %v12229_v22  ;;  %v12239_v10 = vpop.eup %12238 }
 0xff7   : > { %v8144_v17 = vmul.f32 %v12239_v10, %v14575_v35  ;;  %v12241_v42 = vpop.eup %12240 }
 0xff8   : > { %12242 = vtanh.f32 %v14624_v51 }
 0xff9   : > { %v14628_v4 = vadd.f32 %v8146_v63, %v8144_v17  ;;  %12244 = vrcp.f32 %v8138_v49 }
 0xffb   : > { %12246 = vtanh.f32 %v14628_v4 }
0x1002   : > { %v12243_v32 = vpop.eup %12242 }
0x1003   : > { %v12245_v31 = vpop.eup %12244  ;;  %v8151_v48 = vmul.f32 %v12243_v32, %v12241_v42 }
0x1005   : > { %v12247_v26 = vpop.eup %12246 }
0x1006   : > { %v8152_v47 = vmul.f32 %v12247_v26, %v12245_v31 }
0x1008   : > { %v14631_v9 = vpack.c.bf16 %v8152_v47, %v8151_v48 }
0x100a   : > { %8398 = vmatmul.mubr.bf16.vlgmr.msra.gmra.mrb[112].mxu1 %v14631_v9  ;;  %8441 = vmatmul.mubr.bf16.vlgmr.msra.gmra.mrb[156].mxu0 %v14631_v9 }
0x100b   : > { %8720 = vmatpush1.bf16.msra.mxu1 %v14436_v18  ;;  %8751 = vmatprep.mubr.bf16.mxu1 %v15175_v3  ;;  %v14652_v18 = vld [vmem:[#allocation14 + $0xc] ss:$16 sps:$4 sm:$0xff]  }
0x100c   : > { %8721 = vmatprep.subr.bf16.mxu1 %v14440_v41  ;;  %8794 = vmatprep.mubr.bf16.mxu0 %v15175_v3  ;;  %v14654_v41 = vld [vmem:[#allocation14 + $0x8] ss:$16 sps:$4 sm:$0xff]  }
0x100d   : > { %8762 = vmatprep.subr.bf16.mxu0 %v14652_v18 }
0x100e   : > { %8763 = vmatpush1.bf16.msra.mxu0 %v14654_v41 }
0x100f   : > { %8722 = vmatpush1.bf16.msra.mxu1 %v14442_v52  ;;  %v14658_v52 = vld [vmem:[#allocation14 + $0x2c] ss:$16 sps:$4 sm:$0xff]  }
0x1010   : > { %8723 = vmatprep.subr.bf16.mxu1 %v14446_v55  ;;  %v14660_v55 = vld [vmem:[#allocation14 + $0x28] ss:$16 sps:$4 sm:$0xff]   ;;  %8764 = vmatprep.subr.bf16.mxu0 %v14658_v52 }
0x1012   : > { %8765 = vmatpush1.bf16.msra.mxu0 %v14660_v55 }
0x1013   : > { %8724 = vmatpush1.bf16.msra.mxu1 %v14448_v23  ;;  %v14664_v23 = vld [vmem:[#allocation14 + $0x4c] ss:$16 sps:$4 sm:$0xff]  }
0x1014   : > { %8725 = vmatprep.subr.bf16.mxu1 %v14452_v7  ;;  %v14666_v7 = vld [vmem:[#allocation14 + $0x48] ss:$16 sps:$4 sm:$0xff]   ;;  %8766 = vmatprep.subr.bf16.mxu0 %v14664_v23 }
0x1016   : > { %8767 = vmatpush1.bf16.msra.mxu0 %v14666_v7 }
0x1017   : > { %8726 = vmatpush1.bf16.msra.mxu1 %v14454_v37  ;;  %v14670_v37 = vld [vmem:[#allocation14 + $0x6c] ss:$16 sps:$4 sm:$0xff]  }
0x1018   : > { %8727 = vmatprep.subr.bf16.mxu1 %v14458_v39  ;;  %v14672_v39 = vld [vmem:[#allocation14 + $0x68] ss:$16 sps:$4 sm:$0xff]   ;;  %8768 = vmatprep.subr.bf16.mxu0 %v14670_v37 }
0x101a   : > { %8769 = vmatpush1.bf16.msra.mxu0 %v14672_v39 }
0x101b   : > { %8728 = vmatpush1.bf16.msra.mxu1 %v14462_v40  ;;  %8770 = vmatprep.subr.bf16.mxu0 %v14460_v29  ;;  %v15268_v40 = vld [vmem:[#allocation40_spill] sm:$0xff] }
0x101c   : > { %8729 = vmatprep.subr.bf16.mxu1 %v14468_v19  ;;  %v8165_v19 = vunpack.c.l.bf16 %v15268_v40 }
0x101e   : > { %8771 = vmatpush1.bf16.msra.mxu0 %v14464_v56 }
0x101f   : > { %8730 = vmatpush1.bf16.msra.mxu1 %v14474_v6  ;;  %8772 = vmatprep.subr.bf16.mxu0 %v14470_v28  ;;  %v15269_v6 = vld [vmem:[#allocation50_spill] sm:$0xff] }
0x1020   : > { %8731 = vmatprep.subr.bf16.mxu1 %v14480_v53  ;;  %v8167_v29 = vunpack.c.l.bf16 %v15269_v6 }
0x1022   : > { %8773 = vmatpush1.bf16.msra.mxu0 %v14476_v57 }
0x1023   : > { %8732 = vmatpush1.bf16.msra.mxu1 %v14486_v46  ;;  %8774 = vmatprep.subr.bf16.mxu0 %v14482_v45  ;;  %v15270_v46 = vld [vmem:[#allocation37_spill] sm:$0xff] }
0x1024   : > { %8733 = vmatprep.subr.bf16.mxu1 %v14492_v27  ;;  %v8166_v28 = vunpack.c.l.bf16 %v15270_v46  ;;  %v15271_v27 = vld [vmem:[#allocation33_spill] sm:$0xff]  ;;  %v8170_v50 = vunpack.c.h.bf16 %v15270_v46 }
0x1025   : > { %v8168_v57 = vunpack.c.l.bf16 %v15271_v27  ;;  %v8172_v34 = vunpack.c.h.bf16 %v15271_v27 }
0x1026   : > { %8775 = vmatpush1.bf16.msra.mxu0 %v14488_v62 }
0x1027   : > { %8734 = vmatpush1.bf16.msra.mxu1 %v14498_v36  ;;  %8776 = vmatprep.subr.bf16.mxu0 %v14494_v43  ;;  %v8169_v43 = vunpack.c.h.bf16 %v15268_v40 }
0x102a   : > { %8777 = vmatpush1.bf16.msra.mxu0 %v14500_v59  ;;  %v8171_v59 = vunpack.c.h.bf16 %v15269_v6 }
0x102b   : > { %9116 = vmatprep.subr.bf16.mxu0 %v14652_v18 }
0x10dd   : > { %v8399_v53 = vpop.f32.mrb[112].mxu1  ;;  %v8442_v56 = vpop.f32.mrb[156].mxu0 }
0x10de   : > { %v8451_v36 = vadd.f32 %v8399_v53, %v8165_v19  ;;  %v8453_v45 = vadd.f32 %v8442_v56, %v8167_v29  ;;  %v8401_v35 = vpop.f32.mrb[113].mxu1  ;;  %v8444_v62 = vpop.f32.mrb[157].mxu0 }
0x10df   : > { %v8452_v54 = vadd.f32 %v8401_v35, %v8166_v28  ;;  %v8454_v8 = vadd.f32 %v8444_v62, %v8168_v57  ;;  %v8403_v0 = vpop.f32.mrb[114].mxu1  ;;  %v8446_v14 = vpop.f32.mrb[158].mxu0 }
0x10e0   : > { %v10919_v33 = vmul.f32 -1.442695, %v8451_v36  ;;  %v8455_v16 = vadd.f32 %v8403_v0, %v8169_v43  ;;  %v8457_v13 = vadd.f32 %v8446_v14, %v8171_v59  ;;  %v8405_v38 = vpop.f32.mrb[115].mxu1  ;;  %v8448_v2 = vpop.f32.mrb[159].mxu0  ;;  %v14714_v43 = vld [vmem:[#allocation14] ss:$16 sps:$4 sm:$0xff]  }
0x10e1   : > { %v10921_v58 = vmul.f32 -1.442695, %v8452_v54  ;;  %v8456_v30 = vadd.f32 %v8405_v38, %v8170_v50  ;;  %v8458_v25 = vadd.f32 %v8448_v2, %v8172_v34  ;;  %v10923_v22 = vmul.f32 -1.442695, %v8454_v8  ;;  %v14717_v59 = vld [vmem:[#allocation14 + $0x24] ss:$16 sps:$4 sm:$0xff]  }
0x10e2   : > { %12248 = vpow2.f32 %v10919_v33  ;;  %v10920_v11 = vmul.f32 -1.442695, %v8455_v16  ;;  %v14719_v54 = vld [vmem:[#allocation14 + $0x20] ss:$16 sps:$4 sm:$0xff]   ;;  %v14723_v8 = vld [vmem:[#allocation14 + $0x44] ss:$16 sps:$4 sm:$0xff]  }
0x10e3   : > { %12250 = vpow2.f32 %v10921_v58  ;;  %v10922_v20 = vmul.f32 -1.442695, %v8456_v30  ;;  %v10924_v12 = vmul.f32 -1.442695, %v8458_v25  ;;  %v14725_v0 = vld [vmem:[#allocation14 + $0x40] ss:$16 sps:$4 sm:$0xff]  }
0x10e4   : > { %12252 = vpow2.f32 %v10920_v11  ;;  %v14729_v14 = vld [vmem:[#allocation14 + $0x64] ss:$16 sps:$4 sm:$0xff]   ;;  %v14731_v50 = vld [vmem:[#allocation14 + $0x60] ss:$16 sps:$4 sm:$0xff]   ;;  %v14737_v33 = vld [vmem:[#allocation14 + $0x8c] ss:$16 sps:$4 sm:$0xff]  }
0x10e5   : > { %12254 = vpow2.f32 %v10922_v20  ;;  %v14735_v34 = vld [vmem:[#allocation14 + $0x84] ss:$16 sps:$4 sm:$0xff]   ;;  %v14739_v16 = vld [vmem:[#allocation14 + $0x80] ss:$16 sps:$4 sm:$0xff]   ;;  %v14747_v2 = vld [vmem:[#allocation14 + $0xac] ss:$16 sps:$4 sm:$0xff]  }
0x10e6   : > { %12256 = vtanh.f32 %v8453_v45  ;;  %v14745_v38 = vld [vmem:[#allocation14 + $0xa4] ss:$16 sps:$4 sm:$0xff]   ;;  %v14751_v58 = vld [vmem:[#allocation14 + $0xa0] ss:$16 sps:$4 sm:$0xff]   ;;  %v14753_v30 = vld [vmem:[#allocation14 + $0xa8] ss:$16 sps:$4 sm:$0xff]  }
0x10e7   : > { %12258 = vpow2.f32 %v10923_v22  ;;  %v14757_v25 = vld [vmem:[#allocation14 + $0xc4] ss:$16 sps:$4 sm:$0xff]   ;;  %v14759_v11 = vld [vmem:[#allocation14 + $0xcc] ss:$16 sps:$4 sm:$0xff]   ;;  %v14763_v20 = vld [vmem:[#allocation14 + $0xc0] ss:$16 sps:$4 sm:$0xff]  }
0x10e8   : > { %12260 = vtanh.f32 %v8457_v13  ;;  %v14741_v13 = vld [vmem:[#allocation14 + $0x88] ss:$16 sps:$4 sm:$0xff]  }
0x10e9   : > { %v14765_v22 = vld [vmem:[#allocation14 + $0xc8] ss:$16 sps:$4 sm:$0xff]  }
0x10ec   : > { %v12249_v21 = vpop.eup %12248 }
0x10ed   : > { %v12251_v60 = vpop.eup %12250  ;;  %v8465_v44 = vadd.f32 1.0, %v12249_v21  ;;  %v14769_v21 = vld [vmem:[#allocation14 + $0xe4] ss:$16 sps:$4 sm:$0xff]  }
0x10ee   : > { %v8477_v15 = vadd.f32 1.0, %v12251_v60  ;;  %v12253_v5 = vpop.eup %12252  ;;  %v14771_v60 = vld [vmem:[#allocation14 + $0xec] ss:$16 sps:$4 sm:$0xff]  }
0x10ef   : > { %12262 = vrcp.f32 %v8465_v44  ;;  %v8466_v1 = vadd.f32 1.0, %v12253_v5  ;;  %v12255_v63 = vpop.eup %12254  ;;  %v14775_v44 = vld [vmem:[#allocation14 + $0xe0] ss:$16 sps:$4 sm:$0xff]  }
0x10f0   : > { %12264 = vrcp.f32 %v8477_v15  ;;  %v8478_v10 = vadd.f32 1.0, %v12255_v63  ;;  %v12257_v49 = vpop.eup %12256  ;;  %v15272_v15 = vld [vmem:[#allocation41_spill] sm:$0xff] }
0x10f1   : > { %12266 = vpow2.f32 %v10924_v12  ;;  %v12259_v17 = vpop.eup %12258  ;;  %v14777_v12 = vld [vmem:[#allocation14 + $0xe8] ss:$16 sps:$4 sm:$0xff]   ;;  %v8519_v5 = vunpack.c.l.bf16 %v15272_v15 }
0x10f2   : > { %12268 = vrcp.f32 %v8466_v1  ;;  %v12261_v42 = vpop.eup %12260  ;;  %v8491_v19 = vadd.f32 1.0, %v12259_v17  ;;  %v15273_v1 = vld [vmem:[#allocation51_spill] sm:$0xff]  ;;  %v15274_v17 = vld [vmem:[#allocation36_spill] sm:$0xff] }
0x10f3   : > { %12270 = vrcp.f32 %v8478_v10  ;;  %v8521_v63 = vunpack.c.l.bf16 %v15273_v1 }
0x10f4   : > { %12272 = vrcp.f32 %v8491_v19  ;;  %v8523_v19 = vunpack.c.h.bf16 %v15272_v15 }
0x10f9   : > { %v12263_v32 = vpop.eup %12262 }
0x10fa   : > { %v12265_v31 = vpop.eup %12264  ;;  %v8499_v26 = vmul.f32 %v12263_v32, %v12257_v49  ;;  %v15275_v32 = vld [vmem:[#allocation46_spill] sm:$0xff] }
0x10fb   : > { %v12267_v48 = vpop.eup %12266  ;;  %v8497_v47 = vmul.f32 %v12265_v31, %v14624_v51  ;;  %v8522_v31 = vunpack.c.l.bf16 %v15275_v32 }
0x10fc   : > { %v12269_v40 = vpop.eup %12268  ;;  %v8492_v56 = vadd.f32 1.0, %v12267_v48 }
0x10fd   : > { %v14694_v6 = vadd.f32 %v8499_v26, %v8497_v47  ;;  %v8500_v29 = vmul.f32 %v12269_v40, %v12261_v42  ;;  %v12271_v53 = vpop.eup %12270  ;;  %v8520_v42 = vunpack.c.l.bf16 %v15274_v17 }
0x10fe   : > { %v8498_v46 = vmul.f32 %v12271_v53, %v14628_v4  ;;  %v12273_v27 = vpop.eup %12272  ;;  %v11758_v4 = vld [vmem:[#allocation14 + $0x4] ss:$16 sps:$4 sm:$0xff]  }
0x10ff   : > { %12274 = vtanh.f32 %v14694_v6  ;;  %9073 = vmatprep.subr.bf16.mxu1 %v11758_v4 }
0x1100   : > { %v14698_v28 = vadd.f32 %v8500_v29, %v8498_v46  ;;  %12276 = vrcp.f32 %v8492_v56  ;;  %v8525_v29 = vunpack.c.h.bf16 %v15273_v1 }
0x1102   : > { %12278 = vtanh.f32 %v14698_v28 }
0x1109   : > { %v12275_v57 = vpop.eup %12274 }
0x110a   : > { %v12277_v51 = vpop.eup %12276  ;;  %v8505_v45 = vmul.f32 %v12275_v57, %v12273_v27  ;;  %v8524_v27 = vunpack.c.h.bf16 %v15274_v17  ;;  %v8526_v57 = vunpack.c.h.bf16 %v15275_v32 }
0x110c   : > { %v12279_v36 = vpop.eup %12278 }
0x110d   : > { %v8506_v35 = vmul.f32 %v12279_v36, %v12277_v51 }
0x110f   : > { %v14701_v62 = vpack.c.bf16 %v8506_v35, %v8505_v45 }
0x1111   : > { %8752 = vmatmul.mubr.bf16.vlgmr.msra.gmra.mrb[116].mxu1 %v14701_v62  ;;  %8795 = vmatmul.mubr.bf16.vlgmr.msra.gmra.mrb[160].mxu0 %v14701_v62 }
0x1112   : > { %9117 = vmatpush1.bf16.msra.mxu0 %v14654_v41  ;;  %9105 = vmatprep.mubr.bf16.mxu1 %v15175_v3 }
0x1113   : > { %9118 = vmatprep.subr.bf16.mxu0 %v14658_v52  ;;  %9148 = vmatprep.mubr.bf16.mxu0 %v15175_v3 }
0x1114   : > { %9074 = vmatpush1.bf16.msra.mxu1 %v14714_v43 }
0x1115   : > { %9075 = vmatprep.subr.bf16.mxu1 %v14717_v59 }
0x1116   : > { %9119 = vmatpush1.bf16.msra.mxu0 %v14660_v55 }
0x1117   : > { %9120 = vmatprep.subr.bf16.mxu0 %v14664_v23 }
0x1118   : > { %9076 = vmatpush1.bf16.msra.mxu1 %v14719_v54 }
0x1119   : > { %9077 = vmatprep.subr.bf16.mxu1 %v14723_v8 }
0x111a   : > { %9121 = vmatpush1.bf16.msra.mxu0 %v14666_v7 }
0x111b   : > { %9122 = vmatprep.subr.bf16.mxu0 %v14670_v37 }
0x111c   : > { %9078 = vmatpush1.bf16.msra.mxu1 %v14725_v0 }
0x111d   : > { %9079 = vmatprep.subr.bf16.mxu1 %v14729_v14 }
0x111e   : > { %9123 = vmatpush1.bf16.msra.mxu0 %v14672_v39 }
0x111f   : > { %9124 = vmatprep.subr.bf16.mxu0 %v14737_v33 }
0x1120   : > { %9080 = vmatpush1.bf16.msra.mxu1 %v14731_v50 }
0x1121   : > { %9081 = vmatprep.subr.bf16.mxu1 %v14735_v34 }
0x1122   : > { %9125 = vmatpush1.bf16.msra.mxu0 %v14741_v13 }
0x1123   : > { %9126 = vmatprep.subr.bf16.mxu0 %v14747_v2 }
0x1124   : > { %9082 = vmatpush1.bf16.msra.mxu1 %v14739_v16 }
0x1125   : > { %9083 = vmatprep.subr.bf16.mxu1 %v14745_v38 }
0x1126   : > { %9127 = vmatpush1.bf16.msra.mxu0 %v14753_v30 }
0x1127   : > { %9128 = vmatprep.subr.bf16.mxu0 %v14759_v11 }
0x1128   : > { %9084 = vmatpush1.bf16.msra.mxu1 %v14751_v58 }
0x1129   : > { %9085 = vmatprep.subr.bf16.mxu1 %v14757_v25 }
0x112a   : > { %9129 = vmatpush1.bf16.msra.mxu0 %v14765_v22 }
0x112b   : > { %9130 = vmatprep.subr.bf16.mxu0 %v14771_v60 }
0x112c   : > { %9086 = vmatpush1.bf16.msra.mxu1 %v14763_v20 }
0x112d   : > { %9087 = vmatprep.subr.bf16.mxu1 %v14769_v21 }
0x112e   : > { %9131 = vmatpush1.bf16.msra.mxu0 %v14777_v12 }
0x112f   : > { %9470 = vmatprep.subr.bf16.mxu0 %v14652_v18 }
0x1130   : > { %9088 = vmatpush1.bf16.msra.mxu1 %v14775_v44 }
0x1131   : > { %9427 = vmatprep.subr.bf16.mxu1 %v11758_v4 }
0x11e4   : > { %v8753_v10 = vpop.f32.mrb[116].mxu1  ;;  %v8796_v49 = vpop.f32.mrb[160].mxu0 }
0x11e5   : > { %v8805_v26 = vadd.f32 %v8753_v10, %v8519_v5  ;;  %v8807_v48 = vadd.f32 %v8796_v49, %v8521_v63  ;;  %v8755_v47 = vpop.f32.mrb[117].mxu1  ;;  %v8798_v40 = vpop.f32.mrb[161].mxu0 }
0x11e6   : > { %v8806_v53 = vadd.f32 %v8755_v47, %v8520_v42  ;;  %v8808_v18 = vadd.f32 %v8798_v40, %v8522_v31  ;;  %v8757_v56 = vpop.f32.mrb[118].mxu1  ;;  %v8800_v46 = vpop.f32.mrb[162].mxu0 }
0x11e7   : > { %v10957_v51 = vmul.f32 -1.442695, %v8805_v26  ;;  %v8809_v36 = vadd.f32 %v8757_v56, %v8523_v19  ;;  %v8811_v45 = vadd.f32 %v8800_v46, %v8525_v29  ;;  %v8759_v35 = vpop.f32.mrb[119].mxu1  ;;  %v8802_v4 = vpop.f32.mrb[163].mxu0 }
0x11e8   : > { %v10959_v5 = vmul.f32 -1.442695, %v8806_v53  ;;  %v8810_v63 = vadd.f32 %v8759_v35, %v8524_v27  ;;  %v8812_v10 = vadd.f32 %v8802_v4, %v8526_v57  ;;  %v10961_v49 = vmul.f32 -1.442695, %v8808_v18 }
0x11e9   : > { %12280 = vpow2.f32 %v10957_v51  ;;  %v10958_v15 = vmul.f32 -1.442695, %v8809_v36 }
0x11ea   : > { %12282 = vpow2.f32 %v10959_v5  ;;  %v10960_v1 = vmul.f32 -1.442695, %v8810_v63  ;;  %v10962_v32 = vmul.f32 -1.442695, %v8812_v10 }
0x11eb   : > { %12284 = vpow2.f32 %v10958_v15 }
0x11ec   : > { %12286 = vpow2.f32 %v10960_v1 }
0x11ed   : > { %12288 = vtanh.f32 %v8807_v48 }
0x11ee   : > { %12290 = vpow2.f32 %v10961_v49 }
0x11ef   : > { %12292 = vtanh.f32 %v8811_v45 }
0x11f3   : > { %v12281_v42 = vpop.eup %12280 }
0x11f4   : > { %v12283_v17 = vpop.eup %12282  ;;  %v8819_v31 = vadd.f32 1.0, %v12281_v42 }
0x11f5   : > { %v8831_v26 = vadd.f32 1.0, %v12283_v17  ;;  %v12285_v47 = vpop.eup %12284 }
0x11f6   : > { %12294 = vrcp.f32 %v8819_v31  ;;  %v8820_v40 = vadd.f32 1.0, %v12285_v47  ;;  %v12287_v19 = vpop.eup %12286 }
0x11f7   : > { %12296 = vrcp.f32 %v8831_v26  ;;  %v8832_v29 = vadd.f32 1.0, %v12287_v19  ;;  %v12289_v53 = vpop.eup %12288  ;;  %v9759_v19 = vld [vmem:[%s12880_s19] sm:$0xff] }
0x11f8   : > { %12298 = vpow2.f32 %v10962_v32  ;;  %v12291_v56 = vpop.eup %12290  ;;  %vm9777_vm1 = vcmp.gt.f32.partialorder %v9759_v19, 0.0 }
0x11f9   : > { %12300 = vrcp.f32 %v8820_v40  ;;  %v12293_v18 = vpop.eup %12292  ;;  %v8845_v45 = vadd.f32 1.0, %v12291_v56  ;;  %v9762_v56 = vld [vmem:[%s12880_s19 + $0x18] sm:$0xff] }
0x11fa   : > { %12302 = vrcp.f32 %v8832_v29  ;;  %v9760_v29 = vld [vmem:[%s12880_s19 + $0x8] sm:$0xff]  ;;  %vm9780_vm4 = vcmp.gt.f32.partialorder %v9762_v56, 0.0 }
0x11fb   : > { %12304 = vrcp.f32 %v8845_v45  ;;  %vm9778_vm2 = vcmp.gt.f32.partialorder %v9760_v29, 0.0 }
0x1200   : > { %v12295_v46 = vpop.eup %12294 }
0x1201   : > { %v12297_v48 = vpop.eup %12296  ;;  %v8853_v27 = vmul.f32 %v12295_v46, %v12289_v53  ;;  %v9761_v53 = vld [vmem:[%s12880_s19 + $0x10] sm:$0xff]  ;;  %v9795_v46 = vsel %vm9777_vm1, 1, %v15175_v3  ;;  %vm12583_vm1 = vmmov 0  }
0x1202   : > { %v12299_v57 = vpop.eup %12298  ;;  %v8851_v51 = vmul.f32 %v12297_v48, %v14694_v6  ;;  %vm9779_vm3 = vcmp.gt.f32.partialorder %v9761_v53, 0.0  ;;  %9814 = vperm.xlu0 %11265, %v9795_v46  }
0x1203   : > { %v12301_v36 = vpop.eup %12300  ;;  %v8846_v63 = vadd.f32 1.0, %v12299_v57  ;;  %v9797_v48 = vsel %vm9779_vm3, 1, %v15175_v3  ;;  %v9764_v57 = vld [vmem:[%s12880_s19 + $0x28] sm:$0xff] }
0x1204   : > { %v14793_v35 = vadd.f32 %v8853_v27, %v8851_v51  ;;  %v8854_v4 = vmul.f32 %v12301_v36, %v12293_v18  ;;  %v12303_v5 = vpop.eup %12302  ;;  %v9763_v27 = vld [vmem:[%s12880_s19 + $0x20] sm:$0xff]  ;;  %9820 = vperm.xlu1 %11266, %v9797_v48   ;;  %vm9782_vm6 = vcmp.gt.f32.partialorder %v9764_v57, 0.0  ;;  %v11793_v57 = vld [vmem:[%s15280_s21 + $0x8] sm:$0xff]  }
0x1205   : > { %v8852_v10 = vmul.f32 %v12303_v5, %v14698_v28  ;;  %v12305_v1 = vpop.eup %12304  ;;  %v15278_v28 = vld [vmem:[#allocation38_spill] sm:$0xff]  ;;  %v9796_v5 = vsel %vm9778_vm2, 1, %v15175_v3  ;;  %vm9781_vm5 = vcmp.gt.f32.partialorder %v9763_v27, 0.0  ;;  %v11792_v48 = vld [vmem:[%s15280_s21] sm:$0xff]  }
0x1206   : > { %12306 = vtanh.f32 %v14793_v35  ;;  %9817 = vperm.xlu0 %11265, %v9796_v5   ;;  %v11798_v5 = vld [vmem:[%s15280_s21 + $0x30] sm:$0xff]  }
0x1207   : > { %v14797_v15 = vadd.f32 %v8854_v4, %v8852_v10  ;;  %12308 = vrcp.f32 %v8846_v63  ;;  %v9798_v63 = vsel %vm9780_vm4, 1, %v15175_v3 }
0x1208   : > { %9823 = vperm.xlu1 %11266, %v9798_v63   ;;  %v11799_v63 = vld [vmem:[%s15280_s21 + $0x38] sm:$0xff]  }
0x1209   : > { %12310 = vtanh.f32 %v14797_v15 }
0x1210   : > { %v12307_v49 = vpop.eup %12306 }
0x1211   : > { %v12309_v6 = vpop.eup %12308  ;;  %v8859_v17 = vmul.f32 %v12307_v49, %v12305_v1  ;;  %v9765_v49 = vld [vmem:[%s12880_s19 + $0x30] sm:$0xff] }
0x1212   : > { %vm9783_vm7 = vcmp.gt.f32.partialorder %v9765_v49, 0.0  ;;  %v15283_v49 = vld [vmem:[#allocation53_spill] sm:$0xff] }
0x1213   : > { %v12311_v42 = vpop.eup %12310 }
0x1214   : > { %v8860_v31 = vmul.f32 %v12311_v42, %v12309_v6  ;;  %v9766_v6 = vld [vmem:[%s12880_s19 + $0x38] sm:$0xff] }
0x1215   : > { %vm9784_vm8 = vcmp.gt.f32.partialorder %v9766_v6, 0.0  ;;  %v9227_v6 = vunpack.c.l.bf16 %v15283_v49 }
0x1216   : > { %v14800_v32 = vpack.c.bf16 %v8860_v31, %v8859_v17  ;;  %v9799_v31 = vsel %vm9781_vm5, 1, %v15175_v3 }
0x1217   : > { %9826 = vperm.xlu0 %11265, %v9799_v31  }
0x1218   : > { %9106 = vmatmul.mubr.bf16.vlgmr.msra.gmra.mrb[120].mxu1 %v14800_v32  ;;  %9149 = vmatmul.mubr.bf16.vlgmr.msra.gmra.mrb[164].mxu0 %v14800_v32 }
0x1219   : > { %9428 = vmatpush1.bf16.msra.mxu1 %v14714_v43  ;;  %9471 = vmatpush1.bf16.msra.mxu0 %v14654_v41  ;;  %v12582_v41 = vmov 0.0   ;;  %v8874_v43 = vunpack.c.l.bf16 %v15278_v28 }
0x121a   : > { %9429 = vmatprep.subr.bf16.mxu1 %v14717_v59  ;;  %9472 = vmatprep.subr.bf16.mxu0 %v14658_v52  ;;  %v15276_v52 = vld [vmem:[#allocation42_spill] sm:$0xff]  ;;  %v15279_v59 = vld [vmem:[#allocation47_spill] sm:$0xff] }
0x121b   : > { %9459 = vmatprep.mubr.bf16.mxu1 %v15175_v3  ;;  %9502 = vmatprep.mubr.bf16.mxu0 %v15175_v3 }
0x121d   : > { %9430 = vmatpush1.bf16.msra.mxu1 %v14719_v54  ;;  %9473 = vmatpush1.bf16.msra.mxu0 %v14660_v55  ;;  %v8873_v55 = vunpack.c.l.bf16 %v15276_v52  ;;  %v8876_v54 = vunpack.c.l.bf16 %v15279_v59 }
0x121e   : > { %9431 = vmatprep.subr.bf16.mxu1 %v14723_v8  ;;  %9474 = vmatprep.subr.bf16.mxu0 %v14664_v23  ;;  %v15277_v23 = vld [vmem:[#allocation52_spill] sm:$0xff] }
0x1221   : > { %9432 = vmatpush1.bf16.msra.mxu1 %v14725_v0  ;;  %9475 = vmatpush1.bf16.msra.mxu0 %v14666_v7  ;;  %v8875_v7 = vunpack.c.l.bf16 %v15277_v23 }
0x1222   : > { %9433 = vmatprep.subr.bf16.mxu1 %v14729_v14  ;;  %9476 = vmatprep.subr.bf16.mxu0 %v14670_v37 }
0x1225   : > { %9434 = vmatpush1.bf16.msra.mxu1 %v14731_v50  ;;  %9477 = vmatpush1.bf16.msra.mxu0 %v14672_v39 }
0x1226   : > { %9435 = vmatprep.subr.bf16.mxu1 %v14735_v34  ;;  %9478 = vmatprep.subr.bf16.mxu0 %v14737_v33  ;;  %v8877_v34 = vunpack.c.h.bf16 %v15276_v52  ;;  %v8879_v33 = vunpack.c.h.bf16 %v15277_v23  ;;  %v9800_v52 = vsel %vm9782_vm6, 1, %v15175_v3  ;;  %v9768_v23 = vld [vmem:[%s12880_s19 + $0x48] sm:$0xff] }
0x1227   : > { %9829 = vperm.xlu1 %11266, %v9800_v52   ;;  %vm9786_vm10 = vcmp.gt.f32.partialorder %v9768_v23, 0.0  ;;  %v15285_v52 = vld [vmem:[#allocation54_spill] sm:$0xff]  ;;  %v15286_v23 = vld [vmem:[#allocation39_spill] sm:$0xff] }
0x1229   : > { %9436 = vmatpush1.bf16.msra.mxu1 %v14739_v16  ;;  %9479 = vmatpush1.bf16.msra.mxu0 %v14741_v13 }
0x122a   : > { %9437 = vmatprep.subr.bf16.mxu1 %v14745_v38  ;;  %9480 = vmatprep.subr.bf16.mxu0 %v14747_v2 }
0x122d   : > { %9438 = vmatpush1.bf16.msra.mxu1 %v14751_v58  ;;  %9481 = vmatpush1.bf16.msra.mxu0 %v14753_v30  ;;  %v8878_v58 = vunpack.c.h.bf16 %v15278_v28  ;;  %v8880_v30 = vunpack.c.h.bf16 %v15279_v59  ;;  %v9769_v59 = vld [vmem:[%s12880_s19 + $0x50] sm:$0xff] }
0x122e   : > { %9439 = vmatprep.subr.bf16.mxu1 %v14757_v25  ;;  %9482 = vmatprep.subr.bf16.mxu0 %v14759_v11  ;;  %vm9787_vm11 = vcmp.gt.f32.partialorder %v9769_v59, 0.0 }
0x1231   : > { %9440 = vmatpush1.bf16.msra.mxu1 %v14763_v20  ;;  %9483 = vmatpush1.bf16.msra.mxu0 %v14765_v22 }
0x1232   : > { %9441 = vmatprep.subr.bf16.mxu1 %v14769_v21  ;;  %9484 = vmatprep.subr.bf16.mxu0 %v14771_v60 }
0x1235   : > { %9442 = vmatpush1.bf16.msra.mxu1 %v14775_v44  ;;  %9485 = vmatpush1.bf16.msra.mxu0 %v14777_v12 }
0x1236   : > { %11072 = vmatprep.subr.bf16.mxu1 %v12582_v41 }
0x12eb   : > { %v9107_v37 = vpop.f32.mrb[120].mxu1  ;;  %v9150_v39 = vpop.f32.mrb[164].mxu0 }
0x12ec   : > { %v9159_v8 = vadd.f32 %v9107_v37, %v8873_v55  ;;  %v9161_v0 = vadd.f32 %v9150_v39, %v8875_v7  ;;  %v9109_v14 = vpop.f32.mrb[121].mxu1  ;;  %v9152_v50 = vpop.f32.mrb[165].mxu0  ;;  %v9767_v55 = vld [vmem:[%s12880_s19 + $0x40] sm:$0xff]  ;;  %v9801_v37 = vsel %vm9783_vm7, 1, %v15175_v3  ;;  %v9802_v39 = vsel %vm9784_vm8, 1, %v15175_v3 }
0x12ed   : > { %v9160_v16 = vadd.f32 %v9109_v14, %v8874_v43  ;;  %v9162_v13 = vadd.f32 %v9152_v50, %v8876_v54  ;;  %v9111_v38 = vpop.f32.mrb[122].mxu1  ;;  %v9154_v2 = vpop.f32.mrb[166].mxu0  ;;  %vm9785_vm9 = vcmp.gt.f32.partialorder %v9767_v55, 0.0  ;;  %v9770_v54 = vld [vmem:[%s12880_s19 + $0x58] sm:$0xff]  ;;  %9832 = vperm.xlu0 %11265, %v9801_v37   ;;  %9835 = vperm.xlu1 %11266, %v9802_v39   ;;  %v9228_v55 = vunpack.c.l.bf16 %v15285_v52 }
0x12ee   : > { %v10995_v25 = vmul.f32 -1.442695, %v9159_v8  ;;  %v9163_v11 = vadd.f32 %v9111_v38, %v8877_v34  ;;  %v9165_v20 = vadd.f32 %v9154_v2, %v8879_v33  ;;  %v9113_v22 = vpop.f32.mrb[123].mxu1  ;;  %v9156_v21 = vpop.f32.mrb[167].mxu0  ;;  %v9803_v50 = vsel %vm9785_vm9, 1, %v15175_v3  ;;  %v9771_v2 = vld [vmem:[%s12880_s19 + $0x60] sm:$0xff] }
0x12ef   : > { %v10997_v60 = vmul.f32 -1.442695, %v9160_v16  ;;  %v9164_v44 = vadd.f32 %v9113_v22, %v8878_v58  ;;  %v9166_v12 = vadd.f32 %v9156_v21, %v8880_v30  ;;  %v10999_v40 = vmul.f32 -1.442695, %v9162_v13  ;;  %v9772_v58 = vld [vmem:[%s12880_s19 + $0x68] sm:$0xff] }
0x12f0   : > { %12312 = vpow2.f32 %v10995_v25  ;;  %v10996_v26 = vmul.f32 -1.442695, %v9163_v11  ;;  %v9804_v34 = vsel %vm9786_vm10, 1, %v15175_v3  ;;  %vm9788_vm12 = vcmp.gt.f32.partialorder %v9770_v54, 0.0 }
0x12f1   : > { %12314 = vpow2.f32 %v10997_v60  ;;  %v10998_v47 = vmul.f32 -1.442695, %v9164_v44  ;;  %v11000_v45 = vmul.f32 -1.442695, %v9166_v12  ;;  %9838 = vperm.xlu0 %11265, %v9803_v50   ;;  %9841 = vperm.xlu1 %11266, %v9804_v34   ;;  %v9805_v22 = vsel %vm9787_vm11, 1, %v15175_v3  ;;  %v9773_v60 = vld [vmem:[%s12880_s19 + $0x70] sm:$0xff] }
0x12f2   : > { %12316 = vpow2.f32 %v10996_v26  ;;  %v9806_v21 = vsel %vm9788_vm12, 1, %v15175_v3  ;;  %vm9789_vm13 = vcmp.gt.f32.partialorder %v9771_v2, 0.0  ;;  %vm9790_vm14 = vcmp.gt.f32.partialorder %v9772_v58, 0.0  ;;  %v9774_v44 = vld [vmem:[%s12880_s19 + $0x78] sm:$0xff] }
0x12f3   : > { %12318 = vpow2.f32 %v10998_v47  ;;  %v9807_v26 = vsel %vm9789_vm13, 1, %v15175_v3  ;;  %v9808_v47 = vsel %vm9790_vm14, 1, %v15175_v3  ;;  %vm9791_vm15 = vcmp.gt.f32.partialorder %v9773_v60, 0.0 }
0x12f4   : > { %12320 = vtanh.f32 %v9161_v0  ;;  %vm9792_vm0 = vcmp.gt.f32.partialorder %v9774_v44, 0.0  ;;  %v9234_v50 = vunpack.c.h.bf16 %v15286_v23 }
0x12f5   : > { %12322 = vpow2.f32 %v10999_v40  ;;  %9844 = vperm.xlu0 %11265, %v9805_v22   ;;  %9847 = vperm.xlu1 %11266, %v9806_v21   ;;  %v9810_v40 = vsel %vm9792_vm0, 1, %v15175_v3 }
0x12f6   : > { %12324 = vtanh.f32 %v9165_v20 }
0x12f9   : > { %9850 = vperm.xlu0 %11265, %v9807_v26   ;;  %9853 = vperm.xlu1 %11266, %v9808_v47  }
0x12fa   : > { %v12313_v18 = vpop.eup %12312 }
0x12fb   : > { %v12315_v51 = vpop.eup %12314  ;;  %v9173_v36 = vadd.f32 1.0, %v12313_v18 }
0x12fc   : > { %v9185_v4 = vadd.f32 1.0, %v12315_v51  ;;  %v12317_v10 = vpop.eup %12316  ;;  %v11794_v51 = vld [vmem:[%s15280_s21 + $0x10] sm:$0xff]  }
0x12fd   : > { %12326 = vrcp.f32 %v9173_v36  ;;  %v9174_v1 = vadd.f32 1.0, %v12317_v10  ;;  %v12319_v42 = vpop.eup %12318  ;;  %9859 = vperm.xlu1 %11266, %v9810_v40   ;;  %v11795_v36 = vld [vmem:[%s15280_s21 + $0x18] sm:$0xff]   ;;  %v15281_v10 = vld [vmem:[#allocation34_spill] sm:$0xff] }
0x12fe   : > { %12328 = vrcp.f32 %v9185_v4  ;;  %v9186_v17 = vadd.f32 1.0, %v12319_v42  ;;  %v12321_v7 = vpop.eup %12320  ;;  %v11797_v4 = vld [vmem:[%s15280_s21 + $0x28] sm:$0xff]  }
0x12ff   : > { %12330 = vpow2.f32 %v11000_v45  ;;  %v12323_v28 = vpop.eup %12322  ;;  %v11796_v45 = vld [vmem:[%s15280_s21 + $0x20] sm:$0xff]  }
0x1300   : > { %12332 = vrcp.f32 %v9174_v1  ;;  %v12325_v43 = vpop.eup %12324  ;;  %v9199_v38 = vadd.f32 1.0, %v12323_v28  ;;  %v15282_v1 = vld [vmem:[#allocation55_spill] sm:$0xff] }
0x1301   : > { %12334 = vrcp.f32 %v9186_v17 }
0x1302   : > { %12336 = vrcp.f32 %v9199_v38 }
0x1307   : > { %v12327_v8 = vpop.eup %12326 }
0x1308   : > { %v12329_v0 = vpop.eup %12328  ;;  %v9207_v14 = vmul.f32 %v12327_v8, %v12321_v7 }
0x1309   : > { %v12331_v33 = vpop.eup %12330  ;;  %v9205_v16 = vmul.f32 %v12329_v0, %v14793_v35 }
0x130a   : > { %v12333_v13 = vpop.eup %12332  ;;  %v9200_v20 = vadd.f32 1.0, %v12331_v33 }
0x130b   : > { %v14871_v30 = vadd.f32 %v9207_v14, %v9205_v16  ;;  %v9208_v25 = vmul.f32 %v12333_v13, %v12325_v43  ;;  %v12335_v11 = vpop.eup %12334  ;;  %v9231_v43 = vunpack.c.h.bf16 %v15283_v49  ;;  %v9232_v14 = vunpack.c.h.bf16 %v15285_v52  ;;  %v9821_v49 = vpop.permute.xlu1 %9820 }
0x130c   : > { %v9206_v35 = vmul.f32 %v12335_v11, %v14797_v15  ;;  %v9809_v15 = vsel %vm9791_vm15, 1, %v15175_v3  ;;  %v12337_v19 = vpop.eup %12336  ;;  %vm9869_vm6 = vcmp.eq.s32.totalorder %v9821_v49, 1 }
0x130d   : > { %12338 = vtanh.f32 %v14871_v30  ;;  %9856 = vperm.xlu0 %11265, %v9809_v15  }
0x130e   : > { %v14879_v12 = vadd.f32 %v9208_v25, %v9206_v35  ;;  %12340 = vrcp.f32 %v9200_v20 }
0x1310   : > { %12342 = vtanh.f32 %v14879_v12 }
0x1317   : > { %v12339_v29 = vpop.eup %12338 }
0x1318   : > { %v12341_v53 = vpop.eup %12340  ;;  %v9213_v18 = vmul.f32 %v12339_v29, %v12337_v19 }
0x131a   : > { %v12343_v56 = vpop.eup %12342 }
0x131b   : > { %v9214_v46 = vmul.f32 %v12343_v56, %v12341_v53  ;;  %v9815_v53 = vpop.permute.xlu0 %9814 }
0x131c   : > { %vm9867_vm4 = vcmp.eq.s32.totalorder %v9815_v53, 1 }
0x131d   : > { %v9215_v27 = vpack.c.bf16 %v9214_v46, %v9213_v18 }
0x131f   : > { %9460 = vmatmul.mubr.bf16.vlgmr.msra.gmra.mrb[124].mxu1 %v9215_v27  ;;  %9503 = vmatmul.mubr.bf16.vlgmr.msra.gmra.mrb[168].mxu0 %v9215_v27 }
0x1320   : > { %11073 = vmatpush3.bf16.msra.mxu1 %v11792_v48  ;;  %11088 = vmatprep.mubr.msk.bf16.mxu1 %vm12583_vm1, %v12582_v41 }
0x1321   : > { %11074 = vmatprep.subr.bf16.mxu1 %v12582_v41 }
0x1324   : > { %11075 = vmatpush3.bf16.msra.mxu1 %v11793_v57 }
0x1325   : > { %11076 = vmatprep.subr.bf16.mxu1 %v12582_v41 }
0x1328   : > { %11077 = vmatpush3.bf16.msra.mxu1 %v11794_v51 }
0x1329   : > { %11078 = vmatprep.subr.bf16.mxu1 %v12582_v41 }
0x132c   : > { %11079 = vmatpush3.bf16.msra.mxu1 %v11795_v36 }
0x132d   : > { %11080 = vmatprep.subr.bf16.mxu1 %v12582_v41 }
0x1330   : > { %11081 = vmatpush3.bf16.msra.mxu1 %v11796_v45  ;;  %v14958_v45 = vld [vmem:[%s15287_s12] ss:$0 sm:$0xff] }
0x1331   : > { %11082 = vmatprep.subr.bf16.mxu1 %v12582_v41 }
0x1334   : > { %11083 = vmatpush3.bf16.msra.mxu1 %v11797_v4 }
0x1335   : > { %11084 = vmatprep.subr.bf16.mxu1 %v12582_v41 }
0x1338   : > { %11085 = vmatpush3.bf16.msra.mxu1 %v11798_v5  ;;  %v9818_v5 = vpop.permute.xlu0 %9817 }
0x1339   : > { %11086 = vmatprep.subr.bf16.mxu1 %v12582_v41  ;;  %vm9868_vm5 = vcmp.eq.s32.totalorder %v9818_v5, 1 }
0x133c   : > { %11087 = vmatpush3.bf16.msra.mxu1 %v11799_v63 }
0x133f   : > { %11089 = vmatmul.mubr.bf16.vlgmr.msra.gmra.mrb[128].mxu1 %v15281_v10 }
0x1340   : > { %11092 = vmatprep.mubr.msk.bf16.mxu1 %vm12583_vm1, %v12582_v41 }
0x1347   : > { %11093 = vmatmul.mubr.bf16.gmra.mrb[132].mxu1 %v15282_v1 }
0x1348   : > { %11096 = vmatprep.mubr.msk.bf16.mxu1 %vm12583_vm1, %v12582_v41 }
0x134f   : > { %11097 = vmatmul.mubr.bf16.gmra.mrb[136].mxu1 %v14524_v61  ;;  %v9776_v61 = vld [vmem:[%s12880_s19 + $0x88] sm:$0xff] }
0x1350   : > { %11100 = vmatprep.mubr.msk.bf16.mxu1 %vm12583_vm1, %v12582_v41  ;;  %vm9794_vm2 = vcmp.gt.f32.partialorder %v9776_v61, 0.0 }
0x1357   : > { %11101 = vmatmul.mubr.bf16.gmra.mrb[140].mxu1 %v14578_v24  ;;  %v9775_v24 = vld [vmem:[%s12880_s19 + $0x80] sm:$0xff] }
0x1358   : > { %11104 = vmatprep.mubr.msk.bf16.mxu1 %vm12583_vm1, %v12582_v41  ;;  %vm9793_vm3 = vcmp.gt.f32.partialorder %v9775_v24, 0.0 }
0x135f   : > { %11105 = vmatmul.mubr.bf16.gmra.mrb[144].mxu1 %v14631_v9  ;;  %v9812_v9 = vsel %vm9794_vm2, 1, %v15175_v3 }
0x1360   : > { %11108 = vmatprep.mubr.msk.bf16.mxu1 %vm12583_vm1, %v12582_v41  ;;  %9865 = vperm.xlu1 %11266, %v9812_v9  }
0x1367   : > { %11109 = vmatmul.mubr.bf16.gmra.mrb[148].mxu1 %v14701_v62  ;;  %v9811_v62 = vsel %vm9793_vm3, 1, %v15175_v3 }
0x1368   : > { %11112 = vmatprep.mubr.msk.bf16.mxu1 %vm12583_vm1, %v12582_v41  ;;  %9862 = vperm.xlu0 %11265, %v9811_v62  }
0x136f   : > { %11113 = vmatmul.mubr.bf16.gmra.mrb[152].mxu1 %v14800_v32  ;;  %v15284_v32 = vld [vmem:[#allocation32_spill] sm:$0xff] }
0x1370   : > { %11116 = vmatprep.mubr.msk.bf16.mxu1 %vm12583_vm1, %v12582_v41  ;;  %v9229_v42 = vunpack.c.l.bf16 %v15284_v32  ;;  %v9233_v3 = vunpack.c.h.bf16 %v15284_v32 }
0x1377   : > { %11117 = vmatmul.mubr.bf16.gmra.mrb[156].mxu1 %v9215_v27 }
0x1378   : > { %11120 = vmatprep.mubr.msk.bf16.mxu1 %vm12583_vm1, %v12582_v41  ;;  %v9230_v41 = vunpack.c.l.bf16 %v15286_v23 }
0x13f2   : > { %v9461_v17 = vpop.f32.mrb[124].mxu1  ;;  %v9504_v31 = vpop.f32.mrb[168].mxu0 }
0x13f3   : > { %v9513_v7 = vadd.f32 %v9461_v17, %v9227_v6  ;;  %v9515_v37 = vadd.f32 %v9504_v31, %v9229_v42  ;;  %v9463_v39 = vpop.f32.mrb[125].mxu1  ;;  %v9506_v28 = vpop.f32.mrb[169].mxu0 }
0x13f4   : > { %v9514_v59 = vadd.f32 %v9463_v39, %v9228_v55  ;;  %v9516_v54 = vadd.f32 %v9506_v28, %v9230_v41  ;;  %v9465_v8 = vpop.f32.mrb[126].mxu1  ;;  %v9508_v0 = vpop.f32.mrb[170].mxu0 }
0x13f5   : > { %v11033_v34 = vmul.f32 -1.442695, %v9513_v7  ;;  %v9517_v33 = vadd.f32 %v9465_v8, %v9231_v43  ;;  %v9519_v16 = vadd.f32 %v9508_v0, %v9233_v3  ;;  %v9467_v13 = vpop.f32.mrb[127].mxu1  ;;  %v9510_v38 = vpop.f32.mrb[171].mxu0 }
0x13f6   : > { %v11035_v2 = vmul.f32 -1.442695, %v9514_v59  ;;  %v9518_v58 = vadd.f32 %v9467_v13, %v9232_v14  ;;  %v9520_v25 = vadd.f32 %v9510_v38, %v9234_v50  ;;  %v11037_v22 = vmul.f32 -1.442695, %v9516_v54  ;;  %v9827_v54 = vpop.permute.xlu0 %9826 }
0x13f7   : > { %12344 = vpow2.f32 %v11033_v34  ;;  %v11034_v11 = vmul.f32 -1.442695, %v9517_v33  ;;  %vm9871_vm8 = vcmp.eq.s32.totalorder %v9827_v54, 1 }
0x13f8   : > { %12346 = vpow2.f32 %v11035_v2  ;;  %v11036_v20 = vmul.f32 -1.442695, %v9518_v58  ;;  %v11038_v44 = vmul.f32 -1.442695, %v9520_v25 }
0x13f9   : > { %12348 = vpow2.f32 %v11034_v11 }
0x13fa   : > { %12350 = vpow2.f32 %v11036_v20 }
0x13fb   : > { %12352 = vtanh.f32 %v9515_v37 }
0x13fc   : > { %12354 = vpow2.f32 %v11037_v22  ;;  %v9833_v22 = vpop.permute.xlu0 %9832 }
0x13fd   : > { %12356 = vtanh.f32 %v9519_v16  ;;  %vm9873_vm10 = vcmp.eq.s32.totalorder %v9833_v22, 1 }
0x1401   : > { %v12345_v21 = vpop.eup %12344 }
0x1402   : > { %v12347_v35 = vpop.eup %12346  ;;  %v9527_v60 = vadd.f32 1.0, %v12345_v21 }
0x1403   : > { %v9539_v26 = vadd.f32 1.0, %v12347_v35  ;;  %v12349_v47 = vpop.eup %12348 }
0x1404   : > { %12358 = vrcp.f32 %v9527_v60  ;;  %v9528_v15 = vadd.f32 1.0, %v12349_v47  ;;  %v12351_v40 = vpop.eup %12350 }
0x1405   : > { %12360 = vrcp.f32 %v9539_v26  ;;  %v9540_v19 = vadd.f32 1.0, %v12351_v40  ;;  %v12353_v29 = vpop.eup %12352 }
0x1406   : > { %12362 = vpow2.f32 %v11038_v44  ;;  %v12355_v56 = vpop.eup %12354 }
0x1407   : > { %12364 = vrcp.f32 %v9528_v15  ;;  %v12357_v18 = vpop.eup %12356  ;;  %v9553_v57 = vadd.f32 1.0, %v12355_v56 }
0x1408   : > { %12366 = vrcp.f32 %v9540_v19 }
0x1409   : > { %12368 = vrcp.f32 %v9553_v57 }
0x140e   : > { %v12359_v46 = vpop.eup %12358 }
0x140f   : > { %v12361_v48 = vpop.eup %12360  ;;  %v9561_v27 = vmul.f32 %v12359_v46, %v12353_v29  ;;  %v9839_v29 = vpop.permute.xlu0 %9838 }
0x1410   : > { %v12363_v51 = vpop.eup %12362  ;;  %v9559_v36 = vmul.f32 %v12361_v48, %v14871_v30  ;;  %vm9875_vm12 = vcmp.eq.s32.totalorder %v9839_v29, 1 }
0x1411   : > { %v12365_v4 = vpop.eup %12364  ;;  %v9554_v24 = vadd.f32 1.0, %v12363_v51 }
0x1412   : > { %v9562_v63 = vmul.f32 %v12365_v4, %v12357_v18  ;;  %v9688_v10 = vpop.f32.mrb[128].mxu1  ;;  %v9563_v1 = vadd.f32 %v9561_v27, %v9559_v36  ;;  %v12367_v61 = vpop.eup %12366 }
0x1413   : > { %v9689_v9 = vadd.f32 %v14958_v45, %v9688_v10  ;;  %v11090_v62 = vpop.f32.mrb[129].mxu1  ;;  %v9560_v30 = vmul.f32 %v12367_v61, %v14879_v12  ;;  %v9824_v12 = vpop.permute.xlu1 %9823 }
0x1414   : > { %v9691_v6 = vpop.f32.mrb[130].mxu1  ;;  %12370 = vtanh.f32 %v9563_v1  ;;  %vm9870_vm7 = vcmp.eq.s32.totalorder %v9824_v12, 1  ;;  %v12369_v37 = vpop.eup %12368 }
0x1415   : > { %v9885_v32 = vsel %vm9867_vm4, %v9689_v9, %v14958_v45  ;;  %v9692_v42 = vadd.f32 %v14958_v45, %v9691_v6  ;;  %v11091_v17 = vpop.f32.mrb[131].mxu1  ;;  %v9564_v31 = vadd.f32 %v9562_v63, %v9560_v30  ;;  %12372 = vrcp.f32 %v9554_v24  ;;  %v9845_v4 = vpop.permute.xlu0 %9844 }
0x1416   : > { %9903 = vst [vmem:[%s14966_s10] sm:$0xff] %v9885_v32  ;;  %vm9877_vm14 = vcmp.eq.s32.totalorder %v9845_v4, 1 }
0x1417   : > { %v9886_v52 = vsel %vm9868_vm5, %v9692_v42, %v14958_v45  ;;  %12374 = vtanh.f32 %v9564_v31  ;;  %v9830_v14 = vpop.permute.xlu1 %9829 }
0x1418   : > { %9904 = vst [vmem:[%s14966_s10 + $0x8] sm:$0xff] %v9886_v52  ;;  %vm9872_vm9 = vcmp.eq.s32.totalorder %v9830_v14, 1 }
0x1419   : > { %v9851_v30 = vpop.permute.xlu0 %9850 }
0x141a   : > { %v9696_v55 = vpop.f32.mrb[132].mxu1  ;;  %vm9879_vm0 = vcmp.eq.s32.totalorder %v9851_v30, 1 }
0x141b   : > { %v9697_v23 = vadd.f32 %v14958_v45, %v9696_v55  ;;  %v11094_v41 = vpop.f32.mrb[133].mxu1  ;;  %v9836_v21 = vpop.permute.xlu1 %9835 }
0x141c   : > { %v9699_v7 = vpop.f32.mrb[134].mxu1  ;;  %vm9874_vm11 = vcmp.eq.s32.totalorder %v9836_v21, 1 }
0x141d   : > { %v9887_v39 = vsel %vm9869_vm6, %v9697_v23, %v14958_v45  ;;  %v9700_v28 = vadd.f32 %v14958_v45, %v9699_v7  ;;  %v11095_v43 = vpop.f32.mrb[135].mxu1  ;;  %v9857_v41 = vpop.permute.xlu0 %9856 }
0x141e   : > { %v12371_v3 = vpop.eup %12370  ;;  %9905 = vst [vmem:[%s14966_s10 + $0x10] sm:$0xff] %v9887_v39  ;;  %vm9881_vm2 = vcmp.eq.s32.totalorder %v9857_v41, 1 }
0x141f   : > { %v9888_v59 = vsel %vm9870_vm7, %v9700_v28, %v14958_v45  ;;  %v9567_v8 = vmul.f32 %v12371_v3, %v12369_v37  ;;  %v12373_v0 = vpop.eup %12372  ;;  %v9842_v53 = vpop.permute.xlu1 %9841 }
0x1420   : > { %9906 = vst [vmem:[%s14966_s10 + $0x18] sm:$0xff] %v9888_v59  ;;  %vm9876_vm13 = vcmp.eq.s32.totalorder %v9842_v53, 1 }
0x1421   : > { %v12375_v50 = vpop.eup %12374 }
0x1422   : > { %v9704_v34 = vpop.f32.mrb[136].mxu1  ;;  %v9568_v13 = vmul.f32 %v12375_v50, %v12373_v0  ;;  %v9863_v0 = vpop.permute.xlu0 %9862 }
0x1423   : > { %v9705_v33 = vadd.f32 %v14958_v45, %v9704_v34  ;;  %v11098_v16 = vpop.f32.mrb[137].mxu1  ;;  %v9848_v5 = vpop.permute.xlu1 %9847  ;;  %vm9883_vm4 = vcmp.eq.s32.totalorder %v9863_v0, 1 }
0x1424   : > { %v9707_v38 = vpop.f32.mrb[138].mxu1  ;;  %v9569_v11 = vpack.c.bf16 %v9568_v13, %v9567_v8  ;;  %vm9878_vm15 = vcmp.eq.s32.totalorder %v9848_v5, 1 }
0x1425   : > { %v9889_v2 = vsel %vm9871_vm8, %v9705_v33, %v14958_v45  ;;  %v9708_v58 = vadd.f32 %v14958_v45, %v9707_v38  ;;  %v11099_v25 = vpop.f32.mrb[139].mxu1 }
0x1426   : > { %9907 = vst [vmem:[%s14966_s10 + $0x20] sm:$0xff] %v9889_v2  ;;  %11121 = vmatmul.mubr.bf16.gmra.mrb[160].mxu1 %v9569_v11 }
0x1427   : > { %v9890_v20 = vsel %vm9872_vm9, %v9708_v58, %v14958_v45  ;;  %v9854_v6 = vpop.permute.xlu1 %9853 }
0x1428   : > { %9908 = vst [vmem:[%s14966_s10 + $0x28] sm:$0xff] %v9890_v20  ;;  %vm9880_vm1 = vcmp.eq.s32.totalorder %v9854_v6, 1 }
0x142a   : > { %v9712_v35 = vpop.f32.mrb[140].mxu1 }
0x142b   : > { %v9713_v60 = vadd.f32 %v14958_v45, %v9712_v35  ;;  %v11102_v44 = vpop.f32.mrb[141].mxu1  ;;  %v9860_v7 = vpop.permute.xlu1 %9859 }
0x142c   : > { %v9715_v26 = vpop.f32.mrb[142].mxu1  ;;  %vm9882_vm3 = vcmp.eq.s32.totalorder %v9860_v7, 1 }
0x142d   : > { %v9891_v47 = vsel %vm9873_vm10, %v9713_v60, %v14958_v45  ;;  %v9716_v15 = vadd.f32 %v14958_v45, %v9715_v26  ;;  %v11103_v40 = vpop.f32.mrb[143].mxu1 }
0x142e   : > { %9909 = vst [vmem:[%s14966_s10 + $0x30] sm:$0xff] %v9891_v47 }
0x142f   : > { %v9892_v19 = vsel %vm9874_vm11, %v9716_v15, %v14958_v45  ;;  %v9866_v50 = vpop.permute.xlu1 %9865 }
0x1430   : > { %9910 = vst [vmem:[%s14966_s10 + $0x38] sm:$0xff] %v9892_v19  ;;  %vm9884_vm5 = vcmp.eq.s32.totalorder %v9866_v50, 1 }
0x1432   : > { %v9720_v56 = vpop.f32.mrb[144].mxu1 }
0x1433   : > { %v9721_v18 = vadd.f32 %v14958_v45, %v9720_v56  ;;  %v11106_v46 = vpop.f32.mrb[145].mxu1 }
0x1434   : > { %v9723_v48 = vpop.f32.mrb[146].mxu1 }
0x1435   : > { %v9893_v27 = vsel %vm9875_vm12, %v9721_v18, %v14958_v45  ;;  %v9724_v57 = vadd.f32 %v14958_v45, %v9723_v48  ;;  %v11107_v51 = vpop.f32.mrb[147].mxu1 }
0x1436   : > { %9911 = vst [vmem:[%s14966_s10 + $0x40] sm:$0xff] %v9893_v27 }
0x1437   : > { %v9894_v36 = vsel %vm9876_vm13, %v9724_v57, %v14958_v45 }
0x1438   : > { %9912 = vst [vmem:[%s14966_s10 + $0x48] sm:$0xff] %v9894_v36 }
0x143a   : > { %v9728_v63 = vpop.f32.mrb[148].mxu1 }
0x143b   : > { %v9729_v10 = vadd.f32 %v14958_v45, %v9728_v63  ;;  %v11110_v1 = vpop.f32.mrb[149].mxu1 }
0x143c   : > { %v9731_v61 = vpop.f32.mrb[150].mxu1 }
0x143d   : > { %v9895_v24 = vsel %vm9877_vm14, %v9729_v10, %v14958_v45  ;;  %v9732_v9 = vadd.f32 %v14958_v45, %v9731_v61  ;;  %v11111_v62 = vpop.f32.mrb[151].mxu1 }
0x143e   : > { %9913 = vst [vmem:[%s14966_s10 + $0x50] sm:$0xff] %v9895_v24 }
0x143f   : > { %v9896_v49 = vsel %vm9878_vm15, %v9732_v9, %v14958_v45 }
0x1440   : > { %9914 = vst [vmem:[%s14966_s10 + $0x58] sm:$0xff] %v9896_v49 }
0x1442   : > { %v9736_v32 = vpop.f32.mrb[152].mxu1 }
0x1443   : > { %v9737_v42 = vadd.f32 %v14958_v45, %v9736_v32  ;;  %v11114_v17 = vpop.f32.mrb[153].mxu1 }
0x1444   : > { %v9739_v31 = vpop.f32.mrb[154].mxu1 }
0x1445   : > { %v9897_v52 = vsel %vm9879_vm0, %v9737_v42, %v14958_v45  ;;  %v9740_v12 = vadd.f32 %v14958_v45, %v9739_v31  ;;  %v11115_v55 = vpop.f32.mrb[155].mxu1 }
0x1446   : > { %9915 = vst [vmem:[%s14966_s10 + $0x60] sm:$0xff] %v9897_v52 }
0x1447   : > { %v9898_v23 = vsel %vm9880_vm1, %v9740_v12, %v14958_v45 }
0x1448   : > { %9916 = vst [vmem:[%s14966_s10 + $0x68] sm:$0xff] %v9898_v23 }
0x144a   : > { %v9744_v37 = vpop.f32.mrb[156].mxu1 }
0x144b   : > { %v9745_v39 = vadd.f32 %v14958_v45, %v9744_v37  ;;  %v11118_v28 = vpop.f32.mrb[157].mxu1 }
0x144c   : > { %v9747_v43 = vpop.f32.mrb[158].mxu1 }
0x144d   : > { %v9899_v3 = vsel %vm9881_vm2, %v9745_v39, %v14958_v45  ;;  %v9748_v59 = vadd.f32 %v14958_v45, %v9747_v43  ;;  %v11119_v54 = vpop.f32.mrb[159].mxu1 }
0x144e   : > { %9917 = vst [vmem:[%s14966_s10 + $0x70] sm:$0xff] %v9899_v3 }
0x144f   : > { %v9900_v8 = vsel %vm9882_vm3, %v9748_v59, %v14958_v45 }
0x1450   : > { %9918 = vst [vmem:[%s14966_s10 + $0x78] sm:$0xff] %v9900_v8 }
0x14f9   : > { %v9752_v14 = vpop.f32.mrb[160].mxu1 }
0x14fa   : > { %v9753_v34 = vadd.f32 %v14958_v45, %v9752_v14  ;;  %v11122_v33 = vpop.f32.mrb[161].mxu1 }
0x14fb   : > { %v9755_v16 = vpop.f32.mrb[162].mxu1 }
0x14fc   : > { %v9901_v13 = vsel %vm9883_vm4, %v9753_v34, %v14958_v45  ;;  %v9756_v38 = vadd.f32 %v14958_v45, %v9755_v16  ;;  %v11123_v2 = vpop.f32.mrb[163].mxu1 }
0x14fd   : > { %9919 = vst [vmem:[%s14966_s10 + $0x80] sm:$0xff] %v9901_v13 }
0x14fe   : > { %v9902_v58 = vsel %vm9884_vm5, %v9756_v38, %v14958_v45 }
0x14ff   : > { %9920 = vst [vmem:[%s14966_s10 + $0x88] sm:$0xff] %v9902_v58 }
0x1500   : > { %s15288_s20 = sld [smem:[#allocation26_spill]]  ;;  %s11054_s22 = sshll.u32 %s12682_s29, 8 }
0x1501   : > { %s9951_s14 = sshll.u32 %s14966_s10, 4  ;;  %s15289_s30 = sld [smem:[#allocation61_spill]]  ;;  %s9952_s14 = int_to_ptr.vmem [resolvable:$true] %s9951_s14 }
0x1502   : > { %s12584_s13 = smov 256   ;;  %s12585_s18 = smov 512  }
0x1503   : > { %s12586_s23 = smov 2   ;;  %s12587_s17 = smov 128  }
0x1504   : > { %s12588_s29 = smov 8   ;;  %s12589_s4 = smov [#allocation17]  }
0x1505   : > { %s12590_s19 = smov 0  }
0x1506   : > { %p15290_p3 = scmp.ne.s32.totalorder %s15288_s20, 0 }
0x1507   : > { %s9934_s16 = scalar_lea.hbm %s15289_s30, %s11054_s22 }
0x1508   : > { %11183 = sst [smem:[#allocation18]] (%p15290_p3), %s12584_s13 }
0x1509   : > { %11184 = sst [smem:[#allocation18 + $0x1]] (%p15290_p3), %s12585_s18 }
0x150a   : > { %11185 = sst [smem:[#allocation18 + $0x2]] (%p15290_p3), %s12586_s23 }
0x150b   : > { %11186 = sst [smem:[#allocation18 + $0x3]] (%p15290_p3), %s12587_s17 }
0x150c   : > { %11187 = sst [smem:[#allocation18 + $0x4]] (%p15290_p3), %s12587_s17 }
0x150d   : > { %11188 = sst [smem:[#allocation18 + $0x5]] (%p15290_p3), %s12588_s29 }
0x150e   : > { %11189 = dma.general (%p15290_p3), %s9952_s14, 2304, %s9934_s16, %s9922_s15, %s12589_s4, [#allocation18], %s12590_s19, 0  }
0x150f PF: > { %s15291_s24 = sld [smem:[#allocation23_spill]]  ;;  %s15292_s12 = sld [smem:[#allocation27_spill]] }
0x1515   : > { %s9979_s10 = sand.u32 1, %s15291_s24   ;;  %p15293_p6 = scmp.ne.s32.totalorder %s15292_s12, 0 }
0x1516   : > { %s9980_s22 = scalar_lea.sflag [#allocation10], %s9979_s10 }
0x1517   : > { %p11205_p10 = pnand %p10109_p5, %p15293_p6 }
0x1519   : > { %12556 = dma.done.wait (!%p11205_p10), %s9980_s22, 2304  }
0x151a   : > { %12558 = vsyncadd (!%p11205_p10), %s9980_s22, 4294964992  ;;  %s15294_s28 = sld [smem:[#allocation24_spill]]  ;;  %s15295_s11 = sld [smem:[#allocation25_spill]] }
0x151b   : > { %s15296_s25 = smov %s12565_s26  ;;  %s15297_s26 = smov %s12569_s27 }
0x1520   : > { %p26_p2 = scmp.ge.s32.totalorder %s15294_s28, 4   ;;  %s15298_s27 = smov %s15295_s11 }
0x1522   :  { %28 = sbr.rel (!%p26_p2) target bundleno = 12 (0xc), region = 240 }
0x1529   :  { %9985 = vsyncpa [#allocation9], 1 }
0x152a   :  { %9987 = vsyncpa [#allocation9 + $0x1], 1 }
0x152b   :  { %9988 = vsyncpa [#allocation12], 1 }
0x152c   :  { %9989 = vsyncpa [#allocation15], 1 }
0x152d   :  { %9990 = vsyncpa [#allocation10], 1 }
0x152e   :  { %9992 = vsyncpa [#allocation10 + $0x1], 1 }

</bundles_post_ra>
